<compile_context>
chip_gen: v5e
topology: v5e:2x2
jax: 0.10.0
libtpu: 0.0.40
codegen_flags: <defaults>
</compile_context>

<pallas_src>
import functools

import numpy as np
import jax
import jax.numpy as jnp
from jax.experimental import pallas as pl
from jax.experimental.pallas import tpu as pltpu

LANE = 128                       # output channels padded to a multiple of this
COMPUTE_DTYPE = jnp.bfloat16     # MXU/VPU operand dtype (accumulation in f32)


# ---------------------------------------------------------------------------
# Generation-aware limits
# ---------------------------------------------------------------------------

@functools.lru_cache(maxsize=1)
def _vmem_limit_bytes():
    """v5e/v6e have 128 MiB physical VMEM (allow 64 MiB scoped); v7x has only
    64 MiB per TensorCore (keep a tighter 44 MiB cap)."""
    try:
        phys = pltpu.get_tpu_info().vmem_capacity_bytes
    except Exception:
        phys = 64 * 1024 * 1024
    return 64 * 1024 * 1024 if phys >= 96 * 1024 * 1024 else 44 * 1024 * 1024


def _pool_block_budget():
    return 8 * (1 << 20) if _vmem_limit_bytes() >= 64 * (1 << 20) else 4 * (1 << 20)


def _compiler_params(semantics):
    return pltpu.CompilerParams(dimension_semantics=semantics,
                                vmem_limit_bytes=_vmem_limit_bytes())


def _largest_divisor(n, cap):
    cap = max(1, min(n, cap))
    for d in range(cap, 0, -1):
        if n % d == 0:
            return d
    return 1


# ---------------------------------------------------------------------------
# Bilinear operator (matches torch F.interpolate(mode='bilinear',
# align_corners=False)); entries are exact in bf16 for power-of-two ratios.
# ---------------------------------------------------------------------------

def _bilinear_matrix_1d(out_size, in_size):
    scale = in_size / out_size
    dst = np.arange(out_size)
    src = np.maximum((dst + 0.5) * scale - 0.5, 0.0)
    i0 = np.minimum(np.floor(src).astype(np.int64), in_size - 1)
    i1 = np.minimum(i0 + 1, in_size - 1)
    lam = (src - i0).astype(np.float32)
    m = np.zeros((out_size, in_size), np.float32)
    m[dst, i0] += 1.0 - lam
    m[dst, i1] += lam
    return m


# ---------------------------------------------------------------------------
# Kernel 1: one-pass (k, k) pooling (avg or max) on a channels-last view.
# View x (B,H,W,C) as (B*H*(W//k), k*C); one band = k image rows = W view rows.
# Window reduced entirely in-kernel with static lane / sublane chunk slices.
# ---------------------------------------------------------------------------

def _pool_kernel(x_ref, o_ref, *, k, nb, width, is_avg):
    ow = width // k
    c = o_ref.shape[-1]
    for band in range(nb):
        base = band * width
        if is_avg:
            r = x_ref[base:base + ow, :].astype(jnp.float32)
            for h in range(1, k):
                r = r + x_ref[base + h * ow:base + (h + 1) * ow, :].astype(jnp.float32)
        else:
            r = x_ref[base:base + ow, :]
            for h in range(1, k):
                r = jnp.maximum(r, x_ref[base + h * ow:base + (h + 1) * ow, :])
        out = r[:, 0:c]
        for j in range(1, k):
            cj = r[:, j * c:(j + 1) * c]
            out = (out + cj) if is_avg else jnp.maximum(out, cj)
        if is_avg:
            out = out * (1.0 / (k * k))
        o_ref[band * ow:(band + 1) * ow, :] = out.astype(o_ref.dtype)


def pool2d(x_nhwc, k, *, is_avg):
    """(B,H,W,C) bf16 -> (B*(H//k)*(W//k), C), rows ordered (b, hq, wq)."""
    B, H, W, C = x_nhwc.shape
    assert H % k == 0 and W % k == 0
    xv = x_nhwc.reshape(B * H * (W // k), k * C)
    n_bands = B * (H // k)
    ow = W // k
    band_bytes = W * k * C * 2
    cap = max(1, min(16, _pool_block_budget() // max(1, band_bytes)))
    nb = n_bands
    for d in range(min(cap, n_bands), 0, -1):
        if n_bands % d == 0 and ((d * ow) % 8 == 0 or d == n_bands):
            nb = d
            break
    cost = pl.CostEstimate(flops=int(B * H * W * C), transcendentals=0,
                           bytes_accessed=int(xv.size * 2 + n_bands * ow * C * 2))
    return pl.pallas_call(
        functools.partial(_pool_kernel, k=k, nb=nb, width=W, is_avg=is_avg),
        grid=(n_bands // nb,),
        in_specs=[pl.BlockSpec((nb * W, k * C), lambda i: (i, 0))],
        out_specs=pl.BlockSpec((nb * ow, C), lambda i: (i, 0)),
        out_shape=jax.ShapeDtypeStruct((n_bands * ow, C), x_nhwc.dtype),
        compiler_params=_compiler_params(("parallel",)),
        cost_estimate=cost,
    )(xv)


# ---------------------------------------------------------------------------
# Kernel 2: conv3x3 (pad 1) + bias + ReLU over a band of P pooled rows with the
# bilinear W-upsample fused as a per-row epilogue matmul.
# The padded band is flattened to ((P+2)*(wp+2), cin); taps are contiguous-row
# slices (2 junk "wrap" rows per pooled row are computed and later ignored).
# ---------------------------------------------------------------------------

def _conv_band_kernel(x_ref, w_ref, b_ref, u_ref, o_ref, *, P, wq, wp, cin, fuse_k):
    m = P * wq - 2                               # extended rows (junk at row ends)
    tn = o_ref.shape[-1]
    if fuse_k:
        taps = [x_ref[0, dy * wq + dx:dy * wq + dx + m, :]
                for dy in range(3) for dx in range(3)]
        im2col = jnp.concatenate(taps, axis=-1)                     # (m, 9*cin)
        acc = jnp.dot(im2col, w_ref[...], preferred_element_type=jnp.float32)
    else:
        acc = jnp.zeros((m, tn), jnp.float32)
        for dy in range(3):
            for dx in range(3):
                tap = x_ref[0, dy * wq + dx:dy * wq + dx + m, :]
                wk = w_ref[(3 * dy + dx) * cin:(3 * dy + dx + 1) * cin, :]
                acc = acc + jnp.dot(tap, wk, preferred_element_type=jnp.float32)
    acc = jnp.maximum(acc + b_ref[...], 0.0).astype(COMPUTE_DTYPE)  # bias + ReLU
    u = u_ref[...]                                                  # (W, wp)
    for p in range(P):                      # fused bilinear W-upsample per row
        seg = acc[p * wq:p * wq + wp, :]                            # (wp, tn)
        o_ref[p] = jnp.dot(u, seg,
                           preferred_element_type=jnp.float32).astype(o_ref.dtype)


def conv3x3_relu_upsample_w(pooled_flat, w, b, *, B, hp, wp, W, cin, cout, cout_p):
    """pooled_flat: (B*hp*wp, cin) channels-last bf16.
    Returns (B*hp, W, cout_p) bf16: conv3x3(pad 1)+bias+ReLU, bilinearly
    upsampled to full width W."""
    wq = wp + 2
    P = _largest_divisor(hp, max(1, min(16, 2048 // wq)))
    T = hp // P

    pooled = pooled_flat.reshape(B, hp, wp, cin)
    xpad = jnp.pad(pooled, ((0, 0), (1, 1), (1, 1), (0, 0)))        # (B,hp+2,wq,cin)
    band_idx = np.arange(T)[:, None] * P + np.arange(P + 2)[None, :]
    xb = jnp.take(xpad, jnp.asarray(band_idx.reshape(-1)), axis=1)
    xb = xb.reshape(B * T, (P + 2) * wq, cin)

    wmat = jnp.transpose(w, (2, 3, 1, 0)).reshape(9 * cin, cout)    # rows (dy,dx,c)
    wmat = jnp.pad(wmat, ((0, 0), (0, cout_p - cout))).astype(COMPUTE_DTYPE)
    bias = jnp.pad(b, (0, cout_p - cout)).reshape(1, cout_p).astype(jnp.float32)
    umat = jnp.asarray(_bilinear_matrix_1d(W, wp), COMPUTE_DTYPE)   # (W, wp)

    tn = 256 if cout_p % 256 == 0 else LANE
    nj = cout_p // tn
    fuse_k = (cin % LANE == 0)   # single K=9*cin matmul when lane-aligned

    cost = pl.CostEstimate(
        flops=int(2 * B * hp * wq * 9 * cin * cout_p + 2 * B * hp * W * wp * cout_p),
        transcendentals=0,
        bytes_accessed=int(B * T * (P + 2) * wq * cin * 2 * nj
                           + B * 9 * cin * cout_p * 2
                           + B * hp * W * cout_p * 2))

    kernel = functools.partial(_conv_band_kernel, P=P, wq=wq, wp=wp, cin=cin,
                               fuse_k=fuse_k)
    return pl.pallas_call(
        kernel,
        grid=(B, nj, T),          # channel tile outside the band sweep -> resident weights
        in_specs=[
            pl.BlockSpec((1, (P + 2) * wq, cin), lambda bi, j, t: (bi * T + t, 0, 0)),
            pl.BlockSpec((9 * cin, tn), lambda bi, j, t: (0, j)),
            pl.BlockSpec((1, tn), lambda bi, j, t: (0, j)),
            pl.BlockSpec((W, wp), lambda bi, j, t: (0, 0)),
        ],
        out_specs=pl.BlockSpec((P, W, tn), lambda bi, j, t: (bi * T + t, 0, j)),
        out_shape=jax.ShapeDtypeStruct((B * hp, W, cout_p), COMPUTE_DTYPE),
        compiler_params=_compiler_params(("parallel", "parallel", "parallel")),
        cost_estimate=cost,
    )(xb, wmat, bias, umat)


# ---------------------------------------------------------------------------
# Kernel 3: bilinear H-upsample as a 2-tap lerp (pure VPU).  Each grid step
# fetches a block of `pin` pooled rows plus clamped prev/next halo rows and
# emits the pin*s corresponding output rows with static per-row lambdas.
# ---------------------------------------------------------------------------

def _upsample_h_kernel(prv_ref, cur_ref, nxt_ref, o_ref, *, s, pin):
    prv = prv_ref[0].astype(jnp.float32)
    nxt = nxt_ref[0].astype(jnp.float32)
    for k in range(pin):
        mid = cur_ref[k].astype(jnp.float32)
        below = cur_ref[k - 1].astype(jnp.float32) if k > 0 else prv
        above = cur_ref[k + 1].astype(jnp.float32) if k + 1 < pin else nxt
        for r in range(s):
            d = (r + 0.5) / s - 0.5
            if d < 0.0:
                row = (-d) * below + (1.0 + d) * mid
            else:
                row = (1.0 - d) * mid + d * above
            o_ref[k * s + r] = row.astype(o_ref.dtype)


def upsample_h(y, *, B, hp, H):
    """y: (B*hp, W, cp) bf16 -> (B*H, W, cp) bf16 (align_corners=False)."""
    rows, W, cp = y.shape
    assert rows == B * hp
    s = H // hp
    assert s * hp == H
    if s == 1:
        return y
    tc = 256 if cp % 256 == 0 else LANE
    nj = cp // tc
    pin = _largest_divisor(hp, max(1, 16 // s))
    T = hp // pin

    cost = pl.CostEstimate(
        flops=int(3 * B * H * W * cp), transcendentals=0,
        bytes_accessed=int((B * hp * (1.0 + 2.0 / pin) + B * H) * W * cp * 2))
    kernel = functools.partial(_upsample_h_kernel, s=s, pin=pin)
    return pl.pallas_call(
        kernel,
        grid=(B, T, nj),
        in_specs=[
            pl.BlockSpec((1, W, tc),
                         lambda b, t, j: (b * hp + jnp.maximum(t * pin - 1, 0), 0, j)),
            pl.BlockSpec((pin, W, tc), lambda b, t, j: (b * T + t, 0, j)),
            pl.BlockSpec((1, W, tc),
                         lambda b, t, j: (b * hp + jnp.minimum((t + 1) * pin, hp - 1), 0, j)),
        ],
        out_specs=pl.BlockSpec((pin * s, W, tc), lambda b, t, j: (b * T + t, 0, j)),
        out_shape=jax.ShapeDtypeStruct((B * H, W, cp), y.dtype),
        compiler_params=_compiler_params(("parallel", "parallel", "parallel")),
        cost_estimate=cost,
    )(y, y, y)


# ---------------------------------------------------------------------------
# Module forward
# ---------------------------------------------------------------------------

def bottleneck_enhancer_forward(x, params):
    """x: (B, Cin, H, W) float32 (PyTorch NCHW).  Returns (B, 4*Cout, H, W) f32."""
    B, cin, H, W = x.shape
    assert H % 8 == 0 and W % 8 == 0, "H and W must be divisible by 8"
    cout = params["w_global"].shape[0]
    cout_p = ((cout + LANE - 1) // LANE) * LANE

    # bf16 cast BEFORE the boundary transpose (halves the transpose traffic).
    x_nhwc = jnp.transpose(x.astype(COMPUTE_DTYPE), (0, 2, 3, 1))   # (B,H,W,cin)

    # ---- pooling branches: one single-pass kernel each ----
    p8 = pool2d(x_nhwc, 8, is_avg=True)     # (B*(H/8)*(W/8), cin)
    p4 = pool2d(x_nhwc, 4, is_avg=True)     # (B*(H/4)*(W/4), cin)
    p2 = pool2d(x_nhwc, 2, is_avg=False)    # (B*(H/2)*(W/2), cin)  2x2 max

    # ---- global branch (special-cased): conv3x3(pad 1) on a 1x1 map is the
    # centre tap only; bilinear upsample of 1x1 is a broadcast.  Tiny -> XLA.
    pg = p8.astype(jnp.float32).reshape(B, -1, cin).mean(axis=1)    # (B, cin)
    w_c = params["w_global"][:, :, 1, 1].astype(COMPUTE_DTYPE).astype(jnp.float32)
    g = jax.nn.relu(pg @ w_c.T + params["b_global"]).astype(COMPUTE_DTYPE)

    def branch(pooled, k, w, b):
        hp, wp = H // k, W // k
        y = conv3x3_relu_upsample_w(pooled, w, b, B=B, hp=hp, wp=wp, W=W,
                                    cin=cin, cout=cout, cout_p=cout_p)
        y = upsample_h(y, B=B, hp=hp, H=H)
        return y.reshape(B, H, W, cout_p)

    y8 = branch(p8, 8, params["w_avg8"], params["b_avg8"])
    y4 = branch(p4, 4, params["w_avg4"], params["b_avg4"])
    y2 = branch(p2, 2, params["w_max2"], params["b_max2"])

    # Channel order matches torch.cat([glob, x8, x4, x2], dim=1).  Concat +
    # transpose run in bf16; single f32 cast at the very end.
    # TODO(synk): write each branch directly into its channel slice of a shared
    # (B,H,W,4*cout_p) buffer via input_output_aliases to skip this concat pass.
    g_b = jnp.broadcast_to(g[:, None, None, :], (B, H, W, cout))
    out = jnp.concatenate(
        [g_b, y8[..., :cout], y4[..., :cout], y2[..., :cout]], axis=-1)
    return jnp.transpose(out, (0, 3, 1, 2)).astype(jnp.float32)


def init_params(key, input_channel, output_channel):
    ks = jax.random.split(key, 8)

    def w(k):
        return 0.1 * jax.random.normal(
            k, (output_channel, input_channel, 3, 3), jnp.float32)

    def b(k):
        return 0.05 * jax.random.normal(k, (output_channel,), jnp.float32)

    return {
        "w_global": w(ks[0]), "b_global": b(ks[1]),
        "w_avg8":   w(ks[2]), "b_avg8":   b(ks[3]),
        "w_avg4":   w(ks[4]), "b_avg4":   b(ks[5]),
        "w_max2":   w(ks[6]), "b_max2":   b(ks[7]),
    }


# ---------------------------------------------------------------------------
# Pure-JAX (XLA) float32 reference of the PyTorch module, for validation.
# ---------------------------------------------------------------------------

def _reference_forward(x, params):
    B, cin, H, W = x.shape

    def conv_relu(v, w, b):
        y = jax.lax.conv_general_dilated(
            v, w, window_strides=(1, 1), padding=((1, 1), (1, 1)),
            dimension_numbers=("NCHW", "OIHW", "NCHW"))
        return jax.nn.relu(y + b[None, :, None, None])

    def avg_pool(v, k):
        Bv, C, Hv, Wv = v.shape
        return v.reshape(Bv, C, Hv // k, k, Wv // k, k).mean(axis=(3, 5))

    def max_pool(v, k):
        Bv, C, Hv, Wv = v.shape
        return v.reshape(Bv, C, Hv // k, k, Wv // k, k).max(axis=(3, 5))

    def upsample(v):
        _, _, h, w = v.shape
        mr = jnp.asarray(_bilinear_matrix_1d(H, h))
        mc = jnp.asarray(_bilinear_matrix_1d(W, w))
        return jnp.einsum("Hh,bchw,Ww->bcHW", mr, v, mc)

    glob = upsample(conv_relu(x.mean(axis=(2, 3), keepdims=True),
                              params["w_global"], params["b_global"]))
    x8 = upsample(conv_relu(avg_pool(x, 8), params["w_avg8"], params["b_avg8"]))
    x4 = upsample(conv_relu(avg_pool(x, 4), params["w_avg4"], params["b_avg4"]))
    x2 = upsample(conv_relu(max_pool(x, 2), params["w_max2"], params["b_max2"]))
    return jnp.concatenate([glob, x8, x4, x2], axis=1)


if __name__ == "__main__":
    key = jax.random.PRNGKey(0)
    k_x, k_p = jax.random.split(key)

    B, Cin, Cout, H, W = 2, 4, 4, 16, 16
    x = jax.random.normal(k_x, (B, Cin, H, W), jnp.float32)
    params = init_params(k_p, Cin, Cout)

    fwd = jax.jit(bottleneck_enhancer_forward)
    out = jax.block_until_ready(fwd(x, params))

    assert out.shape == (B, 4 * Cout, H, W)
    assert out.dtype == jnp.float32
    assert bool(jnp.all(jnp.isfinite(out)))

    # Validate against a pure-JAX f32 reference evaluated on the same
    # bf16-rounded inputs (the kernels use bf16 operands, f32 accumulation).
    x_r = x.astype(jnp.bfloat16).astype(jnp.float32)
    params_r = jax.tree_util.tree_map(
        lambda v: v.astype(jnp.bfloat16).astype(jnp.float32), params)
    ref = _reference_forward(x_r, params_r)
    assert bool(jnp.allclose(out, ref, rtol=5e-2, atol=5e-2)), (
        "max |err| = %f" % float(jnp.max(jnp.abs(out - ref))))

    print("KERNEL_OK")
</pallas_src>

<mosaic_0001>
module attributes {stable_mosaic.version = 11 : i64} {
  func.func @_pool_kernel(%arg0: i32, %arg1: memref<64x32xbf16, #tpu.memory_space<vmem>>, %arg2: memref<8x4xbf16, #tpu.memory_space<vmem>>) attributes {dimension_semantics = [#tpu.dimension_semantics<parallel>], iteration_bounds = array<i64: 1>, scalar_prefetch = 0 : i64, scratch_operands = 0 : i64, tpu.core_type = #tpu.core_type<tc>, window_params = [{transform_indices = @transform_0, window_bounds = array<i64: 64, 32>}, {transform_indices = @transform_1, window_bounds = array<i64: 8, 4>}]} {
    %c0 = arith.constant 0 : index
    %c0_0 = arith.constant 0 : index
    %0 = vector.load %arg1[%c0, %c0_0] : memref<64x32xbf16, #tpu.memory_space<vmem>>, vector<2x32xbf16>
    %1 = arith.extf %0 : vector<2x32xbf16> to vector<2x32xf32>
    %c2 = arith.constant 2 : index
    %c0_1 = arith.constant 0 : index
    %2 = vector.load %arg1[%c2, %c0_1] : memref<64x32xbf16, #tpu.memory_space<vmem>>, vector<2x32xbf16>
    %3 = arith.extf %2 : vector<2x32xbf16> to vector<2x32xf32>
    %4 = arith.addf %1, %3 : vector<2x32xf32>
    %c4 = arith.constant 4 : index
    %c0_2 = arith.constant 0 : index
    %5 = vector.load %arg1[%c4, %c0_2] : memref<64x32xbf16, #tpu.memory_space<vmem>>, vector<2x32xbf16>
    %6 = arith.extf %5 : vector<2x32xbf16> to vector<2x32xf32>
    %7 = arith.addf %4, %6 : vector<2x32xf32>
    %c6 = arith.constant 6 : index
    %c0_3 = arith.constant 0 : index
    %8 = vector.load %arg1[%c6, %c0_3] : memref<64x32xbf16, #tpu.memory_space<vmem>>, vector<2x32xbf16>
    %9 = arith.extf %8 : vector<2x32xbf16> to vector<2x32xf32>
    %10 = arith.addf %7, %9 : vector<2x32xf32>
    %c8 = arith.constant 8 : index
    %c0_4 = arith.constant 0 : index
    %11 = vector.load %arg1[%c8, %c0_4] : memref<64x32xbf16, #tpu.memory_space<vmem>>, vector<2x32xbf16>
    %12 = arith.extf %11 : vector<2x32xbf16> to vector<2x32xf32>
    %13 = arith.addf %10, %12 : vector<2x32xf32>
    %c10 = arith.constant 10 : index
    %c0_5 = arith.constant 0 : index
    %14 = vector.load %arg1[%c10, %c0_5] : memref<64x32xbf16, #tpu.memory_space<vmem>>, vector<2x32xbf16>
    %15 = arith.extf %14 : vector<2x32xbf16> to vector<2x32xf32>
    %16 = arith.addf %13, %15 : vector<2x32xf32>
    %c12 = arith.constant 12 : index
    %c0_6 = arith.constant 0 : index
    %17 = vector.load %arg1[%c12, %c0_6] : memref<64x32xbf16, #tpu.memory_space<vmem>>, vector<2x32xbf16>
    %18 = arith.extf %17 : vector<2x32xbf16> to vector<2x32xf32>
    %19 = arith.addf %16, %18 : vector<2x32xf32>
    %c14 = arith.constant 14 : index
    %c0_7 = arith.constant 0 : index
    %20 = vector.load %arg1[%c14, %c0_7] : memref<64x32xbf16, #tpu.memory_space<vmem>>, vector<2x32xbf16>
    %21 = arith.extf %20 : vector<2x32xbf16> to vector<2x32xf32>
    %22 = arith.addf %19, %21 : vector<2x32xf32>
    %23 = vector.extract_strided_slice %22 {offsets = [0, 0], sizes = [2, 4], strides = [1, 1]} : vector<2x32xf32> to vector<2x4xf32>
    %24 = vector.extract_strided_slice %22 {offsets = [0, 4], sizes = [2, 4], strides = [1, 1]} : vector<2x32xf32> to vector<2x4xf32>
    %25 = arith.addf %23, %24 : vector<2x4xf32>
    %26 = vector.extract_strided_slice %22 {offsets = [0, 8], sizes = [2, 4], strides = [1, 1]} : vector<2x32xf32> to vector<2x4xf32>
    %27 = arith.addf %25, %26 : vector<2x4xf32>
    %28 = vector.extract_strided_slice %22 {offsets = [0, 12], sizes = [2, 4], strides = [1, 1]} : vector<2x32xf32> to vector<2x4xf32>
    %29 = arith.addf %27, %28 : vector<2x4xf32>
    %30 = vector.extract_strided_slice %22 {offsets = [0, 16], sizes = [2, 4], strides = [1, 1]} : vector<2x32xf32> to vector<2x4xf32>
    %31 = arith.addf %29, %30 : vector<2x4xf32>
    %32 = vector.extract_strided_slice %22 {offsets = [0, 20], sizes = [2, 4], strides = [1, 1]} : vector<2x32xf32> to vector<2x4xf32>
    %33 = arith.addf %31, %32 : vector<2x4xf32>
    %34 = vector.extract_strided_slice %22 {offsets = [0, 24], sizes = [2, 4], strides = [1, 1]} : vector<2x32xf32> to vector<2x4xf32>
    %35 = arith.addf %33, %34 : vector<2x4xf32>
    %36 = vector.extract_strided_slice %22 {offsets = [0, 28], sizes = [2, 4], strides = [1, 1]} : vector<2x32xf32> to vector<2x4xf32>
    %37 = arith.addf %35, %36 : vector<2x4xf32>
    %cst = arith.constant 1.562500e-02 : f32
    %38 = vector.broadcast %cst : f32 to vector<2x4xf32>
    %39 = arith.mulf %37, %38 : vector<2x4xf32>
    %40 = arith.truncf %39 : vector<2x4xf32> to vector<2x4xbf16>
    %c0_8 = arith.constant 0 : index
    %c0_9 = arith.constant 0 : index
    %41 = vector.load %arg2[%c0_8, %c0_9] : memref<8x4xbf16, #tpu.memory_space<vmem>>, vector<2x4xbf16>
    tpu.vector_store %arg2[%c0_8, %c0_9], %40 {strides = array<i32>} : memref<8x4xbf16, #tpu.memory_space<vmem>>, vector<2x4xbf16>,
    %c16 = arith.constant 16 : index
    %c0_10 = arith.constant 0 : index
    %42 = vector.load %arg1[%c16, %c0_10] : memref<64x32xbf16, #tpu.memory_space<vmem>>, vector<2x32xbf16>
    %43 = arith.extf %42 : vector<2x32xbf16> to vector<2x32xf32>
    %c18 = arith.constant 18 : index
    %c0_11 = arith.constant 0 : index
    %44 = vector.load %arg1[%c18, %c0_11] : memref<64x32xbf16, #tpu.memory_space<vmem>>, vector<2x32xbf16>
    %45 = arith.extf %44 : vector<2x32xbf16> to vector<2x32xf32>
    %46 = arith.addf %43, %45 : vector<2x32xf32>
    %c20 = arith.constant 20 : index
    %c0_12 = arith.constant 0 : index
    %47 = vector.load %arg1[%c20, %c0_12] : memref<64x32xbf16, #tpu.memory_space<vmem>>, vector<2x32xbf16>
    %48 = arith.extf %47 : vector<2x32xbf16> to vector<2x32xf32>
    %49 = arith.addf %46, %48 : vector<2x32xf32>
    %c22 = arith.constant 22 : index
    %c0_13 = arith.constant 0 : index
    %50 = vector.load %arg1[%c22, %c0_13] : memref<64x32xbf16, #tpu.memory_space<vmem>>, vector<2x32xbf16>
    %51 = arith.extf %50 : vector<2x32xbf16> to vector<2x32xf32>
    %52 = arith.addf %49, %51 : vector<2x32xf32>
    %c24 = arith.constant 24 : index
    %c0_14 = arith.constant 0 : index
    %53 = vector.load %arg1[%c24, %c0_14] : memref<64x32xbf16, #tpu.memory_space<vmem>>, vector<2x32xbf16>
    %54 = arith.extf %53 : vector<2x32xbf16> to vector<2x32xf32>
    %55 = arith.addf %52, %54 : vector<2x32xf32>
    %c26 = arith.constant 26 : index
    %c0_15 = arith.constant 0 : index
    %56 = vector.load %arg1[%c26, %c0_15] : memref<64x32xbf16, #tpu.memory_space<vmem>>, vector<2x32xbf16>
    %57 = arith.extf %56 : vector<2x32xbf16> to vector<2x32xf32>
    %58 = arith.addf %55, %57 : vector<2x32xf32>
    %c28 = arith.constant 28 : index
    %c0_16 = arith.constant 0 : index
    %59 = vector.load %arg1[%c28, %c0_16] : memref<64x32xbf16, #tpu.memory_space<vmem>>, vector<2x32xbf16>
    %60 = arith.extf %59 : vector<2x32xbf16> to vector<2x32xf32>
    %61 = arith.addf %58, %60 : vector<2x32xf32>
    %c30 = arith.constant 30 : index
    %c0_17 = arith.constant 0 : index
    %62 = vector.load %arg1[%c30, %c0_17] : memref<64x32xbf16, #tpu.memory_space<vmem>>, vector<2x32xbf16>
    %63 = arith.extf %62 : vector<2x32xbf16> to vector<2x32xf32>
    %64 = arith.addf %61, %63 : vector<2x32xf32>
    %65 = vector.extract_strided_slice %64 {offsets = [0, 0], sizes = [2, 4], strides = [1, 1]} : vector<2x32xf32> to vector<2x4xf32>
    %66 = vector.extract_strided_slice %64 {offsets = [0, 4], sizes = [2, 4], strides = [1, 1]} : vector<2x32xf32> to vector<2x4xf32>
    %67 = arith.addf %65, %66 : vector<2x4xf32>
    %68 = vector.extract_strided_slice %64 {offsets = [0, 8], sizes = [2, 4], strides = [1, 1]} : vector<2x32xf32> to vector<2x4xf32>
    %69 = arith.addf %67, %68 : vector<2x4xf32>
    %70 = vector.extract_strided_slice %64 {offsets = [0, 12], sizes = [2, 4], strides = [1, 1]} : vector<2x32xf32> to vector<2x4xf32>
    %71 = arith.addf %69, %70 : vector<2x4xf32>
    %72 = vector.extract_strided_slice %64 {offsets = [0, 16], sizes = [2, 4], strides = [1, 1]} : vector<2x32xf32> to vector<2x4xf32>
    %73 = arith.addf %71, %72 : vector<2x4xf32>
    %74 = vector.extract_strided_slice %64 {offsets = [0, 20], sizes = [2, 4], strides = [1, 1]} : vector<2x32xf32> to vector<2x4xf32>
    %75 = arith.addf %73, %74 : vector<2x4xf32>
    %76 = vector.extract_strided_slice %64 {offsets = [0, 24], sizes = [2, 4], strides = [1, 1]} : vector<2x32xf32> to vector<2x4xf32>
    %77 = arith.addf %75, %76 : vector<2x4xf32>
    %78 = vector.extract_strided_slice %64 {offsets = [0, 28], sizes = [2, 4], strides = [1, 1]} : vector<2x32xf32> to vector<2x4xf32>
    %79 = arith.addf %77, %78 : vector<2x4xf32>
    %cst_18 = arith.constant 1.562500e-02 : f32
    %80 = vector.broadcast %cst_18 : f32 to vector<2x4xf32>
    %81 = arith.mulf %79, %80 : vector<2x4xf32>
    %82 = arith.truncf %81 : vector<2x4xf32> to vector<2x4xbf16>
    %c2_19 = arith.constant 2 : index
    %c0_20 = arith.constant 0 : index
    %83 = vector.load %arg2[%c2_19, %c0_20] : memref<8x4xbf16, #tpu.memory_space<vmem>>, vector<2x4xbf16>
    tpu.vector_store %arg2[%c2_19, %c0_20], %82 {strides = array<i32>} : memref<8x4xbf16, #tpu.memory_space<vmem>>, vector<2x4xbf16>,
    %c32 = arith.constant 32 : index
    %c0_21 = arith.constant 0 : index
    %84 = vector.load %arg1[%c32, %c0_21] : memref<64x32xbf16, #tpu.memory_space<vmem>>, vector<2x32xbf16>
    %85 = arith.extf %84 : vector<2x32xbf16> to vector<2x32xf32>
    %c34 = arith.constant 34 : index
    %c0_22 = arith.constant 0 : index
    %86 = vector.load %arg1[%c34, %c0_22] : memref<64x32xbf16, #tpu.memory_space<vmem>>, vector<2x32xbf16>
    %87 = arith.extf %86 : vector<2x32xbf16> to vector<2x32xf32>
    %88 = arith.addf %85, %87 : vector<2x32xf32>
    %c36 = arith.constant 36 : index
    %c0_23 = arith.constant 0 : index
    %89 = vector.load %arg1[%c36, %c0_23] : memref<64x32xbf16, #tpu.memory_space<vmem>>, vector<2x32xbf16>
    %90 = arith.extf %89 : vector<2x32xbf16> to vector<2x32xf32>
    %91 = arith.addf %88, %90 : vector<2x32xf32>
    %c38 = arith.constant 38 : index
    %c0_24 = arith.constant 0 : index
    %92 = vector.load %arg1[%c38, %c0_24] : memref<64x32xbf16, #tpu.memory_space<vmem>>, vector<2x32xbf16>
    %93 = arith.extf %92 : vector<2x32xbf16> to vector<2x32xf32>
    %94 = arith.addf %91, %93 : vector<2x32xf32>
    %c40 = arith.constant 40 : index
    %c0_25 = arith.constant 0 : index
    %95 = vector.load %arg1[%c40, %c0_25] : memref<64x32xbf16, #tpu.memory_space<vmem>>, vector<2x32xbf16>
    %96 = arith.extf %95 : vector<2x32xbf16> to vector<2x32xf32>
    %97 = arith.addf %94, %96 : vector<2x32xf32>
    %c42 = arith.constant 42 : index
    %c0_26 = arith.constant 0 : index
    %98 = vector.load %arg1[%c42, %c0_26] : memref<64x32xbf16, #tpu.memory_space<vmem>>, vector<2x32xbf16>
    %99 = arith.extf %98 : vector<2x32xbf16> to vector<2x32xf32>
    %100 = arith.addf %97, %99 : vector<2x32xf32>
    %c44 = arith.constant 44 : index
    %c0_27 = arith.constant 0 : index
    %101 = vector.load %arg1[%c44, %c0_27] : memref<64x32xbf16, #tpu.memory_space<vmem>>, vector<2x32xbf16>
    %102 = arith.extf %101 : vector<2x32xbf16> to vector<2x32xf32>
    %103 = arith.addf %100, %102 : vector<2x32xf32>
    %c46 = arith.constant 46 : index
    %c0_28 = arith.constant 0 : index
    %104 = vector.load %arg1[%c46, %c0_28] : memref<64x32xbf16, #tpu.memory_space<vmem>>, vector<2x32xbf16>
    %105 = arith.extf %104 : vector<2x32xbf16> to vector<2x32xf32>
    %106 = arith.addf %103, %105 : vector<2x32xf32>
    %107 = vector.extract_strided_slice %106 {offsets = [0, 0], sizes = [2, 4], strides = [1, 1]} : vector<2x32xf32> to vector<2x4xf32>
    %108 = vector.extract_strided_slice %106 {offsets = [0, 4], sizes = [2, 4], strides = [1, 1]} : vector<2x32xf32> to vector<2x4xf32>
    %109 = arith.addf %107, %108 : vector<2x4xf32>
    %110 = vector.extract_strided_slice %106 {offsets = [0, 8], sizes = [2, 4], strides = [1, 1]} : vector<2x32xf32> to vector<2x4xf32>
    %111 = arith.addf %109, %110 : vector<2x4xf32>
    %112 = vector.extract_strided_slice %106 {offsets = [0, 12], sizes = [2, 4], strides = [1, 1]} : vector<2x32xf32> to vector<2x4xf32>
    %113 = arith.addf %111, %112 : vector<2x4xf32>
    %114 = vector.extract_strided_slice %106 {offsets = [0, 16], sizes = [2, 4], strides = [1, 1]} : vector<2x32xf32> to vector<2x4xf32>
    %115 = arith.addf %113, %114 : vector<2x4xf32>
    %116 = vector.extract_strided_slice %106 {offsets = [0, 20], sizes = [2, 4], strides = [1, 1]} : vector<2x32xf32> to vector<2x4xf32>
    %117 = arith.addf %115, %116 : vector<2x4xf32>
    %118 = vector.extract_strided_slice %106 {offsets = [0, 24], sizes = [2, 4], strides = [1, 1]} : vector<2x32xf32> to vector<2x4xf32>
    %119 = arith.addf %117, %118 : vector<2x4xf32>
    %120 = vector.extract_strided_slice %106 {offsets = [0, 28], sizes = [2, 4], strides = [1, 1]} : vector<2x32xf32> to vector<2x4xf32>
    %121 = arith.addf %119, %120 : vector<2x4xf32>
    %cst_29 = arith.constant 1.562500e-02 : f32
    %122 = vector.broadcast %cst_29 : f32 to vector<2x4xf32>
    %123 = arith.mulf %121, %122 : vector<2x4xf32>
    %124 = arith.truncf %123 : vector<2x4xf32> to vector<2x4xbf16>
    %c4_30 = arith.constant 4 : index
    %c0_31 = arith.constant 0 : index
    %125 = vector.load %arg2[%c4_30, %c0_31] : memref<8x4xbf16, #tpu.memory_space<vmem>>, vector<2x4xbf16>
    tpu.vector_store %arg2[%c4_30, %c0_31], %124 {strides = array<i32>} : memref<8x4xbf16, #tpu.memory_space<vmem>>, vector<2x4xbf16>,
    %c48 = arith.constant 48 : index
    %c0_32 = arith.constant 0 : index
    %126 = vector.load %arg1[%c48, %c0_32] : memref<64x32xbf16, #tpu.memory_space<vmem>>, vector<2x32xbf16>
    %127 = arith.extf %126 : vector<2x32xbf16> to vector<2x32xf32>
    %c50 = arith.constant 50 : index
    %c0_33 = arith.constant 0 : index
    %128 = vector.load %arg1[%c50, %c0_33] : memref<64x32xbf16, #tpu.memory_space<vmem>>, vector<2x32xbf16>
    %129 = arith.extf %128 : vector<2x32xbf16> to vector<2x32xf32>
    %130 = arith.addf %127, %129 : vector<2x32xf32>
    %c52 = arith.constant 52 : index
    %c0_34 = arith.constant 0 : index
    %131 = vector.load %arg1[%c52, %c0_34] : memref<64x32xbf16, #tpu.memory_space<vmem>>, vector<2x32xbf16>
    %132 = arith.extf %131 : vector<2x32xbf16> to vector<2x32xf32>
    %133 = arith.addf %130, %132 : vector<2x32xf32>
    %c54 = arith.constant 54 : index
    %c0_35 = arith.constant 0 : index
    %134 = vector.load %arg1[%c54, %c0_35] : memref<64x32xbf16, #tpu.memory_space<vmem>>, vector<2x32xbf16>
    %135 = arith.extf %134 : vector<2x32xbf16> to vector<2x32xf32>
    %136 = arith.addf %133, %135 : vector<2x32xf32>
    %c56 = arith.constant 56 : index
    %c0_36 = arith.constant 0 : index
    %137 = vector.load %arg1[%c56, %c0_36] : memref<64x32xbf16, #tpu.memory_space<vmem>>, vector<2x32xbf16>
    %138 = arith.extf %137 : vector<2x32xbf16> to vector<2x32xf32>
    %139 = arith.addf %136, %138 : vector<2x32xf32>
    %c58 = arith.constant 58 : index
    %c0_37 = arith.constant 0 : index
    %140 = vector.load %arg1[%c58, %c0_37] : memref<64x32xbf16, #tpu.memory_space<vmem>>, vector<2x32xbf16>
    %141 = arith.extf %140 : vector<2x32xbf16> to vector<2x32xf32>
    %142 = arith.addf %139, %141 : vector<2x32xf32>
    %c60 = arith.constant 60 : index
    %c0_38 = arith.constant 0 : index
    %143 = vector.load %arg1[%c60, %c0_38] : memref<64x32xbf16, #tpu.memory_space<vmem>>, vector<2x32xbf16>
    %144 = arith.extf %143 : vector<2x32xbf16> to vector<2x32xf32>
    %145 = arith.addf %142, %144 : vector<2x32xf32>
    %c62 = arith.constant 62 : index
    %c0_39 = arith.constant 0 : index
    %146 = vector.load %arg1[%c62, %c0_39] : memref<64x32xbf16, #tpu.memory_space<vmem>>, vector<2x32xbf16>
    %147 = arith.extf %146 : vector<2x32xbf16> to vector<2x32xf32>
    %148 = arith.addf %145, %147 : vector<2x32xf32>
    %149 = vector.extract_strided_slice %148 {offsets = [0, 0], sizes = [2, 4], strides = [1, 1]} : vector<2x32xf32> to vector<2x4xf32>
    %150 = vector.extract_strided_slice %148 {offsets = [0, 4], sizes = [2, 4], strides = [1, 1]} : vector<2x32xf32> to vector<2x4xf32>
    %151 = arith.addf %149, %150 : vector<2x4xf32>
    %152 = vector.extract_strided_slice %148 {offsets = [0, 8], sizes = [2, 4], strides = [1, 1]} : vector<2x32xf32> to vector<2x4xf32>
    %153 = arith.addf %151, %152 : vector<2x4xf32>
    %154 = vector.extract_strided_slice %148 {offsets = [0, 12], sizes = [2, 4], strides = [1, 1]} : vector<2x32xf32> to vector<2x4xf32>
    %155 = arith.addf %153, %154 : vector<2x4xf32>
    %156 = vector.extract_strided_slice %148 {offsets = [0, 16], sizes = [2, 4], strides = [1, 1]} : vector<2x32xf32> to vector<2x4xf32>
    %157 = arith.addf %155, %156 : vector<2x4xf32>
    %158 = vector.extract_strided_slice %148 {offsets = [0, 20], sizes = [2, 4], strides = [1, 1]} : vector<2x32xf32> to vector<2x4xf32>
    %159 = arith.addf %157, %158 : vector<2x4xf32>
    %160 = vector.extract_strided_slice %148 {offsets = [0, 24], sizes = [2, 4], strides = [1, 1]} : vector<2x32xf32> to vector<2x4xf32>
    %161 = arith.addf %159, %160 : vector<2x4xf32>
    %162 = vector.extract_strided_slice %148 {offsets = [0, 28], sizes = [2, 4], strides = [1, 1]} : vector<2x32xf32> to vector<2x4xf32>
    %163 = arith.addf %161, %162 : vector<2x4xf32>
    %cst_40 = arith.constant 1.562500e-02 : f32
    %164 = vector.broadcast %cst_40 : f32 to vector<2x4xf32>
    %165 = arith.mulf %163, %164 : vector<2x4xf32>
    %166 = arith.truncf %165 : vector<2x4xf32> to vector<2x4xbf16>
    %c6_41 = arith.constant 6 : index
    %c0_42 = arith.constant 0 : index
    %167 = vector.load %arg2[%c6_41, %c0_42] : memref<8x4xbf16, #tpu.memory_space<vmem>>, vector<2x4xbf16>
    tpu.vector_store %arg2[%c6_41, %c0_42], %166 {strides = array<i32>} : memref<8x4xbf16, #tpu.memory_space<vmem>>, vector<2x4xbf16>,
    return
  }
  func.func @transform_0(%arg0: i32) -> (i32, i32) {
    %c0_i32 = arith.constant 0 : i32
    %c0_i32_0 = arith.constant 0 : i32
    return %arg0, %c0_i32 : i32, i32
  }
  func.func @transform_1(%arg0: i32) -> (i32, i32) {
    %c0_i32 = arith.constant 0 : i32
    %c0_i32_0 = arith.constant 0 : i32
    return %arg0, %c0_i32 : i32, i32
  }
}

module attributes {stable_mosaic.version = 11 : i64} {
  func.func @_conv_band_kernel(%arg0: i32, %arg1: i32, %arg2: i32, %arg3: memref<1x16x4xbf16, #tpu.memory_space<vmem>>, %arg4: memref<36x128xbf16, #tpu.memory_space<vmem>>, %arg5: memref<1x128xf32, #tpu.memory_space<vmem>>, %arg6: memref<16x2xbf16, #tpu.memory_space<vmem>>, %arg7: memref<2x16x128xbf16, #tpu.memory_space<vmem>>) attributes {dimension_semantics = [#tpu.dimension_semantics<parallel>, #tpu.dimension_semantics<parallel>, #tpu.dimension_semantics<parallel>], iteration_bounds = array<i64: 2, 1, 1>, scalar_prefetch = 0 : i64, scratch_operands = 0 : i64, tpu.core_type = #tpu.core_type<tc>, window_params = [{transform_indices = @transform_0, window_bounds = array<i64: 1, 16, 4>}, {transform_indices = @transform_1, window_bounds = array<i64: 36, 128>}, {transform_indices = @transform_2, window_bounds = array<i64: 1, 128>}, {pipeline_mode = #tpu.pipeline_mode<synchronous>, transform_indices = @transform_3, window_bounds = array<i64: 16, 2>}, {transform_indices = @transform_4, window_bounds = array<i64: 2, 16, 128>}]} {
    %cst = arith.constant 0.000000e+00 : f32
    %0 = vector.broadcast %cst : f32 to vector<6x128xf32>
    %c0 = arith.constant 0 : index
    %c0_0 = arith.constant 0 : index
    %c0_1 = arith.constant 0 : index
    %1 = vector.load %arg3[%c0, %c0_0, %c0_1] : memref<1x16x4xbf16, #tpu.memory_space<vmem>>, vector<1x6x4xbf16>
    %2 = vector.shape_cast %1 : vector<1x6x4xbf16> to vector<6x4xbf16>
    %c0_2 = arith.constant 0 : index
    %c0_3 = arith.constant 0 : index
    %3 = vector.load %arg4[%c0_2, %c0_3] : memref<36x128xbf16, #tpu.memory_space<vmem>>, vector<4x128xbf16>
    %cst_4 = arith.constant dense<0.000000e+00> : vector<6x128xf32>
    %4 = tpu.matmul %2, %3, %cst_4 {dimension_numbers = #tpu.dot_dimension_numbers<[1], [0], [0], [1], [0, 0, 1, 1], [], []>} : vector<6x4xbf16>, vector<4x128xbf16>, vector<6x128xf32> -> vector<6x128xf32>
    %5 = arith.addf %0, %4 : vector<6x128xf32>
    %c0_5 = arith.constant 0 : index
    %c1 = arith.constant 1 : index
    %c0_6 = arith.constant 0 : index
    %6 = vector.load %arg3[%c0_5, %c1, %c0_6] : memref<1x16x4xbf16, #tpu.memory_space<vmem>>, vector<1x6x4xbf16>
    %7 = vector.shape_cast %6 : vector<1x6x4xbf16> to vector<6x4xbf16>
    %c4 = arith.constant 4 : index
    %c0_7 = arith.constant 0 : index
    %8 = vector.load %arg4[%c4, %c0_7] : memref<36x128xbf16, #tpu.memory_space<vmem>>, vector<4x128xbf16>
    %cst_8 = arith.constant dense<0.000000e+00> : vector<6x128xf32>
    %9 = tpu.matmul %7, %8, %cst_8 {dimension_numbers = #tpu.dot_dimension_numbers<[1], [0], [0], [1], [0, 0, 1, 1], [], []>} : vector<6x4xbf16>, vector<4x128xbf16>, vector<6x128xf32> -> vector<6x128xf32>
    %10 = arith.addf %5, %9 : vector<6x128xf32>
    %c0_9 = arith.constant 0 : index
    %c2 = arith.constant 2 : index
    %c0_10 = arith.constant 0 : index
    %11 = vector.load %arg3[%c0_9, %c2, %c0_10] : memref<1x16x4xbf16, #tpu.memory_space<vmem>>, vector<1x6x4xbf16>
    %12 = vector.shape_cast %11 : vector<1x6x4xbf16> to vector<6x4xbf16>
    %c8 = arith.constant 8 : index
    %c0_11 = arith.constant 0 : index
    %13 = vector.load %arg4[%c8, %c0_11] : memref<36x128xbf16, #tpu.memory_space<vmem>>, vector<4x128xbf16>
    %cst_12 = arith.constant dense<0.000000e+00> : vector<6x128xf32>
    %14 = tpu.matmul %12, %13, %cst_12 {dimension_numbers = #tpu.dot_dimension_numbers<[1], [0], [0], [1], [0, 0, 1, 1], [], []>} : vector<6x4xbf16>, vector<4x128xbf16>, vector<6x128xf32> -> vector<6x128xf32>
    %15 = arith.addf %10, %14 : vector<6x128xf32>
    %c0_13 = arith.constant 0 : index
    %c4_14 = arith.constant 4 : index
    %c0_15 = arith.constant 0 : index
    %16 = vector.load %arg3[%c0_13, %c4_14, %c0_15] : memref<1x16x4xbf16, #tpu.memory_space<vmem>>, vector<1x6x4xbf16>
    %17 = vector.shape_cast %16 : vector<1x6x4xbf16> to vector<6x4xbf16>
    %c12 = arith.constant 12 : index
    %c0_16 = arith.constant 0 : index
    %18 = vector.load %arg4[%c12, %c0_16] : memref<36x128xbf16, #tpu.memory_space<vmem>>, vector<4x128xbf16>
    %cst_17 = arith.constant dense<0.000000e+00> : vector<6x128xf32>
    %19 = tpu.matmul %17, %18, %cst_17 {dimension_numbers = #tpu.dot_dimension_numbers<[1], [0], [0], [1], [0, 0, 1, 1], [], []>} : vector<6x4xbf16>, vector<4x128xbf16>, vector<6x128xf32> -> vector<6x128xf32>
    %20 = arith.addf %15, %19 : vector<6x128xf32>
    %c0_18 = arith.constant 0 : index
    %c5 = arith.constant 5 : index
    %c0_19 = arith.constant 0 : index
    %21 = vector.load %arg3[%c0_18, %c5, %c0_19] : memref<1x16x4xbf16, #tpu.memory_space<vmem>>, vector<1x6x4xbf16>
    %22 = vector.shape_cast %21 : vector<1x6x4xbf16> to vector<6x4xbf16>
    %c16 = arith.constant 16 : index
    %c0_20 = arith.constant 0 : index
    %23 = vector.load %arg4[%c16, %c0_20] : memref<36x128xbf16, #tpu.memory_space<vmem>>, vector<4x128xbf16>
    %cst_21 = arith.constant dense<0.000000e+00> : vector<6x128xf32>
    %24 = tpu.matmul %22, %23, %cst_21 {dimension_numbers = #tpu.dot_dimension_numbers<[1], [0], [0], [1], [0, 0, 1, 1], [], []>} : vector<6x4xbf16>, vector<4x128xbf16>, vector<6x128xf32> -> vector<6x128xf32>
    %25 = arith.addf %20, %24 : vector<6x128xf32>
    %c0_22 = arith.constant 0 : index
    %c6 = arith.constant 6 : index
    %c0_23 = arith.constant 0 : index
    %26 = vector.load %arg3[%c0_22, %c6, %c0_23] : memref<1x16x4xbf16, #tpu.memory_space<vmem>>, vector<1x6x4xbf16>
    %27 = vector.shape_cast %26 : vector<1x6x4xbf16> to vector<6x4xbf16>
    %c20 = arith.constant 20 : index
    %c0_24 = arith.constant 0 : index
    %28 = vector.load %arg4[%c20, %c0_24] : memref<36x128xbf16, #tpu.memory_space<vmem>>, vector<4x128xbf16>
    %cst_25 = arith.constant dense<0.000000e+00> : vector<6x128xf32>
    %29 = tpu.matmul %27, %28, %cst_25 {dimension_numbers = #tpu.dot_dimension_numbers<[1], [0], [0], [1], [0, 0, 1, 1], [], []>} : vector<6x4xbf16>, vector<4x128xbf16>, vector<6x128xf32> -> vector<6x128xf32>
    %30 = arith.addf %25, %29 : vector<6x128xf32>
    %c0_26 = arith.constant 0 : index
    %c8_27 = arith.constant 8 : index
    %c0_28 = arith.constant 0 : index
    %31 = vector.load %arg3[%c0_26, %c8_27, %c0_28] : memref<1x16x4xbf16, #tpu.memory_space<vmem>>, vector<1x6x4xbf16>
    %32 = vector.shape_cast %31 : vector<1x6x4xbf16> to vector<6x4xbf16>
    %c24 = arith.constant 24 : index
    %c0_29 = arith.constant 0 : index
    %33 = vector.load %arg4[%c24, %c0_29] : memref<36x128xbf16, #tpu.memory_space<vmem>>, vector<4x128xbf16>
    %cst_30 = arith.constant dense<0.000000e+00> : vector<6x128xf32>
    %34 = tpu.matmul %32, %33, %cst_30 {dimension_numbers = #tpu.dot_dimension_numbers<[1], [0], [0], [1], [0, 0, 1, 1], [], []>} : vector<6x4xbf16>, vector<4x128xbf16>, vector<6x128xf32> -> vector<6x128xf32>
    %35 = arith.addf %30, %34 : vector<6x128xf32>
    %c0_31 = arith.constant 0 : index
    %c9 = arith.constant 9 : index
    %c0_32 = arith.constant 0 : index
    %36 = vector.load %arg3[%c0_31, %c9, %c0_32] : memref<1x16x4xbf16, #tpu.memory_space<vmem>>, vector<1x6x4xbf16>
    %37 = vector.shape_cast %36 : vector<1x6x4xbf16> to vector<6x4xbf16>
    %c28 = arith.constant 28 : index
    %c0_33 = arith.constant 0 : index
    %38 = vector.load %arg4[%c28, %c0_33] : memref<36x128xbf16, #tpu.memory_space<vmem>>, vector<4x128xbf16>
    %cst_34 = arith.constant dense<0.000000e+00> : vector<6x128xf32>
    %39 = tpu.matmul %37, %38, %cst_34 {dimension_numbers = #tpu.dot_dimension_numbers<[1], [0], [0], [1], [0, 0, 1, 1], [], []>} : vector<6x4xbf16>, vector<4x128xbf16>, vector<6x128xf32> -> vector<6x128xf32>
    %40 = arith.addf %35, %39 : vector<6x128xf32>
    %c0_35 = arith.constant 0 : index
    %c10 = arith.constant 10 : index
    %c0_36 = arith.constant 0 : index
    %41 = vector.load %arg3[%c0_35, %c10, %c0_36] : memref<1x16x4xbf16, #tpu.memory_space<vmem>>, vector<1x6x4xbf16>
    %42 = vector.shape_cast %41 : vector<1x6x4xbf16> to vector<6x4xbf16>
    %c32 = arith.constant 32 : index
    %c0_37 = arith.constant 0 : index
    %43 = vector.load %arg4[%c32, %c0_37] : memref<36x128xbf16, #tpu.memory_space<vmem>>, vector<4x128xbf16>
    %cst_38 = arith.constant dense<0.000000e+00> : vector<6x128xf32>
    %44 = tpu.matmul %42, %43, %cst_38 {dimension_numbers = #tpu.dot_dimension_numbers<[1], [0], [0], [1], [0, 0, 1, 1], [], []>} : vector<6x4xbf16>, vector<4x128xbf16>, vector<6x128xf32> -> vector<6x128xf32>
    %45 = arith.addf %40, %44 : vector<6x128xf32>
    %c0_39 = arith.constant 0 : index
    %c0_40 = arith.constant 0 : index
    %46 = vector.load %arg5[%c0_39, %c0_40] : memref<1x128xf32, #tpu.memory_space<vmem>>, vector<1x128xf32>
    %47 = vector.broadcast %46 : vector<1x128xf32> to vector<6x128xf32>
    %48 = arith.addf %45, %47 : vector<6x128xf32>
    %cst_41 = arith.constant 0.000000e+00 : f32
    %49 = vector.broadcast %cst_41 : f32 to vector<6x128xf32>
    %50 = arith.maximumf %48, %49 : vector<6x128xf32>
    %51 = arith.truncf %50 : vector<6x128xf32> to vector<6x128xbf16>
    %c0_42 = arith.constant 0 : index
    %c0_43 = arith.constant 0 : index
    %52 = vector.load %arg6[%c0_42, %c0_43] : memref<16x2xbf16, #tpu.memory_space<vmem>>, vector<16x2xbf16>
    %53 = vector.extract_strided_slice %51 {offsets = [0, 0], sizes = [2, 128], strides = [1, 1]} : vector<6x128xbf16> to vector<2x128xbf16>
    %cst_44 = arith.constant dense<0.000000e+00> : vector<16x128xf32>
    %54 = tpu.matmul %52, %53, %cst_44 {dimension_numbers = #tpu.dot_dimension_numbers<[1], [0], [0], [1], [0, 0, 1, 1], [], []>} : vector<16x2xbf16>, vector<2x128xbf16>, vector<16x128xf32> -> vector<16x128xf32>
    %55 = arith.truncf %54 : vector<16x128xf32> to vector<16x128xbf16>
    %c0_45 = arith.constant 0 : index
    %c0_46 = arith.constant 0 : index
    %c0_47 = arith.constant 0 : index
    %56 = vector.load %arg7[%c0_45, %c0_46, %c0_47] : memref<2x16x128xbf16, #tpu.memory_space<vmem>>, vector<1x16x128xbf16>
    %57 = vector.shape_cast %56 : vector<1x16x128xbf16> to vector<16x128xbf16>
    %58 = vector.shape_cast %55 : vector<16x128xbf16> to vector<1x16x128xbf16>
    tpu.vector_store %arg7[%c0_45, %c0_46, %c0_47], %58 {strides = array<i32>} : memref<2x16x128xbf16, #tpu.memory_space<vmem>>, vector<1x16x128xbf16>,
    %59 = vector.extract_strided_slice %51 {offsets = [4, 0], sizes = [2, 128], strides = [1, 1]} : vector<6x128xbf16> to vector<2x128xbf16>
    %cst_48 = arith.constant dense<0.000000e+00> : vector<16x128xf32>
    %60 = tpu.matmul %52, %59, %cst_48 {dimension_numbers = #tpu.dot_dimension_numbers<[1], [0], [0], [1], [0, 0, 1, 1], [], []>} : vector<16x2xbf16>, vector<2x128xbf16>, vector<16x128xf32> -> vector<16x128xf32>
    %61 = arith.truncf %60 : vector<16x128xf32> to vector<16x128xbf16>
    %c1_49 = arith.constant 1 : index
    %c0_50 = arith.constant 0 : index
    %c0_51 = arith.constant 0 : index
    %62 = vector.load %arg7[%c1_49, %c0_50, %c0_51] : memref<2x16x128xbf16, #tpu.memory_space<vmem>>, vector<1x16x128xbf16>
    %63 = vector.shape_cast %62 : vector<1x16x128xbf16> to vector<16x128xbf16>
    %64 = vector.shape_cast %61 : vector<16x128xbf16> to vector<1x16x128xbf16>
    tpu.vector_store %arg7[%c1_49, %c0_50, %c0_51], %64 {strides = array<i32>} : memref<2x16x128xbf16, #tpu.memory_space<vmem>>, vector<1x16x128xbf16>,
    return
  }
  func.func @transform_0(%arg0: i32, %arg1: i32, %arg2: i32) -> (i32, i32, i32) {
    %c1_i32 = arith.constant 1 : i32
    %0 = arith.muli %arg0, %c1_i32 : i32
    %1 = arith.addi %0, %arg2 : i32
    %c0_i32 = arith.constant 0 : i32
    %c0_i32_0 = arith.constant 0 : i32
    %c0_i32_1 = arith.constant 0 : i32
    return %1, %c0_i32, %c0_i32_0 : i32, i32, i32
  }
  func.func @transform_1(%arg0: i32, %arg1: i32, %arg2: i32) -> (i32, i32) {
    %c0_i32 = arith.constant 0 : i32
    %c0_i32_0 = arith.constant 0 : i32
    return %c0_i32, %arg1 : i32, i32
  }
  func.func @transform_2(%arg0: i32, %arg1: i32, %arg2: i32) -> (i32, i32) {
    %c0_i32 = arith.constant 0 : i32
    %c0_i32_0 = arith.constant 0 : i32
    return %c0_i32, %arg1 : i32, i32
  }
  func.func @transform_3(%arg0: i32, %arg1: i32, %arg2: i32) -> (i32, i32) {
    %c0_i32 = arith.constant 0 : i32
    %c0_i32_0 = arith.constant 0 : i32
    %c0_i32_1 = arith.constant 0 : i32
    return %c0_i32, %c0_i32_0 : i32, i32
  }
  func.func @transform_4(%arg0: i32, %arg1: i32, %arg2: i32) -> (i32, i32, i32) {
    %c1_i32 = arith.constant 1 : i32
    %0 = arith.muli %arg0, %c1_i32 : i32
    %1 = arith.addi %0, %arg2 : i32
    %c0_i32 = arith.constant 0 : i32
    %c0_i32_0 = arith.constant 0 : i32
    return %1, %c0_i32, %arg1 : i32, i32, i32
  }
}

module attributes {stable_mosaic.version = 11 : i64} {
  func.func @_pool_kernel(%arg0: i32, %arg1: memref<256x8xbf16, #tpu.memory_space<vmem>>, %arg2: memref<128x4xbf16, #tpu.memory_space<vmem>>) attributes {dimension_semantics = [#tpu.dimension_semantics<parallel>], iteration_bounds = array<i64: 1>, scalar_prefetch = 0 : i64, scratch_operands = 0 : i64, tpu.core_type = #tpu.core_type<tc>, window_params = [{transform_indices = @transform_0, window_bounds = array<i64: 256, 8>}, {transform_indices = @transform_1, window_bounds = array<i64: 128, 4>}]} {
    %c0 = arith.constant 0 : index
    %c0_0 = arith.constant 0 : index
    %0 = vector.load %arg1[%c0, %c0_0] : memref<256x8xbf16, #tpu.memory_space<vmem>>, vector<8x8xbf16>
    %c8 = arith.constant 8 : index
    %c0_1 = arith.constant 0 : index
    %1 = vector.load %arg1[%c8, %c0_1] : memref<256x8xbf16, #tpu.memory_space<vmem>>, vector<8x8xbf16>
    %2 = arith.maximumf %0, %1 : vector<8x8xbf16>
    %3 = vector.extract_strided_slice %2 {offsets = [0, 0], sizes = [8, 4], strides = [1, 1]} : vector<8x8xbf16> to vector<8x4xbf16>
    %4 = vector.extract_strided_slice %2 {offsets = [0, 4], sizes = [8, 4], strides = [1, 1]} : vector<8x8xbf16> to vector<8x4xbf16>
    %5 = arith.maximumf %3, %4 : vector<8x4xbf16>
    %c0_2 = arith.constant 0 : index
    %c0_3 = arith.constant 0 : index
    %6 = vector.load %arg2[%c0_2, %c0_3] : memref<128x4xbf16, #tpu.memory_space<vmem>>, vector<8x4xbf16>
    tpu.vector_store %arg2[%c0_2, %c0_3], %5 {strides = array<i32>} : memref<128x4xbf16, #tpu.memory_space<vmem>>, vector<8x4xbf16>,
    %c16 = arith.constant 16 : index
    %c0_4 = arith.constant 0 : index
    %7 = vector.load %arg1[%c16, %c0_4] : memref<256x8xbf16, #tpu.memory_space<vmem>>, vector<8x8xbf16>
    %c24 = arith.constant 24 : index
    %c0_5 = arith.constant 0 : index
    %8 = vector.load %arg1[%c24, %c0_5] : memref<256x8xbf16, #tpu.memory_space<vmem>>, vector<8x8xbf16>
    %9 = arith.maximumf %7, %8 : vector<8x8xbf16>
    %10 = vector.extract_strided_slice %9 {offsets = [0, 0], sizes = [8, 4], strides = [1, 1]} : vector<8x8xbf16> to vector<8x4xbf16>
    %11 = vector.extract_strided_slice %9 {offsets = [0, 4], sizes = [8, 4], strides = [1, 1]} : vector<8x8xbf16> to vector<8x4xbf16>
    %12 = arith.maximumf %10, %11 : vector<8x4xbf16>
    %c8_6 = arith.constant 8 : index
    %c0_7 = arith.constant 0 : index
    %13 = vector.load %arg2[%c8_6, %c0_7] : memref<128x4xbf16, #tpu.memory_space<vmem>>, vector<8x4xbf16>
    tpu.vector_store %arg2[%c8_6, %c0_7], %12 {strides = array<i32>} : memref<128x4xbf16, #tpu.memory_space<vmem>>, vector<8x4xbf16>,
    %c32 = arith.constant 32 : index
    %c0_8 = arith.constant 0 : index
    %14 = vector.load %arg1[%c32, %c0_8] : memref<256x8xbf16, #tpu.memory_space<vmem>>, vector<8x8xbf16>
    %c40 = arith.constant 40 : index
    %c0_9 = arith.constant 0 : index
    %15 = vector.load %arg1[%c40, %c0_9] : memref<256x8xbf16, #tpu.memory_space<vmem>>, vector<8x8xbf16>
    %16 = arith.maximumf %14, %15 : vector<8x8xbf16>
    %17 = vector.extract_strided_slice %16 {offsets = [0, 0], sizes = [8, 4], strides = [1, 1]} : vector<8x8xbf16> to vector<8x4xbf16>
    %18 = vector.extract_strided_slice %16 {offsets = [0, 4], sizes = [8, 4], strides = [1, 1]} : vector<8x8xbf16> to vector<8x4xbf16>
    %19 = arith.maximumf %17, %18 : vector<8x4xbf16>
    %c16_10 = arith.constant 16 : index
    %c0_11 = arith.constant 0 : index
    %20 = vector.load %arg2[%c16_10, %c0_11] : memref<128x4xbf16, #tpu.memory_space<vmem>>, vector<8x4xbf16>
    tpu.vector_store %arg2[%c16_10, %c0_11], %19 {strides = array<i32>} : memref<128x4xbf16, #tpu.memory_space<vmem>>, vector<8x4xbf16>,
    %c48 = arith.constant 48 : index
    %c0_12 = arith.constant 0 : index
    %21 = vector.load %arg1[%c48, %c0_12] : memref<256x8xbf16, #tpu.memory_space<vmem>>, vector<8x8xbf16>
    %c56 = arith.constant 56 : index
    %c0_13 = arith.constant 0 : index
    %22 = vector.load %arg1[%c56, %c0_13] : memref<256x8xbf16, #tpu.memory_space<vmem>>, vector<8x8xbf16>
    %23 = arith.maximumf %21, %22 : vector<8x8xbf16>
    %24 = vector.extract_strided_slice %23 {offsets = [0, 0], sizes = [8, 4], strides = [1, 1]} : vector<8x8xbf16> to vector<8x4xbf16>
    %25 = vector.extract_strided_slice %23 {offsets = [0, 4], sizes = [8, 4], strides = [1, 1]} : vector<8x8xbf16> to vector<8x4xbf16>
    %26 = arith.maximumf %24, %25 : vector<8x4xbf16>
    %c24_14 = arith.constant 24 : index
    %c0_15 = arith.constant 0 : index
    %27 = vector.load %arg2[%c24_14, %c0_15] : memref<128x4xbf16, #tpu.memory_space<vmem>>, vector<8x4xbf16>
    tpu.vector_store %arg2[%c24_14, %c0_15], %26 {strides = array<i32>} : memref<128x4xbf16, #tpu.memory_space<vmem>>, vector<8x4xbf16>,
    %c64 = arith.constant 64 : index
    %c0_16 = arith.constant 0 : index
    %28 = vector.load %arg1[%c64, %c0_16] : memref<256x8xbf16, #tpu.memory_space<vmem>>, vector<8x8xbf16>
    %c72 = arith.constant 72 : index
    %c0_17 = arith.constant 0 : index
    %29 = vector.load %arg1[%c72, %c0_17] : memref<256x8xbf16, #tpu.memory_space<vmem>>, vector<8x8xbf16>
    %30 = arith.maximumf %28, %29 : vector<8x8xbf16>
    %31 = vector.extract_strided_slice %30 {offsets = [0, 0], sizes = [8, 4], strides = [1, 1]} : vector<8x8xbf16> to vector<8x4xbf16>
    %32 = vector.extract_strided_slice %30 {offsets = [0, 4], sizes = [8, 4], strides = [1, 1]} : vector<8x8xbf16> to vector<8x4xbf16>
    %33 = arith.maximumf %31, %32 : vector<8x4xbf16>
    %c32_18 = arith.constant 32 : index
    %c0_19 = arith.constant 0 : index
    %34 = vector.load %arg2[%c32_18, %c0_19] : memref<128x4xbf16, #tpu.memory_space<vmem>>, vector<8x4xbf16>
    tpu.vector_store %arg2[%c32_18, %c0_19], %33 {strides = array<i32>} : memref<128x4xbf16, #tpu.memory_space<vmem>>, vector<8x4xbf16>,
    %c80 = arith.constant 80 : index
    %c0_20 = arith.constant 0 : index
    %35 = vector.load %arg1[%c80, %c0_20] : memref<256x8xbf16, #tpu.memory_space<vmem>>, vector<8x8xbf16>
    %c88 = arith.constant 88 : index
    %c0_21 = arith.constant 0 : index
    %36 = vector.load %arg1[%c88, %c0_21] : memref<256x8xbf16, #tpu.memory_space<vmem>>, vector<8x8xbf16>
    %37 = arith.maximumf %35, %36 : vector<8x8xbf16>
    %38 = vector.extract_strided_slice %37 {offsets = [0, 0], sizes = [8, 4], strides = [1, 1]} : vector<8x8xbf16> to vector<8x4xbf16>
    %39 = vector.extract_strided_slice %37 {offsets = [0, 4], sizes = [8, 4], strides = [1, 1]} : vector<8x8xbf16> to vector<8x4xbf16>
    %40 = arith.maximumf %38, %39 : vector<8x4xbf16>
    %c40_22 = arith.constant 40 : index
    %c0_23 = arith.constant 0 : index
    %41 = vector.load %arg2[%c40_22, %c0_23] : memref<128x4xbf16, #tpu.memory_space<vmem>>, vector<8x4xbf16>
    tpu.vector_store %arg2[%c40_22, %c0_23], %40 {strides = array<i32>} : memref<128x4xbf16, #tpu.memory_space<vmem>>, vector<8x4xbf16>,
    %c96 = arith.constant 96 : index
    %c0_24 = arith.constant 0 : index
    %42 = vector.load %arg1[%c96, %c0_24] : memref<256x8xbf16, #tpu.memory_space<vmem>>, vector<8x8xbf16>
    %c104 = arith.constant 104 : index
    %c0_25 = arith.constant 0 : index
    %43 = vector.load %arg1[%c104, %c0_25] : memref<256x8xbf16, #tpu.memory_space<vmem>>, vector<8x8xbf16>
    %44 = arith.maximumf %42, %43 : vector<8x8xbf16>
    %45 = vector.extract_strided_slice %44 {offsets = [0, 0], sizes = [8, 4], strides = [1, 1]} : vector<8x8xbf16> to vector<8x4xbf16>
    %46 = vector.extract_strided_slice %44 {offsets = [0, 4], sizes = [8, 4], strides = [1, 1]} : vector<8x8xbf16> to vector<8x4xbf16>
    %47 = arith.maximumf %45, %46 : vector<8x4xbf16>
    %c48_26 = arith.constant 48 : index
    %c0_27 = arith.constant 0 : index
    %48 = vector.load %arg2[%c48_26, %c0_27] : memref<128x4xbf16, #tpu.memory_space<vmem>>, vector<8x4xbf16>
    tpu.vector_store %arg2[%c48_26, %c0_27], %47 {strides = array<i32>} : memref<128x4xbf16, #tpu.memory_space<vmem>>, vector<8x4xbf16>,
    %c112 = arith.constant 112 : index
    %c0_28 = arith.constant 0 : index
    %49 = vector.load %arg1[%c112, %c0_28] : memref<256x8xbf16, #tpu.memory_space<vmem>>, vector<8x8xbf16>
    %c120 = arith.constant 120 : index
    %c0_29 = arith.constant 0 : index
    %50 = vector.load %arg1[%c120, %c0_29] : memref<256x8xbf16, #tpu.memory_space<vmem>>, vector<8x8xbf16>
    %51 = arith.maximumf %49, %50 : vector<8x8xbf16>
    %52 = vector.extract_strided_slice %51 {offsets = [0, 0], sizes = [8, 4], strides = [1, 1]} : vector<8x8xbf16> to vector<8x4xbf16>
    %53 = vector.extract_strided_slice %51 {offsets = [0, 4], sizes = [8, 4], strides = [1, 1]} : vector<8x8xbf16> to vector<8x4xbf16>
    %54 = arith.maximumf %52, %53 : vector<8x4xbf16>
    %c56_30 = arith.constant 56 : index
    %c0_31 = arith.constant 0 : index
    %55 = vector.load %arg2[%c56_30, %c0_31] : memref<128x4xbf16, #tpu.memory_space<vmem>>, vector<8x4xbf16>
    tpu.vector_store %arg2[%c56_30, %c0_31], %54 {strides = array<i32>} : memref<128x4xbf16, #tpu.memory_space<vmem>>, vector<8x4xbf16>,
    %c128 = arith.constant 128 : index
    %c0_32 = arith.constant 0 : index
    %56 = vector.load %arg1[%c128, %c0_32] : memref<256x8xbf16, #tpu.memory_space<vmem>>, vector<8x8xbf16>
    %c136 = arith.constant 136 : index
    %c0_33 = arith.constant 0 : index
    %57 = vector.load %arg1[%c136, %c0_33] : memref<256x8xbf16, #tpu.memory_space<vmem>>, vector<8x8xbf16>
    %58 = arith.maximumf %56, %57 : vector<8x8xbf16>
    %59 = vector.extract_strided_slice %58 {offsets = [0, 0], sizes = [8, 4], strides = [1, 1]} : vector<8x8xbf16> to vector<8x4xbf16>
    %60 = vector.extract_strided_slice %58 {offsets = [0, 4], sizes = [8, 4], strides = [1, 1]} : vector<8x8xbf16> to vector<8x4xbf16>
    %61 = arith.maximumf %59, %60 : vector<8x4xbf16>
    %c64_34 = arith.constant 64 : index
    %c0_35 = arith.constant 0 : index
    %62 = vector.load %arg2[%c64_34, %c0_35] : memref<128x4xbf16, #tpu.memory_space<vmem>>, vector<8x4xbf16>
    tpu.vector_store %arg2[%c64_34, %c0_35], %61 {strides = array<i32>} : memref<128x4xbf16, #tpu.memory_space<vmem>>, vector<8x4xbf16>,
    %c144 = arith.constant 144 : index
    %c0_36 = arith.constant 0 : index
    %63 = vector.load %arg1[%c144, %c0_36] : memref<256x8xbf16, #tpu.memory_space<vmem>>, vector<8x8xbf16>
    %c152 = arith.constant 152 : index
    %c0_37 = arith.constant 0 : index
    %64 = vector.load %arg1[%c152, %c0_37] : memref<256x8xbf16, #tpu.memory_space<vmem>>, vector<8x8xbf16>
    %65 = arith.maximumf %63, %64 : vector<8x8xbf16>
    %66 = vector.extract_strided_slice %65 {offsets = [0, 0], sizes = [8, 4], strides = [1, 1]} : vector<8x8xbf16> to vector<8x4xbf16>
    %67 = vector.extract_strided_slice %65 {offsets = [0, 4], sizes = [8, 4], strides = [1, 1]} : vector<8x8xbf16> to vector<8x4xbf16>
    %68 = arith.maximumf %66, %67 : vector<8x4xbf16>
    %c72_38 = arith.constant 72 : index
    %c0_39 = arith.constant 0 : index
    %69 = vector.load %arg2[%c72_38, %c0_39] : memref<128x4xbf16, #tpu.memory_space<vmem>>, vector<8x4xbf16>
    tpu.vector_store %arg2[%c72_38, %c0_39], %68 {strides = array<i32>} : memref<128x4xbf16, #tpu.memory_space<vmem>>, vector<8x4xbf16>,
    %c160 = arith.constant 160 : index
    %c0_40 = arith.constant 0 : index
    %70 = vector.load %arg1[%c160, %c0_40] : memref<256x8xbf16, #tpu.memory_space<vmem>>, vector<8x8xbf16>
    %c168 = arith.constant 168 : index
    %c0_41 = arith.constant 0 : index
    %71 = vector.load %arg1[%c168, %c0_41] : memref<256x8xbf16, #tpu.memory_space<vmem>>, vector<8x8xbf16>
    %72 = arith.maximumf %70, %71 : vector<8x8xbf16>
    %73 = vector.extract_strided_slice %72 {offsets = [0, 0], sizes = [8, 4], strides = [1, 1]} : vector<8x8xbf16> to vector<8x4xbf16>
    %74 = vector.extract_strided_slice %72 {offsets = [0, 4], sizes = [8, 4], strides = [1, 1]} : vector<8x8xbf16> to vector<8x4xbf16>
    %75 = arith.maximumf %73, %74 : vector<8x4xbf16>
    %c80_42 = arith.constant 80 : index
    %c0_43 = arith.constant 0 : index
    %76 = vector.load %arg2[%c80_42, %c0_43] : memref<128x4xbf16, #tpu.memory_space<vmem>>, vector<8x4xbf16>
    tpu.vector_store %arg2[%c80_42, %c0_43], %75 {strides = array<i32>} : memref<128x4xbf16, #tpu.memory_space<vmem>>, vector<8x4xbf16>,
    %c176 = arith.constant 176 : index
    %c0_44 = arith.constant 0 : index
    %77 = vector.load %arg1[%c176, %c0_44] : memref<256x8xbf16, #tpu.memory_space<vmem>>, vector<8x8xbf16>
    %c184 = arith.constant 184 : index
    %c0_45 = arith.constant 0 : index
    %78 = vector.load %arg1[%c184, %c0_45] : memref<256x8xbf16, #tpu.memory_space<vmem>>, vector<8x8xbf16>
    %79 = arith.maximumf %77, %78 : vector<8x8xbf16>
    %80 = vector.extract_strided_slice %79 {offsets = [0, 0], sizes = [8, 4], strides = [1, 1]} : vector<8x8xbf16> to vector<8x4xbf16>
    %81 = vector.extract_strided_slice %79 {offsets = [0, 4], sizes = [8, 4], strides = [1, 1]} : vector<8x8xbf16> to vector<8x4xbf16>
    %82 = arith.maximumf %80, %81 : vector<8x4xbf16>
    %c88_46 = arith.constant 88 : index
    %c0_47 = arith.constant 0 : index
    %83 = vector.load %arg2[%c88_46, %c0_47] : memref<128x4xbf16, #tpu.memory_space<vmem>>, vector<8x4xbf16>
    tpu.vector_store %arg2[%c88_46, %c0_47], %82 {strides = array<i32>} : memref<128x4xbf16, #tpu.memory_space<vmem>>, vector<8x4xbf16>,
    %c192 = arith.constant 192 : index
    %c0_48 = arith.constant 0 : index
    %84 = vector.load %arg1[%c192, %c0_48] : memref<256x8xbf16, #tpu.memory_space<vmem>>, vector<8x8xbf16>
    %c200 = arith.constant 200 : index
    %c0_49 = arith.constant 0 : index
    %85 = vector.load %arg1[%c200, %c0_49] : memref<256x8xbf16, #tpu.memory_space<vmem>>, vector<8x8xbf16>
    %86 = arith.maximumf %84, %85 : vector<8x8xbf16>
    %87 = vector.extract_strided_slice %86 {offsets = [0, 0], sizes = [8, 4], strides = [1, 1]} : vector<8x8xbf16> to vector<8x4xbf16>
    %88 = vector.extract_strided_slice %86 {offsets = [0, 4], sizes = [8, 4], strides = [1, 1]} : vector<8x8xbf16> to vector<8x4xbf16>
    %89 = arith.maximumf %87, %88 : vector<8x4xbf16>
    %c96_50 = arith.constant 96 : index
    %c0_51 = arith.constant 0 : index
    %90 = vector.load %arg2[%c96_50, %c0_51] : memref<128x4xbf16, #tpu.memory_space<vmem>>, vector<8x4xbf16>
    tpu.vector_store %arg2[%c96_50, %c0_51], %89 {strides = array<i32>} : memref<128x4xbf16, #tpu.memory_space<vmem>>, vector<8x4xbf16>,
    %c208 = arith.constant 208 : index
    %c0_52 = arith.constant 0 : index
    %91 = vector.load %arg1[%c208, %c0_52] : memref<256x8xbf16, #tpu.memory_space<vmem>>, vector<8x8xbf16>
    %c216 = arith.constant 216 : index
    %c0_53 = arith.constant 0 : index
    %92 = vector.load %arg1[%c216, %c0_53] : memref<256x8xbf16, #tpu.memory_space<vmem>>, vector<8x8xbf16>
    %93 = arith.maximumf %91, %92 : vector<8x8xbf16>
    %94 = vector.extract_strided_slice %93 {offsets = [0, 0], sizes = [8, 4], strides = [1, 1]} : vector<8x8xbf16> to vector<8x4xbf16>
    %95 = vector.extract_strided_slice %93 {offsets = [0, 4], sizes = [8, 4], strides = [1, 1]} : vector<8x8xbf16> to vector<8x4xbf16>
    %96 = arith.maximumf %94, %95 : vector<8x4xbf16>
    %c104_54 = arith.constant 104 : index
    %c0_55 = arith.constant 0 : index
    %97 = vector.load %arg2[%c104_54, %c0_55] : memref<128x4xbf16, #tpu.memory_space<vmem>>, vector<8x4xbf16>
    tpu.vector_store %arg2[%c104_54, %c0_55], %96 {strides = array<i32>} : memref<128x4xbf16, #tpu.memory_space<vmem>>, vector<8x4xbf16>,
    %c224 = arith.constant 224 : index
    %c0_56 = arith.constant 0 : index
    %98 = vector.load %arg1[%c224, %c0_56] : memref<256x8xbf16, #tpu.memory_space<vmem>>, vector<8x8xbf16>
    %c232 = arith.constant 232 : index
    %c0_57 = arith.constant 0 : index
    %99 = vector.load %arg1[%c232, %c0_57] : memref<256x8xbf16, #tpu.memory_space<vmem>>, vector<8x8xbf16>
    %100 = arith.maximumf %98, %99 : vector<8x8xbf16>
    %101 = vector.extract_strided_slice %100 {offsets = [0, 0], sizes = [8, 4], strides = [1, 1]} : vector<8x8xbf16> to vector<8x4xbf16>
    %102 = vector.extract_strided_slice %100 {offsets = [0, 4], sizes = [8, 4], strides = [1, 1]} : vector<8x8xbf16> to vector<8x4xbf16>
    %103 = arith.maximumf %101, %102 : vector<8x4xbf16>
    %c112_58 = arith.constant 112 : index
    %c0_59 = arith.constant 0 : index
    %104 = vector.load %arg2[%c112_58, %c0_59] : memref<128x4xbf16, #tpu.memory_space<vmem>>, vector<8x4xbf16>
    tpu.vector_store %arg2[%c112_58, %c0_59], %103 {strides = array<i32>} : memref<128x4xbf16, #tpu.memory_space<vmem>>, vector<8x4xbf16>,
    %c240 = arith.constant 240 : index
    %c0_60 = arith.constant 0 : index
    %105 = vector.load %arg1[%c240, %c0_60] : memref<256x8xbf16, #tpu.memory_space<vmem>>, vector<8x8xbf16>
    %c248 = arith.constant 248 : index
    %c0_61 = arith.constant 0 : index
    %106 = vector.load %arg1[%c248, %c0_61] : memref<256x8xbf16, #tpu.memory_space<vmem>>, vector<8x8xbf16>
    %107 = arith.maximumf %105, %106 : vector<8x8xbf16>
    %108 = vector.extract_strided_slice %107 {offsets = [0, 0], sizes = [8, 4], strides = [1, 1]} : vector<8x8xbf16> to vector<8x4xbf16>
    %109 = vector.extract_strided_slice %107 {offsets = [0, 4], sizes = [8, 4], strides = [1, 1]} : vector<8x8xbf16> to vector<8x4xbf16>
    %110 = arith.maximumf %108, %109 : vector<8x4xbf16>
    %c120_62 = arith.constant 120 : index
    %c0_63 = arith.constant 0 : index
    %111 = vector.load %arg2[%c120_62, %c0_63] : memref<128x4xbf16, #tpu.memory_space<vmem>>, vector<8x4xbf16>
    tpu.vector_store %arg2[%c120_62, %c0_63], %110 {strides = array<i32>} : memref<128x4xbf16, #tpu.memory_space<vmem>>, vector<8x4xbf16>,
    return
  }
  func.func @transform_0(%arg0: i32) -> (i32, i32) {
    %c0_i32 = arith.constant 0 : i32
    %c0_i32_0 = arith.constant 0 : i32
    return %arg0, %c0_i32 : i32, i32
  }
  func.func @transform_1(%arg0: i32) -> (i32, i32) {
    %c0_i32 = arith.constant 0 : i32
    %c0_i32_0 = arith.constant 0 : i32
    return %arg0, %c0_i32 : i32, i32
  }
}

module attributes {stable_mosaic.version = 11 : i64} {
  func.func @_pool_kernel(%arg0: i32, %arg1: memref<128x16xbf16, #tpu.memory_space<vmem>>, %arg2: memref<32x4xbf16, #tpu.memory_space<vmem>>) attributes {dimension_semantics = [#tpu.dimension_semantics<parallel>], iteration_bounds = array<i64: 1>, scalar_prefetch = 0 : i64, scratch_operands = 0 : i64, tpu.core_type = #tpu.core_type<tc>, window_params = [{transform_indices = @transform_0, window_bounds = array<i64: 128, 16>}, {transform_indices = @transform_1, window_bounds = array<i64: 32, 4>}]} {
    %c0 = arith.constant 0 : index
    %c0_0 = arith.constant 0 : index
    %0 = vector.load %arg1[%c0, %c0_0] : memref<128x16xbf16, #tpu.memory_space<vmem>>, vector<4x16xbf16>
    %1 = arith.extf %0 : vector<4x16xbf16> to vector<4x16xf32>
    %c4 = arith.constant 4 : index
    %c0_1 = arith.constant 0 : index
    %2 = vector.load %arg1[%c4, %c0_1] : memref<128x16xbf16, #tpu.memory_space<vmem>>, vector<4x16xbf16>
    %3 = arith.extf %2 : vector<4x16xbf16> to vector<4x16xf32>
    %4 = arith.addf %1, %3 : vector<4x16xf32>
    %c8 = arith.constant 8 : index
    %c0_2 = arith.constant 0 : index
    %5 = vector.load %arg1[%c8, %c0_2] : memref<128x16xbf16, #tpu.memory_space<vmem>>, vector<4x16xbf16>
    %6 = arith.extf %5 : vector<4x16xbf16> to vector<4x16xf32>
    %7 = arith.addf %4, %6 : vector<4x16xf32>
    %c12 = arith.constant 12 : index
    %c0_3 = arith.constant 0 : index
    %8 = vector.load %arg1[%c12, %c0_3] : memref<128x16xbf16, #tpu.memory_space<vmem>>, vector<4x16xbf16>
    %9 = arith.extf %8 : vector<4x16xbf16> to vector<4x16xf32>
    %10 = arith.addf %7, %9 : vector<4x16xf32>
    %11 = vector.extract_strided_slice %10 {offsets = [0, 0], sizes = [4, 4], strides = [1, 1]} : vector<4x16xf32> to vector<4x4xf32>
    %12 = vector.extract_strided_slice %10 {offsets = [0, 4], sizes = [4, 4], strides = [1, 1]} : vector<4x16xf32> to vector<4x4xf32>
    %13 = arith.addf %11, %12 : vector<4x4xf32>
    %14 = vector.extract_strided_slice %10 {offsets = [0, 8], sizes = [4, 4], strides = [1, 1]} : vector<4x16xf32> to vector<4x4xf32>
    %15 = arith.addf %13, %14 : vector<4x4xf32>
    %16 = vector.extract_strided_slice %10 {offsets = [0, 12], sizes = [4, 4], strides = [1, 1]} : vector<4x16xf32> to vector<4x4xf32>
    %17 = arith.addf %15, %16 : vector<4x4xf32>
    %cst = arith.constant 6.250000e-02 : f32
    %18 = vector.broadcast %cst : f32 to vector<4x4xf32>
    %19 = arith.mulf %17, %18 : vector<4x4xf32>
    %20 = arith.truncf %19 : vector<4x4xf32> to vector<4x4xbf16>
    %c0_4 = arith.constant 0 : index
    %c0_5 = arith.constant 0 : index
    %21 = vector.load %arg2[%c0_4, %c0_5] : memref<32x4xbf16, #tpu.memory_space<vmem>>, vector<4x4xbf16>
    tpu.vector_store %arg2[%c0_4, %c0_5], %20 {strides = array<i32>} : memref<32x4xbf16, #tpu.memory_space<vmem>>, vector<4x4xbf16>,
    %c16 = arith.constant 16 : index
    %c0_6 = arith.constant 0 : index
    %22 = vector.load %arg1[%c16, %c0_6] : memref<128x16xbf16, #tpu.memory_space<vmem>>, vector<4x16xbf16>
    %23 = arith.extf %22 : vector<4x16xbf16> to vector<4x16xf32>
    %c20 = arith.constant 20 : index
    %c0_7 = arith.constant 0 : index
    %24 = vector.load %arg1[%c20, %c0_7] : memref<128x16xbf16, #tpu.memory_space<vmem>>, vector<4x16xbf16>
    %25 = arith.extf %24 : vector<4x16xbf16> to vector<4x16xf32>
    %26 = arith.addf %23, %25 : vector<4x16xf32>
    %c24 = arith.constant 24 : index
    %c0_8 = arith.constant 0 : index
    %27 = vector.load %arg1[%c24, %c0_8] : memref<128x16xbf16, #tpu.memory_space<vmem>>, vector<4x16xbf16>
    %28 = arith.extf %27 : vector<4x16xbf16> to vector<4x16xf32>
    %29 = arith.addf %26, %28 : vector<4x16xf32>
    %c28 = arith.constant 28 : index
    %c0_9 = arith.constant 0 : index
    %30 = vector.load %arg1[%c28, %c0_9] : memref<128x16xbf16, #tpu.memory_space<vmem>>, vector<4x16xbf16>
    %31 = arith.extf %30 : vector<4x16xbf16> to vector<4x16xf32>
    %32 = arith.addf %29, %31 : vector<4x16xf32>
    %33 = vector.extract_strided_slice %32 {offsets = [0, 0], sizes = [4, 4], strides = [1, 1]} : vector<4x16xf32> to vector<4x4xf32>
    %34 = vector.extract_strided_slice %32 {offsets = [0, 4], sizes = [4, 4], strides = [1, 1]} : vector<4x16xf32> to vector<4x4xf32>
    %35 = arith.addf %33, %34 : vector<4x4xf32>
    %36 = vector.extract_strided_slice %32 {offsets = [0, 8], sizes = [4, 4], strides = [1, 1]} : vector<4x16xf32> to vector<4x4xf32>
    %37 = arith.addf %35, %36 : vector<4x4xf32>
    %38 = vector.extract_strided_slice %32 {offsets = [0, 12], sizes = [4, 4], strides = [1, 1]} : vector<4x16xf32> to vector<4x4xf32>
    %39 = arith.addf %37, %38 : vector<4x4xf32>
    %cst_10 = arith.constant 6.250000e-02 : f32
    %40 = vector.broadcast %cst_10 : f32 to vector<4x4xf32>
    %41 = arith.mulf %39, %40 : vector<4x4xf32>
    %42 = arith.truncf %41 : vector<4x4xf32> to vector<4x4xbf16>
    %c4_11 = arith.constant 4 : index
    %c0_12 = arith.constant 0 : index
    %43 = vector.load %arg2[%c4_11, %c0_12] : memref<32x4xbf16, #tpu.memory_space<vmem>>, vector<4x4xbf16>
    tpu.vector_store %arg2[%c4_11, %c0_12], %42 {strides = array<i32>} : memref<32x4xbf16, #tpu.memory_space<vmem>>, vector<4x4xbf16>,
    %c32 = arith.constant 32 : index
    %c0_13 = arith.constant 0 : index
    %44 = vector.load %arg1[%c32, %c0_13] : memref<128x16xbf16, #tpu.memory_space<vmem>>, vector<4x16xbf16>
    %45 = arith.extf %44 : vector<4x16xbf16> to vector<4x16xf32>
    %c36 = arith.constant 36 : index
    %c0_14 = arith.constant 0 : index
    %46 = vector.load %arg1[%c36, %c0_14] : memref<128x16xbf16, #tpu.memory_space<vmem>>, vector<4x16xbf16>
    %47 = arith.extf %46 : vector<4x16xbf16> to vector<4x16xf32>
    %48 = arith.addf %45, %47 : vector<4x16xf32>
    %c40 = arith.constant 40 : index
    %c0_15 = arith.constant 0 : index
    %49 = vector.load %arg1[%c40, %c0_15] : memref<128x16xbf16, #tpu.memory_space<vmem>>, vector<4x16xbf16>
    %50 = arith.extf %49 : vector<4x16xbf16> to vector<4x16xf32>
    %51 = arith.addf %48, %50 : vector<4x16xf32>
    %c44 = arith.constant 44 : index
    %c0_16 = arith.constant 0 : index
    %52 = vector.load %arg1[%c44, %c0_16] : memref<128x16xbf16, #tpu.memory_space<vmem>>, vector<4x16xbf16>
    %53 = arith.extf %52 : vector<4x16xbf16> to vector<4x16xf32>
    %54 = arith.addf %51, %53 : vector<4x16xf32>
    %55 = vector.extract_strided_slice %54 {offsets = [0, 0], sizes = [4, 4], strides = [1, 1]} : vector<4x16xf32> to vector<4x4xf32>
    %56 = vector.extract_strided_slice %54 {offsets = [0, 4], sizes = [4, 4], strides = [1, 1]} : vector<4x16xf32> to vector<4x4xf32>
    %57 = arith.addf %55, %56 : vector<4x4xf32>
    %58 = vector.extract_strided_slice %54 {offsets = [0, 8], sizes = [4, 4], strides = [1, 1]} : vector<4x16xf32> to vector<4x4xf32>
    %59 = arith.addf %57, %58 : vector<4x4xf32>
    %60 = vector.extract_strided_slice %54 {offsets = [0, 12], sizes = [4, 4], strides = [1, 1]} : vector<4x16xf32> to vector<4x4xf32>
    %61 = arith.addf %59, %60 : vector<4x4xf32>
    %cst_17 = arith.constant 6.250000e-02 : f32
    %62 = vector.broadcast %cst_17 : f32 to vector<4x4xf32>
    %63 = arith.mulf %61, %62 : vector<4x4xf32>
    %64 = arith.truncf %63 : vector<4x4xf32> to vector<4x4xbf16>
    %c8_18 = arith.constant 8 : index
    %c0_19 = arith.constant 0 : index
    %65 = vector.load %arg2[%c8_18, %c0_19] : memref<32x4xbf16, #tpu.memory_space<vmem>>, vector<4x4xbf16>
    tpu.vector_store %arg2[%c8_18, %c0_19], %64 {strides = array<i32>} : memref<32x4xbf16, #tpu.memory_space<vmem>>, vector<4x4xbf16>,
    %c48 = arith.constant 48 : index
    %c0_20 = arith.constant 0 : index
    %66 = vector.load %arg1[%c48, %c0_20] : memref<128x16xbf16, #tpu.memory_space<vmem>>, vector<4x16xbf16>
    %67 = arith.extf %66 : vector<4x16xbf16> to vector<4x16xf32>
    %c52 = arith.constant 52 : index
    %c0_21 = arith.constant 0 : index
    %68 = vector.load %arg1[%c52, %c0_21] : memref<128x16xbf16, #tpu.memory_space<vmem>>, vector<4x16xbf16>
    %69 = arith.extf %68 : vector<4x16xbf16> to vector<4x16xf32>
    %70 = arith.addf %67, %69 : vector<4x16xf32>
    %c56 = arith.constant 56 : index
    %c0_22 = arith.constant 0 : index
    %71 = vector.load %arg1[%c56, %c0_22] : memref<128x16xbf16, #tpu.memory_space<vmem>>, vector<4x16xbf16>
    %72 = arith.extf %71 : vector<4x16xbf16> to vector<4x16xf32>
    %73 = arith.addf %70, %72 : vector<4x16xf32>
    %c60 = arith.constant 60 : index
    %c0_23 = arith.constant 0 : index
    %74 = vector.load %arg1[%c60, %c0_23] : memref<128x16xbf16, #tpu.memory_space<vmem>>, vector<4x16xbf16>
    %75 = arith.extf %74 : vector<4x16xbf16> to vector<4x16xf32>
    %76 = arith.addf %73, %75 : vector<4x16xf32>
    %77 = vector.extract_strided_slice %76 {offsets = [0, 0], sizes = [4, 4], strides = [1, 1]} : vector<4x16xf32> to vector<4x4xf32>
    %78 = vector.extract_strided_slice %76 {offsets = [0, 4], sizes = [4, 4], strides = [1, 1]} : vector<4x16xf32> to vector<4x4xf32>
    %79 = arith.addf %77, %78 : vector<4x4xf32>
    %80 = vector.extract_strided_slice %76 {offsets = [0, 8], sizes = [4, 4], strides = [1, 1]} : vector<4x16xf32> to vector<4x4xf32>
    %81 = arith.addf %79, %80 : vector<4x4xf32>
    %82 = vector.extract_strided_slice %76 {offsets = [0, 12], sizes = [4, 4], strides = [1, 1]} : vector<4x16xf32> to vector<4x4xf32>
    %83 = arith.addf %81, %82 : vector<4x4xf32>
    %cst_24 = arith.constant 6.250000e-02 : f32
    %84 = vector.broadcast %cst_24 : f32 to vector<4x4xf32>
    %85 = arith.mulf %83, %84 : vector<4x4xf32>
    %86 = arith.truncf %85 : vector<4x4xf32> to vector<4x4xbf16>
    %c12_25 = arith.constant 12 : index
    %c0_26 = arith.constant 0 : index
    %87 = vector.load %arg2[%c12_25, %c0_26] : memref<32x4xbf16, #tpu.memory_space<vmem>>, vector<4x4xbf16>
    tpu.vector_store %arg2[%c12_25, %c0_26], %86 {strides = array<i32>} : memref<32x4xbf16, #tpu.memory_space<vmem>>, vector<4x4xbf16>,
    %c64 = arith.constant 64 : index
    %c0_27 = arith.constant 0 : index
    %88 = vector.load %arg1[%c64, %c0_27] : memref<128x16xbf16, #tpu.memory_space<vmem>>, vector<4x16xbf16>
    %89 = arith.extf %88 : vector<4x16xbf16> to vector<4x16xf32>
    %c68 = arith.constant 68 : index
    %c0_28 = arith.constant 0 : index
    %90 = vector.load %arg1[%c68, %c0_28] : memref<128x16xbf16, #tpu.memory_space<vmem>>, vector<4x16xbf16>
    %91 = arith.extf %90 : vector<4x16xbf16> to vector<4x16xf32>
    %92 = arith.addf %89, %91 : vector<4x16xf32>
    %c72 = arith.constant 72 : index
    %c0_29 = arith.constant 0 : index
    %93 = vector.load %arg1[%c72, %c0_29] : memref<128x16xbf16, #tpu.memory_space<vmem>>, vector<4x16xbf16>
    %94 = arith.extf %93 : vector<4x16xbf16> to vector<4x16xf32>
    %95 = arith.addf %92, %94 : vector<4x16xf32>
    %c76 = arith.constant 76 : index
    %c0_30 = arith.constant 0 : index
    %96 = vector.load %arg1[%c76, %c0_30] : memref<128x16xbf16, #tpu.memory_space<vmem>>, vector<4x16xbf16>
    %97 = arith.extf %96 : vector<4x16xbf16> to vector<4x16xf32>
    %98 = arith.addf %95, %97 : vector<4x16xf32>
    %99 = vector.extract_strided_slice %98 {offsets = [0, 0], sizes = [4, 4], strides = [1, 1]} : vector<4x16xf32> to vector<4x4xf32>
    %100 = vector.extract_strided_slice %98 {offsets = [0, 4], sizes = [4, 4], strides = [1, 1]} : vector<4x16xf32> to vector<4x4xf32>
    %101 = arith.addf %99, %100 : vector<4x4xf32>
    %102 = vector.extract_strided_slice %98 {offsets = [0, 8], sizes = [4, 4], strides = [1, 1]} : vector<4x16xf32> to vector<4x4xf32>
    %103 = arith.addf %101, %102 : vector<4x4xf32>
    %104 = vector.extract_strided_slice %98 {offsets = [0, 12], sizes = [4, 4], strides = [1, 1]} : vector<4x16xf32> to vector<4x4xf32>
    %105 = arith.addf %103, %104 : vector<4x4xf32>
    %cst_31 = arith.constant 6.250000e-02 : f32
    %106 = vector.broadcast %cst_31 : f32 to vector<4x4xf32>
    %107 = arith.mulf %105, %106 : vector<4x4xf32>
    %108 = arith.truncf %107 : vector<4x4xf32> to vector<4x4xbf16>
    %c16_32 = arith.constant 16 : index
    %c0_33 = arith.constant 0 : index
    %109 = vector.load %arg2[%c16_32, %c0_33] : memref<32x4xbf16, #tpu.memory_space<vmem>>, vector<4x4xbf16>
    tpu.vector_store %arg2[%c16_32, %c0_33], %108 {strides = array<i32>} : memref<32x4xbf16, #tpu.memory_space<vmem>>, vector<4x4xbf16>,
    %c80 = arith.constant 80 : index
    %c0_34 = arith.constant 0 : index
    %110 = vector.load %arg1[%c80, %c0_34] : memref<128x16xbf16, #tpu.memory_space<vmem>>, vector<4x16xbf16>
    %111 = arith.extf %110 : vector<4x16xbf16> to vector<4x16xf32>
    %c84 = arith.constant 84 : index
    %c0_35 = arith.constant 0 : index
    %112 = vector.load %arg1[%c84, %c0_35] : memref<128x16xbf16, #tpu.memory_space<vmem>>, vector<4x16xbf16>
    %113 = arith.extf %112 : vector<4x16xbf16> to vector<4x16xf32>
    %114 = arith.addf %111, %113 : vector<4x16xf32>
    %c88 = arith.constant 88 : index
    %c0_36 = arith.constant 0 : index
    %115 = vector.load %arg1[%c88, %c0_36] : memref<128x16xbf16, #tpu.memory_space<vmem>>, vector<4x16xbf16>
    %116 = arith.extf %115 : vector<4x16xbf16> to vector<4x16xf32>
    %117 = arith.addf %114, %116 : vector<4x16xf32>
    %c92 = arith.constant 92 : index
    %c0_37 = arith.constant 0 : index
    %118 = vector.load %arg1[%c92, %c0_37] : memref<128x16xbf16, #tpu.memory_space<vmem>>, vector<4x16xbf16>
    %119 = arith.extf %118 : vector<4x16xbf16> to vector<4x16xf32>
    %120 = arith.addf %117, %119 : vector<4x16xf32>
    %121 = vector.extract_strided_slice %120 {offsets = [0, 0], sizes = [4, 4], strides = [1, 1]} : vector<4x16xf32> to vector<4x4xf32>
    %122 = vector.extract_strided_slice %120 {offsets = [0, 4], sizes = [4, 4], strides = [1, 1]} : vector<4x16xf32> to vector<4x4xf32>
    %123 = arith.addf %121, %122 : vector<4x4xf32>
    %124 = vector.extract_strided_slice %120 {offsets = [0, 8], sizes = [4, 4], strides = [1, 1]} : vector<4x16xf32> to vector<4x4xf32>
    %125 = arith.addf %123, %124 : vector<4x4xf32>
    %126 = vector.extract_strided_slice %120 {offsets = [0, 12], sizes = [4, 4], strides = [1, 1]} : vector<4x16xf32> to vector<4x4xf32>
    %127 = arith.addf %125, %126 : vector<4x4xf32>
    %cst_38 = arith.constant 6.250000e-02 : f32
    %128 = vector.broadcast %cst_38 : f32 to vector<4x4xf32>
    %129 = arith.mulf %127, %128 : vector<4x4xf32>
    %130 = arith.truncf %129 : vector<4x4xf32> to vector<4x4xbf16>
    %c20_39 = arith.constant 20 : index
    %c0_40 = arith.constant 0 : index
    %131 = vector.load %arg2[%c20_39, %c0_40] : memref<32x4xbf16, #tpu.memory_space<vmem>>, vector<4x4xbf16>
    tpu.vector_store %arg2[%c20_39, %c0_40], %130 {strides = array<i32>} : memref<32x4xbf16, #tpu.memory_space<vmem>>, vector<4x4xbf16>,
    %c96 = arith.constant 96 : index
    %c0_41 = arith.constant 0 : index
    %132 = vector.load %arg1[%c96, %c0_41] : memref<128x16xbf16, #tpu.memory_space<vmem>>, vector<4x16xbf16>
    %133 = arith.extf %132 : vector<4x16xbf16> to vector<4x16xf32>
    %c100 = arith.constant 100 : index
    %c0_42 = arith.constant 0 : index
    %134 = vector.load %arg1[%c100, %c0_42] : memref<128x16xbf16, #tpu.memory_space<vmem>>, vector<4x16xbf16>
    %135 = arith.extf %134 : vector<4x16xbf16> to vector<4x16xf32>
    %136 = arith.addf %133, %135 : vector<4x16xf32>
    %c104 = arith.constant 104 : index
    %c0_43 = arith.constant 0 : index
    %137 = vector.load %arg1[%c104, %c0_43] : memref<128x16xbf16, #tpu.memory_space<vmem>>, vector<4x16xbf16>
    %138 = arith.extf %137 : vector<4x16xbf16> to vector<4x16xf32>
    %139 = arith.addf %136, %138 : vector<4x16xf32>
    %c108 = arith.constant 108 : index
    %c0_44 = arith.constant 0 : index
    %140 = vector.load %arg1[%c108, %c0_44] : memref<128x16xbf16, #tpu.memory_space<vmem>>, vector<4x16xbf16>
    %141 = arith.extf %140 : vector<4x16xbf16> to vector<4x16xf32>
    %142 = arith.addf %139, %141 : vector<4x16xf32>
    %143 = vector.extract_strided_slice %142 {offsets = [0, 0], sizes = [4, 4], strides = [1, 1]} : vector<4x16xf32> to vector<4x4xf32>
    %144 = vector.extract_strided_slice %142 {offsets = [0, 4], sizes = [4, 4], strides = [1, 1]} : vector<4x16xf32> to vector<4x4xf32>
    %145 = arith.addf %143, %144 : vector<4x4xf32>
    %146 = vector.extract_strided_slice %142 {offsets = [0, 8], sizes = [4, 4], strides = [1, 1]} : vector<4x16xf32> to vector<4x4xf32>
    %147 = arith.addf %145, %146 : vector<4x4xf32>
    %148 = vector.extract_strided_slice %142 {offsets = [0, 12], sizes = [4, 4], strides = [1, 1]} : vector<4x16xf32> to vector<4x4xf32>
    %149 = arith.addf %147, %148 : vector<4x4xf32>
    %cst_45 = arith.constant 6.250000e-02 : f32
    %150 = vector.broadcast %cst_45 : f32 to vector<4x4xf32>
    %151 = arith.mulf %149, %150 : vector<4x4xf32>
    %152 = arith.truncf %151 : vector<4x4xf32> to vector<4x4xbf16>
    %c24_46 = arith.constant 24 : index
    %c0_47 = arith.constant 0 : index
    %153 = vector.load %arg2[%c24_46, %c0_47] : memref<32x4xbf16, #tpu.memory_space<vmem>>, vector<4x4xbf16>
    tpu.vector_store %arg2[%c24_46, %c0_47], %152 {strides = array<i32>} : memref<32x4xbf16, #tpu.memory_space<vmem>>, vector<4x4xbf16>,
    %c112 = arith.constant 112 : index
    %c0_48 = arith.constant 0 : index
    %154 = vector.load %arg1[%c112, %c0_48] : memref<128x16xbf16, #tpu.memory_space<vmem>>, vector<4x16xbf16>
    %155 = arith.extf %154 : vector<4x16xbf16> to vector<4x16xf32>
    %c116 = arith.constant 116 : index
    %c0_49 = arith.constant 0 : index
    %156 = vector.load %arg1[%c116, %c0_49] : memref<128x16xbf16, #tpu.memory_space<vmem>>, vector<4x16xbf16>
    %157 = arith.extf %156 : vector<4x16xbf16> to vector<4x16xf32>
    %158 = arith.addf %155, %157 : vector<4x16xf32>
    %c120 = arith.constant 120 : index
    %c0_50 = arith.constant 0 : index
    %159 = vector.load %arg1[%c120, %c0_50] : memref<128x16xbf16, #tpu.memory_space<vmem>>, vector<4x16xbf16>
    %160 = arith.extf %159 : vector<4x16xbf16> to vector<4x16xf32>
    %161 = arith.addf %158, %160 : vector<4x16xf32>
    %c124 = arith.constant 124 : index
    %c0_51 = arith.constant 0 : index
    %162 = vector.load %arg1[%c124, %c0_51] : memref<128x16xbf16, #tpu.memory_space<vmem>>, vector<4x16xbf16>
    %163 = arith.extf %162 : vector<4x16xbf16> to vector<4x16xf32>
    %164 = arith.addf %161, %163 : vector<4x16xf32>
    %165 = vector.extract_strided_slice %164 {offsets = [0, 0], sizes = [4, 4], strides = [1, 1]} : vector<4x16xf32> to vector<4x4xf32>
    %166 = vector.extract_strided_slice %164 {offsets = [0, 4], sizes = [4, 4], strides = [1, 1]} : vector<4x16xf32> to vector<4x4xf32>
    %167 = arith.addf %165, %166 : vector<4x4xf32>
    %168 = vector.extract_strided_slice %164 {offsets = [0, 8], sizes = [4, 4], strides = [1, 1]} : vector<4x16xf32> to vector<4x4xf32>
    %169 = arith.addf %167, %168 : vector<4x4xf32>
    %170 = vector.extract_strided_slice %164 {offsets = [0, 12], sizes = [4, 4], strides = [1, 1]} : vector<4x16xf32> to vector<4x4xf32>
    %171 = arith.addf %169, %170 : vector<4x4xf32>
    %cst_52 = arith.constant 6.250000e-02 : f32
    %172 = vector.broadcast %cst_52 : f32 to vector<4x4xf32>
    %173 = arith.mulf %171, %172 : vector<4x4xf32>
    %174 = arith.truncf %173 : vector<4x4xf32> to vector<4x4xbf16>
    %c28_53 = arith.constant 28 : index
    %c0_54 = arith.constant 0 : index
    %175 = vector.load %arg2[%c28_53, %c0_54] : memref<32x4xbf16, #tpu.memory_space<vmem>>, vector<4x4xbf16>
    tpu.vector_store %arg2[%c28_53, %c0_54], %174 {strides = array<i32>} : memref<32x4xbf16, #tpu.memory_space<vmem>>, vector<4x4xbf16>,
    return
  }
  func.func @transform_0(%arg0: i32) -> (i32, i32) {
    %c0_i32 = arith.constant 0 : i32
    %c0_i32_0 = arith.constant 0 : i32
    return %arg0, %c0_i32 : i32, i32
  }
  func.func @transform_1(%arg0: i32) -> (i32, i32) {
    %c0_i32 = arith.constant 0 : i32
    %c0_i32_0 = arith.constant 0 : i32
    return %arg0, %c0_i32 : i32, i32
  }
}

module attributes {stable_mosaic.version = 11 : i64} {
  func.func @_conv_band_kernel(%arg0: i32, %arg1: i32, %arg2: i32, %arg3: memref<1x100x4xbf16, #tpu.memory_space<vmem>>, %arg4: memref<36x128xbf16, #tpu.memory_space<vmem>>, %arg5: memref<1x128xf32, #tpu.memory_space<vmem>>, %arg6: memref<16x8xbf16, #tpu.memory_space<vmem>>, %arg7: memref<8x16x128xbf16, #tpu.memory_space<vmem>>) attributes {dimension_semantics = [#tpu.dimension_semantics<parallel>, #tpu.dimension_semantics<parallel>, #tpu.dimension_semantics<parallel>], iteration_bounds = array<i64: 2, 1, 1>, scalar_prefetch = 0 : i64, scratch_operands = 0 : i64, tpu.core_type = #tpu.core_type<tc>, window_params = [{transform_indices = @transform_0, window_bounds = array<i64: 1, 100, 4>}, {transform_indices = @transform_1, window_bounds = array<i64: 36, 128>}, {transform_indices = @transform_2, window_bounds = array<i64: 1, 128>}, {pipeline_mode = #tpu.pipeline_mode<synchronous>, transform_indices = @transform_3, window_bounds = array<i64: 16, 8>}, {transform_indices = @transform_4, window_bounds = array<i64: 8, 16, 128>}]} {
    %cst = arith.constant 0.000000e+00 : f32
    %0 = vector.broadcast %cst : f32 to vector<78x128xf32>
    %c0 = arith.constant 0 : index
    %c0_0 = arith.constant 0 : index
    %c0_1 = arith.constant 0 : index
    %1 = vector.load %arg3[%c0, %c0_0, %c0_1] : memref<1x100x4xbf16, #tpu.memory_space<vmem>>, vector<1x78x4xbf16>
    %2 = vector.shape_cast %1 : vector<1x78x4xbf16> to vector<78x4xbf16>
    %c0_2 = arith.constant 0 : index
    %c0_3 = arith.constant 0 : index
    %3 = vector.load %arg4[%c0_2, %c0_3] : memref<36x128xbf16, #tpu.memory_space<vmem>>, vector<4x128xbf16>
    %cst_4 = arith.constant dense<0.000000e+00> : vector<78x128xf32>
    %4 = tpu.matmul %2, %3, %cst_4 {dimension_numbers = #tpu.dot_dimension_numbers<[1], [0], [0], [1], [0, 0, 1, 1], [], []>} : vector<78x4xbf16>, vector<4x128xbf16>, vector<78x128xf32> -> vector<78x128xf32>
    %5 = arith.addf %0, %4 : vector<78x128xf32>
    %c0_5 = arith.constant 0 : index
    %c1 = arith.constant 1 : index
    %c0_6 = arith.constant 0 : index
    %6 = vector.load %arg3[%c0_5, %c1, %c0_6] : memref<1x100x4xbf16, #tpu.memory_space<vmem>>, vector<1x78x4xbf16>
    %7 = vector.shape_cast %6 : vector<1x78x4xbf16> to vector<78x4xbf16>
    %c4 = arith.constant 4 : index
    %c0_7 = arith.constant 0 : index
    %8 = vector.load %arg4[%c4, %c0_7] : memref<36x128xbf16, #tpu.memory_space<vmem>>, vector<4x128xbf16>
    %cst_8 = arith.constant dense<0.000000e+00> : vector<78x128xf32>
    %9 = tpu.matmul %7, %8, %cst_8 {dimension_numbers = #tpu.dot_dimension_numbers<[1], [0], [0], [1], [0, 0, 1, 1], [], []>} : vector<78x4xbf16>, vector<4x128xbf16>, vector<78x128xf32> -> vector<78x128xf32>
    %10 = arith.addf %5, %9 : vector<78x128xf32>
    %c0_9 = arith.constant 0 : index
    %c2 = arith.constant 2 : index
    %c0_10 = arith.constant 0 : index
    %11 = vector.load %arg3[%c0_9, %c2, %c0_10] : memref<1x100x4xbf16, #tpu.memory_space<vmem>>, vector<1x78x4xbf16>
    %12 = vector.shape_cast %11 : vector<1x78x4xbf16> to vector<78x4xbf16>
    %c8 = arith.constant 8 : index
    %c0_11 = arith.constant 0 : index
    %13 = vector.load %arg4[%c8, %c0_11] : memref<36x128xbf16, #tpu.memory_space<vmem>>, vector<4x128xbf16>
    %cst_12 = arith.constant dense<0.000000e+00> : vector<78x128xf32>
    %14 = tpu.matmul %12, %13, %cst_12 {dimension_numbers = #tpu.dot_dimension_numbers<[1], [0], [0], [1], [0, 0, 1, 1], [], []>} : vector<78x4xbf16>, vector<4x128xbf16>, vector<78x128xf32> -> vector<78x128xf32>
    %15 = arith.addf %10, %14 : vector<78x128xf32>
    %c0_13 = arith.constant 0 : index
    %c10 = arith.constant 10 : index
    %c0_14 = arith.constant 0 : index
    %16 = vector.load %arg3[%c0_13, %c10, %c0_14] : memref<1x100x4xbf16, #tpu.memory_space<vmem>>, vector<1x78x4xbf16>
    %17 = vector.shape_cast %16 : vector<1x78x4xbf16> to vector<78x4xbf16>
    %c12 = arith.constant 12 : index
    %c0_15 = arith.constant 0 : index
    %18 = vector.load %arg4[%c12, %c0_15] : memref<36x128xbf16, #tpu.memory_space<vmem>>, vector<4x128xbf16>
    %cst_16 = arith.constant dense<0.000000e+00> : vector<78x128xf32>
    %19 = tpu.matmul %17, %18, %cst_16 {dimension_numbers = #tpu.dot_dimension_numbers<[1], [0], [0], [1], [0, 0, 1, 1], [], []>} : vector<78x4xbf16>, vector<4x128xbf16>, vector<78x128xf32> -> vector<78x128xf32>
    %20 = arith.addf %15, %19 : vector<78x128xf32>
    %c0_17 = arith.constant 0 : index
    %c11 = arith.constant 11 : index
    %c0_18 = arith.constant 0 : index
    %21 = vector.load %arg3[%c0_17, %c11, %c0_18] : memref<1x100x4xbf16, #tpu.memory_space<vmem>>, vector<1x78x4xbf16>
    %22 = vector.shape_cast %21 : vector<1x78x4xbf16> to vector<78x4xbf16>
    %c16 = arith.constant 16 : index
    %c0_19 = arith.constant 0 : index
    %23 = vector.load %arg4[%c16, %c0_19] : memref<36x128xbf16, #tpu.memory_space<vmem>>, vector<4x128xbf16>
    %cst_20 = arith.constant dense<0.000000e+00> : vector<78x128xf32>
    %24 = tpu.matmul %22, %23, %cst_20 {dimension_numbers = #tpu.dot_dimension_numbers<[1], [0], [0], [1], [0, 0, 1, 1], [], []>} : vector<78x4xbf16>, vector<4x128xbf16>, vector<78x128xf32> -> vector<78x128xf32>
    %25 = arith.addf %20, %24 : vector<78x128xf32>
    %c0_21 = arith.constant 0 : index
    %c12_22 = arith.constant 12 : index
    %c0_23 = arith.constant 0 : index
    %26 = vector.load %arg3[%c0_21, %c12_22, %c0_23] : memref<1x100x4xbf16, #tpu.memory_space<vmem>>, vector<1x78x4xbf16>
    %27 = vector.shape_cast %26 : vector<1x78x4xbf16> to vector<78x4xbf16>
    %c20 = arith.constant 20 : index
    %c0_24 = arith.constant 0 : index
    %28 = vector.load %arg4[%c20, %c0_24] : memref<36x128xbf16, #tpu.memory_space<vmem>>, vector<4x128xbf16>
    %cst_25 = arith.constant dense<0.000000e+00> : vector<78x128xf32>
    %29 = tpu.matmul %27, %28, %cst_25 {dimension_numbers = #tpu.dot_dimension_numbers<[1], [0], [0], [1], [0, 0, 1, 1], [], []>} : vector<78x4xbf16>, vector<4x128xbf16>, vector<78x128xf32> -> vector<78x128xf32>
    %30 = arith.addf %25, %29 : vector<78x128xf32>
    %c0_26 = arith.constant 0 : index
    %c20_27 = arith.constant 20 : index
    %c0_28 = arith.constant 0 : index
    %31 = vector.load %arg3[%c0_26, %c20_27, %c0_28] : memref<1x100x4xbf16, #tpu.memory_space<vmem>>, vector<1x78x4xbf16>
    %32 = vector.shape_cast %31 : vector<1x78x4xbf16> to vector<78x4xbf16>
    %c24 = arith.constant 24 : index
    %c0_29 = arith.constant 0 : index
    %33 = vector.load %arg4[%c24, %c0_29] : memref<36x128xbf16, #tpu.memory_space<vmem>>, vector<4x128xbf16>
    %cst_30 = arith.constant dense<0.000000e+00> : vector<78x128xf32>
    %34 = tpu.matmul %32, %33, %cst_30 {dimension_numbers = #tpu.dot_dimension_numbers<[1], [0], [0], [1], [0, 0, 1, 1], [], []>} : vector<78x4xbf16>, vector<4x128xbf16>, vector<78x128xf32> -> vector<78x128xf32>
    %35 = arith.addf %30, %34 : vector<78x128xf32>
    %c0_31 = arith.constant 0 : index
    %c21 = arith.constant 21 : index
    %c0_32 = arith.constant 0 : index
    %36 = vector.load %arg3[%c0_31, %c21, %c0_32] : memref<1x100x4xbf16, #tpu.memory_space<vmem>>, vector<1x78x4xbf16>
    %37 = vector.shape_cast %36 : vector<1x78x4xbf16> to vector<78x4xbf16>
    %c28 = arith.constant 28 : index
    %c0_33 = arith.constant 0 : index
    %38 = vector.load %arg4[%c28, %c0_33] : memref<36x128xbf16, #tpu.memory_space<vmem>>, vector<4x128xbf16>
    %cst_34 = arith.constant dense<0.000000e+00> : vector<78x128xf32>
    %39 = tpu.matmul %37, %38, %cst_34 {dimension_numbers = #tpu.dot_dimension_numbers<[1], [0], [0], [1], [0, 0, 1, 1], [], []>} : vector<78x4xbf16>, vector<4x128xbf16>, vector<78x128xf32> -> vector<78x128xf32>
    %40 = arith.addf %35, %39 : vector<78x128xf32>
    %c0_35 = arith.constant 0 : index
    %c22 = arith.constant 22 : index
    %c0_36 = arith.constant 0 : index
    %41 = vector.load %arg3[%c0_35, %c22, %c0_36] : memref<1x100x4xbf16, #tpu.memory_space<vmem>>, vector<1x78x4xbf16>
    %42 = vector.shape_cast %41 : vector<1x78x4xbf16> to vector<78x4xbf16>
    %c32 = arith.constant 32 : index
    %c0_37 = arith.constant 0 : index
    %43 = vector.load %arg4[%c32, %c0_37] : memref<36x128xbf16, #tpu.memory_space<vmem>>, vector<4x128xbf16>
    %cst_38 = arith.constant dense<0.000000e+00> : vector<78x128xf32>
    %44 = tpu.matmul %42, %43, %cst_38 {dimension_numbers = #tpu.dot_dimension_numbers<[1], [0], [0], [1], [0, 0, 1, 1], [], []>} : vector<78x4xbf16>, vector<4x128xbf16>, vector<78x128xf32> -> vector<78x128xf32>
    %45 = arith.addf %40, %44 : vector<78x128xf32>
    %c0_39 = arith.constant 0 : index
    %c0_40 = arith.constant 0 : index
    %46 = vector.load %arg5[%c0_39, %c0_40] : memref<1x128xf32, #tpu.memory_space<vmem>>, vector<1x128xf32>
    %47 = vector.broadcast %46 : vector<1x128xf32> to vector<78x128xf32>
    %48 = arith.addf %45, %47 : vector<78x128xf32>
    %cst_41 = arith.constant 0.000000e+00 : f32
    %49 = vector.broadcast %cst_41 : f32 to vector<78x128xf32>
    %50 = arith.maximumf %48, %49 : vector<78x128xf32>
    %51 = arith.truncf %50 : vector<78x128xf32> to vector<78x128xbf16>
    %c0_42 = arith.constant 0 : index
    %c0_43 = arith.constant 0 : index
    %52 = vector.load %arg6[%c0_42, %c0_43] : memref<16x8xbf16, #tpu.memory_space<vmem>>, vector<16x8xbf16>
    %53 = vector.extract_strided_slice %51 {offsets = [0, 0], sizes = [8, 128], strides = [1, 1]} : vector<78x128xbf16> to vector<8x128xbf16>
    %cst_44 = arith.constant dense<0.000000e+00> : vector<16x128xf32>
    %54 = tpu.matmul %52, %53, %cst_44 {dimension_numbers = #tpu.dot_dimension_numbers<[1], [0], [0], [1], [0, 0, 1, 1], [], []>} : vector<16x8xbf16>, vector<8x128xbf16>, vector<16x128xf32> -> vector<16x128xf32>
    %55 = arith.truncf %54 : vector<16x128xf32> to vector<16x128xbf16>
    %c0_45 = arith.constant 0 : index
    %c0_46 = arith.constant 0 : index
    %c0_47 = arith.constant 0 : index
    %56 = vector.load %arg7[%c0_45, %c0_46, %c0_47] : memref<8x16x128xbf16, #tpu.memory_space<vmem>>, vector<1x16x128xbf16>
    %57 = vector.shape_cast %56 : vector<1x16x128xbf16> to vector<16x128xbf16>
    %58 = vector.shape_cast %55 : vector<16x128xbf16> to vector<1x16x128xbf16>
    tpu.vector_store %arg7[%c0_45, %c0_46, %c0_47], %58 {strides = array<i32>} : memref<8x16x128xbf16, #tpu.memory_space<vmem>>, vector<1x16x128xbf16>,
    %59 = vector.extract_strided_slice %51 {offsets = [10, 0], sizes = [8, 128], strides = [1, 1]} : vector<78x128xbf16> to vector<8x128xbf16>
    %cst_48 = arith.constant dense<0.000000e+00> : vector<16x128xf32>
    %60 = tpu.matmul %52, %59, %cst_48 {dimension_numbers = #tpu.dot_dimension_numbers<[1], [0], [0], [1], [0, 0, 1, 1], [], []>} : vector<16x8xbf16>, vector<8x128xbf16>, vector<16x128xf32> -> vector<16x128xf32>
    %61 = arith.truncf %60 : vector<16x128xf32> to vector<16x128xbf16>
    %c1_49 = arith.constant 1 : index
    %c0_50 = arith.constant 0 : index
    %c0_51 = arith.constant 0 : index
    %62 = vector.load %arg7[%c1_49, %c0_50, %c0_51] : memref<8x16x128xbf16, #tpu.memory_space<vmem>>, vector<1x16x128xbf16>
    %63 = vector.shape_cast %62 : vector<1x16x128xbf16> to vector<16x128xbf16>
    %64 = vector.shape_cast %61 : vector<16x128xbf16> to vector<1x16x128xbf16>
    tpu.vector_store %arg7[%c1_49, %c0_50, %c0_51], %64 {strides = array<i32>} : memref<8x16x128xbf16, #tpu.memory_space<vmem>>, vector<1x16x128xbf16>,
    %65 = vector.extract_strided_slice %51 {offsets = [20, 0], sizes = [8, 128], strides = [1, 1]} : vector<78x128xbf16> to vector<8x128xbf16>
    %cst_52 = arith.constant dense<0.000000e+00> : vector<16x128xf32>
    %66 = tpu.matmul %52, %65, %cst_52 {dimension_numbers = #tpu.dot_dimension_numbers<[1], [0], [0], [1], [0, 0, 1, 1], [], []>} : vector<16x8xbf16>, vector<8x128xbf16>, vector<16x128xf32> -> vector<16x128xf32>
    %67 = arith.truncf %66 : vector<16x128xf32> to vector<16x128xbf16>
    %c2_53 = arith.constant 2 : index
    %c0_54 = arith.constant 0 : index
    %c0_55 = arith.constant 0 : index
    %68 = vector.load %arg7[%c2_53, %c0_54, %c0_55] : memref<8x16x128xbf16, #tpu.memory_space<vmem>>, vector<1x16x128xbf16>
    %69 = vector.shape_cast %68 : vector<1x16x128xbf16> to vector<16x128xbf16>
    %70 = vector.shape_cast %67 : vector<16x128xbf16> to vector<1x16x128xbf16>
    tpu.vector_store %arg7[%c2_53, %c0_54, %c0_55], %70 {strides = array<i32>} : memref<8x16x128xbf16, #tpu.memory_space<vmem>>, vector<1x16x128xbf16>,
    %71 = vector.extract_strided_slice %51 {offsets = [30, 0], sizes = [8, 128], strides = [1, 1]} : vector<78x128xbf16> to vector<8x128xbf16>
    %cst_56 = arith.constant dense<0.000000e+00> : vector<16x128xf32>
    %72 = tpu.matmul %52, %71, %cst_56 {dimension_numbers = #tpu.dot_dimension_numbers<[1], [0], [0], [1], [0, 0, 1, 1], [], []>} : vector<16x8xbf16>, vector<8x128xbf16>, vector<16x128xf32> -> vector<16x128xf32>
    %73 = arith.truncf %72 : vector<16x128xf32> to vector<16x128xbf16>
    %c3 = arith.constant 3 : index
    %c0_57 = arith.constant 0 : index
    %c0_58 = arith.constant 0 : index
    %74 = vector.load %arg7[%c3, %c0_57, %c0_58] : memref<8x16x128xbf16, #tpu.memory_space<vmem>>, vector<1x16x128xbf16>
    %75 = vector.shape_cast %74 : vector<1x16x128xbf16> to vector<16x128xbf16>
    %76 = vector.shape_cast %73 : vector<16x128xbf16> to vector<1x16x128xbf16>
    tpu.vector_store %arg7[%c3, %c0_57, %c0_58], %76 {strides = array<i32>} : memref<8x16x128xbf16, #tpu.memory_space<vmem>>, vector<1x16x128xbf16>,
    %77 = vector.extract_strided_slice %51 {offsets = [40, 0], sizes = [8, 128], strides = [1, 1]} : vector<78x128xbf16> to vector<8x128xbf16>
    %cst_59 = arith.constant dense<0.000000e+00> : vector<16x128xf32>
    %78 = tpu.matmul %52, %77, %cst_59 {dimension_numbers = #tpu.dot_dimension_numbers<[1], [0], [0], [1], [0, 0, 1, 1], [], []>} : vector<16x8xbf16>, vector<8x128xbf16>, vector<16x128xf32> -> vector<16x128xf32>
    %79 = arith.truncf %78 : vector<16x128xf32> to vector<16x128xbf16>
    %c4_60 = arith.constant 4 : index
    %c0_61 = arith.constant 0 : index
    %c0_62 = arith.constant 0 : index
    %80 = vector.load %arg7[%c4_60, %c0_61, %c0_62] : memref<8x16x128xbf16, #tpu.memory_space<vmem>>, vector<1x16x128xbf16>
    %81 = vector.shape_cast %80 : vector<1x16x128xbf16> to vector<16x128xbf16>
    %82 = vector.shape_cast %79 : vector<16x128xbf16> to vector<1x16x128xbf16>
    tpu.vector_store %arg7[%c4_60, %c0_61, %c0_62], %82 {strides = array<i32>} : memref<8x16x128xbf16, #tpu.memory_space<vmem>>, vector<1x16x128xbf16>,
    %83 = vector.extract_strided_slice %51 {offsets = [50, 0], sizes = [8, 128], strides = [1, 1]} : vector<78x128xbf16> to vector<8x128xbf16>
    %cst_63 = arith.constant dense<0.000000e+00> : vector<16x128xf32>
    %84 = tpu.matmul %52, %83, %cst_63 {dimension_numbers = #tpu.dot_dimension_numbers<[1], [0], [0], [1], [0, 0, 1, 1], [], []>} : vector<16x8xbf16>, vector<8x128xbf16>, vector<16x128xf32> -> vector<16x128xf32>
    %85 = arith.truncf %84 : vector<16x128xf32> to vector<16x128xbf16>
    %c5 = arith.constant 5 : index
    %c0_64 = arith.constant 0 : index
    %c0_65 = arith.constant 0 : index
    %86 = vector.load %arg7[%c5, %c0_64, %c0_65] : memref<8x16x128xbf16, #tpu.memory_space<vmem>>, vector<1x16x128xbf16>
    %87 = vector.shape_cast %86 : vector<1x16x128xbf16> to vector<16x128xbf16>
    %88 = vector.shape_cast %85 : vector<16x128xbf16> to vector<1x16x128xbf16>
    tpu.vector_store %arg7[%c5, %c0_64, %c0_65], %88 {strides = array<i32>} : memref<8x16x128xbf16, #tpu.memory_space<vmem>>, vector<1x16x128xbf16>,
    %89 = vector.extract_strided_slice %51 {offsets = [60, 0], sizes = [8, 128], strides = [1, 1]} : vector<78x128xbf16> to vector<8x128xbf16>
    %cst_66 = arith.constant dense<0.000000e+00> : vector<16x128xf32>
    %90 = tpu.matmul %52, %89, %cst_66 {dimension_numbers = #tpu.dot_dimension_numbers<[1], [0], [0], [1], [0, 0, 1, 1], [], []>} : vector<16x8xbf16>, vector<8x128xbf16>, vector<16x128xf32> -> vector<16x128xf32>
    %91 = arith.truncf %90 : vector<16x128xf32> to vector<16x128xbf16>
    %c6 = arith.constant 6 : index
    %c0_67 = arith.constant 0 : index
    %c0_68 = arith.constant 0 : index
    %92 = vector.load %arg7[%c6, %c0_67, %c0_68] : memref<8x16x128xbf16, #tpu.memory_space<vmem>>, vector<1x16x128xbf16>
    %93 = vector.shape_cast %92 : vector<1x16x128xbf16> to vector<16x128xbf16>
    %94 = vector.shape_cast %91 : vector<16x128xbf16> to vector<1x16x128xbf16>
    tpu.vector_store %arg7[%c6, %c0_67, %c0_68], %94 {strides = array<i32>} : memref<8x16x128xbf16, #tpu.memory_space<vmem>>, vector<1x16x128xbf16>,
    %95 = vector.extract_strided_slice %51 {offsets = [70, 0], sizes = [8, 128], strides = [1, 1]} : vector<78x128xbf16> to vector<8x128xbf16>
    %cst_69 = arith.constant dense<0.000000e+00> : vector<16x128xf32>
    %96 = tpu.matmul %52, %95, %cst_69 {dimension_numbers = #tpu.dot_dimension_numbers<[1], [0], [0], [1], [0, 0, 1, 1], [], []>} : vector<16x8xbf16>, vector<8x128xbf16>, vector<16x128xf32> -> vector<16x128xf32>
    %97 = arith.truncf %96 : vector<16x128xf32> to vector<16x128xbf16>
    %c7 = arith.constant 7 : index
    %c0_70 = arith.constant 0 : index
    %c0_71 = arith.constant 0 : index
    %98 = vector.load %arg7[%c7, %c0_70, %c0_71] : memref<8x16x128xbf16, #tpu.memory_space<vmem>>, vector<1x16x128xbf16>
    %99 = vector.shape_cast %98 : vector<1x16x128xbf16> to vector<16x128xbf16>
    %100 = vector.shape_cast %97 : vector<16x128xbf16> to vector<1x16x128xbf16>
    tpu.vector_store %arg7[%c7, %c0_70, %c0_71], %100 {strides = array<i32>} : memref<8x16x128xbf16, #tpu.memory_space<vmem>>, vector<1x16x128xbf16>,
    return
  }
  func.func @transform_0(%arg0: i32, %arg1: i32, %arg2: i32) -> (i32, i32, i32) {
    %c1_i32 = arith.constant 1 : i32
    %0 = arith.muli %arg0, %c1_i32 : i32
    %1 = arith.addi %0, %arg2 : i32
    %c0_i32 = arith.constant 0 : i32
    %c0_i32_0 = arith.constant 0 : i32
    %c0_i32_1 = arith.constant 0 : i32
    return %1, %c0_i32, %c0_i32_0 : i32, i32, i32
  }
  func.func @transform_1(%arg0: i32, %arg1: i32, %arg2: i32) -> (i32, i32) {
    %c0_i32 = arith.constant 0 : i32
    %c0_i32_0 = arith.constant 0 : i32
    return %c0_i32, %arg1 : i32, i32
  }
  func.func @transform_2(%arg0: i32, %arg1: i32, %arg2: i32) -> (i32, i32) {
    %c0_i32 = arith.constant 0 : i32
    %c0_i32_0 = arith.constant 0 : i32
    return %c0_i32, %arg1 : i32, i32
  }
  func.func @transform_3(%arg0: i32, %arg1: i32, %arg2: i32) -> (i32, i32) {
    %c0_i32 = arith.constant 0 : i32
    %c0_i32_0 = arith.constant 0 : i32
    %c0_i32_1 = arith.constant 0 : i32
    return %c0_i32, %c0_i32_0 : i32, i32
  }
  func.func @transform_4(%arg0: i32, %arg1: i32, %arg2: i32) -> (i32, i32, i32) {
    %c1_i32 = arith.constant 1 : i32
    %0 = arith.muli %arg0, %c1_i32 : i32
    %1 = arith.addi %0, %arg2 : i32
    %c0_i32 = arith.constant 0 : i32
    %c0_i32_0 = arith.constant 0 : i32
    return %1, %c0_i32, %arg1 : i32, i32, i32
  }
}

module attributes {stable_mosaic.version = 11 : i64} {
  func.func @_conv_band_kernel(%arg0: i32, %arg1: i32, %arg2: i32, %arg3: memref<1x36x4xbf16, #tpu.memory_space<vmem>>, %arg4: memref<36x128xbf16, #tpu.memory_space<vmem>>, %arg5: memref<1x128xf32, #tpu.memory_space<vmem>>, %arg6: memref<16x4xbf16, #tpu.memory_space<vmem>>, %arg7: memref<4x16x128xbf16, #tpu.memory_space<vmem>>) attributes {dimension_semantics = [#tpu.dimension_semantics<parallel>, #tpu.dimension_semantics<parallel>, #tpu.dimension_semantics<parallel>], iteration_bounds = array<i64: 2, 1, 1>, scalar_prefetch = 0 : i64, scratch_operands = 0 : i64, tpu.core_type = #tpu.core_type<tc>, window_params = [{transform_indices = @transform_0, window_bounds = array<i64: 1, 36, 4>}, {transform_indices = @transform_1, window_bounds = array<i64: 36, 128>}, {transform_indices = @transform_2, window_bounds = array<i64: 1, 128>}, {pipeline_mode = #tpu.pipeline_mode<synchronous>, transform_indices = @transform_3, window_bounds = array<i64: 16, 4>}, {transform_indices = @transform_4, window_bounds = array<i64: 4, 16, 128>}]} {
    %cst = arith.constant 0.000000e+00 : f32
    %0 = vector.broadcast %cst : f32 to vector<22x128xf32>
    %c0 = arith.constant 0 : index
    %c0_0 = arith.constant 0 : index
    %c0_1 = arith.constant 0 : index
    %1 = vector.load %arg3[%c0, %c0_0, %c0_1] : memref<1x36x4xbf16, #tpu.memory_space<vmem>>, vector<1x22x4xbf16>
    %2 = vector.shape_cast %1 : vector<1x22x4xbf16> to vector<22x4xbf16>
    %c0_2 = arith.constant 0 : index
    %c0_3 = arith.constant 0 : index
    %3 = vector.load %arg4[%c0_2, %c0_3] : memref<36x128xbf16, #tpu.memory_space<vmem>>, vector<4x128xbf16>
    %cst_4 = arith.constant dense<0.000000e+00> : vector<22x128xf32>
    %4 = tpu.matmul %2, %3, %cst_4 {dimension_numbers = #tpu.dot_dimension_numbers<[1], [0], [0], [1], [0, 0, 1, 1], [], []>} : vector<22x4xbf16>, vector<4x128xbf16>, vector<22x128xf32> -> vector<22x128xf32>
    %5 = arith.addf %0, %4 : vector<22x128xf32>
    %c0_5 = arith.constant 0 : index
    %c1 = arith.constant 1 : index
    %c0_6 = arith.constant 0 : index
    %6 = vector.load %arg3[%c0_5, %c1, %c0_6] : memref<1x36x4xbf16, #tpu.memory_space<vmem>>, vector<1x22x4xbf16>
    %7 = vector.shape_cast %6 : vector<1x22x4xbf16> to vector<22x4xbf16>
    %c4 = arith.constant 4 : index
    %c0_7 = arith.constant 0 : index
    %8 = vector.load %arg4[%c4, %c0_7] : memref<36x128xbf16, #tpu.memory_space<vmem>>, vector<4x128xbf16>
    %cst_8 = arith.constant dense<0.000000e+00> : vector<22x128xf32>
    %9 = tpu.matmul %7, %8, %cst_8 {dimension_numbers = #tpu.dot_dimension_numbers<[1], [0], [0], [1], [0, 0, 1, 1], [], []>} : vector<22x4xbf16>, vector<4x128xbf16>, vector<22x128xf32> -> vector<22x128xf32>
    %10 = arith.addf %5, %9 : vector<22x128xf32>
    %c0_9 = arith.constant 0 : index
    %c2 = arith.constant 2 : index
    %c0_10 = arith.constant 0 : index
    %11 = vector.load %arg3[%c0_9, %c2, %c0_10] : memref<1x36x4xbf16, #tpu.memory_space<vmem>>, vector<1x22x4xbf16>
    %12 = vector.shape_cast %11 : vector<1x22x4xbf16> to vector<22x4xbf16>
    %c8 = arith.constant 8 : index
    %c0_11 = arith.constant 0 : index
    %13 = vector.load %arg4[%c8, %c0_11] : memref<36x128xbf16, #tpu.memory_space<vmem>>, vector<4x128xbf16>
    %cst_12 = arith.constant dense<0.000000e+00> : vector<22x128xf32>
    %14 = tpu.matmul %12, %13, %cst_12 {dimension_numbers = #tpu.dot_dimension_numbers<[1], [0], [0], [1], [0, 0, 1, 1], [], []>} : vector<22x4xbf16>, vector<4x128xbf16>, vector<22x128xf32> -> vector<22x128xf32>
    %15 = arith.addf %10, %14 : vector<22x128xf32>
    %c0_13 = arith.constant 0 : index
    %c6 = arith.constant 6 : index
    %c0_14 = arith.constant 0 : index
    %16 = vector.load %arg3[%c0_13, %c6, %c0_14] : memref<1x36x4xbf16, #tpu.memory_space<vmem>>, vector<1x22x4xbf16>
    %17 = vector.shape_cast %16 : vector<1x22x4xbf16> to vector<22x4xbf16>
    %c12 = arith.constant 12 : index
    %c0_15 = arith.constant 0 : index
    %18 = vector.load %arg4[%c12, %c0_15] : memref<36x128xbf16, #tpu.memory_space<vmem>>, vector<4x128xbf16>
    %cst_16 = arith.constant dense<0.000000e+00> : vector<22x128xf32>
    %19 = tpu.matmul %17, %18, %cst_16 {dimension_numbers = #tpu.dot_dimension_numbers<[1], [0], [0], [1], [0, 0, 1, 1], [], []>} : vector<22x4xbf16>, vector<4x128xbf16>, vector<22x128xf32> -> vector<22x128xf32>
    %20 = arith.addf %15, %19 : vector<22x128xf32>
    %c0_17 = arith.constant 0 : index
    %c7 = arith.constant 7 : index
    %c0_18 = arith.constant 0 : index
    %21 = vector.load %arg3[%c0_17, %c7, %c0_18] : memref<1x36x4xbf16, #tpu.memory_space<vmem>>, vector<1x22x4xbf16>
    %22 = vector.shape_cast %21 : vector<1x22x4xbf16> to vector<22x4xbf16>
    %c16 = arith.constant 16 : index
    %c0_19 = arith.constant 0 : index
    %23 = vector.load %arg4[%c16, %c0_19] : memref<36x128xbf16, #tpu.memory_space<vmem>>, vector<4x128xbf16>
    %cst_20 = arith.constant dense<0.000000e+00> : vector<22x128xf32>
    %24 = tpu.matmul %22, %23, %cst_20 {dimension_numbers = #tpu.dot_dimension_numbers<[1], [0], [0], [1], [0, 0, 1, 1], [], []>} : vector<22x4xbf16>, vector<4x128xbf16>, vector<22x128xf32> -> vector<22x128xf32>
    %25 = arith.addf %20, %24 : vector<22x128xf32>
    %c0_21 = arith.constant 0 : index
    %c8_22 = arith.constant 8 : index
    %c0_23 = arith.constant 0 : index
    %26 = vector.load %arg3[%c0_21, %c8_22, %c0_23] : memref<1x36x4xbf16, #tpu.memory_space<vmem>>, vector<1x22x4xbf16>
    %27 = vector.shape_cast %26 : vector<1x22x4xbf16> to vector<22x4xbf16>
    %c20 = arith.constant 20 : index
    %c0_24 = arith.constant 0 : index
    %28 = vector.load %arg4[%c20, %c0_24] : memref<36x128xbf16, #tpu.memory_space<vmem>>, vector<4x128xbf16>
    %cst_25 = arith.constant dense<0.000000e+00> : vector<22x128xf32>
    %29 = tpu.matmul %27, %28, %cst_25 {dimension_numbers = #tpu.dot_dimension_numbers<[1], [0], [0], [1], [0, 0, 1, 1], [], []>} : vector<22x4xbf16>, vector<4x128xbf16>, vector<22x128xf32> -> vector<22x128xf32>
    %30 = arith.addf %25, %29 : vector<22x128xf32>
    %c0_26 = arith.constant 0 : index
    %c12_27 = arith.constant 12 : index
    %c0_28 = arith.constant 0 : index
    %31 = vector.load %arg3[%c0_26, %c12_27, %c0_28] : memref<1x36x4xbf16, #tpu.memory_space<vmem>>, vector<1x22x4xbf16>
    %32 = vector.shape_cast %31 : vector<1x22x4xbf16> to vector<22x4xbf16>
    %c24 = arith.constant 24 : index
    %c0_29 = arith.constant 0 : index
    %33 = vector.load %arg4[%c24, %c0_29] : memref<36x128xbf16, #tpu.memory_space<vmem>>, vector<4x128xbf16>
    %cst_30 = arith.constant dense<0.000000e+00> : vector<22x128xf32>
    %34 = tpu.matmul %32, %33, %cst_30 {dimension_numbers = #tpu.dot_dimension_numbers<[1], [0], [0], [1], [0, 0, 1, 1], [], []>} : vector<22x4xbf16>, vector<4x128xbf16>, vector<22x128xf32> -> vector<22x128xf32>
    %35 = arith.addf %30, %34 : vector<22x128xf32>
    %c0_31 = arith.constant 0 : index
    %c13 = arith.constant 13 : index
    %c0_32 = arith.constant 0 : index
    %36 = vector.load %arg3[%c0_31, %c13, %c0_32] : memref<1x36x4xbf16, #tpu.memory_space<vmem>>, vector<1x22x4xbf16>
    %37 = vector.shape_cast %36 : vector<1x22x4xbf16> to vector<22x4xbf16>
    %c28 = arith.constant 28 : index
    %c0_33 = arith.constant 0 : index
    %38 = vector.load %arg4[%c28, %c0_33] : memref<36x128xbf16, #tpu.memory_space<vmem>>, vector<4x128xbf16>
    %cst_34 = arith.constant dense<0.000000e+00> : vector<22x128xf32>
    %39 = tpu.matmul %37, %38, %cst_34 {dimension_numbers = #tpu.dot_dimension_numbers<[1], [0], [0], [1], [0, 0, 1, 1], [], []>} : vector<22x4xbf16>, vector<4x128xbf16>, vector<22x128xf32> -> vector<22x128xf32>
    %40 = arith.addf %35, %39 : vector<22x128xf32>
    %c0_35 = arith.constant 0 : index
    %c14 = arith.constant 14 : index
    %c0_36 = arith.constant 0 : index
    %41 = vector.load %arg3[%c0_35, %c14, %c0_36] : memref<1x36x4xbf16, #tpu.memory_space<vmem>>, vector<1x22x4xbf16>
    %42 = vector.shape_cast %41 : vector<1x22x4xbf16> to vector<22x4xbf16>
    %c32 = arith.constant 32 : index
    %c0_37 = arith.constant 0 : index
    %43 = vector.load %arg4[%c32, %c0_37] : memref<36x128xbf16, #tpu.memory_space<vmem>>, vector<4x128xbf16>
    %cst_38 = arith.constant dense<0.000000e+00> : vector<22x128xf32>
    %44 = tpu.matmul %42, %43, %cst_38 {dimension_numbers = #tpu.dot_dimension_numbers<[1], [0], [0], [1], [0, 0, 1, 1], [], []>} : vector<22x4xbf16>, vector<4x128xbf16>, vector<22x128xf32> -> vector<22x128xf32>
    %45 = arith.addf %40, %44 : vector<22x128xf32>
    %c0_39 = arith.constant 0 : index
    %c0_40 = arith.constant 0 : index
    %46 = vector.load %arg5[%c0_39, %c0_40] : memref<1x128xf32, #tpu.memory_space<vmem>>, vector<1x128xf32>
    %47 = vector.broadcast %46 : vector<1x128xf32> to vector<22x128xf32>
    %48 = arith.addf %45, %47 : vector<22x128xf32>
    %cst_41 = arith.constant 0.000000e+00 : f32
    %49 = vector.broadcast %cst_41 : f32 to vector<22x128xf32>
    %50 = arith.maximumf %48, %49 : vector<22x128xf32>
    %51 = arith.truncf %50 : vector<22x128xf32> to vector<22x128xbf16>
    %c0_42 = arith.constant 0 : index
    %c0_43 = arith.constant 0 : index
    %52 = vector.load %arg6[%c0_42, %c0_43] : memref<16x4xbf16, #tpu.memory_space<vmem>>, vector<16x4xbf16>
    %53 = vector.extract_strided_slice %51 {offsets = [0, 0], sizes = [4, 128], strides = [1, 1]} : vector<22x128xbf16> to vector<4x128xbf16>
    %cst_44 = arith.constant dense<0.000000e+00> : vector<16x128xf32>
    %54 = tpu.matmul %52, %53, %cst_44 {dimension_numbers = #tpu.dot_dimension_numbers<[1], [0], [0], [1], [0, 0, 1, 1], [], []>} : vector<16x4xbf16>, vector<4x128xbf16>, vector<16x128xf32> -> vector<16x128xf32>
    %55 = arith.truncf %54 : vector<16x128xf32> to vector<16x128xbf16>
    %c0_45 = arith.constant 0 : index
    %c0_46 = arith.constant 0 : index
    %c0_47 = arith.constant 0 : index
    %56 = vector.load %arg7[%c0_45, %c0_46, %c0_47] : memref<4x16x128xbf16, #tpu.memory_space<vmem>>, vector<1x16x128xbf16>
    %57 = vector.shape_cast %56 : vector<1x16x128xbf16> to vector<16x128xbf16>
    %58 = vector.shape_cast %55 : vector<16x128xbf16> to vector<1x16x128xbf16>
    tpu.vector_store %arg7[%c0_45, %c0_46, %c0_47], %58 {strides = array<i32>} : memref<4x16x128xbf16, #tpu.memory_space<vmem>>, vector<1x16x128xbf16>,
    %59 = vector.extract_strided_slice %51 {offsets = [6, 0], sizes = [4, 128], strides = [1, 1]} : vector<22x128xbf16> to vector<4x128xbf16>
    %cst_48 = arith.constant dense<0.000000e+00> : vector<16x128xf32>
    %60 = tpu.matmul %52, %59, %cst_48 {dimension_numbers = #tpu.dot_dimension_numbers<[1], [0], [0], [1], [0, 0, 1, 1], [], []>} : vector<16x4xbf16>, vector<4x128xbf16>, vector<16x128xf32> -> vector<16x128xf32>
    %61 = arith.truncf %60 : vector<16x128xf32> to vector<16x128xbf16>
    %c1_49 = arith.constant 1 : index
    %c0_50 = arith.constant 0 : index
    %c0_51 = arith.constant 0 : index
    %62 = vector.load %arg7[%c1_49, %c0_50, %c0_51] : memref<4x16x128xbf16, #tpu.memory_space<vmem>>, vector<1x16x128xbf16>
    %63 = vector.shape_cast %62 : vector<1x16x128xbf16> to vector<16x128xbf16>
    %64 = vector.shape_cast %61 : vector<16x128xbf16> to vector<1x16x128xbf16>
    tpu.vector_store %arg7[%c1_49, %c0_50, %c0_51], %64 {strides = array<i32>} : memref<4x16x128xbf16, #tpu.memory_space<vmem>>, vector<1x16x128xbf16>,
    %65 = vector.extract_strided_slice %51 {offsets = [12, 0], sizes = [4, 128], strides = [1, 1]} : vector<22x128xbf16> to vector<4x128xbf16>
    %cst_52 = arith.constant dense<0.000000e+00> : vector<16x128xf32>
    %66 = tpu.matmul %52, %65, %cst_52 {dimension_numbers = #tpu.dot_dimension_numbers<[1], [0], [0], [1], [0, 0, 1, 1], [], []>} : vector<16x4xbf16>, vector<4x128xbf16>, vector<16x128xf32> -> vector<16x128xf32>
    %67 = arith.truncf %66 : vector<16x128xf32> to vector<16x128xbf16>
    %c2_53 = arith.constant 2 : index
    %c0_54 = arith.constant 0 : index
    %c0_55 = arith.constant 0 : index
    %68 = vector.load %arg7[%c2_53, %c0_54, %c0_55] : memref<4x16x128xbf16, #tpu.memory_space<vmem>>, vector<1x16x128xbf16>
    %69 = vector.shape_cast %68 : vector<1x16x128xbf16> to vector<16x128xbf16>
    %70 = vector.shape_cast %67 : vector<16x128xbf16> to vector<1x16x128xbf16>
    tpu.vector_store %arg7[%c2_53, %c0_54, %c0_55], %70 {strides = array<i32>} : memref<4x16x128xbf16, #tpu.memory_space<vmem>>, vector<1x16x128xbf16>,
    %71 = vector.extract_strided_slice %51 {offsets = [18, 0], sizes = [4, 128], strides = [1, 1]} : vector<22x128xbf16> to vector<4x128xbf16>
    %cst_56 = arith.constant dense<0.000000e+00> : vector<16x128xf32>
    %72 = tpu.matmul %52, %71, %cst_56 {dimension_numbers = #tpu.dot_dimension_numbers<[1], [0], [0], [1], [0, 0, 1, 1], [], []>} : vector<16x4xbf16>, vector<4x128xbf16>, vector<16x128xf32> -> vector<16x128xf32>
    %73 = arith.truncf %72 : vector<16x128xf32> to vector<16x128xbf16>
    %c3 = arith.constant 3 : index
    %c0_57 = arith.constant 0 : index
    %c0_58 = arith.constant 0 : index
    %74 = vector.load %arg7[%c3, %c0_57, %c0_58] : memref<4x16x128xbf16, #tpu.memory_space<vmem>>, vector<1x16x128xbf16>
    %75 = vector.shape_cast %74 : vector<1x16x128xbf16> to vector<16x128xbf16>
    %76 = vector.shape_cast %73 : vector<16x128xbf16> to vector<1x16x128xbf16>
    tpu.vector_store %arg7[%c3, %c0_57, %c0_58], %76 {strides = array<i32>} : memref<4x16x128xbf16, #tpu.memory_space<vmem>>, vector<1x16x128xbf16>,
    return
  }
  func.func @transform_0(%arg0: i32, %arg1: i32, %arg2: i32) -> (i32, i32, i32) {
    %c1_i32 = arith.constant 1 : i32
    %0 = arith.muli %arg0, %c1_i32 : i32
    %1 = arith.addi %0, %arg2 : i32
    %c0_i32 = arith.constant 0 : i32
    %c0_i32_0 = arith.constant 0 : i32
    %c0_i32_1 = arith.constant 0 : i32
    return %1, %c0_i32, %c0_i32_0 : i32, i32, i32
  }
  func.func @transform_1(%arg0: i32, %arg1: i32, %arg2: i32) -> (i32, i32) {
    %c0_i32 = arith.constant 0 : i32
    %c0_i32_0 = arith.constant 0 : i32
    return %c0_i32, %arg1 : i32, i32
  }
  func.func @transform_2(%arg0: i32, %arg1: i32, %arg2: i32) -> (i32, i32) {
    %c0_i32 = arith.constant 0 : i32
    %c0_i32_0 = arith.constant 0 : i32
    return %c0_i32, %arg1 : i32, i32
  }
  func.func @transform_3(%arg0: i32, %arg1: i32, %arg2: i32) -> (i32, i32) {
    %c0_i32 = arith.constant 0 : i32
    %c0_i32_0 = arith.constant 0 : i32
    %c0_i32_1 = arith.constant 0 : i32
    return %c0_i32, %c0_i32_0 : i32, i32
  }
  func.func @transform_4(%arg0: i32, %arg1: i32, %arg2: i32) -> (i32, i32, i32) {
    %c1_i32 = arith.constant 1 : i32
    %0 = arith.muli %arg0, %c1_i32 : i32
    %1 = arith.addi %0, %arg2 : i32
    %c0_i32 = arith.constant 0 : i32
    %c0_i32_0 = arith.constant 0 : i32
    return %1, %c0_i32, %arg1 : i32, i32, i32
  }
}

module attributes {stable_mosaic.version = 11 : i64} {
  func.func @_upsample_h_kernel(%arg0: i32, %arg1: i32, %arg2: i32, %arg3: memref<1x16x128xbf16, #tpu.memory_space<vmem>>, %arg4: memref<8x16x128xbf16, #tpu.memory_space<vmem>>, %arg5: memref<1x16x128xbf16, #tpu.memory_space<vmem>>, %arg6: memref<16x16x128xbf16, #tpu.memory_space<vmem>>) attributes {dimension_semantics = [#tpu.dimension_semantics<parallel>, #tpu.dimension_semantics<parallel>, #tpu.dimension_semantics<parallel>], iteration_bounds = array<i64: 2, 1, 1>, scalar_prefetch = 0 : i64, scratch_operands = 0 : i64, tpu.core_type = #tpu.core_type<tc>, window_params = [{transform_indices = @transform_0, window_bounds = array<i64: 1, 16, 128>}, {transform_indices = @transform_1, window_bounds = array<i64: 8, 16, 128>}, {transform_indices = @transform_2, window_bounds = array<i64: 1, 16, 128>}, {transform_indices = @transform_3, window_bounds = array<i64: 16, 16, 128>}]} {
    %c0 = arith.constant 0 : index
    %c0_0 = arith.constant 0 : index
    %c0_1 = arith.constant 0 : index
    %0 = vector.load %arg3[%c0, %c0_0, %c0_1] : memref<1x16x128xbf16, #tpu.memory_space<vmem>>, vector<1x16x128xbf16>
    %1 = vector.shape_cast %0 : vector<1x16x128xbf16> to vector<16x128xbf16>
    %2 = arith.extf %1 : vector<16x128xbf16> to vector<16x128xf32>
    %c0_2 = arith.constant 0 : index
    %c0_3 = arith.constant 0 : index
    %c0_4 = arith.constant 0 : index
    %3 = vector.load %arg5[%c0_2, %c0_3, %c0_4] : memref<1x16x128xbf16, #tpu.memory_space<vmem>>, vector<1x16x128xbf16>
    %4 = vector.shape_cast %3 : vector<1x16x128xbf16> to vector<16x128xbf16>
    %5 = arith.extf %4 : vector<16x128xbf16> to vector<16x128xf32>
    %c0_5 = arith.constant 0 : index
    %c0_6 = arith.constant 0 : index
    %c0_7 = arith.constant 0 : index
    %6 = vector.load %arg4[%c0_5, %c0_6, %c0_7] : memref<8x16x128xbf16, #tpu.memory_space<vmem>>, vector<1x16x128xbf16>
    %7 = vector.shape_cast %6 : vector<1x16x128xbf16> to vector<16x128xbf16>
    %8 = arith.extf %7 : vector<16x128xbf16> to vector<16x128xf32>
    %c1 = arith.constant 1 : index
    %c0_8 = arith.constant 0 : index
    %c0_9 = arith.constant 0 : index
    %9 = vector.load %arg4[%c1, %c0_8, %c0_9] : memref<8x16x128xbf16, #tpu.memory_space<vmem>>, vector<1x16x128xbf16>
    %10 = vector.shape_cast %9 : vector<1x16x128xbf16> to vector<16x128xbf16>
    %11 = arith.extf %10 : vector<16x128xbf16> to vector<16x128xf32>
    %cst = arith.constant 2.500000e-01 : f32
    %12 = vector.broadcast %cst : f32 to vector<16x128xf32>
    %13 = arith.mulf %12, %2 : vector<16x128xf32>
    %cst_10 = arith.constant 7.500000e-01 : f32
    %14 = vector.broadcast %cst_10 : f32 to vector<16x128xf32>
    %15 = arith.mulf %14, %8 : vector<16x128xf32>
    %16 = arith.addf %13, %15 : vector<16x128xf32>
    %17 = arith.truncf %16 : vector<16x128xf32> to vector<16x128xbf16>
    %c0_11 = arith.constant 0 : index
    %c0_12 = arith.constant 0 : index
    %c0_13 = arith.constant 0 : index
    %18 = vector.load %arg6[%c0_11, %c0_12, %c0_13] : memref<16x16x128xbf16, #tpu.memory_space<vmem>>, vector<1x16x128xbf16>
    %19 = vector.shape_cast %18 : vector<1x16x128xbf16> to vector<16x128xbf16>
    %20 = vector.shape_cast %17 : vector<16x128xbf16> to vector<1x16x128xbf16>
    tpu.vector_store %arg6[%c0_11, %c0_12, %c0_13], %20 {strides = array<i32>} : memref<16x16x128xbf16, #tpu.memory_space<vmem>>, vector<1x16x128xbf16>,
    %cst_14 = arith.constant 7.500000e-01 : f32
    %21 = vector.broadcast %cst_14 : f32 to vector<16x128xf32>
    %22 = arith.mulf %21, %8 : vector<16x128xf32>
    %cst_15 = arith.constant 2.500000e-01 : f32
    %23 = vector.broadcast %cst_15 : f32 to vector<16x128xf32>
    %24 = arith.mulf %23, %11 : vector<16x128xf32>
    %25 = arith.addf %22, %24 : vector<16x128xf32>
    %26 = arith.truncf %25 : vector<16x128xf32> to vector<16x128xbf16>
    %c1_16 = arith.constant 1 : index
    %c0_17 = arith.constant 0 : index
    %c0_18 = arith.constant 0 : index
    %27 = vector.load %arg6[%c1_16, %c0_17, %c0_18] : memref<16x16x128xbf16, #tpu.memory_space<vmem>>, vector<1x16x128xbf16>
    %28 = vector.shape_cast %27 : vector<1x16x128xbf16> to vector<16x128xbf16>
    %29 = vector.shape_cast %26 : vector<16x128xbf16> to vector<1x16x128xbf16>
    tpu.vector_store %arg6[%c1_16, %c0_17, %c0_18], %29 {strides = array<i32>} : memref<16x16x128xbf16, #tpu.memory_space<vmem>>, vector<1x16x128xbf16>,
    %c1_19 = arith.constant 1 : index
    %c0_20 = arith.constant 0 : index
    %c0_21 = arith.constant 0 : index
    %30 = vector.load %arg4[%c1_19, %c0_20, %c0_21] : memref<8x16x128xbf16, #tpu.memory_space<vmem>>, vector<1x16x128xbf16>
    %31 = vector.shape_cast %30 : vector<1x16x128xbf16> to vector<16x128xbf16>
    %32 = arith.extf %31 : vector<16x128xbf16> to vector<16x128xf32>
    %c0_22 = arith.constant 0 : index
    %c0_23 = arith.constant 0 : index
    %c0_24 = arith.constant 0 : index
    %33 = vector.load %arg4[%c0_22, %c0_23, %c0_24] : memref<8x16x128xbf16, #tpu.memory_space<vmem>>, vector<1x16x128xbf16>
    %34 = vector.shape_cast %33 : vector<1x16x128xbf16> to vector<16x128xbf16>
    %35 = arith.extf %34 : vector<16x128xbf16> to vector<16x128xf32>
    %c2 = arith.constant 2 : index
    %c0_25 = arith.constant 0 : index
    %c0_26 = arith.constant 0 : index
    %36 = vector.load %arg4[%c2, %c0_25, %c0_26] : memref<8x16x128xbf16, #tpu.memory_space<vmem>>, vector<1x16x128xbf16>
    %37 = vector.shape_cast %36 : vector<1x16x128xbf16> to vector<16x128xbf16>
    %38 = arith.extf %37 : vector<16x128xbf16> to vector<16x128xf32>
    %cst_27 = arith.constant 2.500000e-01 : f32
    %39 = vector.broadcast %cst_27 : f32 to vector<16x128xf32>
    %40 = arith.mulf %39, %35 : vector<16x128xf32>
    %cst_28 = arith.constant 7.500000e-01 : f32
    %41 = vector.broadcast %cst_28 : f32 to vector<16x128xf32>
    %42 = arith.mulf %41, %32 : vector<16x128xf32>
    %43 = arith.addf %40, %42 : vector<16x128xf32>
    %44 = arith.truncf %43 : vector<16x128xf32> to vector<16x128xbf16>
    %c2_29 = arith.constant 2 : index
    %c0_30 = arith.constant 0 : index
    %c0_31 = arith.constant 0 : index
    %45 = vector.load %arg6[%c2_29, %c0_30, %c0_31] : memref<16x16x128xbf16, #tpu.memory_space<vmem>>, vector<1x16x128xbf16>
    %46 = vector.shape_cast %45 : vector<1x16x128xbf16> to vector<16x128xbf16>
    %47 = vector.shape_cast %44 : vector<16x128xbf16> to vector<1x16x128xbf16>
    tpu.vector_store %arg6[%c2_29, %c0_30, %c0_31], %47 {strides = array<i32>} : memref<16x16x128xbf16, #tpu.memory_space<vmem>>, vector<1x16x128xbf16>,
    %cst_32 = arith.constant 7.500000e-01 : f32
    %48 = vector.broadcast %cst_32 : f32 to vector<16x128xf32>
    %49 = arith.mulf %48, %32 : vector<16x128xf32>
    %cst_33 = arith.constant 2.500000e-01 : f32
    %50 = vector.broadcast %cst_33 : f32 to vector<16x128xf32>
    %51 = arith.mulf %50, %38 : vector<16x128xf32>
    %52 = arith.addf %49, %51 : vector<16x128xf32>
    %53 = arith.truncf %52 : vector<16x128xf32> to vector<16x128xbf16>
    %c3 = arith.constant 3 : index
    %c0_34 = arith.constant 0 : index
    %c0_35 = arith.constant 0 : index
    %54 = vector.load %arg6[%c3, %c0_34, %c0_35] : memref<16x16x128xbf16, #tpu.memory_space<vmem>>, vector<1x16x128xbf16>
    %55 = vector.shape_cast %54 : vector<1x16x128xbf16> to vector<16x128xbf16>
    %56 = vector.shape_cast %53 : vector<16x128xbf16> to vector<1x16x128xbf16>
    tpu.vector_store %arg6[%c3, %c0_34, %c0_35], %56 {strides = array<i32>} : memref<16x16x128xbf16, #tpu.memory_space<vmem>>, vector<1x16x128xbf16>,
    %c2_36 = arith.constant 2 : index
    %c0_37 = arith.constant 0 : index
    %c0_38 = arith.constant 0 : index
    %57 = vector.load %arg4[%c2_36, %c0_37, %c0_38] : memref<8x16x128xbf16, #tpu.memory_space<vmem>>, vector<1x16x128xbf16>
    %58 = vector.shape_cast %57 : vector<1x16x128xbf16> to vector<16x128xbf16>
    %59 = arith.extf %58 : vector<16x128xbf16> to vector<16x128xf32>
    %c1_39 = arith.constant 1 : index
    %c0_40 = arith.constant 0 : index
    %c0_41 = arith.constant 0 : index
    %60 = vector.load %arg4[%c1_39, %c0_40, %c0_41] : memref<8x16x128xbf16, #tpu.memory_space<vmem>>, vector<1x16x128xbf16>
    %61 = vector.shape_cast %60 : vector<1x16x128xbf16> to vector<16x128xbf16>
    %62 = arith.extf %61 : vector<16x128xbf16> to vector<16x128xf32>
    %c3_42 = arith.constant 3 : index
    %c0_43 = arith.constant 0 : index
    %c0_44 = arith.constant 0 : index
    %63 = vector.load %arg4[%c3_42, %c0_43, %c0_44] : memref<8x16x128xbf16, #tpu.memory_space<vmem>>, vector<1x16x128xbf16>
    %64 = vector.shape_cast %63 : vector<1x16x128xbf16> to vector<16x128xbf16>
    %65 = arith.extf %64 : vector<16x128xbf16> to vector<16x128xf32>
    %cst_45 = arith.constant 2.500000e-01 : f32
    %66 = vector.broadcast %cst_45 : f32 to vector<16x128xf32>
    %67 = arith.mulf %66, %62 : vector<16x128xf32>
    %cst_46 = arith.constant 7.500000e-01 : f32
    %68 = vector.broadcast %cst_46 : f32 to vector<16x128xf32>
    %69 = arith.mulf %68, %59 : vector<16x128xf32>
    %70 = arith.addf %67, %69 : vector<16x128xf32>
    %71 = arith.truncf %70 : vector<16x128xf32> to vector<16x128xbf16>
    %c4 = arith.constant 4 : index
    %c0_47 = arith.constant 0 : index
    %c0_48 = arith.constant 0 : index
    %72 = vector.load %arg6[%c4, %c0_47, %c0_48] : memref<16x16x128xbf16, #tpu.memory_space<vmem>>, vector<1x16x128xbf16>
    %73 = vector.shape_cast %72 : vector<1x16x128xbf16> to vector<16x128xbf16>
    %74 = vector.shape_cast %71 : vector<16x128xbf16> to vector<1x16x128xbf16>
    tpu.vector_store %arg6[%c4, %c0_47, %c0_48], %74 {strides = array<i32>} : memref<16x16x128xbf16, #tpu.memory_space<vmem>>, vector<1x16x128xbf16>,
    %cst_49 = arith.constant 7.500000e-01 : f32
    %75 = vector.broadcast %cst_49 : f32 to vector<16x128xf32>
    %76 = arith.mulf %75, %59 : vector<16x128xf32>
    %cst_50 = arith.constant 2.500000e-01 : f32
    %77 = vector.broadcast %cst_50 : f32 to vector<16x128xf32>
    %78 = arith.mulf %77, %65 : vector<16x128xf32>
    %79 = arith.addf %76, %78 : vector<16x128xf32>
    %80 = arith.truncf %79 : vector<16x128xf32> to vector<16x128xbf16>
    %c5 = arith.constant 5 : index
    %c0_51 = arith.constant 0 : index
    %c0_52 = arith.constant 0 : index
    %81 = vector.load %arg6[%c5, %c0_51, %c0_52] : memref<16x16x128xbf16, #tpu.memory_space<vmem>>, vector<1x16x128xbf16>
    %82 = vector.shape_cast %81 : vector<1x16x128xbf16> to vector<16x128xbf16>
    %83 = vector.shape_cast %80 : vector<16x128xbf16> to vector<1x16x128xbf16>
    tpu.vector_store %arg6[%c5, %c0_51, %c0_52], %83 {strides = array<i32>} : memref<16x16x128xbf16, #tpu.memory_space<vmem>>, vector<1x16x128xbf16>,
    %c3_53 = arith.constant 3 : index
    %c0_54 = arith.constant 0 : index
    %c0_55 = arith.constant 0 : index
    %84 = vector.load %arg4[%c3_53, %c0_54, %c0_55] : memref<8x16x128xbf16, #tpu.memory_space<vmem>>, vector<1x16x128xbf16>
    %85 = vector.shape_cast %84 : vector<1x16x128xbf16> to vector<16x128xbf16>
    %86 = arith.extf %85 : vector<16x128xbf16> to vector<16x128xf32>
    %c2_56 = arith.constant 2 : index
    %c0_57 = arith.constant 0 : index
    %c0_58 = arith.constant 0 : index
    %87 = vector.load %arg4[%c2_56, %c0_57, %c0_58] : memref<8x16x128xbf16, #tpu.memory_space<vmem>>, vector<1x16x128xbf16>
    %88 = vector.shape_cast %87 : vector<1x16x128xbf16> to vector<16x128xbf16>
    %89 = arith.extf %88 : vector<16x128xbf16> to vector<16x128xf32>
    %c4_59 = arith.constant 4 : index
    %c0_60 = arith.constant 0 : index
    %c0_61 = arith.constant 0 : index
    %90 = vector.load %arg4[%c4_59, %c0_60, %c0_61] : memref<8x16x128xbf16, #tpu.memory_space<vmem>>, vector<1x16x128xbf16>
    %91 = vector.shape_cast %90 : vector<1x16x128xbf16> to vector<16x128xbf16>
    %92 = arith.extf %91 : vector<16x128xbf16> to vector<16x128xf32>
    %cst_62 = arith.constant 2.500000e-01 : f32
    %93 = vector.broadcast %cst_62 : f32 to vector<16x128xf32>
    %94 = arith.mulf %93, %89 : vector<16x128xf32>
    %cst_63 = arith.constant 7.500000e-01 : f32
    %95 = vector.broadcast %cst_63 : f32 to vector<16x128xf32>
    %96 = arith.mulf %95, %86 : vector<16x128xf32>
    %97 = arith.addf %94, %96 : vector<16x128xf32>
    %98 = arith.truncf %97 : vector<16x128xf32> to vector<16x128xbf16>
    %c6 = arith.constant 6 : index
    %c0_64 = arith.constant 0 : index
    %c0_65 = arith.constant 0 : index
    %99 = vector.load %arg6[%c6, %c0_64, %c0_65] : memref<16x16x128xbf16, #tpu.memory_space<vmem>>, vector<1x16x128xbf16>
    %100 = vector.shape_cast %99 : vector<1x16x128xbf16> to vector<16x128xbf16>
    %101 = vector.shape_cast %98 : vector<16x128xbf16> to vector<1x16x128xbf16>
    tpu.vector_store %arg6[%c6, %c0_64, %c0_65], %101 {strides = array<i32>} : memref<16x16x128xbf16, #tpu.memory_space<vmem>>, vector<1x16x128xbf16>,
    %cst_66 = arith.constant 7.500000e-01 : f32
    %102 = vector.broadcast %cst_66 : f32 to vector<16x128xf32>
    %103 = arith.mulf %102, %86 : vector<16x128xf32>
    %cst_67 = arith.constant 2.500000e-01 : f32
    %104 = vector.broadcast %cst_67 : f32 to vector<16x128xf32>
    %105 = arith.mulf %104, %92 : vector<16x128xf32>
    %106 = arith.addf %103, %105 : vector<16x128xf32>
    %107 = arith.truncf %106 : vector<16x128xf32> to vector<16x128xbf16>
    %c7 = arith.constant 7 : index
    %c0_68 = arith.constant 0 : index
    %c0_69 = arith.constant 0 : index
    %108 = vector.load %arg6[%c7, %c0_68, %c0_69] : memref<16x16x128xbf16, #tpu.memory_space<vmem>>, vector<1x16x128xbf16>
    %109 = vector.shape_cast %108 : vector<1x16x128xbf16> to vector<16x128xbf16>
    %110 = vector.shape_cast %107 : vector<16x128xbf16> to vector<1x16x128xbf16>
    tpu.vector_store %arg6[%c7, %c0_68, %c0_69], %110 {strides = array<i32>} : memref<16x16x128xbf16, #tpu.memory_space<vmem>>, vector<1x16x128xbf16>,
    %c4_70 = arith.constant 4 : index
    %c0_71 = arith.constant 0 : index
    %c0_72 = arith.constant 0 : index
    %111 = vector.load %arg4[%c4_70, %c0_71, %c0_72] : memref<8x16x128xbf16, #tpu.memory_space<vmem>>, vector<1x16x128xbf16>
    %112 = vector.shape_cast %111 : vector<1x16x128xbf16> to vector<16x128xbf16>
    %113 = arith.extf %112 : vector<16x128xbf16> to vector<16x128xf32>
    %c3_73 = arith.constant 3 : index
    %c0_74 = arith.constant 0 : index
    %c0_75 = arith.constant 0 : index
    %114 = vector.load %arg4[%c3_73, %c0_74, %c0_75] : memref<8x16x128xbf16, #tpu.memory_space<vmem>>, vector<1x16x128xbf16>
    %115 = vector.shape_cast %114 : vector<1x16x128xbf16> to vector<16x128xbf16>
    %116 = arith.extf %115 : vector<16x128xbf16> to vector<16x128xf32>
    %c5_76 = arith.constant 5 : index
    %c0_77 = arith.constant 0 : index
    %c0_78 = arith.constant 0 : index
    %117 = vector.load %arg4[%c5_76, %c0_77, %c0_78] : memref<8x16x128xbf16, #tpu.memory_space<vmem>>, vector<1x16x128xbf16>
    %118 = vector.shape_cast %117 : vector<1x16x128xbf16> to vector<16x128xbf16>
    %119 = arith.extf %118 : vector<16x128xbf16> to vector<16x128xf32>
    %cst_79 = arith.constant 2.500000e-01 : f32
    %120 = vector.broadcast %cst_79 : f32 to vector<16x128xf32>
    %121 = arith.mulf %120, %116 : vector<16x128xf32>
    %cst_80 = arith.constant 7.500000e-01 : f32
    %122 = vector.broadcast %cst_80 : f32 to vector<16x128xf32>
    %123 = arith.mulf %122, %113 : vector<16x128xf32>
    %124 = arith.addf %121, %123 : vector<16x128xf32>
    %125 = arith.truncf %124 : vector<16x128xf32> to vector<16x128xbf16>
    %c8 = arith.constant 8 : index
    %c0_81 = arith.constant 0 : index
    %c0_82 = arith.constant 0 : index
    %126 = vector.load %arg6[%c8, %c0_81, %c0_82] : memref<16x16x128xbf16, #tpu.memory_space<vmem>>, vector<1x16x128xbf16>
    %127 = vector.shape_cast %126 : vector<1x16x128xbf16> to vector<16x128xbf16>
    %128 = vector.shape_cast %125 : vector<16x128xbf16> to vector<1x16x128xbf16>
    tpu.vector_store %arg6[%c8, %c0_81, %c0_82], %128 {strides = array<i32>} : memref<16x16x128xbf16, #tpu.memory_space<vmem>>, vector<1x16x128xbf16>,
    %cst_83 = arith.constant 7.500000e-01 : f32
    %129 = vector.broadcast %cst_83 : f32 to vector<16x128xf32>
    %130 = arith.mulf %129, %113 : vector<16x128xf32>
    %cst_84 = arith.constant 2.500000e-01 : f32
    %131 = vector.broadcast %cst_84 : f32 to vector<16x128xf32>
    %132 = arith.mulf %131, %119 : vector<16x128xf32>
    %133 = arith.addf %130, %132 : vector<16x128xf32>
    %134 = arith.truncf %133 : vector<16x128xf32> to vector<16x128xbf16>
    %c9 = arith.constant 9 : index
    %c0_85 = arith.constant 0 : index
    %c0_86 = arith.constant 0 : index
    %135 = vector.load %arg6[%c9, %c0_85, %c0_86] : memref<16x16x128xbf16, #tpu.memory_space<vmem>>, vector<1x16x128xbf16>
    %136 = vector.shape_cast %135 : vector<1x16x128xbf16> to vector<16x128xbf16>
    %137 = vector.shape_cast %134 : vector<16x128xbf16> to vector<1x16x128xbf16>
    tpu.vector_store %arg6[%c9, %c0_85, %c0_86], %137 {strides = array<i32>} : memref<16x16x128xbf16, #tpu.memory_space<vmem>>, vector<1x16x128xbf16>,
    %c5_87 = arith.constant 5 : index
    %c0_88 = arith.constant 0 : index
    %c0_89 = arith.constant 0 : index
    %138 = vector.load %arg4[%c5_87, %c0_88, %c0_89] : memref<8x16x128xbf16, #tpu.memory_space<vmem>>, vector<1x16x128xbf16>
    %139 = vector.shape_cast %138 : vector<1x16x128xbf16> to vector<16x128xbf16>
    %140 = arith.extf %139 : vector<16x128xbf16> to vector<16x128xf32>
    %c4_90 = arith.constant 4 : index
    %c0_91 = arith.constant 0 : index
    %c0_92 = arith.constant 0 : index
    %141 = vector.load %arg4[%c4_90, %c0_91, %c0_92] : memref<8x16x128xbf16, #tpu.memory_space<vmem>>, vector<1x16x128xbf16>
    %142 = vector.shape_cast %141 : vector<1x16x128xbf16> to vector<16x128xbf16>
    %143 = arith.extf %142 : vector<16x128xbf16> to vector<16x128xf32>
    %c6_93 = arith.constant 6 : index
    %c0_94 = arith.constant 0 : index
    %c0_95 = arith.constant 0 : index
    %144 = vector.load %arg4[%c6_93, %c0_94, %c0_95] : memref<8x16x128xbf16, #tpu.memory_space<vmem>>, vector<1x16x128xbf16>
    %145 = vector.shape_cast %144 : vector<1x16x128xbf16> to vector<16x128xbf16>
    %146 = arith.extf %145 : vector<16x128xbf16> to vector<16x128xf32>
    %cst_96 = arith.constant 2.500000e-01 : f32
    %147 = vector.broadcast %cst_96 : f32 to vector<16x128xf32>
    %148 = arith.mulf %147, %143 : vector<16x128xf32>
    %cst_97 = arith.constant 7.500000e-01 : f32
    %149 = vector.broadcast %cst_97 : f32 to vector<16x128xf32>
    %150 = arith.mulf %149, %140 : vector<16x128xf32>
    %151 = arith.addf %148, %150 : vector<16x128xf32>
    %152 = arith.truncf %151 : vector<16x128xf32> to vector<16x128xbf16>
    %c10 = arith.constant 10 : index
    %c0_98 = arith.constant 0 : index
    %c0_99 = arith.constant 0 : index
    %153 = vector.load %arg6[%c10, %c0_98, %c0_99] : memref<16x16x128xbf16, #tpu.memory_space<vmem>>, vector<1x16x128xbf16>
    %154 = vector.shape_cast %153 : vector<1x16x128xbf16> to vector<16x128xbf16>
    %155 = vector.shape_cast %152 : vector<16x128xbf16> to vector<1x16x128xbf16>
    tpu.vector_store %arg6[%c10, %c0_98, %c0_99], %155 {strides = array<i32>} : memref<16x16x128xbf16, #tpu.memory_space<vmem>>, vector<1x16x128xbf16>,
    %cst_100 = arith.constant 7.500000e-01 : f32
    %156 = vector.broadcast %cst_100 : f32 to vector<16x128xf32>
    %157 = arith.mulf %156, %140 : vector<16x128xf32>
    %cst_101 = arith.constant 2.500000e-01 : f32
    %158 = vector.broadcast %cst_101 : f32 to vector<16x128xf32>
    %159 = arith.mulf %158, %146 : vector<16x128xf32>
    %160 = arith.addf %157, %159 : vector<16x128xf32>
    %161 = arith.truncf %160 : vector<16x128xf32> to vector<16x128xbf16>
    %c11 = arith.constant 11 : index
    %c0_102 = arith.constant 0 : index
    %c0_103 = arith.constant 0 : index
    %162 = vector.load %arg6[%c11, %c0_102, %c0_103] : memref<16x16x128xbf16, #tpu.memory_space<vmem>>, vector<1x16x128xbf16>
    %163 = vector.shape_cast %162 : vector<1x16x128xbf16> to vector<16x128xbf16>
    %164 = vector.shape_cast %161 : vector<16x128xbf16> to vector<1x16x128xbf16>
    tpu.vector_store %arg6[%c11, %c0_102, %c0_103], %164 {strides = array<i32>} : memref<16x16x128xbf16, #tpu.memory_space<vmem>>, vector<1x16x128xbf16>,
    %c6_104 = arith.constant 6 : index
    %c0_105 = arith.constant 0 : index
    %c0_106 = arith.constant 0 : index
    %165 = vector.load %arg4[%c6_104, %c0_105, %c0_106] : memref<8x16x128xbf16, #tpu.memory_space<vmem>>, vector<1x16x128xbf16>
    %166 = vector.shape_cast %165 : vector<1x16x128xbf16> to vector<16x128xbf16>
    %167 = arith.extf %166 : vector<16x128xbf16> to vector<16x128xf32>
    %c5_107 = arith.constant 5 : index
    %c0_108 = arith.constant 0 : index
    %c0_109 = arith.constant 0 : index
    %168 = vector.load %arg4[%c5_107, %c0_108, %c0_109] : memref<8x16x128xbf16, #tpu.memory_space<vmem>>, vector<1x16x128xbf16>
    %169 = vector.shape_cast %168 : vector<1x16x128xbf16> to vector<16x128xbf16>
    %170 = arith.extf %169 : vector<16x128xbf16> to vector<16x128xf32>
    %c7_110 = arith.constant 7 : index
    %c0_111 = arith.constant 0 : index
    %c0_112 = arith.constant 0 : index
    %171 = vector.load %arg4[%c7_110, %c0_111, %c0_112] : memref<8x16x128xbf16, #tpu.memory_space<vmem>>, vector<1x16x128xbf16>
    %172 = vector.shape_cast %171 : vector<1x16x128xbf16> to vector<16x128xbf16>
    %173 = arith.extf %172 : vector<16x128xbf16> to vector<16x128xf32>
    %cst_113 = arith.constant 2.500000e-01 : f32
    %174 = vector.broadcast %cst_113 : f32 to vector<16x128xf32>
    %175 = arith.mulf %174, %170 : vector<16x128xf32>
    %cst_114 = arith.constant 7.500000e-01 : f32
    %176 = vector.broadcast %cst_114 : f32 to vector<16x128xf32>
    %177 = arith.mulf %176, %167 : vector<16x128xf32>
    %178 = arith.addf %175, %177 : vector<16x128xf32>
    %179 = arith.truncf %178 : vector<16x128xf32> to vector<16x128xbf16>
    %c12 = arith.constant 12 : index
    %c0_115 = arith.constant 0 : index
    %c0_116 = arith.constant 0 : index
    %180 = vector.load %arg6[%c12, %c0_115, %c0_116] : memref<16x16x128xbf16, #tpu.memory_space<vmem>>, vector<1x16x128xbf16>
    %181 = vector.shape_cast %180 : vector<1x16x128xbf16> to vector<16x128xbf16>
    %182 = vector.shape_cast %179 : vector<16x128xbf16> to vector<1x16x128xbf16>
    tpu.vector_store %arg6[%c12, %c0_115, %c0_116], %182 {strides = array<i32>} : memref<16x16x128xbf16, #tpu.memory_space<vmem>>, vector<1x16x128xbf16>,
    %cst_117 = arith.constant 7.500000e-01 : f32
    %183 = vector.broadcast %cst_117 : f32 to vector<16x128xf32>
    %184 = arith.mulf %183, %167 : vector<16x128xf32>
    %cst_118 = arith.constant 2.500000e-01 : f32
    %185 = vector.broadcast %cst_118 : f32 to vector<16x128xf32>
    %186 = arith.mulf %185, %173 : vector<16x128xf32>
    %187 = arith.addf %184, %186 : vector<16x128xf32>
    %188 = arith.truncf %187 : vector<16x128xf32> to vector<16x128xbf16>
    %c13 = arith.constant 13 : index
    %c0_119 = arith.constant 0 : index
    %c0_120 = arith.constant 0 : index
    %189 = vector.load %arg6[%c13, %c0_119, %c0_120] : memref<16x16x128xbf16, #tpu.memory_space<vmem>>, vector<1x16x128xbf16>
    %190 = vector.shape_cast %189 : vector<1x16x128xbf16> to vector<16x128xbf16>
    %191 = vector.shape_cast %188 : vector<16x128xbf16> to vector<1x16x128xbf16>
    tpu.vector_store %arg6[%c13, %c0_119, %c0_120], %191 {strides = array<i32>} : memref<16x16x128xbf16, #tpu.memory_space<vmem>>, vector<1x16x128xbf16>,
    %c7_121 = arith.constant 7 : index
    %c0_122 = arith.constant 0 : index
    %c0_123 = arith.constant 0 : index
    %192 = vector.load %arg4[%c7_121, %c0_122, %c0_123] : memref<8x16x128xbf16, #tpu.memory_space<vmem>>, vector<1x16x128xbf16>
    %193 = vector.shape_cast %192 : vector<1x16x128xbf16> to vector<16x128xbf16>
    %194 = arith.extf %193 : vector<16x128xbf16> to vector<16x128xf32>
    %c6_124 = arith.constant 6 : index
    %c0_125 = arith.constant 0 : index
    %c0_126 = arith.constant 0 : index
    %195 = vector.load %arg4[%c6_124, %c0_125, %c0_126] : memref<8x16x128xbf16, #tpu.memory_space<vmem>>, vector<1x16x128xbf16>
    %196 = vector.shape_cast %195 : vector<1x16x128xbf16> to vector<16x128xbf16>
    %197 = arith.extf %196 : vector<16x128xbf16> to vector<16x128xf32>
    %cst_127 = arith.constant 2.500000e-01 : f32
    %198 = vector.broadcast %cst_127 : f32 to vector<16x128xf32>
    %199 = arith.mulf %198, %197 : vector<16x128xf32>
    %cst_128 = arith.constant 7.500000e-01 : f32
    %200 = vector.broadcast %cst_128 : f32 to vector<16x128xf32>
    %201 = arith.mulf %200, %194 : vector<16x128xf32>
    %202 = arith.addf %199, %201 : vector<16x128xf32>
    %203 = arith.truncf %202 : vector<16x128xf32> to vector<16x128xbf16>
    %c14 = arith.constant 14 : index
    %c0_129 = arith.constant 0 : index
    %c0_130 = arith.constant 0 : index
    %204 = vector.load %arg6[%c14, %c0_129, %c0_130] : memref<16x16x128xbf16, #tpu.memory_space<vmem>>, vector<1x16x128xbf16>
    %205 = vector.shape_cast %204 : vector<1x16x128xbf16> to vector<16x128xbf16>
    %206 = vector.shape_cast %203 : vector<16x128xbf16> to vector<1x16x128xbf16>
    tpu.vector_store %arg6[%c14, %c0_129, %c0_130], %206 {strides = array<i32>} : memref<16x16x128xbf16, #tpu.memory_space<vmem>>, vector<1x16x128xbf16>,
    %cst_131 = arith.constant 7.500000e-01 : f32
    %207 = vector.broadcast %cst_131 : f32 to vector<16x128xf32>
    %208 = arith.mulf %207, %194 : vector<16x128xf32>
    %cst_132 = arith.constant 2.500000e-01 : f32
    %209 = vector.broadcast %cst_132 : f32 to vector<16x128xf32>
    %210 = arith.mulf %209, %5 : vector<16x128xf32>
    %211 = arith.addf %208, %210 : vector<16x128xf32>
    %212 = arith.truncf %211 : vector<16x128xf32> to vector<16x128xbf16>
    %c15 = arith.constant 15 : index
    %c0_133 = arith.constant 0 : index
    %c0_134 = arith.constant 0 : index
    %213 = vector.load %arg6[%c15, %c0_133, %c0_134] : memref<16x16x128xbf16, #tpu.memory_space<vmem>>, vector<1x16x128xbf16>
    %214 = vector.shape_cast %213 : vector<1x16x128xbf16> to vector<16x128xbf16>
    %215 = vector.shape_cast %212 : vector<16x128xbf16> to vector<1x16x128xbf16>
    tpu.vector_store %arg6[%c15, %c0_133, %c0_134], %215 {strides = array<i32>} : memref<16x16x128xbf16, #tpu.memory_space<vmem>>, vector<1x16x128xbf16>,
    return
  }
  func.func @transform_0(%arg0: i32, %arg1: i32, %arg2: i32) -> (i32, i32, i32) {
    %c8_i32 = arith.constant 8 : i32
    %0 = arith.muli %arg0, %c8_i32 : i32
    %c8_i32_0 = arith.constant 8 : i32
    %1 = arith.muli %arg1, %c8_i32_0 : i32
    %c1_i32 = arith.constant 1 : i32
    %2 = arith.subi %1, %c1_i32 : i32
    %c0_i32 = arith.constant 0 : i32
    %3 = arith.maxsi %2, %c0_i32 : i32
    %4 = arith.addi %0, %3 : i32
    %c0_i32_1 = arith.constant 0 : i32
    %c0_i32_2 = arith.constant 0 : i32
    return %4, %c0_i32_1, %arg2 : i32, i32, i32
  }
  func.func @transform_1(%arg0: i32, %arg1: i32, %arg2: i32) -> (i32, i32, i32) {
    %c1_i32 = arith.constant 1 : i32
    %0 = arith.muli %arg0, %c1_i32 : i32
    %1 = arith.addi %0, %arg1 : i32
    %c0_i32 = arith.constant 0 : i32
    %c0_i32_0 = arith.constant 0 : i32
    return %1, %c0_i32, %arg2 : i32, i32, i32
  }
  func.func @transform_2(%arg0: i32, %arg1: i32, %arg2: i32) -> (i32, i32, i32) {
    %c8_i32 = arith.constant 8 : i32
    %0 = arith.muli %arg0, %c8_i32 : i32
    %c1_i32 = arith.constant 1 : i32
    %1 = arith.addi %arg1, %c1_i32 : i32
    %c8_i32_0 = arith.constant 8 : i32
    %2 = arith.muli %1, %c8_i32_0 : i32
    %c7_i32 = arith.constant 7 : i32
    %3 = arith.minsi %2, %c7_i32 : i32
    %4 = arith.addi %0, %3 : i32
    %c0_i32 = arith.constant 0 : i32
    %c0_i32_1 = arith.constant 0 : i32
    return %4, %c0_i32, %arg2 : i32, i32, i32
  }
  func.func @transform_3(%arg0: i32, %arg1: i32, %arg2: i32) -> (i32, i32, i32) {
    %c1_i32 = arith.constant 1 : i32
    %0 = arith.muli %arg0, %c1_i32 : i32
    %1 = arith.addi %0, %arg1 : i32
    %c0_i32 = arith.constant 0 : i32
    %c0_i32_0 = arith.constant 0 : i32
    return %1, %c0_i32, %arg2 : i32, i32, i32
  }
}

module attributes {stable_mosaic.version = 11 : i64} {
  func.func @_upsample_h_kernel(%arg0: i32, %arg1: i32, %arg2: i32, %arg3: memref<1x16x128xbf16, #tpu.memory_space<vmem>>, %arg4: memref<4x16x128xbf16, #tpu.memory_space<vmem>>, %arg5: memref<1x16x128xbf16, #tpu.memory_space<vmem>>, %arg6: memref<16x16x128xbf16, #tpu.memory_space<vmem>>) attributes {dimension_semantics = [#tpu.dimension_semantics<parallel>, #tpu.dimension_semantics<parallel>, #tpu.dimension_semantics<parallel>], iteration_bounds = array<i64: 2, 1, 1>, scalar_prefetch = 0 : i64, scratch_operands = 0 : i64, tpu.core_type = #tpu.core_type<tc>, window_params = [{transform_indices = @transform_0, window_bounds = array<i64: 1, 16, 128>}, {transform_indices = @transform_1, window_bounds = array<i64: 4, 16, 128>}, {transform_indices = @transform_2, window_bounds = array<i64: 1, 16, 128>}, {transform_indices = @transform_3, window_bounds = array<i64: 16, 16, 128>}]} {
    %c0 = arith.constant 0 : index
    %c0_0 = arith.constant 0 : index
    %c0_1 = arith.constant 0 : index
    %0 = vector.load %arg3[%c0, %c0_0, %c0_1] : memref<1x16x128xbf16, #tpu.memory_space<vmem>>, vector<1x16x128xbf16>
    %1 = vector.shape_cast %0 : vector<1x16x128xbf16> to vector<16x128xbf16>
    %2 = arith.extf %1 : vector<16x128xbf16> to vector<16x128xf32>
    %c0_2 = arith.constant 0 : index
    %c0_3 = arith.constant 0 : index
    %c0_4 = arith.constant 0 : index
    %3 = vector.load %arg5[%c0_2, %c0_3, %c0_4] : memref<1x16x128xbf16, #tpu.memory_space<vmem>>, vector<1x16x128xbf16>
    %4 = vector.shape_cast %3 : vector<1x16x128xbf16> to vector<16x128xbf16>
    %5 = arith.extf %4 : vector<16x128xbf16> to vector<16x128xf32>
    %c0_5 = arith.constant 0 : index
    %c0_6 = arith.constant 0 : index
    %c0_7 = arith.constant 0 : index
    %6 = vector.load %arg4[%c0_5, %c0_6, %c0_7] : memref<4x16x128xbf16, #tpu.memory_space<vmem>>, vector<1x16x128xbf16>
    %7 = vector.shape_cast %6 : vector<1x16x128xbf16> to vector<16x128xbf16>
    %8 = arith.extf %7 : vector<16x128xbf16> to vector<16x128xf32>
    %c1 = arith.constant 1 : index
    %c0_8 = arith.constant 0 : index
    %c0_9 = arith.constant 0 : index
    %9 = vector.load %arg4[%c1, %c0_8, %c0_9] : memref<4x16x128xbf16, #tpu.memory_space<vmem>>, vector<1x16x128xbf16>
    %10 = vector.shape_cast %9 : vector<1x16x128xbf16> to vector<16x128xbf16>
    %11 = arith.extf %10 : vector<16x128xbf16> to vector<16x128xf32>
    %cst = arith.constant 3.750000e-01 : f32
    %12 = vector.broadcast %cst : f32 to vector<16x128xf32>
    %13 = arith.mulf %12, %2 : vector<16x128xf32>
    %cst_10 = arith.constant 6.250000e-01 : f32
    %14 = vector.broadcast %cst_10 : f32 to vector<16x128xf32>
    %15 = arith.mulf %14, %8 : vector<16x128xf32>
    %16 = arith.addf %13, %15 : vector<16x128xf32>
    %17 = arith.truncf %16 : vector<16x128xf32> to vector<16x128xbf16>
    %c0_11 = arith.constant 0 : index
    %c0_12 = arith.constant 0 : index
    %c0_13 = arith.constant 0 : index
    %18 = vector.load %arg6[%c0_11, %c0_12, %c0_13] : memref<16x16x128xbf16, #tpu.memory_space<vmem>>, vector<1x16x128xbf16>
    %19 = vector.shape_cast %18 : vector<1x16x128xbf16> to vector<16x128xbf16>
    %20 = vector.shape_cast %17 : vector<16x128xbf16> to vector<1x16x128xbf16>
    tpu.vector_store %arg6[%c0_11, %c0_12, %c0_13], %20 {strides = array<i32>} : memref<16x16x128xbf16, #tpu.memory_space<vmem>>, vector<1x16x128xbf16>,
    %cst_14 = arith.constant 1.250000e-01 : f32
    %21 = vector.broadcast %cst_14 : f32 to vector<16x128xf32>
    %22 = arith.mulf %21, %2 : vector<16x128xf32>
    %cst_15 = arith.constant 8.750000e-01 : f32
    %23 = vector.broadcast %cst_15 : f32 to vector<16x128xf32>
    %24 = arith.mulf %23, %8 : vector<16x128xf32>
    %25 = arith.addf %22, %24 : vector<16x128xf32>
    %26 = arith.truncf %25 : vector<16x128xf32> to vector<16x128xbf16>
    %c1_16 = arith.constant 1 : index
    %c0_17 = arith.constant 0 : index
    %c0_18 = arith.constant 0 : index
    %27 = vector.load %arg6[%c1_16, %c0_17, %c0_18] : memref<16x16x128xbf16, #tpu.memory_space<vmem>>, vector<1x16x128xbf16>
    %28 = vector.shape_cast %27 : vector<1x16x128xbf16> to vector<16x128xbf16>
    %29 = vector.shape_cast %26 : vector<16x128xbf16> to vector<1x16x128xbf16>
    tpu.vector_store %arg6[%c1_16, %c0_17, %c0_18], %29 {strides = array<i32>} : memref<16x16x128xbf16, #tpu.memory_space<vmem>>, vector<1x16x128xbf16>,
    %cst_19 = arith.constant 8.750000e-01 : f32
    %30 = vector.broadcast %cst_19 : f32 to vector<16x128xf32>
    %31 = arith.mulf %30, %8 : vector<16x128xf32>
    %cst_20 = arith.constant 1.250000e-01 : f32
    %32 = vector.broadcast %cst_20 : f32 to vector<16x128xf32>
    %33 = arith.mulf %32, %11 : vector<16x128xf32>
    %34 = arith.addf %31, %33 : vector<16x128xf32>
    %35 = arith.truncf %34 : vector<16x128xf32> to vector<16x128xbf16>
    %c2 = arith.constant 2 : index
    %c0_21 = arith.constant 0 : index
    %c0_22 = arith.constant 0 : index
    %36 = vector.load %arg6[%c2, %c0_21, %c0_22] : memref<16x16x128xbf16, #tpu.memory_space<vmem>>, vector<1x16x128xbf16>
    %37 = vector.shape_cast %36 : vector<1x16x128xbf16> to vector<16x128xbf16>
    %38 = vector.shape_cast %35 : vector<16x128xbf16> to vector<1x16x128xbf16>
    tpu.vector_store %arg6[%c2, %c0_21, %c0_22], %38 {strides = array<i32>} : memref<16x16x128xbf16, #tpu.memory_space<vmem>>, vector<1x16x128xbf16>,
    %cst_23 = arith.constant 6.250000e-01 : f32
    %39 = vector.broadcast %cst_23 : f32 to vector<16x128xf32>
    %40 = arith.mulf %39, %8 : vector<16x128xf32>
    %cst_24 = arith.constant 3.750000e-01 : f32
    %41 = vector.broadcast %cst_24 : f32 to vector<16x128xf32>
    %42 = arith.mulf %41, %11 : vector<16x128xf32>
    %43 = arith.addf %40, %42 : vector<16x128xf32>
    %44 = arith.truncf %43 : vector<16x128xf32> to vector<16x128xbf16>
    %c3 = arith.constant 3 : index
    %c0_25 = arith.constant 0 : index
    %c0_26 = arith.constant 0 : index
    %45 = vector.load %arg6[%c3, %c0_25, %c0_26] : memref<16x16x128xbf16, #tpu.memory_space<vmem>>, vector<1x16x128xbf16>
    %46 = vector.shape_cast %45 : vector<1x16x128xbf16> to vector<16x128xbf16>
    %47 = vector.shape_cast %44 : vector<16x128xbf16> to vector<1x16x128xbf16>
    tpu.vector_store %arg6[%c3, %c0_25, %c0_26], %47 {strides = array<i32>} : memref<16x16x128xbf16, #tpu.memory_space<vmem>>, vector<1x16x128xbf16>,
    %c1_27 = arith.constant 1 : index
    %c0_28 = arith.constant 0 : index
    %c0_29 = arith.constant 0 : index
    %48 = vector.load %arg4[%c1_27, %c0_28, %c0_29] : memref<4x16x128xbf16, #tpu.memory_space<vmem>>, vector<1x16x128xbf16>
    %49 = vector.shape_cast %48 : vector<1x16x128xbf16> to vector<16x128xbf16>
    %50 = arith.extf %49 : vector<16x128xbf16> to vector<16x128xf32>
    %c0_30 = arith.constant 0 : index
    %c0_31 = arith.constant 0 : index
    %c0_32 = arith.constant 0 : index
    %51 = vector.load %arg4[%c0_30, %c0_31, %c0_32] : memref<4x16x128xbf16, #tpu.memory_space<vmem>>, vector<1x16x128xbf16>
    %52 = vector.shape_cast %51 : vector<1x16x128xbf16> to vector<16x128xbf16>
    %53 = arith.extf %52 : vector<16x128xbf16> to vector<16x128xf32>
    %c2_33 = arith.constant 2 : index
    %c0_34 = arith.constant 0 : index
    %c0_35 = arith.constant 0 : index
    %54 = vector.load %arg4[%c2_33, %c0_34, %c0_35] : memref<4x16x128xbf16, #tpu.memory_space<vmem>>, vector<1x16x128xbf16>
    %55 = vector.shape_cast %54 : vector<1x16x128xbf16> to vector<16x128xbf16>
    %56 = arith.extf %55 : vector<16x128xbf16> to vector<16x128xf32>
    %cst_36 = arith.constant 3.750000e-01 : f32
    %57 = vector.broadcast %cst_36 : f32 to vector<16x128xf32>
    %58 = arith.mulf %57, %53 : vector<16x128xf32>
    %cst_37 = arith.constant 6.250000e-01 : f32
    %59 = vector.broadcast %cst_37 : f32 to vector<16x128xf32>
    %60 = arith.mulf %59, %50 : vector<16x128xf32>
    %61 = arith.addf %58, %60 : vector<16x128xf32>
    %62 = arith.truncf %61 : vector<16x128xf32> to vector<16x128xbf16>
    %c4 = arith.constant 4 : index
    %c0_38 = arith.constant 0 : index
    %c0_39 = arith.constant 0 : index
    %63 = vector.load %arg6[%c4, %c0_38, %c0_39] : memref<16x16x128xbf16, #tpu.memory_space<vmem>>, vector<1x16x128xbf16>
    %64 = vector.shape_cast %63 : vector<1x16x128xbf16> to vector<16x128xbf16>
    %65 = vector.shape_cast %62 : vector<16x128xbf16> to vector<1x16x128xbf16>
    tpu.vector_store %arg6[%c4, %c0_38, %c0_39], %65 {strides = array<i32>} : memref<16x16x128xbf16, #tpu.memory_space<vmem>>, vector<1x16x128xbf16>,
    %cst_40 = arith.constant 1.250000e-01 : f32
    %66 = vector.broadcast %cst_40 : f32 to vector<16x128xf32>
    %67 = arith.mulf %66, %53 : vector<16x128xf32>
    %cst_41 = arith.constant 8.750000e-01 : f32
    %68 = vector.broadcast %cst_41 : f32 to vector<16x128xf32>
    %69 = arith.mulf %68, %50 : vector<16x128xf32>
    %70 = arith.addf %67, %69 : vector<16x128xf32>
    %71 = arith.truncf %70 : vector<16x128xf32> to vector<16x128xbf16>
    %c5 = arith.constant 5 : index
    %c0_42 = arith.constant 0 : index
    %c0_43 = arith.constant 0 : index
    %72 = vector.load %arg6[%c5, %c0_42, %c0_43] : memref<16x16x128xbf16, #tpu.memory_space<vmem>>, vector<1x16x128xbf16>
    %73 = vector.shape_cast %72 : vector<1x16x128xbf16> to vector<16x128xbf16>
    %74 = vector.shape_cast %71 : vector<16x128xbf16> to vector<1x16x128xbf16>
    tpu.vector_store %arg6[%c5, %c0_42, %c0_43], %74 {strides = array<i32>} : memref<16x16x128xbf16, #tpu.memory_space<vmem>>, vector<1x16x128xbf16>,
    %cst_44 = arith.constant 8.750000e-01 : f32
    %75 = vector.broadcast %cst_44 : f32 to vector<16x128xf32>
    %76 = arith.mulf %75, %50 : vector<16x128xf32>
    %cst_45 = arith.constant 1.250000e-01 : f32
    %77 = vector.broadcast %cst_45 : f32 to vector<16x128xf32>
    %78 = arith.mulf %77, %56 : vector<16x128xf32>
    %79 = arith.addf %76, %78 : vector<16x128xf32>
    %80 = arith.truncf %79 : vector<16x128xf32> to vector<16x128xbf16>
    %c6 = arith.constant 6 : index
    %c0_46 = arith.constant 0 : index
    %c0_47 = arith.constant 0 : index
    %81 = vector.load %arg6[%c6, %c0_46, %c0_47] : memref<16x16x128xbf16, #tpu.memory_space<vmem>>, vector<1x16x128xbf16>
    %82 = vector.shape_cast %81 : vector<1x16x128xbf16> to vector<16x128xbf16>
    %83 = vector.shape_cast %80 : vector<16x128xbf16> to vector<1x16x128xbf16>
    tpu.vector_store %arg6[%c6, %c0_46, %c0_47], %83 {strides = array<i32>} : memref<16x16x128xbf16, #tpu.memory_space<vmem>>, vector<1x16x128xbf16>,
    %cst_48 = arith.constant 6.250000e-01 : f32
    %84 = vector.broadcast %cst_48 : f32 to vector<16x128xf32>
    %85 = arith.mulf %84, %50 : vector<16x128xf32>
    %cst_49 = arith.constant 3.750000e-01 : f32
    %86 = vector.broadcast %cst_49 : f32 to vector<16x128xf32>
    %87 = arith.mulf %86, %56 : vector<16x128xf32>
    %88 = arith.addf %85, %87 : vector<16x128xf32>
    %89 = arith.truncf %88 : vector<16x128xf32> to vector<16x128xbf16>
    %c7 = arith.constant 7 : index
    %c0_50 = arith.constant 0 : index
    %c0_51 = arith.constant 0 : index
    %90 = vector.load %arg6[%c7, %c0_50, %c0_51] : memref<16x16x128xbf16, #tpu.memory_space<vmem>>, vector<1x16x128xbf16>
    %91 = vector.shape_cast %90 : vector<1x16x128xbf16> to vector<16x128xbf16>
    %92 = vector.shape_cast %89 : vector<16x128xbf16> to vector<1x16x128xbf16>
    tpu.vector_store %arg6[%c7, %c0_50, %c0_51], %92 {strides = array<i32>} : memref<16x16x128xbf16, #tpu.memory_space<vmem>>, vector<1x16x128xbf16>,
    %c2_52 = arith.constant 2 : index
    %c0_53 = arith.constant 0 : index
    %c0_54 = arith.constant 0 : index
    %93 = vector.load %arg4[%c2_52, %c0_53, %c0_54] : memref<4x16x128xbf16, #tpu.memory_space<vmem>>, vector<1x16x128xbf16>
    %94 = vector.shape_cast %93 : vector<1x16x128xbf16> to vector<16x128xbf16>
    %95 = arith.extf %94 : vector<16x128xbf16> to vector<16x128xf32>
    %c1_55 = arith.constant 1 : index
    %c0_56 = arith.constant 0 : index
    %c0_57 = arith.constant 0 : index
    %96 = vector.load %arg4[%c1_55, %c0_56, %c0_57] : memref<4x16x128xbf16, #tpu.memory_space<vmem>>, vector<1x16x128xbf16>
    %97 = vector.shape_cast %96 : vector<1x16x128xbf16> to vector<16x128xbf16>
    %98 = arith.extf %97 : vector<16x128xbf16> to vector<16x128xf32>
    %c3_58 = arith.constant 3 : index
    %c0_59 = arith.constant 0 : index
    %c0_60 = arith.constant 0 : index
    %99 = vector.load %arg4[%c3_58, %c0_59, %c0_60] : memref<4x16x128xbf16, #tpu.memory_space<vmem>>, vector<1x16x128xbf16>
    %100 = vector.shape_cast %99 : vector<1x16x128xbf16> to vector<16x128xbf16>
    %101 = arith.extf %100 : vector<16x128xbf16> to vector<16x128xf32>
    %cst_61 = arith.constant 3.750000e-01 : f32
    %102 = vector.broadcast %cst_61 : f32 to vector<16x128xf32>
    %103 = arith.mulf %102, %98 : vector<16x128xf32>
    %cst_62 = arith.constant 6.250000e-01 : f32
    %104 = vector.broadcast %cst_62 : f32 to vector<16x128xf32>
    %105 = arith.mulf %104, %95 : vector<16x128xf32>
    %106 = arith.addf %103, %105 : vector<16x128xf32>
    %107 = arith.truncf %106 : vector<16x128xf32> to vector<16x128xbf16>
    %c8 = arith.constant 8 : index
    %c0_63 = arith.constant 0 : index
    %c0_64 = arith.constant 0 : index
    %108 = vector.load %arg6[%c8, %c0_63, %c0_64] : memref<16x16x128xbf16, #tpu.memory_space<vmem>>, vector<1x16x128xbf16>
    %109 = vector.shape_cast %108 : vector<1x16x128xbf16> to vector<16x128xbf16>
    %110 = vector.shape_cast %107 : vector<16x128xbf16> to vector<1x16x128xbf16>
    tpu.vector_store %arg6[%c8, %c0_63, %c0_64], %110 {strides = array<i32>} : memref<16x16x128xbf16, #tpu.memory_space<vmem>>, vector<1x16x128xbf16>,
    %cst_65 = arith.constant 1.250000e-01 : f32
    %111 = vector.broadcast %cst_65 : f32 to vector<16x128xf32>
    %112 = arith.mulf %111, %98 : vector<16x128xf32>
    %cst_66 = arith.constant 8.750000e-01 : f32
    %113 = vector.broadcast %cst_66 : f32 to vector<16x128xf32>
    %114 = arith.mulf %113, %95 : vector<16x128xf32>
    %115 = arith.addf %112, %114 : vector<16x128xf32>
    %116 = arith.truncf %115 : vector<16x128xf32> to vector<16x128xbf16>
    %c9 = arith.constant 9 : index
    %c0_67 = arith.constant 0 : index
    %c0_68 = arith.constant 0 : index
    %117 = vector.load %arg6[%c9, %c0_67, %c0_68] : memref<16x16x128xbf16, #tpu.memory_space<vmem>>, vector<1x16x128xbf16>
    %118 = vector.shape_cast %117 : vector<1x16x128xbf16> to vector<16x128xbf16>
    %119 = vector.shape_cast %116 : vector<16x128xbf16> to vector<1x16x128xbf16>
    tpu.vector_store %arg6[%c9, %c0_67, %c0_68], %119 {strides = array<i32>} : memref<16x16x128xbf16, #tpu.memory_space<vmem>>, vector<1x16x128xbf16>,
    %cst_69 = arith.constant 8.750000e-01 : f32
    %120 = vector.broadcast %cst_69 : f32 to vector<16x128xf32>
    %121 = arith.mulf %120, %95 : vector<16x128xf32>
    %cst_70 = arith.constant 1.250000e-01 : f32
    %122 = vector.broadcast %cst_70 : f32 to vector<16x128xf32>
    %123 = arith.mulf %122, %101 : vector<16x128xf32>
    %124 = arith.addf %121, %123 : vector<16x128xf32>
    %125 = arith.truncf %124 : vector<16x128xf32> to vector<16x128xbf16>
    %c10 = arith.constant 10 : index
    %c0_71 = arith.constant 0 : index
    %c0_72 = arith.constant 0 : index
    %126 = vector.load %arg6[%c10, %c0_71, %c0_72] : memref<16x16x128xbf16, #tpu.memory_space<vmem>>, vector<1x16x128xbf16>
    %127 = vector.shape_cast %126 : vector<1x16x128xbf16> to vector<16x128xbf16>
    %128 = vector.shape_cast %125 : vector<16x128xbf16> to vector<1x16x128xbf16>
    tpu.vector_store %arg6[%c10, %c0_71, %c0_72], %128 {strides = array<i32>} : memref<16x16x128xbf16, #tpu.memory_space<vmem>>, vector<1x16x128xbf16>,
    %cst_73 = arith.constant 6.250000e-01 : f32
    %129 = vector.broadcast %cst_73 : f32 to vector<16x128xf32>
    %130 = arith.mulf %129, %95 : vector<16x128xf32>
    %cst_74 = arith.constant 3.750000e-01 : f32
    %131 = vector.broadcast %cst_74 : f32 to vector<16x128xf32>
    %132 = arith.mulf %131, %101 : vector<16x128xf32>
    %133 = arith.addf %130, %132 : vector<16x128xf32>
    %134 = arith.truncf %133 : vector<16x128xf32> to vector<16x128xbf16>
    %c11 = arith.constant 11 : index
    %c0_75 = arith.constant 0 : index
    %c0_76 = arith.constant 0 : index
    %135 = vector.load %arg6[%c11, %c0_75, %c0_76] : memref<16x16x128xbf16, #tpu.memory_space<vmem>>, vector<1x16x128xbf16>
    %136 = vector.shape_cast %135 : vector<1x16x128xbf16> to vector<16x128xbf16>
    %137 = vector.shape_cast %134 : vector<16x128xbf16> to vector<1x16x128xbf16>
    tpu.vector_store %arg6[%c11, %c0_75, %c0_76], %137 {strides = array<i32>} : memref<16x16x128xbf16, #tpu.memory_space<vmem>>, vector<1x16x128xbf16>,
    %c3_77 = arith.constant 3 : index
    %c0_78 = arith.constant 0 : index
    %c0_79 = arith.constant 0 : index
    %138 = vector.load %arg4[%c3_77, %c0_78, %c0_79] : memref<4x16x128xbf16, #tpu.memory_space<vmem>>, vector<1x16x128xbf16>
    %139 = vector.shape_cast %138 : vector<1x16x128xbf16> to vector<16x128xbf16>
    %140 = arith.extf %139 : vector<16x128xbf16> to vector<16x128xf32>
    %c2_80 = arith.constant 2 : index
    %c0_81 = arith.constant 0 : index
    %c0_82 = arith.constant 0 : index
    %141 = vector.load %arg4[%c2_80, %c0_81, %c0_82] : memref<4x16x128xbf16, #tpu.memory_space<vmem>>, vector<1x16x128xbf16>
    %142 = vector.shape_cast %141 : vector<1x16x128xbf16> to vector<16x128xbf16>
    %143 = arith.extf %142 : vector<16x128xbf16> to vector<16x128xf32>
    %cst_83 = arith.constant 3.750000e-01 : f32
    %144 = vector.broadcast %cst_83 : f32 to vector<16x128xf32>
    %145 = arith.mulf %144, %143 : vector<16x128xf32>
    %cst_84 = arith.constant 6.250000e-01 : f32
    %146 = vector.broadcast %cst_84 : f32 to vector<16x128xf32>
    %147 = arith.mulf %146, %140 : vector<16x128xf32>
    %148 = arith.addf %145, %147 : vector<16x128xf32>
    %149 = arith.truncf %148 : vector<16x128xf32> to vector<16x128xbf16>
    %c12 = arith.constant 12 : index
    %c0_85 = arith.constant 0 : index
    %c0_86 = arith.constant 0 : index
    %150 = vector.load %arg6[%c12, %c0_85, %c0_86] : memref<16x16x128xbf16, #tpu.memory_space<vmem>>, vector<1x16x128xbf16>
    %151 = vector.shape_cast %150 : vector<1x16x128xbf16> to vector<16x128xbf16>
    %152 = vector.shape_cast %149 : vector<16x128xbf16> to vector<1x16x128xbf16>
    tpu.vector_store %arg6[%c12, %c0_85, %c0_86], %152 {strides = array<i32>} : memref<16x16x128xbf16, #tpu.memory_space<vmem>>, vector<1x16x128xbf16>,
    %cst_87 = arith.constant 1.250000e-01 : f32
    %153 = vector.broadcast %cst_87 : f32 to vector<16x128xf32>
    %154 = arith.mulf %153, %143 : vector<16x128xf32>
    %cst_88 = arith.constant 8.750000e-01 : f32
    %155 = vector.broadcast %cst_88 : f32 to vector<16x128xf32>
    %156 = arith.mulf %155, %140 : vector<16x128xf32>
    %157 = arith.addf %154, %156 : vector<16x128xf32>
    %158 = arith.truncf %157 : vector<16x128xf32> to vector<16x128xbf16>
    %c13 = arith.constant 13 : index
    %c0_89 = arith.constant 0 : index
    %c0_90 = arith.constant 0 : index
    %159 = vector.load %arg6[%c13, %c0_89, %c0_90] : memref<16x16x128xbf16, #tpu.memory_space<vmem>>, vector<1x16x128xbf16>
    %160 = vector.shape_cast %159 : vector<1x16x128xbf16> to vector<16x128xbf16>
    %161 = vector.shape_cast %158 : vector<16x128xbf16> to vector<1x16x128xbf16>
    tpu.vector_store %arg6[%c13, %c0_89, %c0_90], %161 {strides = array<i32>} : memref<16x16x128xbf16, #tpu.memory_space<vmem>>, vector<1x16x128xbf16>,
    %cst_91 = arith.constant 8.750000e-01 : f32
    %162 = vector.broadcast %cst_91 : f32 to vector<16x128xf32>
    %163 = arith.mulf %162, %140 : vector<16x128xf32>
    %cst_92 = arith.constant 1.250000e-01 : f32
    %164 = vector.broadcast %cst_92 : f32 to vector<16x128xf32>
    %165 = arith.mulf %164, %5 : vector<16x128xf32>
    %166 = arith.addf %163, %165 : vector<16x128xf32>
    %167 = arith.truncf %166 : vector<16x128xf32> to vector<16x128xbf16>
    %c14 = arith.constant 14 : index
    %c0_93 = arith.constant 0 : index
    %c0_94 = arith.constant 0 : index
    %168 = vector.load %arg6[%c14, %c0_93, %c0_94] : memref<16x16x128xbf16, #tpu.memory_space<vmem>>, vector<1x16x128xbf16>
    %169 = vector.shape_cast %168 : vector<1x16x128xbf16> to vector<16x128xbf16>
    %170 = vector.shape_cast %167 : vector<16x128xbf16> to vector<1x16x128xbf16>
    tpu.vector_store %arg6[%c14, %c0_93, %c0_94], %170 {strides = array<i32>} : memref<16x16x128xbf16, #tpu.memory_space<vmem>>, vector<1x16x128xbf16>,
    %cst_95 = arith.constant 6.250000e-01 : f32
    %171 = vector.broadcast %cst_95 : f32 to vector<16x128xf32>
    %172 = arith.mulf %171, %140 : vector<16x128xf32>
    %cst_96 = arith.constant 3.750000e-01 : f32
    %173 = vector.broadcast %cst_96 : f32 to vector<16x128xf32>
    %174 = arith.mulf %173, %5 : vector<16x128xf32>
    %175 = arith.addf %172, %174 : vector<16x128xf32>
    %176 = arith.truncf %175 : vector<16x128xf32> to vector<16x128xbf16>
    %c15 = arith.constant 15 : index
    %c0_97 = arith.constant 0 : index
    %c0_98 = arith.constant 0 : index
    %177 = vector.load %arg6[%c15, %c0_97, %c0_98] : memref<16x16x128xbf16, #tpu.memory_space<vmem>>, vector<1x16x128xbf16>
    %178 = vector.shape_cast %177 : vector<1x16x128xbf16> to vector<16x128xbf16>
    %179 = vector.shape_cast %176 : vector<16x128xbf16> to vector<1x16x128xbf16>
    tpu.vector_store %arg6[%c15, %c0_97, %c0_98], %179 {strides = array<i32>} : memref<16x16x128xbf16, #tpu.memory_space<vmem>>, vector<1x16x128xbf16>,
    return
  }
  func.func @transform_0(%arg0: i32, %arg1: i32, %arg2: i32) -> (i32, i32, i32) {
    %c4_i32 = arith.constant 4 : i32
    %0 = arith.muli %arg0, %c4_i32 : i32
    %c4_i32_0 = arith.constant 4 : i32
    %1 = arith.muli %arg1, %c4_i32_0 : i32
    %c1_i32 = arith.constant 1 : i32
    %2 = arith.subi %1, %c1_i32 : i32
    %c0_i32 = arith.constant 0 : i32
    %3 = arith.maxsi %2, %c0_i32 : i32
    %4 = arith.addi %0, %3 : i32
    %c0_i32_1 = arith.constant 0 : i32
    %c0_i32_2 = arith.constant 0 : i32
    return %4, %c0_i32_1, %arg2 : i32, i32, i32
  }
  func.func @transform_1(%arg0: i32, %arg1: i32, %arg2: i32) -> (i32, i32, i32) {
    %c1_i32 = arith.constant 1 : i32
    %0 = arith.muli %arg0, %c1_i32 : i32
    %1 = arith.addi %0, %arg1 : i32
    %c0_i32 = arith.constant 0 : i32
    %c0_i32_0 = arith.constant 0 : i32
    return %1, %c0_i32, %arg2 : i32, i32, i32
  }
  func.func @transform_2(%arg0: i32, %arg1: i32, %arg2: i32) -> (i32, i32, i32) {
    %c4_i32 = arith.constant 4 : i32
    %0 = arith.muli %arg0, %c4_i32 : i32
    %c1_i32 = arith.constant 1 : i32
    %1 = arith.addi %arg1, %c1_i32 : i32
    %c4_i32_0 = arith.constant 4 : i32
    %2 = arith.muli %1, %c4_i32_0 : i32
    %c3_i32 = arith.constant 3 : i32
    %3 = arith.minsi %2, %c3_i32 : i32
    %4 = arith.addi %0, %3 : i32
    %c0_i32 = arith.constant 0 : i32
    %c0_i32_1 = arith.constant 0 : i32
    return %4, %c0_i32, %arg2 : i32, i32, i32
  }
  func.func @transform_3(%arg0: i32, %arg1: i32, %arg2: i32) -> (i32, i32, i32) {
    %c1_i32 = arith.constant 1 : i32
    %0 = arith.muli %arg0, %c1_i32 : i32
    %1 = arith.addi %0, %arg1 : i32
    %c0_i32 = arith.constant 0 : i32
    %c0_i32_0 = arith.constant 0 : i32
    return %1, %c0_i32, %arg2 : i32, i32, i32
  }
}

module attributes {stable_mosaic.version = 11 : i64} {
  func.func @_upsample_h_kernel(%arg0: i32, %arg1: i32, %arg2: i32, %arg3: memref<1x16x128xbf16, #tpu.memory_space<vmem>>, %arg4: memref<2x16x128xbf16, #tpu.memory_space<vmem>>, %arg5: memref<1x16x128xbf16, #tpu.memory_space<vmem>>, %arg6: memref<16x16x128xbf16, #tpu.memory_space<vmem>>) attributes {dimension_semantics = [#tpu.dimension_semantics<parallel>, #tpu.dimension_semantics<parallel>, #tpu.dimension_semantics<parallel>], iteration_bounds = array<i64: 2, 1, 1>, scalar_prefetch = 0 : i64, scratch_operands = 0 : i64, tpu.core_type = #tpu.core_type<tc>, window_params = [{transform_indices = @transform_0, window_bounds = array<i64: 1, 16, 128>}, {transform_indices = @transform_1, window_bounds = array<i64: 2, 16, 128>}, {transform_indices = @transform_2, window_bounds = array<i64: 1, 16, 128>}, {transform_indices = @transform_3, window_bounds = array<i64: 16, 16, 128>}]} {
    %c0 = arith.constant 0 : index
    %c0_0 = arith.constant 0 : index
    %c0_1 = arith.constant 0 : index
    %0 = vector.load %arg3[%c0, %c0_0, %c0_1] : memref<1x16x128xbf16, #tpu.memory_space<vmem>>, vector<1x16x128xbf16>
    %1 = vector.shape_cast %0 : vector<1x16x128xbf16> to vector<16x128xbf16>
    %2 = arith.extf %1 : vector<16x128xbf16> to vector<16x128xf32>
    %c0_2 = arith.constant 0 : index
    %c0_3 = arith.constant 0 : index
    %c0_4 = arith.constant 0 : index
    %3 = vector.load %arg5[%c0_2, %c0_3, %c0_4] : memref<1x16x128xbf16, #tpu.memory_space<vmem>>, vector<1x16x128xbf16>
    %4 = vector.shape_cast %3 : vector<1x16x128xbf16> to vector<16x128xbf16>
    %5 = arith.extf %4 : vector<16x128xbf16> to vector<16x128xf32>
    %c0_5 = arith.constant 0 : index
    %c0_6 = arith.constant 0 : index
    %c0_7 = arith.constant 0 : index
    %6 = vector.load %arg4[%c0_5, %c0_6, %c0_7] : memref<2x16x128xbf16, #tpu.memory_space<vmem>>, vector<1x16x128xbf16>
    %7 = vector.shape_cast %6 : vector<1x16x128xbf16> to vector<16x128xbf16>
    %8 = arith.extf %7 : vector<16x128xbf16> to vector<16x128xf32>
    %c1 = arith.constant 1 : index
    %c0_8 = arith.constant 0 : index
    %c0_9 = arith.constant 0 : index
    %9 = vector.load %arg4[%c1, %c0_8, %c0_9] : memref<2x16x128xbf16, #tpu.memory_space<vmem>>, vector<1x16x128xbf16>
    %10 = vector.shape_cast %9 : vector<1x16x128xbf16> to vector<16x128xbf16>
    %11 = arith.extf %10 : vector<16x128xbf16> to vector<16x128xf32>
    %cst = arith.constant 4.375000e-01 : f32
    %12 = vector.broadcast %cst : f32 to vector<16x128xf32>
    %13 = arith.mulf %12, %2 : vector<16x128xf32>
    %cst_10 = arith.constant 5.625000e-01 : f32
    %14 = vector.broadcast %cst_10 : f32 to vector<16x128xf32>
    %15 = arith.mulf %14, %8 : vector<16x128xf32>
    %16 = arith.addf %13, %15 : vector<16x128xf32>
    %17 = arith.truncf %16 : vector<16x128xf32> to vector<16x128xbf16>
    %c0_11 = arith.constant 0 : index
    %c0_12 = arith.constant 0 : index
    %c0_13 = arith.constant 0 : index
    %18 = vector.load %arg6[%c0_11, %c0_12, %c0_13] : memref<16x16x128xbf16, #tpu.memory_space<vmem>>, vector<1x16x128xbf16>
    %19 = vector.shape_cast %18 : vector<1x16x128xbf16> to vector<16x128xbf16>
    %20 = vector.shape_cast %17 : vector<16x128xbf16> to vector<1x16x128xbf16>
    tpu.vector_store %arg6[%c0_11, %c0_12, %c0_13], %20 {strides = array<i32>} : memref<16x16x128xbf16, #tpu.memory_space<vmem>>, vector<1x16x128xbf16>,
    %cst_14 = arith.constant 3.125000e-01 : f32
    %21 = vector.broadcast %cst_14 : f32 to vector<16x128xf32>
    %22 = arith.mulf %21, %2 : vector<16x128xf32>
    %cst_15 = arith.constant 6.875000e-01 : f32
    %23 = vector.broadcast %cst_15 : f32 to vector<16x128xf32>
    %24 = arith.mulf %23, %8 : vector<16x128xf32>
    %25 = arith.addf %22, %24 : vector<16x128xf32>
    %26 = arith.truncf %25 : vector<16x128xf32> to vector<16x128xbf16>
    %c1_16 = arith.constant 1 : index
    %c0_17 = arith.constant 0 : index
    %c0_18 = arith.constant 0 : index
    %27 = vector.load %arg6[%c1_16, %c0_17, %c0_18] : memref<16x16x128xbf16, #tpu.memory_space<vmem>>, vector<1x16x128xbf16>
    %28 = vector.shape_cast %27 : vector<1x16x128xbf16> to vector<16x128xbf16>
    %29 = vector.shape_cast %26 : vector<16x128xbf16> to vector<1x16x128xbf16>
    tpu.vector_store %arg6[%c1_16, %c0_17, %c0_18], %29 {strides = array<i32>} : memref<16x16x128xbf16, #tpu.memory_space<vmem>>, vector<1x16x128xbf16>,
    %cst_19 = arith.constant 1.875000e-01 : f32
    %30 = vector.broadcast %cst_19 : f32 to vector<16x128xf32>
    %31 = arith.mulf %30, %2 : vector<16x128xf32>
    %cst_20 = arith.constant 8.125000e-01 : f32
    %32 = vector.broadcast %cst_20 : f32 to vector<16x128xf32>
    %33 = arith.mulf %32, %8 : vector<16x128xf32>
    %34 = arith.addf %31, %33 : vector<16x128xf32>
    %35 = arith.truncf %34 : vector<16x128xf32> to vector<16x128xbf16>
    %c2 = arith.constant 2 : index
    %c0_21 = arith.constant 0 : index
    %c0_22 = arith.constant 0 : index
    %36 = vector.load %arg6[%c2, %c0_21, %c0_22] : memref<16x16x128xbf16, #tpu.memory_space<vmem>>, vector<1x16x128xbf16>
    %37 = vector.shape_cast %36 : vector<1x16x128xbf16> to vector<16x128xbf16>
    %38 = vector.shape_cast %35 : vector<16x128xbf16> to vector<1x16x128xbf16>
    tpu.vector_store %arg6[%c2, %c0_21, %c0_22], %38 {strides = array<i32>} : memref<16x16x128xbf16, #tpu.memory_space<vmem>>, vector<1x16x128xbf16>,
    %cst_23 = arith.constant 6.250000e-02 : f32
    %39 = vector.broadcast %cst_23 : f32 to vector<16x128xf32>
    %40 = arith.mulf %39, %2 : vector<16x128xf32>
    %cst_24 = arith.constant 9.375000e-01 : f32
    %41 = vector.broadcast %cst_24 : f32 to vector<16x128xf32>
    %42 = arith.mulf %41, %8 : vector<16x128xf32>
    %43 = arith.addf %40, %42 : vector<16x128xf32>
    %44 = arith.truncf %43 : vector<16x128xf32> to vector<16x128xbf16>
    %c3 = arith.constant 3 : index
    %c0_25 = arith.constant 0 : index
    %c0_26 = arith.constant 0 : index
    %45 = vector.load %arg6[%c3, %c0_25, %c0_26] : memref<16x16x128xbf16, #tpu.memory_space<vmem>>, vector<1x16x128xbf16>
    %46 = vector.shape_cast %45 : vector<1x16x128xbf16> to vector<16x128xbf16>
    %47 = vector.shape_cast %44 : vector<16x128xbf16> to vector<1x16x128xbf16>
    tpu.vector_store %arg6[%c3, %c0_25, %c0_26], %47 {strides = array<i32>} : memref<16x16x128xbf16, #tpu.memory_space<vmem>>, vector<1x16x128xbf16>,
    %cst_27 = arith.constant 9.375000e-01 : f32
    %48 = vector.broadcast %cst_27 : f32 to vector<16x128xf32>
    %49 = arith.mulf %48, %8 : vector<16x128xf32>
    %cst_28 = arith.constant 6.250000e-02 : f32
    %50 = vector.broadcast %cst_28 : f32 to vector<16x128xf32>
    %51 = arith.mulf %50, %11 : vector<16x128xf32>
    %52 = arith.addf %49, %51 : vector<16x128xf32>
    %53 = arith.truncf %52 : vector<16x128xf32> to vector<16x128xbf16>
    %c4 = arith.constant 4 : index
    %c0_29 = arith.constant 0 : index
    %c0_30 = arith.constant 0 : index
    %54 = vector.load %arg6[%c4, %c0_29, %c0_30] : memref<16x16x128xbf16, #tpu.memory_space<vmem>>, vector<1x16x128xbf16>
    %55 = vector.shape_cast %54 : vector<1x16x128xbf16> to vector<16x128xbf16>
    %56 = vector.shape_cast %53 : vector<16x128xbf16> to vector<1x16x128xbf16>
    tpu.vector_store %arg6[%c4, %c0_29, %c0_30], %56 {strides = array<i32>} : memref<16x16x128xbf16, #tpu.memory_space<vmem>>, vector<1x16x128xbf16>,
    %cst_31 = arith.constant 8.125000e-01 : f32
    %57 = vector.broadcast %cst_31 : f32 to vector<16x128xf32>
    %58 = arith.mulf %57, %8 : vector<16x128xf32>
    %cst_32 = arith.constant 1.875000e-01 : f32
    %59 = vector.broadcast %cst_32 : f32 to vector<16x128xf32>
    %60 = arith.mulf %59, %11 : vector<16x128xf32>
    %61 = arith.addf %58, %60 : vector<16x128xf32>
    %62 = arith.truncf %61 : vector<16x128xf32> to vector<16x128xbf16>
    %c5 = arith.constant 5 : index
    %c0_33 = arith.constant 0 : index
    %c0_34 = arith.constant 0 : index
    %63 = vector.load %arg6[%c5, %c0_33, %c0_34] : memref<16x16x128xbf16, #tpu.memory_space<vmem>>, vector<1x16x128xbf16>
    %64 = vector.shape_cast %63 : vector<1x16x128xbf16> to vector<16x128xbf16>
    %65 = vector.shape_cast %62 : vector<16x128xbf16> to vector<1x16x128xbf16>
    tpu.vector_store %arg6[%c5, %c0_33, %c0_34], %65 {strides = array<i32>} : memref<16x16x128xbf16, #tpu.memory_space<vmem>>, vector<1x16x128xbf16>,
    %cst_35 = arith.constant 6.875000e-01 : f32
    %66 = vector.broadcast %cst_35 : f32 to vector<16x128xf32>
    %67 = arith.mulf %66, %8 : vector<16x128xf32>
    %cst_36 = arith.constant 3.125000e-01 : f32
    %68 = vector.broadcast %cst_36 : f32 to vector<16x128xf32>
    %69 = arith.mulf %68, %11 : vector<16x128xf32>
    %70 = arith.addf %67, %69 : vector<16x128xf32>
    %71 = arith.truncf %70 : vector<16x128xf32> to vector<16x128xbf16>
    %c6 = arith.constant 6 : index
    %c0_37 = arith.constant 0 : index
    %c0_38 = arith.constant 0 : index
    %72 = vector.load %arg6[%c6, %c0_37, %c0_38] : memref<16x16x128xbf16, #tpu.memory_space<vmem>>, vector<1x16x128xbf16>
    %73 = vector.shape_cast %72 : vector<1x16x128xbf16> to vector<16x128xbf16>
    %74 = vector.shape_cast %71 : vector<16x128xbf16> to vector<1x16x128xbf16>
    tpu.vector_store %arg6[%c6, %c0_37, %c0_38], %74 {strides = array<i32>} : memref<16x16x128xbf16, #tpu.memory_space<vmem>>, vector<1x16x128xbf16>,
    %cst_39 = arith.constant 5.625000e-01 : f32
    %75 = vector.broadcast %cst_39 : f32 to vector<16x128xf32>
    %76 = arith.mulf %75, %8 : vector<16x128xf32>
    %cst_40 = arith.constant 4.375000e-01 : f32
    %77 = vector.broadcast %cst_40 : f32 to vector<16x128xf32>
    %78 = arith.mulf %77, %11 : vector<16x128xf32>
    %79 = arith.addf %76, %78 : vector<16x128xf32>
    %80 = arith.truncf %79 : vector<16x128xf32> to vector<16x128xbf16>
    %c7 = arith.constant 7 : index
    %c0_41 = arith.constant 0 : index
    %c0_42 = arith.constant 0 : index
    %81 = vector.load %arg6[%c7, %c0_41, %c0_42] : memref<16x16x128xbf16, #tpu.memory_space<vmem>>, vector<1x16x128xbf16>
    %82 = vector.shape_cast %81 : vector<1x16x128xbf16> to vector<16x128xbf16>
    %83 = vector.shape_cast %80 : vector<16x128xbf16> to vector<1x16x128xbf16>
    tpu.vector_store %arg6[%c7, %c0_41, %c0_42], %83 {strides = array<i32>} : memref<16x16x128xbf16, #tpu.memory_space<vmem>>, vector<1x16x128xbf16>,
    %c1_43 = arith.constant 1 : index
    %c0_44 = arith.constant 0 : index
    %c0_45 = arith.constant 0 : index
    %84 = vector.load %arg4[%c1_43, %c0_44, %c0_45] : memref<2x16x128xbf16, #tpu.memory_space<vmem>>, vector<1x16x128xbf16>
    %85 = vector.shape_cast %84 : vector<1x16x128xbf16> to vector<16x128xbf16>
    %86 = arith.extf %85 : vector<16x128xbf16> to vector<16x128xf32>
    %c0_46 = arith.constant 0 : index
    %c0_47 = arith.constant 0 : index
    %c0_48 = arith.constant 0 : index
    %87 = vector.load %arg4[%c0_46, %c0_47, %c0_48] : memref<2x16x128xbf16, #tpu.memory_space<vmem>>, vector<1x16x128xbf16>
    %88 = vector.shape_cast %87 : vector<1x16x128xbf16> to vector<16x128xbf16>
    %89 = arith.extf %88 : vector<16x128xbf16> to vector<16x128xf32>
    %cst_49 = arith.constant 4.375000e-01 : f32
    %90 = vector.broadcast %cst_49 : f32 to vector<16x128xf32>
    %91 = arith.mulf %90, %89 : vector<16x128xf32>
    %cst_50 = arith.constant 5.625000e-01 : f32
    %92 = vector.broadcast %cst_50 : f32 to vector<16x128xf32>
    %93 = arith.mulf %92, %86 : vector<16x128xf32>
    %94 = arith.addf %91, %93 : vector<16x128xf32>
    %95 = arith.truncf %94 : vector<16x128xf32> to vector<16x128xbf16>
    %c8 = arith.constant 8 : index
    %c0_51 = arith.constant 0 : index
    %c0_52 = arith.constant 0 : index
    %96 = vector.load %arg6[%c8, %c0_51, %c0_52] : memref<16x16x128xbf16, #tpu.memory_space<vmem>>, vector<1x16x128xbf16>
    %97 = vector.shape_cast %96 : vector<1x16x128xbf16> to vector<16x128xbf16>
    %98 = vector.shape_cast %95 : vector<16x128xbf16> to vector<1x16x128xbf16>
    tpu.vector_store %arg6[%c8, %c0_51, %c0_52], %98 {strides = array<i32>} : memref<16x16x128xbf16, #tpu.memory_space<vmem>>, vector<1x16x128xbf16>,
    %cst_53 = arith.constant 3.125000e-01 : f32
    %99 = vector.broadcast %cst_53 : f32 to vector<16x128xf32>
    %100 = arith.mulf %99, %89 : vector<16x128xf32>
    %cst_54 = arith.constant 6.875000e-01 : f32
    %101 = vector.broadcast %cst_54 : f32 to vector<16x128xf32>
    %102 = arith.mulf %101, %86 : vector<16x128xf32>
    %103 = arith.addf %100, %102 : vector<16x128xf32>
    %104 = arith.truncf %103 : vector<16x128xf32> to vector<16x128xbf16>
    %c9 = arith.constant 9 : index
    %c0_55 = arith.constant 0 : index
    %c0_56 = arith.constant 0 : index
    %105 = vector.load %arg6[%c9, %c0_55, %c0_56] : memref<16x16x128xbf16, #tpu.memory_space<vmem>>, vector<1x16x128xbf16>
    %106 = vector.shape_cast %105 : vector<1x16x128xbf16> to vector<16x128xbf16>
    %107 = vector.shape_cast %104 : vector<16x128xbf16> to vector<1x16x128xbf16>
    tpu.vector_store %arg6[%c9, %c0_55, %c0_56], %107 {strides = array<i32>} : memref<16x16x128xbf16, #tpu.memory_space<vmem>>, vector<1x16x128xbf16>,
    %cst_57 = arith.constant 1.875000e-01 : f32
    %108 = vector.broadcast %cst_57 : f32 to vector<16x128xf32>
    %109 = arith.mulf %108, %89 : vector<16x128xf32>
    %cst_58 = arith.constant 8.125000e-01 : f32
    %110 = vector.broadcast %cst_58 : f32 to vector<16x128xf32>
    %111 = arith.mulf %110, %86 : vector<16x128xf32>
    %112 = arith.addf %109, %111 : vector<16x128xf32>
    %113 = arith.truncf %112 : vector<16x128xf32> to vector<16x128xbf16>
    %c10 = arith.constant 10 : index
    %c0_59 = arith.constant 0 : index
    %c0_60 = arith.constant 0 : index
    %114 = vector.load %arg6[%c10, %c0_59, %c0_60] : memref<16x16x128xbf16, #tpu.memory_space<vmem>>, vector<1x16x128xbf16>
    %115 = vector.shape_cast %114 : vector<1x16x128xbf16> to vector<16x128xbf16>
    %116 = vector.shape_cast %113 : vector<16x128xbf16> to vector<1x16x128xbf16>
    tpu.vector_store %arg6[%c10, %c0_59, %c0_60], %116 {strides = array<i32>} : memref<16x16x128xbf16, #tpu.memory_space<vmem>>, vector<1x16x128xbf16>,
    %cst_61 = arith.constant 6.250000e-02 : f32
    %117 = vector.broadcast %cst_61 : f32 to vector<16x128xf32>
    %118 = arith.mulf %117, %89 : vector<16x128xf32>
    %cst_62 = arith.constant 9.375000e-01 : f32
    %119 = vector.broadcast %cst_62 : f32 to vector<16x128xf32>
    %120 = arith.mulf %119, %86 : vector<16x128xf32>
    %121 = arith.addf %118, %120 : vector<16x128xf32>
    %122 = arith.truncf %121 : vector<16x128xf32> to vector<16x128xbf16>
    %c11 = arith.constant 11 : index
    %c0_63 = arith.constant 0 : index
    %c0_64 = arith.constant 0 : index
    %123 = vector.load %arg6[%c11, %c0_63, %c0_64] : memref<16x16x128xbf16, #tpu.memory_space<vmem>>, vector<1x16x128xbf16>
    %124 = vector.shape_cast %123 : vector<1x16x128xbf16> to vector<16x128xbf16>
    %125 = vector.shape_cast %122 : vector<16x128xbf16> to vector<1x16x128xbf16>
    tpu.vector_store %arg6[%c11, %c0_63, %c0_64], %125 {strides = array<i32>} : memref<16x16x128xbf16, #tpu.memory_space<vmem>>, vector<1x16x128xbf16>,
    %cst_65 = arith.constant 9.375000e-01 : f32
    %126 = vector.broadcast %cst_65 : f32 to vector<16x128xf32>
    %127 = arith.mulf %126, %86 : vector<16x128xf32>
    %cst_66 = arith.constant 6.250000e-02 : f32
    %128 = vector.broadcast %cst_66 : f32 to vector<16x128xf32>
    %129 = arith.mulf %128, %5 : vector<16x128xf32>
    %130 = arith.addf %127, %129 : vector<16x128xf32>
    %131 = arith.truncf %130 : vector<16x128xf32> to vector<16x128xbf16>
    %c12 = arith.constant 12 : index
    %c0_67 = arith.constant 0 : index
    %c0_68 = arith.constant 0 : index
    %132 = vector.load %arg6[%c12, %c0_67, %c0_68] : memref<16x16x128xbf16, #tpu.memory_space<vmem>>, vector<1x16x128xbf16>
    %133 = vector.shape_cast %132 : vector<1x16x128xbf16> to vector<16x128xbf16>
    %134 = vector.shape_cast %131 : vector<16x128xbf16> to vector<1x16x128xbf16>
    tpu.vector_store %arg6[%c12, %c0_67, %c0_68], %134 {strides = array<i32>} : memref<16x16x128xbf16, #tpu.memory_space<vmem>>, vector<1x16x128xbf16>,
    %cst_69 = arith.constant 8.125000e-01 : f32
    %135 = vector.broadcast %cst_69 : f32 to vector<16x128xf32>
    %136 = arith.mulf %135, %86 : vector<16x128xf32>
    %cst_70 = arith.constant 1.875000e-01 : f32
    %137 = vector.broadcast %cst_70 : f32 to vector<16x128xf32>
    %138 = arith.mulf %137, %5 : vector<16x128xf32>
    %139 = arith.addf %136, %138 : vector<16x128xf32>
    %140 = arith.truncf %139 : vector<16x128xf32> to vector<16x128xbf16>
    %c13 = arith.constant 13 : index
    %c0_71 = arith.constant 0 : index
    %c0_72 = arith.constant 0 : index
    %141 = vector.load %arg6[%c13, %c0_71, %c0_72] : memref<16x16x128xbf16, #tpu.memory_space<vmem>>, vector<1x16x128xbf16>
    %142 = vector.shape_cast %141 : vector<1x16x128xbf16> to vector<16x128xbf16>
    %143 = vector.shape_cast %140 : vector<16x128xbf16> to vector<1x16x128xbf16>
    tpu.vector_store %arg6[%c13, %c0_71, %c0_72], %143 {strides = array<i32>} : memref<16x16x128xbf16, #tpu.memory_space<vmem>>, vector<1x16x128xbf16>,
    %cst_73 = arith.constant 6.875000e-01 : f32
    %144 = vector.broadcast %cst_73 : f32 to vector<16x128xf32>
    %145 = arith.mulf %144, %86 : vector<16x128xf32>
    %cst_74 = arith.constant 3.125000e-01 : f32
    %146 = vector.broadcast %cst_74 : f32 to vector<16x128xf32>
    %147 = arith.mulf %146, %5 : vector<16x128xf32>
    %148 = arith.addf %145, %147 : vector<16x128xf32>
    %149 = arith.truncf %148 : vector<16x128xf32> to vector<16x128xbf16>
    %c14 = arith.constant 14 : index
    %c0_75 = arith.constant 0 : index
    %c0_76 = arith.constant 0 : index
    %150 = vector.load %arg6[%c14, %c0_75, %c0_76] : memref<16x16x128xbf16, #tpu.memory_space<vmem>>, vector<1x16x128xbf16>
    %151 = vector.shape_cast %150 : vector<1x16x128xbf16> to vector<16x128xbf16>
    %152 = vector.shape_cast %149 : vector<16x128xbf16> to vector<1x16x128xbf16>
    tpu.vector_store %arg6[%c14, %c0_75, %c0_76], %152 {strides = array<i32>} : memref<16x16x128xbf16, #tpu.memory_space<vmem>>, vector<1x16x128xbf16>,
    %cst_77 = arith.constant 5.625000e-01 : f32
    %153 = vector.broadcast %cst_77 : f32 to vector<16x128xf32>
    %154 = arith.mulf %153, %86 : vector<16x128xf32>
    %cst_78 = arith.constant 4.375000e-01 : f32
    %155 = vector.broadcast %cst_78 : f32 to vector<16x128xf32>
    %156 = arith.mulf %155, %5 : vector<16x128xf32>
    %157 = arith.addf %154, %156 : vector<16x128xf32>
    %158 = arith.truncf %157 : vector<16x128xf32> to vector<16x128xbf16>
    %c15 = arith.constant 15 : index
    %c0_79 = arith.constant 0 : index
    %c0_80 = arith.constant 0 : index
    %159 = vector.load %arg6[%c15, %c0_79, %c0_80] : memref<16x16x128xbf16, #tpu.memory_space<vmem>>, vector<1x16x128xbf16>
    %160 = vector.shape_cast %159 : vector<1x16x128xbf16> to vector<16x128xbf16>
    %161 = vector.shape_cast %158 : vector<16x128xbf16> to vector<1x16x128xbf16>
    tpu.vector_store %arg6[%c15, %c0_79, %c0_80], %161 {strides = array<i32>} : memref<16x16x128xbf16, #tpu.memory_space<vmem>>, vector<1x16x128xbf16>,
    return
  }
  func.func @transform_0(%arg0: i32, %arg1: i32, %arg2: i32) -> (i32, i32, i32) {
    %c2_i32 = arith.constant 2 : i32
    %0 = arith.muli %arg0, %c2_i32 : i32
    %c2_i32_0 = arith.constant 2 : i32
    %1 = arith.muli %arg1, %c2_i32_0 : i32
    %c1_i32 = arith.constant 1 : i32
    %2 = arith.subi %1, %c1_i32 : i32
    %c0_i32 = arith.constant 0 : i32
    %3 = arith.maxsi %2, %c0_i32 : i32
    %4 = arith.addi %0, %3 : i32
    %c0_i32_1 = arith.constant 0 : i32
    %c0_i32_2 = arith.constant 0 : i32
    return %4, %c0_i32_1, %arg2 : i32, i32, i32
  }
  func.func @transform_1(%arg0: i32, %arg1: i32, %arg2: i32) -> (i32, i32, i32) {
    %c1_i32 = arith.constant 1 : i32
    %0 = arith.muli %arg0, %c1_i32 : i32
    %1 = arith.addi %0, %arg1 : i32
    %c0_i32 = arith.constant 0 : i32
    %c0_i32_0 = arith.constant 0 : i32
    return %1, %c0_i32, %arg2 : i32, i32, i32
  }
  func.func @transform_2(%arg0: i32, %arg1: i32, %arg2: i32) -> (i32, i32, i32) {
    %c2_i32 = arith.constant 2 : i32
    %0 = arith.muli %arg0, %c2_i32 : i32
    %c1_i32 = arith.constant 1 : i32
    %1 = arith.addi %arg1, %c1_i32 : i32
    %c2_i32_0 = arith.constant 2 : i32
    %2 = arith.muli %1, %c2_i32_0 : i32
    %c1_i32_1 = arith.constant 1 : i32
    %3 = arith.minsi %2, %c1_i32_1 : i32
    %4 = arith.addi %0, %3 : i32
    %c0_i32 = arith.constant 0 : i32
    %c0_i32_2 = arith.constant 0 : i32
    return %4, %c0_i32, %arg2 : i32, i32, i32
  }
  func.func @transform_3(%arg0: i32, %arg1: i32, %arg2: i32) -> (i32, i32, i32) {
    %c1_i32 = arith.constant 1 : i32
    %0 = arith.muli %arg0, %c1_i32 : i32
    %1 = arith.addi %0, %arg1 : i32
    %c0_i32 = arith.constant 0 : i32
    %c0_i32_0 = arith.constant 0 : i32
    return %1, %c0_i32, %arg2 : i32, i32, i32
  }
}

</mosaic_0001>

<bundles_post_ra>
// kernel: bottleneck_enhancer_forward.9
= control target key start
LH: loop header
LB: loop body
LE: loop exit
PB: predicated region body
PF: predicated region fallthrough
CT: control target
= control target key end

     0   :  { %s324_s27 = smov 108   ;;  %s325_s28 = smov 116   ;;  %vm80_vm0 = vcmask 24576   ;;  %vm234_vm1 = vcmask 26626   ;;  %vm157_vm2 = vcmask 25601   ;;  %vm311_vm3 = vcmask 27651   ;;  %s499_s0 = inlined_call_operand.vmem [shape: bf16[64,32], index: 0, kind: input, shape index: {}]   ;;  %s500_s1 = inlined_call_operand.vmem [shape: bf16[8,4], index: 1, kind: output, shape index: {}]  }
   0x1   :  { %v8_v0 = vld [vmem:[%s499_s0] sm:$0x1]  ;;  %v10_v1 = vld [vmem:[%s499_s0] sm:$0x2]  ;;  %v16_v2 = vld [vmem:[%s499_s0] sm:$0x4] }
   0x2   :  { %v9_v3 = vunpack.c.l.bf16 %v8_v0  ;;  %v11_v4 = vunpack.c.l.bf16 %v10_v1  ;;  %v17_v5 = vunpack.c.l.bf16 %v16_v2  ;;  %v22_v6 = vld [vmem:[%s499_s0] sm:$0x8]  ;;  %v31_v7 = vld [vmem:[%s499_s0 + $0x4] sm:$0x2]  ;;  %v37_v11 = vld [vmem:[%s499_s0 + $0x4] sm:$0x4] }
   0x3   :  { %v23_v8 = vunpack.c.l.bf16 %v22_v6  ;;  %v82_v12 = vld [vmem:[%s499_s0 + $0x8] sm:$0x1]  ;;  %v28_v13 = vld [vmem:[%s499_s0 + $0x4] sm:$0x1]  ;;  %v32_v14 = vunpack.c.l.bf16 %v31_v7  ;;  %v84_v15 = vld [vmem:[%s499_s0 + $0x8] sm:$0x2]  ;;  %v38_v22 = vunpack.c.l.bf16 %v37_v11 }
   0x4   :  { %v13_v9 = vrot.slane %v11_v4, 2  ;;  %v19_v10 = vrot.slane %v17_v5, 4  ;;  %v90_v16 = vld [vmem:[%s499_s0 + $0x8] sm:$0x4]  ;;  %v83_v19 = vunpack.c.l.bf16 %v82_v12  ;;  %v85_v20 = vunpack.c.l.bf16 %v84_v15  ;;  %v96_v21 = vld [vmem:[%s499_s0 + $0x8] sm:$0x8] }
   0x5   :  { %v25_v18 = vrot.slane %v23_v8, 6  ;;  %v43_v23 = vld [vmem:[%s499_s0 + $0x4] sm:$0x8]  ;;  %v91_v24 = vunpack.c.l.bf16 %v90_v16  ;;  %v97_v25 = vunpack.c.l.bf16 %v96_v21  ;;  %v29_v27 = vunpack.c.l.bf16 %v28_v13  ;;  %v161_v29 = vld [vmem:[%s499_s0 + $0x10] sm:$0x2]  ;;  %s326_s4 = smov 124  }
   0x6   :  { %v15_v17 = vadd.f32 %v13_v9, %v9_v3  ;;  %v87_v28 = vrot.slane %v85_v20, 2  ;;  %v159_v31 = vld [vmem:[%s499_s0 + $0x10] sm:$0x1]  ;;  %v167_v32 = vld [vmem:[%s499_s0 + $0x10] sm:$0x4]  ;;  %v34_v34 = vrot.slane %v32_v14, 2  ;;  %v44_v35 = vunpack.c.l.bf16 %v43_v23 }
   0x7   :  { %v93_v30 = vrot.slane %v91_v24, 4  ;;  %v40_v37 = vrot.slane %v38_v22, 4  ;;  %v99_v38 = vrot.slane %v97_v25, 6  ;;  %v102_v39 = vld [vmem:[%s499_s0 + $0xc] sm:$0x1]  ;;  %v162_v41 = vunpack.c.l.bf16 %v161_v29  ;;  %s327_s11 = smov 104  }
   0x8   :  { %v21_v26 = vadd.f32 %v19_v10, %v15_v17  ;;  %v89_v36 = vadd.f32 %v87_v28, %v83_v19  ;;  %v105_v40 = vld [vmem:[%s499_s0 + $0xc] sm:$0x2]  ;;  %v168_v42 = vunpack.c.l.bf16 %v167_v32  ;;  %v160_v45 = vunpack.c.l.bf16 %v159_v31  ;;  %v173_v46 = vld [vmem:[%s499_s0 + $0x10] sm:$0x8]  ;;  %v236_v47 = vld [vmem:[%s499_s0 + $0x18] sm:$0x1] }
   0x9   :  { %v238_v48 = vld [vmem:[%s499_s0 + $0x18] sm:$0x2]  ;;  %v164_v49 = vrot.slane %v162_v41, 2  ;;  %v244_v50 = vld [vmem:[%s499_s0 + $0x18] sm:$0x4]  ;;  %v46_v52 = vrot.slane %v44_v35, 6  ;;  %v103_v53 = vunpack.c.l.bf16 %v102_v39  ;;  %v106_v54 = vunpack.c.l.bf16 %v105_v40 }
   0xa   :  { %v27_v33 = vadd.f32 %v25_v18, %v21_v26  ;;  %v95_v44 = vadd.f32 %v93_v30, %v89_v36  ;;  %v250_v55 = vld [vmem:[%s499_s0 + $0x18] sm:$0x8]  ;;  %v170_v56 = vrot.slane %v168_v42, 4  ;;  %v174_v57 = vunpack.c.l.bf16 %v173_v46  ;;  %v111_v62 = vld [vmem:[%s499_s0 + $0xc] sm:$0x4]  ;;  %s328_s12 = smov 112  }
   0xb   :  { %v237_v58 = vunpack.c.l.bf16 %v236_v47  ;;  %v239_v59 = vunpack.c.l.bf16 %v238_v48  ;;  %v166_v63 = vadd.f32 %v164_v49, %v160_v45  ;;  %v245_v0 = vunpack.c.l.bf16 %v244_v50  ;;  %v117_v7 = vld [vmem:[%s499_s0 + $0xc] sm:$0x8]  ;;  %v179_v8 = vld [vmem:[%s499_s0 + $0x14] sm:$0x1]  ;;  %v182_v13 = vld [vmem:[%s499_s0 + $0x14] sm:$0x2] }
   0xc   :  { %v30_v43 = vadd.f32 %v29_v27, %v27_v33  ;;  %v101_v61 = vadd.f32 %v99_v38, %v95_v44  ;;  %v251_v2 = vunpack.c.l.bf16 %v250_v55  ;;  %v108_v5 = vrot.slane %v106_v54, 2  ;;  %v256_v15 = vld [vmem:[%s499_s0 + $0x1c] sm:$0x1]  ;;  %v259_v17 = vld [vmem:[%s499_s0 + $0x1c] sm:$0x2]  ;;  %s329_s17 = smov 120  }
   0xd   :  { %v241_v1 = vrot.slane %v239_v59, 2  ;;  %v247_v4 = vrot.slane %v245_v0, 4  ;;  %v112_v6 = vunpack.c.l.bf16 %v111_v62  ;;  %v172_v11 = vadd.f32 %v170_v56, %v166_v63  ;;  %v188_v25 = vld [vmem:[%s499_s0 + $0x14] sm:$0x4]  ;;  %v265_v28 = vld [vmem:[%s499_s0 + $0x1c] sm:$0x4] }
   0xe   :  { %v36_v51 = vadd.f32 %v34_v34, %v30_v43  ;;  %v104_v10 = vadd.f32 %v103_v53, %v101_v61  ;;  %v176_v12 = vrot.slane %v174_v57, 6  ;;  %v253_v14 = vrot.slane %v251_v2, 6  ;;  %v194_v35 = vld [vmem:[%s499_s0 + $0x14] sm:$0x8]  ;;  %v271_v38 = vld [vmem:[%s499_s0 + $0x1c] sm:$0x8] }
   0xf   :  { %v243_v9 = vadd.f32 %v241_v1, %v237_v58  ;;  %v118_v18 = vunpack.c.l.bf16 %v117_v7  ;;  %v114_v19 = vrot.slane %v112_v6, 4  ;;  %v180_v20 = vunpack.c.l.bf16 %v179_v8  ;;  %s330_s0 = smov 100  }
  0x10   :  { %v42_v60 = vadd.f32 %v40_v37, %v36_v51  ;;  %v183_v21 = vunpack.c.l.bf16 %v182_v13  ;;  %v257_v22 = vunpack.c.l.bf16 %v256_v15  ;;  %v110_v23 = vadd.f32 %v108_v5, %v104_v10 }
  0x11   :  { %v249_v16 = vadd.f32 %v247_v4, %v243_v9  ;;  %v178_v24 = vadd.f32 %v176_v12, %v172_v11  ;;  %v260_v27 = vunpack.c.l.bf16 %v259_v17  ;;  %v120_v29 = vrot.slane %v118_v18, 6 }
  0x12   :  { %v410_v3 = vadd.f32 %v46_v52, %v42_v60  ;;  %v185_v30 = vrot.slane %v183_v21, 2  ;;  %v189_v31 = vunpack.c.l.bf16 %v188_v25  ;;  %v266_v32 = vunpack.c.l.bf16 %v265_v28 }
  0x13   :  { %v255_v26 = vadd.f32 %v253_v14, %v249_v16  ;;  %v116_v33 = vadd.f32 %v114_v19, %v110_v23  ;;  %v181_v34 = vadd.f32 %v180_v20, %v178_v24  ;;  %v262_v37 = vrot.slane %v260_v27, 2 }
  0x14   :  { %66 = vrot.lane.b32.xlu2 %v410_v3, %s324_s27  ;;  %58 = vrot.lane.b32.xlu1 %v410_v3, %s325_s28  ;;  %v191_v39 = vrot.slane %v189_v31, 4  ;;  %v195_v40 = vunpack.c.l.bf16 %v194_v35  ;;  %v272_v41 = vunpack.c.l.bf16 %v271_v38  ;;  %v268_v45 = vrot.slane %v266_v32, 4 }
  0x15   :  { %50 = vrot.lane.b32.xlu0 %v410_v3, %s326_s4  ;;  %v258_v36 = vadd.f32 %v257_v22, %v255_v26  ;;  %v450_v42 = vadd.f32 %v120_v29, %v116_v33  ;;  %v187_v43 = vadd.f32 %v185_v30, %v181_v34 }
  0x16   :  { %v197_v47 = vrot.slane %v195_v40, 6  ;;  %v274_v49 = vrot.slane %v272_v41, 6 }
  0x17   :  { %v264_v44 = vadd.f32 %v262_v37, %v258_v36  ;;  %v193_v46 = vadd.f32 %v191_v39, %v187_v43 }
  0x19   :  { %v270_v48 = vadd.f32 %v268_v45, %v264_v44  ;;  %v199_v50 = vadd.f32 %v197_v47, %v193_v46 }
  0x1b   :  { %v456_v51 = vadd.f32 %v274_v49, %v270_v48 }
  0x1c   :  { %70 = vrot.lane.b32.xlu2 %v410_v3, %s327_s11  ;;  %62 = vrot.lane.b32.xlu1 %v410_v3, %s328_s12 }
  0x1d   :  { %54 = vrot.lane.b32.xlu0 %v410_v3, %s329_s17 }
  0x24   :  { %128 = vrot.lane.b32.xlu2 %v450_v42, %s329_s17  ;;  %124 = vrot.lane.b32.xlu1 %v450_v42, %s326_s4 }
  0x25   :  { %74 = vrot.lane.b32.xlu0 %v410_v3, %s330_s0 }
  0x2c   :  { %205 = vrot.lane.b32.xlu2 %v199_v50, %s329_s17  ;;  %278 = vrot.lane.b32.xlu1 %v456_v51, %s326_s4 }
  0x2d   :  { %201 = vrot.lane.b32.xlu0 %v199_v50, %s326_s4 }
  0x34   :  { %209 = vrot.lane.b32.xlu2 %v199_v50, %s325_s28  ;;  %132 = vrot.lane.b32.xlu1 %v450_v42, %s325_s28 }
  0x35   :  { %282 = vrot.lane.b32.xlu0 %v456_v51, %s329_s17 }
  0x3c   :  { %213 = vrot.lane.b32.xlu2 %v199_v50, %s328_s12  ;;  %136 = vrot.lane.b32.xlu1 %v450_v42, %s328_s12 }
  0x3d   :  { %286 = vrot.lane.b32.xlu0 %v456_v51, %s325_s28 }
  0x44   :  { %217 = vrot.lane.b32.xlu2 %v199_v50, %s324_s27  ;;  %140 = vrot.lane.b32.xlu1 %v450_v42, %s324_s27 }
  0x45   :  { %290 = vrot.lane.b32.xlu0 %v456_v51, %s328_s12 }
  0x4c   :  { %221 = vrot.lane.b32.xlu2 %v199_v50, %s327_s11  ;;  %144 = vrot.lane.b32.xlu1 %v450_v42, %s327_s11 }
  0x4d   :  { %294 = vrot.lane.b32.xlu0 %v456_v51, %s324_s27 }
  0x54   :  { %225 = vrot.lane.b32.xlu2 %v199_v50, %s330_s0  ;;  %148 = vrot.lane.b32.xlu1 %v450_v42, %s330_s0 }
  0x55   :  { %298 = vrot.lane.b32.xlu0 %v456_v51, %s327_s11 }
  0x5d   :  { %302 = vrot.lane.b32.xlu0 %v456_v51, %s330_s0 }
  0x6e   :  { %v67_v52 = vpop.permute.xlu2 %66 }
  0x76   :  { %v71_v53 = vpop.permute.xlu2 %70 }
  0x7e   :  { %v129_v54 = vpop.permute.xlu2 %128 }
  0x86   :  { %v206_v55 = vpop.permute.xlu2 %205  ;;  %v59_v56 = vpop.permute.xlu1 %58 }
  0x87   :  { %v51_v57 = vpop.permute.xlu0 %50 }
  0x88   :  { %v53_v58 = vadd.f32 %v51_v57, %v410_v3 }
  0x8e   :  { %v210_v59 = vpop.permute.xlu2 %209  ;;  %v63_v60 = vpop.permute.xlu1 %62 }
  0x8f   :  { %v55_v61 = vpop.permute.xlu0 %54 }
  0x90   :  { %v57_v62 = vadd.f32 %v55_v61, %v53_v58 }
  0x92   :  { %v61_v63 = vadd.f32 %v59_v56, %v57_v62 }
  0x94   :  { %v65_v0 = vadd.f32 %v63_v60, %v61_v63 }
  0x96   :  { %v214_v1 = vpop.permute.xlu2 %213  ;;  %v125_v2 = vpop.permute.xlu1 %124  ;;  %v69_v4 = vadd.f32 %v67_v52, %v65_v0 }
  0x97   :  { %v75_v5 = vpop.permute.xlu0 %74  ;;  %v127_v30 = vadd.f32 %v125_v2, %v450_v42 }
  0x98   :  { %v73_v6 = vadd.f32 %v71_v53, %v69_v4 }
  0x99   :  { %v131_v31 = vadd.f32 %v129_v54, %v127_v30 }
  0x9a   :  { %v77_v7 = vadd.f32 %v75_v5, %v73_v6 }
  0x9c   :  { %v78_v8 = vmul.f32 0.015625, %v77_v7 }
  0x9e   :  { %v79_v9 = vpack.c.bf16 %v78_v8, %v78_v8  ;;  %v218_v10 = vpop.permute.xlu2 %217  ;;  %v279_v11 = vpop.permute.xlu1 %278 }
  0x9f   :  { %v202_v12 = vpop.permute.xlu0 %201  ;;  %v281_v36 = vadd.f32 %v279_v11, %v456_v51 }
  0xa0   :  { %81 = vst.msk [vmem:[%s500_s1] sm:$0x1] %vm80_vm0, %v79_v9  ;;  %v204_v3 = vadd.f32 %v202_v12, %v199_v50 }
  0xa2   :  { %v208_v13 = vadd.f32 %v206_v55, %v204_v3 }
  0xa4   :  { %v212_v14 = vadd.f32 %v210_v59, %v208_v13 }
  0xa6   :  { %v222_v15 = vpop.permute.xlu2 %221  ;;  %v216_v16 = vadd.f32 %v214_v1, %v212_v14  ;;  %v133_v17 = vpop.permute.xlu1 %132 }
  0xa7   :  { %v283_v18 = vpop.permute.xlu0 %282  ;;  %v135_v33 = vadd.f32 %v133_v17, %v131_v31 }
  0xa8   :  { %v220_v19 = vadd.f32 %v218_v10, %v216_v16  ;;  %v285_v39 = vadd.f32 %v283_v18, %v281_v36 }
  0xaa   :  { %v224_v20 = vadd.f32 %v222_v15, %v220_v19 }
  0xae   :  { %v226_v21 = vpop.permute.xlu2 %225  ;;  %v137_v22 = vpop.permute.xlu1 %136 }
  0xaf   :  { %v228_v23 = vadd.f32 %v226_v21, %v224_v20  ;;  %v287_v24 = vpop.permute.xlu0 %286  ;;  %v139_v35 = vadd.f32 %v137_v22, %v135_v33 }
  0xb0   :  { %v289_v44 = vadd.f32 %v287_v24, %v285_v39 }
  0xb1   :  { %v229_v25 = vmul.f32 0.015625, %v228_v23 }
  0xb3   :  { %v230_v26 = vpack.c.bf16 %v229_v25, %v229_v25 }
  0xb5   :  { %v232_v27 = vrot.slane %v230_v26, 6 }
  0xb6   :  { %v141_v28 = vpop.permute.xlu1 %140 }
  0xb7   :  { %235 = vst.msk [vmem:[%s500_s1] sm:$0x4] %vm234_vm1, %v232_v27  ;;  %v291_v29 = vpop.permute.xlu0 %290  ;;  %v143_v37 = vadd.f32 %v141_v28, %v139_v35 }
  0xb8   :  { %v293_v46 = vadd.f32 %v291_v29, %v289_v44 }
  0xbe   :  { %v145_v32 = vpop.permute.xlu1 %144 }
  0xbf   :  { %v295_v34 = vpop.permute.xlu0 %294  ;;  %v147_v38 = vadd.f32 %v145_v32, %v143_v37 }
  0xc0   :  { %v297_v48 = vadd.f32 %v295_v34, %v293_v46 }
  0xc6   :  { %v149_v40 = vpop.permute.xlu1 %148 }
  0xc7   :  { %v151_v41 = vadd.f32 %v149_v40, %v147_v38  ;;  %v299_v43 = vpop.permute.xlu0 %298 }
  0xc8   :  { %v301_v49 = vadd.f32 %v299_v43, %v297_v48 }
  0xc9   :  { %v152_v45 = vmul.f32 0.015625, %v151_v41 }
  0xcb   :  { %v153_v47 = vpack.c.bf16 %v152_v45, %v152_v45 }
  0xcd   :  { %v155_v42 = vrot.slane %v153_v47, 7 }
  0xcf   :  { %158 = vst.msk [vmem:[%s500_s1] sm:$0x2] %vm157_vm2, %v155_v42  ;;  %v303_v50 = vpop.permute.xlu0 %302 }
  0xd0   :  { %v305_v51 = vadd.f32 %v303_v50, %v301_v49 }
  0xd2   :  { %v306_v52 = vmul.f32 0.015625, %v305_v51 }
  0xd4   :  { %v307_v53 = vpack.c.bf16 %v306_v52, %v306_v52 }
  0xd6   :  { %v309_v54 = vrot.slane %v307_v53, 5 }
  0xd8   :  { %312 = vst.msk [vmem:[%s500_s1] sm:$0x8] %vm311_vm3, %v309_v54 }

// kernel: bottleneck_enhancer_forward.12
= control target key start
LH: loop header
LB: loop body
LE: loop exit
PB: predicated region body
PF: predicated region fallthrough
CT: control target
= control target key end

     0   :  { %s835_s15 = smov 0   ;;  %s837_s16 = smov 0   ;;  %s935_s0 = inlined_call_operand.vmem [shape: bf16[2,16,4], index: 0, kind: input, shape index: {}]   ;;  %s936_s1 = inlined_call_operand.vmem [shape: bf16[36,128], index: 1, kind: input, shape index: {}]   ;;  %s937_s2 = inlined_call_operand.vmem [shape: f32[1,128], index: 2, kind: input, shape index: {}]   ;;  %s938_s3 = inlined_call_operand.vmem [shape: bf16[16,2], index: 3, kind: input, shape index: {}]   ;;  %s939_s4 = inlined_call_operand.vmem [shape: bf16[4,16,128], index: 4, kind: output, shape index: {}]  }
   0x1   :  { %s839_s17 = smov 0  }
   0x2 LB: > { %s33_s18 = sadd.s32 1, %s804_s16  ;;  %p722_p0 = scmp.ge.s32.totalorder %s808_s17, 1  ;;  %s808_s17 = sphi %s839_s17, %s14_s17   ;;  %s804_s16 = sphi %s837_s16, %s941_s16   ;;  %s800_s15 = sphi %s835_s15, %s940_s15  }
   0x3   : > { %p35_p1 = scmp.ge.s32.totalorder %s33_s18, 2  ;;  %p206_p2 = scmp.lt.s32.totalorder %s808_s17, 3 }
   0x5   : > { %s943_s18 = smov (%p35_p1, %s33_s18), 0  ;;  %p207_p3 = pnand %p722_p0, %p206_p2 }
   0x6   : > { %p246_p4 = scmp.lt.s32.totalorder (!%p207_p3), %s800_s15, 1  ;;  %s725_s24 = sshll.u32 (!%p207_p3), %s800_s15, 1 }
   0x7   : > { %210 = sbr.rel (%p207_p3) target bundleno = 348 (0x15c), region = 36  ;;  %p261_p5 = scmp.lt.s32.totalorder (!%p207_p3), %s725_s24, 3 }
   0xc   : > { %vm294_vm0 = vcmask 1041408   ;;  %v331_v0 = vld [vmem:[%s936_s1 + $0x4] sm:$0x3]  ;;  %v358_v1 = vld [vmem:[%s936_s1 + $0x4] sm:$0xc]  ;;  %s247_s27 = scalar_select %p246_p4, %s800_s15, 1 }
   0xd   : > { %v340_v2 = vsel %vm294_vm0, %v331_v0, 0  ;;  %v366_v3 = vunpack.c.l.b16 %v358_v1  ;;  %v275_v4 = vld [vmem:[%s936_s1] sm:$0xc]  ;;  %v273_v5 = vld [vmem:[%s936_s1] sm:$0x3]  ;;  %vm290_vm1 = vcmask 31744  }
   0xe   : > { %349 = vmatpush.bf16.msra.mxu2 %v340_v2  ;;  %v287_v6 = vunpack.c.l.b16 %v275_v4  ;;  %v315_v7 = vsel %vm294_vm0, %v273_v5, 0  ;;  %v453_v8 = vld [vmem:[%s936_s1 + $0xc] sm:$0x3]  ;;  %v390_v9 = vld [vmem:[%s936_s1 + $0x8] sm:$0x3]  ;;  %s747_s10 = sshll.u32 %s247_s27, 3 }
   0xf   : > { %v367_v10 = vpack.c.b16 %v366_v3, %v366_v3  ;;  %324 = vmatpush.bf16.msra.mxu1 %v315_v7  ;;  %v458_v11 = vsel %vm294_vm0, %v453_v8, 0  ;;  %v475_v12 = vld [vmem:[%s936_s1 + $0xc] sm:$0xc]  ;;  %v423_v13 = vld [vmem:[%s936_s1 + $0x8] sm:$0xc]  ;;  %s887_s13 = scalar_lea.vmem %s935_s0, %s747_s10  ;;  %v406_v18 = vsel %vm294_vm0, %v390_v9, 0 }
  0x10   : > { %v288_v14 = vpack.c.b16 %v287_v6, %v287_v6  ;;  %v487_v15 = vunpack.c.l.b16 %v475_v12  ;;  %v429_v16 = vunpack.c.l.b16 %v423_v13  ;;  %v330_v19 = vld [vmem:[%s887_s13] sm:$0xe]  ;;  %v357_v27 = vld [vmem:[%s887_s13 + $0x4] sm:$0x1]  ;;  %v511_v47 = vld [vmem:[%s936_s1 + $0x10] sm:$0x3] }
  0x11   : > { %v368_v17 = vrot.slane %v367_v10, 2  ;;  %v356_v21 = vld [vmem:[%s887_s13] sm:$0xc]  ;;  %v333_v26 = vunpack.c.l.b16 %v330_v19  ;;  %v362_v31 = vunpack.c.l.b16 %v357_v27  ;;  %v389_v38 = vld [vmem:[%s887_s13 + $0x4] sm:$0x3]  ;;  %v520_v53 = vsel %vm294_vm0, %v511_v47, 0 }
  0x12   : > { %467 = vmatpush.bf16.msrb.mxu2 %v458_v11  ;;  %v289_v20 = vrot.slane %v288_v14, 2  ;;  %v274_v22 = vld [vmem:[%s887_s13] sm:$0xff]   ;;  %v488_v23 = vpack.c.b16 %v487_v15, %v487_v15  ;;  %v430_v24 = vpack.c.b16 %v429_v16, %v429_v16  ;;  %v361_v28 = vunpack.c.l.b16 %v356_v21  ;;  %s945_s24 = smov (!%p261_p5, %s725_s24), 3 }
  0x13   : > { %v373_v25 = vsel %vm294_vm0, %v368_v17, 0  ;;  %v277_v29 = vunpack.c.l.b16 %v274_v22  ;;  %v272_v32 = vld [vmem:[%s887_s13] sm:$0x7]  ;;  %v334_v34 = vpack.c.b16 %v333_v26, %v333_v26  ;;  %v477_v40 = vunpack.c.h.b16 %v274_v22  ;;  %v422_v41 = vld [vmem:[%s887_s13] sm:$0x8]  ;;  %s748_s25 = sshll.u32 %s945_s24, 3 }
  0x14   : > { %382 = vmatpush.bf16.msra.mxu3 %v373_v25  ;;  %v296_v30 = vsel %vm294_vm0, %v289_v20, 0  ;;  %v489_v33 = vrot.slane %v488_v23, 2  ;;  %729 = vmatmul.msk.bf16.vlgmr.msra.gmra.mxu1 %vm290_vm1, %v272_v32  ;;  %v431_v36 = vrot.slane %v430_v24, 2  ;;  %v363_v37 = vpack.c.b16 %v362_v31, %v361_v28  ;;  %v452_v0 = vld [vmem:[%s887_s13 + $0x4] sm:$0x7]  ;;  %s268_s28 = scalar_lea.vmem %s939_s4, %s748_s25 }
  0x15   : > { %305 = vmatpush.bf16.msra.mxu0 %v296_v30  ;;  %v278_v35 = vpack.c.b16 %v277_v29, %v277_v29  ;;  %v335_v42 = vrot.slane %v334_v34, 1  ;;  %v392_v48 = vunpack.c.l.b16 %v389_v38  ;;  %v425_v50 = vunpack.c.l.b16 %v422_v41  ;;  %v510_v3 = vld [vmem:[%s887_s13 + $0x4] sm:$0xe]  ;;  %v785_v30 = vld [vmem:[%s937_s2] ss:$0 sm:$0xff] }
  0x16   : > { %v494_v39 = vsel %vm294_vm0, %v489_v33, 0  ;;  %v436_v45 = vsel %vm294_vm0, %v431_v36, 0  ;;  %v364_v46 = vrot.slane %v363_v37, 2  ;;  %v478_v51 = vpack.c.b16 %v477_v40, %v477_v40 }
  0x17   : > { %v280_v43 = vshrl.u32 %v278_v35, 16  ;;  %v282_v44 = vshll.u32 %v278_v35, 16  ;;  %445 = vmatpush.bf16.msrb.mxu1 %v436_v45  ;;  %730 = vmatmul.msk.bf16.vlgmr.msra.gmra.mxu2 %vm290_vm1, %v335_v42  ;;  %v393_v54 = vpack.c.b16 %v392_v48, %v361_v28  ;;  %v426_v55 = vpack.c.b16 %v392_v48, %v425_v50 }
  0x18   : > { %503 = vmatpush.bf16.msrb.mxu3 %v494_v39  ;;  %v482_v56 = vshll.u32 %v478_v51, 16  ;;  %v480_v60 = vshrl.u32 %v478_v51, 16  ;;  %v513_v4 = vunpack.c.l.b16 %v510_v3  ;;  %vm554_vm2 = vcmask 1040384   ;;  %v749_v39 = vld [vmem:[%s938_s3] sm:$0xff] }
  0x19   : > { %415 = vmatpush.bf16.msrb.mxu0 %v406_v18  ;;  %v284_v49 = vrot.slane %v282_v44, 1  ;;  %731 = vmatmul.msk.bf16.vlgmr.msra.gmra.mxu3 %vm290_vm1, %v364_v46  ;;  %v395_v57 = vshrl.u32 %v393_v54, 16  ;;  %v398_v58 = vshll.u32 %v393_v54, 16  ;;  %v427_v59 = vrot.slane %v426_v55, 3 }
  0x1a   : > { %v484_v61 = vrot.slane %v482_v56, 1  ;;  %v514_v5 = vpack.c.b16 %v513_v4, %v513_v4  ;;  %vm550_vm3 = vcmask 15360  }
  0x1b   : > { %v285_v52 = vor.u32 %v284_v49, %v280_v43  ;;  %v397_v62 = vrot.slane %v395_v57, 2  ;;  %v400_v63 = vrot.slane %v398_v58, 3 }
  0x1c   : > { %v485_v1 = vor.u32 %v484_v61, %v480_v60  ;;  %v515_v6 = vrot.slane %v514_v5, 1 }
  0x1d   : > { %728 = vmatmul.msk.bf16.vlgmr.msra.gmra.mxu0 %vm290_vm1, %v285_v52  ;;  %v401_v2 = vor.u32 %v400_v63, %v397_v62 }
  0x1e   : > { %529 = vmatpush.bf16.msra.mxu0 %v520_v53 }
  0x24   : > { %733 = vmatmul.msk.bf16.vlgmr.msrb.gmra.mxu1 %vm290_vm1, %v427_v59 }
  0x27   : > { %734 = vmatmul.msk.bf16.vlgmr.msrb.gmra.mxu2 %vm290_vm1, %v452_v0 }
  0x29   : > { %735 = vmatmul.msk.bf16.vlgmr.msrb.gmra.mxu3 %vm290_vm1, %v485_v1 }
  0x2d   : > { %732 = vmatmul.msk.bf16.vlgmr.msrb.gmra.mxu0 %vm290_vm1, %v401_v2 }
  0x3d   : > { %736 = vmatmul.msk.bf16.vlgmr.msra.gmra.mxu0 %vm290_vm1, %v515_v6 }
  0x91   : > { %v326_v7 = vpop.f32.mrf.mxu1 }
  0x99   : > { %v328_v9 = vpop.f32.mrf.mxu1 }
  0x9a   : > { %v307_v8 = vpop.f32.mrf.mxu0  ;;  %v351_v10 = vpop.f32.mrf.mxu2 }
  0x9b   : > { %v327_v14 = vadd.f32 %v326_v7, %v307_v8 }
  0x9c   : > { %v384_v11 = vpop.f32.mrf.mxu3 }
  0x9d   : > { %v355_v17 = vadd.f32 %v351_v10, %v327_v14 }
  0x9f   : > { %v388_v20 = vadd.f32 %v384_v11, %v355_v17 }
  0xa1   : > { %v447_v13 = vpop.f32.mrf.mxu1 }
  0xa2   : > { %v309_v12 = vpop.f32.mrf.mxu0  ;;  %v353_v15 = vpop.f32.mrf.mxu2 }
  0xa4   : > { %v386_v16 = vpop.f32.mrf.mxu3 }
  0xa9   : > { %v449_v19 = vpop.f32.mrf.mxu1 }
  0xaa   : > { %v417_v18 = vpop.f32.mrf.mxu0  ;;  %v469_v21 = vpop.f32.mrf.mxu2 }
  0xab   : > { %v421_v22 = vadd.f32 %v417_v18, %v388_v20 }
  0xac   : > { %v505_v23 = vpop.f32.mrf.mxu3 }
  0xad   : > { %v451_v24 = vadd.f32 %v447_v13, %v421_v22 }
  0xaf   : > { %v473_v27 = vadd.f32 %v469_v21, %v451_v24 }
  0xb1   : > { %v509_v29 = vadd.f32 %v505_v23, %v473_v27 }
  0xb2   : > { %v419_v25 = vpop.f32.mrf.mxu0  ;;  %v471_v26 = vpop.f32.mrf.mxu2 }
  0xb4   : > { %v507_v28 = vpop.f32.mrf.mxu3 }
  0xba   : > { %v531_v31 = vpop.f32.mrf.mxu0 }
  0xbb   : > { %v535_v32 = vadd.f32 %v531_v31, %v509_v29 }
  0xbd   : > { %v540_v33 = vadd.f32 %v785_v30, %v535_v32 }
  0xbf   : > { %v541_v34 = vmax.f32 %v540_v33, 0.0 }
  0xc1   : > { %v542_v35 = vpack.c.bf16 %v541_v34, %v541_v34 }
  0xc2   : > { %v533_v36 = vpop.f32.mrf.mxu0 }
  0xc3   : > { %v577_v37 = vunpack.c.l.b16 %v542_v35  ;;  %v556_v38 = vsel %vm554_vm2, %v542_v35, 0 }
  0xc4   : > { %565 = vmatpush.bf16.msra.mxu1 %v556_v38 }
  0xc5   : > { %v578_v40 = vpack.c.b16 %v577_v37, %v577_v37 }
  0xc7   : > { %v579_v41 = vrot.slane %v578_v40, 2  ;;  %741 = vmatmul.msk.bf16.vlgmr.msra.gmra.mxu1 %vm550_vm3, %v749_v39 }
  0xc9   : > { %v581_v42 = vsel %vm554_vm2, %v579_v41, 0 }
  0xca   : > { %590 = vmatpush.bf16.msra.mxu2 %v581_v42 }
  0xcd   : > { %742 = vmatmul.msk.bf16.vlgmr.msra.gmra.mxu2 %vm550_vm3, %v749_v39 }
 0x144   : > { %v567_v43 = vpop.f32.mrf.mxu1 }
 0x14c   : > { %v569_v44 = vpop.f32.mrf.mxu1 }
 0x14d   : > { %v753_v45 = vpack.c.bf16 %v569_v44, %v567_v43 }
 0x14f   : > { %754 = vst [vmem:[%s268_s28] sm:$0xff] %v753_v45  }
 0x150   : > { %v592_v46 = vpop.f32.mrf.mxu2 }
 0x158   : > { %v594_v47 = vpop.f32.mrf.mxu2 }
 0x159   : > { %v758_v48 = vpack.c.bf16 %v594_v47, %v592_v46 }
 0x15b   : > { %760 = vst [vmem:[%s268_s28 + $0x8] sm:$0xff] %v758_v48  }
 0x15c PF: > { %s14_s17 = sadd.s32 1, %s808_s17   ;;  %s940_s15 = smov %s804_s16 }
 0x15d   : > { %p11_p6 = scmp.ge.s32.totalorder %s14_s17, 4   ;;  %s941_s16 = smov %s943_s18 }
 0x15f   :  { %13 = sbr.rel (!%p11_p6) target bundleno = 2 (0x2), region = 73 }

// kernel: bottleneck_enhancer_forward.11
= control target key start
LH: loop header
LB: loop body
LE: loop exit
PB: predicated region body
PF: predicated region fallthrough
CT: control target
= control target key end

     0   :  { %s357_s30 = smov 124   ;;  %vm21_vm0 = vcmask 27648   ;;  %s536_s0 = inlined_call_operand.vmem [shape: bf16[256,8], index: 0, kind: input, shape index: {}]   ;;  %s537_s1 = inlined_call_operand.vmem [shape: bf16[128,4], index: 1, kind: output, shape index: {}]  }
   0x1   :  { %v304_v0 = vld [vmem:[%s536_s0 + $0x20] sm:$0xff]   ;;  %v305_v1 = vld [vmem:[%s536_s0 + $0x28] sm:$0xff]   ;;  %v306_v8 = vld [vmem:[%s536_s0 + $0x30] sm:$0xff]  }
   0x2   :  { %v238_v2 = vld [vmem:[%s536_s0] sm:$0xff]   ;;  %v255_v3 = vunpack.c.l.bf16 %v304_v0  ;;  %v256_v4 = vunpack.c.h.bf16 %v304_v0  ;;  %v259_v5 = vunpack.c.l.bf16 %v305_v1  ;;  %v260_v6 = vunpack.c.h.bf16 %v305_v1  ;;  %v301_v7 = vld [vmem:[%s536_s0 + $0x8] sm:$0xff]   ;;  %v307_v9 = vld [vmem:[%s536_s0 + $0x38] sm:$0xff]  }
   0x3   :  { %v239_v10 = vunpack.c.l.bf16 %v238_v2  ;;  %v240_v11 = vunpack.c.h.bf16 %v238_v2  ;;  %v243_v12 = vunpack.c.l.bf16 %v301_v7  ;;  %v244_v13 = vunpack.c.h.bf16 %v301_v7  ;;  %v302_v14 = vld [vmem:[%s536_s0 + $0x10] sm:$0xff]   ;;  %v303_v23 = vld [vmem:[%s536_s0 + $0x18] sm:$0xff]   ;;  %v312_v32 = vld [vmem:[%s536_s0 + $0x60] sm:$0xff]  }
   0x4   :  { %v389_v15 = vmax.f32 %v255_v3, %v256_v4  ;;  %v391_v16 = vmax.f32 %v259_v5, %v260_v6  ;;  %v263_v17 = vunpack.c.l.bf16 %v306_v8  ;;  %v264_v18 = vunpack.c.h.bf16 %v306_v8  ;;  %v314_v28 = vld [vmem:[%s536_s0 + $0x70] sm:$0xff]   ;;  %v315_v31 = vld [vmem:[%s536_s0 + $0x78] sm:$0xff]   ;;  %v313_v38 = vld [vmem:[%s536_s0 + $0x68] sm:$0xff]  }
   0x5   :  { %v393_v19 = vmax.f32 %v239_v10, %v240_v11  ;;  %v395_v20 = vmax.f32 %v243_v12, %v244_v13  ;;  %v267_v21 = vunpack.c.l.bf16 %v307_v9  ;;  %v268_v22 = vunpack.c.h.bf16 %v307_v9  ;;  %v308_v43 = vld [vmem:[%s536_s0 + $0x40] sm:$0xff]   ;;  %v309_v47 = vld [vmem:[%s536_s0 + $0x48] sm:$0xff]   ;;  %v310_v54 = vld [vmem:[%s536_s0 + $0x50] sm:$0xff]  }
   0x6   :  { %v400_v24 = vmax.f32 %v263_v17, %v264_v18  ;;  %v247_v25 = vunpack.c.l.bf16 %v302_v14  ;;  %v248_v27 = vunpack.c.h.bf16 %v302_v14  ;;  %v251_v29 = vunpack.c.l.bf16 %v303_v23  ;;  %v311_v59 = vld [vmem:[%s536_s0 + $0x58] sm:$0xff]  }
   0x7   :  { %v402_v26 = vmax.f32 %v267_v21, %v268_v22  ;;  %v327_v33 = vpack.i.bf16 %v391_v16, %v389_v15  ;;  %v252_v34 = vunpack.c.h.bf16 %v303_v23  ;;  %v295_v35 = vunpack.c.l.bf16 %v314_v28 }
   0x8   :  { %v407_v30 = vmax.f32 %v247_v25, %v248_v27  ;;  %v317_v36 = vpack.i.bf16 %v395_v20, %v393_v19  ;;  %v296_v37 = vunpack.c.h.bf16 %v314_v28  ;;  %v299_v40 = vunpack.c.l.bf16 %v315_v31 }
   0x9   :  { %328 = vrot.lane.b32.xlu1 %v327_v33, %s357_s30  ;;  %v423_v39 = vmax.f32 %v251_v29, %v252_v34  ;;  %v300_v41 = vunpack.c.h.bf16 %v315_v31  ;;  %v287_v42 = vunpack.c.l.bf16 %v312_v32  ;;  %v332_v44 = vpack.i.bf16 %v402_v26, %v400_v24 }
   0xa   :  { %318 = vrot.lane.b32.xlu0 %v317_v36, %s357_s30  ;;  %v431_v45 = vmax.f32 %v295_v35, %v296_v37  ;;  %v288_v46 = vunpack.c.h.bf16 %v312_v32  ;;  %v291_v49 = vunpack.c.l.bf16 %v313_v38  ;;  %v292_v50 = vunpack.c.h.bf16 %v313_v38 }
   0xb   :  { %v436_v48 = vmax.f32 %v299_v40, %v300_v41  ;;  %v271_v52 = vunpack.c.l.bf16 %v308_v43  ;;  %v272_v53 = vunpack.c.h.bf16 %v308_v43  ;;  %v275_v56 = vunpack.c.l.bf16 %v309_v47 }
   0xc   :  { %v438_v51 = vmax.f32 %v287_v42, %v288_v46  ;;  %v443_v55 = vmax.f32 %v291_v49, %v292_v50  ;;  %v276_v58 = vunpack.c.h.bf16 %v309_v47  ;;  %v322_v60 = vpack.i.bf16 %v423_v39, %v407_v30 }
   0xd   :  { %v125_v57 = vmax.f32 %v271_v52, %v272_v53  ;;  %v279_v61 = vunpack.c.l.bf16 %v310_v54  ;;  %v280_v63 = vunpack.c.h.bf16 %v310_v54  ;;  %v283_v0 = vunpack.c.l.bf16 %v311_v59 }
   0xe   :  { %v139_v62 = vmax.f32 %v275_v56, %v276_v58  ;;  %v284_v1 = vunpack.c.h.bf16 %v311_v59  ;;  %v352_v4 = vpack.i.bf16 %v436_v48, %v431_v45  ;;  %v347_v5 = vpack.i.bf16 %v443_v55, %v438_v51 }
   0xf   :  { %v153_v2 = vmax.f32 %v279_v61, %v280_v63 }
  0x10   :  { %v167_v3 = vmax.f32 %v283_v0, %v284_v1  ;;  %v337_v6 = vpack.i.bf16 %v139_v62, %v125_v57 }
  0x11   :  { %333 = vrot.lane.b32.xlu1 %v332_v44, %s357_s30 }
  0x12   :  { %323 = vrot.lane.b32.xlu0 %v322_v60, %s357_s30  ;;  %338 = vrot.lane.b32.xlu2 %v337_v6, %s357_s30  ;;  %v342_v7 = vpack.i.bf16 %v167_v3, %v153_v2 }
  0x19   :  { %353 = vrot.lane.b32.xlu1 %v352_v4, %s357_s30 }
  0x1a   :  { %348 = vrot.lane.b32.xlu0 %v347_v5, %s357_s30  ;;  %343 = vrot.lane.b32.xlu2 %v342_v7, %s357_s30 }
  0x6c   :  { %v339_v8 = vpop.permute.xlu2 %338 }
  0x6d   :  { %v341_v9 = vunpack.i.h.bf16 %v339_v8  ;;  %v340_v10 = vunpack.i.l.bf16 %v339_v8 }
  0x6f   :  { %v146_v11 = vmax.f32 %v139_v62, %v341_v9  ;;  %v132_v12 = vmax.f32 %v125_v57, %v340_v10 }
  0x71   :  { %v147_v13 = vpack.c.bf16 %v146_v11, %v146_v11  ;;  %v133_v14 = vpack.c.bf16 %v132_v12, %v132_v12 }
  0x73   :  { %148 = vst.msk [vmem:[%s537_s1 + $0x24] sm:$0xf] %vm21_vm0, %v147_v13 }
  0x74   :  { %134 = vst.msk [vmem:[%s537_s1 + $0x20] sm:$0xf] %vm21_vm0, %v133_v14  ;;  %v344_v17 = vpop.permute.xlu2 %343 }
  0x75   :  { %v346_v21 = vunpack.i.h.bf16 %v344_v17  ;;  %v345_v22 = vunpack.i.l.bf16 %v344_v17 }
  0x77   :  { %v174_v31 = vmax.f32 %v167_v3, %v346_v21  ;;  %v160_v34 = vmax.f32 %v153_v2, %v345_v22 }
  0x79   :  { %v175_v37 = vpack.c.bf16 %v174_v31, %v174_v31 }
  0x7b   :  { %v329_v18 = vpop.permute.xlu1 %328  ;;  %176 = vst.msk [vmem:[%s537_s1 + $0x2c] sm:$0xf] %vm21_vm0, %v175_v37 }
  0x7c   :  { %v331_v23 = vunpack.i.h.bf16 %v329_v18  ;;  %v330_v25 = vunpack.i.l.bf16 %v329_v18  ;;  %v319_v27 = vpop.permute.xlu0 %318 }
  0x7d   :  { %v321_v28 = vunpack.i.h.bf16 %v319_v27  ;;  %v320_v29 = vunpack.i.l.bf16 %v319_v27 }
  0x7e   :  { %v90_v32 = vmax.f32 %v391_v16, %v331_v23  ;;  %v76_v33 = vmax.f32 %v389_v15, %v330_v25  ;;  %v161_v15 = vpack.c.bf16 %v160_v34, %v160_v34 }
  0x7f   :  { %v34_v35 = vmax.f32 %v395_v20, %v321_v28  ;;  %v19_v36 = vmax.f32 %v393_v19, %v320_v29 }
  0x80   :  { %v91_v38 = vpack.c.bf16 %v90_v32, %v90_v32  ;;  %v77_v40 = vpack.c.bf16 %v76_v33, %v76_v33  ;;  %162 = vst.msk [vmem:[%s537_s1 + $0x28] sm:$0xf] %vm21_vm0, %v161_v15 }
  0x81   :  { %v35_v41 = vpack.c.bf16 %v34_v35, %v34_v35  ;;  %v20_v42 = vpack.c.bf16 %v19_v36, %v19_v36 }
  0x82   :  { %92 = vst.msk [vmem:[%s537_s1 + $0x14] sm:$0xf] %vm21_vm0, %v91_v38 }
  0x83   :  { %78 = vst.msk [vmem:[%s537_s1 + $0x10] sm:$0xf] %vm21_vm0, %v77_v40  ;;  %v334_v16 = vpop.permute.xlu1 %333 }
  0x84   :  { %36 = vst.msk [vmem:[%s537_s1 + $0x4] sm:$0xf] %vm21_vm0, %v35_v41  ;;  %v336_v19 = vunpack.i.h.bf16 %v334_v16  ;;  %v335_v20 = vunpack.i.l.bf16 %v334_v16  ;;  %v324_v43 = vpop.permute.xlu0 %323 }
  0x85   :  { %22 = vst.msk [vmem:[%s537_s1] sm:$0xf] %vm21_vm0, %v20_v42  ;;  %v326_v44 = vunpack.i.h.bf16 %v324_v43  ;;  %v325_v46 = vunpack.i.l.bf16 %v324_v43 }
  0x86   :  { %v118_v47 = vmax.f32 %v402_v26, %v336_v19  ;;  %v104_v49 = vmax.f32 %v400_v24, %v335_v20 }
  0x87   :  { %v62_v50 = vmax.f32 %v423_v39, %v326_v44  ;;  %v48_v52 = vmax.f32 %v407_v30, %v325_v46 }
  0x88   :  { %v119_v53 = vpack.c.bf16 %v118_v47, %v118_v47  ;;  %v105_v54 = vpack.c.bf16 %v104_v49, %v104_v49 }
  0x89   :  { %v63_v56 = vpack.c.bf16 %v62_v50, %v62_v50  ;;  %v49_v57 = vpack.c.bf16 %v48_v52, %v48_v52 }
  0x8a   :  { %120 = vst.msk [vmem:[%s537_s1 + $0x1c] sm:$0xf] %vm21_vm0, %v119_v53 }
  0x8b   :  { %106 = vst.msk [vmem:[%s537_s1 + $0x18] sm:$0xf] %vm21_vm0, %v105_v54  ;;  %v354_v24 = vpop.permute.xlu1 %353 }
  0x8c   :  { %64 = vst.msk [vmem:[%s537_s1 + $0xc] sm:$0xf] %vm21_vm0, %v63_v56  ;;  %v356_v26 = vunpack.i.h.bf16 %v354_v24  ;;  %v355_v30 = vunpack.i.l.bf16 %v354_v24  ;;  %v349_v39 = vpop.permute.xlu0 %348 }
  0x8d   :  { %50 = vst.msk [vmem:[%s537_s1 + $0x8] sm:$0xf] %vm21_vm0, %v49_v57  ;;  %v351_v58 = vunpack.i.h.bf16 %v349_v39  ;;  %v350_v59 = vunpack.i.l.bf16 %v349_v39 }
  0x8e   :  { %v230_v60 = vmax.f32 %v436_v48, %v356_v26  ;;  %v216_v61 = vmax.f32 %v431_v45, %v355_v30 }
  0x8f   :  { %v202_v62 = vmax.f32 %v443_v55, %v351_v58  ;;  %v188_v63 = vmax.f32 %v438_v51, %v350_v59 }
  0x90   :  { %v231_v0 = vpack.c.bf16 %v230_v60, %v230_v60  ;;  %v217_v1 = vpack.c.bf16 %v216_v61, %v216_v61 }
  0x91   :  { %v203_v2 = vpack.c.bf16 %v202_v62, %v202_v62  ;;  %v189_v3 = vpack.c.bf16 %v188_v63, %v188_v63 }
  0x92   :  { %232 = vst.msk [vmem:[%s537_s1 + $0x3c] sm:$0xf] %vm21_vm0, %v231_v0 }
  0x93   :  { %218 = vst.msk [vmem:[%s537_s1 + $0x38] sm:$0xf] %vm21_vm0, %v217_v1 }
  0x94   :  { %204 = vst.msk [vmem:[%s537_s1 + $0x34] sm:$0xf] %vm21_vm0, %v203_v2 }
  0x95   :  { %190 = vst.msk [vmem:[%s537_s1 + $0x30] sm:$0xf] %vm21_vm0, %v189_v3 }

// kernel: bottleneck_enhancer_forward.10
= control target key start
LH: loop header
LB: loop body
LE: loop exit
PB: predicated region body
PF: predicated region fallthrough
CT: control target
= control target key end

     0   :  { %s293_s5 = smov 116   ;;  %s294_s6 = smov 124   ;;  %vm40_vm0 = vcmask 25600   ;;  %vm77_vm1 = vcmask 27650   ;;  %s494_s0 = inlined_call_operand.vmem [shape: bf16[128,16], index: 0, kind: input, shape index: {}]   ;;  %s495_s1 = inlined_call_operand.vmem [shape: bf16[32,4], index: 1, kind: output, shape index: {}]  }
   0x1   :  { %v8_v0 = vld [vmem:[%s494_s0] sm:$0x3]  ;;  %v10_v1 = vld [vmem:[%s494_s0] sm:$0xc]  ;;  %v16_v2 = vld [vmem:[%s494_s0 + $0x4] sm:$0x3] }
   0x2   :  { %v9_v3 = vunpack.c.l.bf16 %v8_v0  ;;  %v11_v4 = vunpack.c.l.bf16 %v10_v1  ;;  %v19_v5 = vld [vmem:[%s494_s0 + $0x4] sm:$0xc]  ;;  %v42_v6 = vld [vmem:[%s494_s0 + $0x8] sm:$0x3]  ;;  %v17_v7 = vunpack.c.l.bf16 %v16_v2  ;;  %v44_v9 = vld [vmem:[%s494_s0 + $0x8] sm:$0xc] }
   0x3   :  { %v20_v8 = vunpack.c.l.bf16 %v19_v5  ;;  %v50_v10 = vld [vmem:[%s494_s0 + $0xc] sm:$0x3]  ;;  %v53_v11 = vld [vmem:[%s494_s0 + $0xc] sm:$0xc]  ;;  %v43_v13 = vunpack.c.l.bf16 %v42_v6  ;;  %v45_v14 = vunpack.c.l.bf16 %v44_v9  ;;  %v114_v16 = vld [vmem:[%s494_s0 + $0x18] sm:$0xc] }
   0x4   :  { %v13_v12 = vrot.slane %v11_v4, 4  ;;  %v54_v15 = vunpack.c.l.bf16 %v53_v11  ;;  %v51_v20 = vunpack.c.l.bf16 %v50_v10  ;;  %v81_v21 = vld [vmem:[%s494_s0 + $0x10] sm:$0xc]  ;;  %v115_v22 = vunpack.c.l.bf16 %v114_v16  ;;  %v112_v26 = vld [vmem:[%s494_s0 + $0x18] sm:$0x3]  ;;  %s295_s17 = smov 120  }
   0x5   :  { %v22_v18 = vrot.slane %v20_v8, 4  ;;  %v47_v19 = vrot.slane %v45_v14, 4  ;;  %v82_v27 = vunpack.c.l.bf16 %v81_v21  ;;  %v183_v28 = vld [vmem:[%s494_s0 + $0x28] sm:$0xc]  ;;  %v79_v29 = vld [vmem:[%s494_s0 + $0x10] sm:$0x3]  ;;  %v113_v33 = vunpack.c.l.bf16 %v112_v26 }
   0x6   :  { %v15_v17 = vadd.f32 %v13_v12, %v9_v3  ;;  %v56_v25 = vrot.slane %v54_v15, 4  ;;  %v184_v32 = vunpack.c.l.bf16 %v183_v28  ;;  %v117_v34 = vrot.slane %v115_v22, 4  ;;  %v181_v35 = vld [vmem:[%s494_s0 + $0x28] sm:$0x3]  ;;  %v120_v37 = vld [vmem:[%s494_s0 + $0x1c] sm:$0x3] }
   0x7   :  { %v49_v24 = vadd.f32 %v47_v19, %v43_v13  ;;  %v123_v38 = vld [vmem:[%s494_s0 + $0x1c] sm:$0xc]  ;;  %v80_v39 = vunpack.c.l.bf16 %v79_v29  ;;  %v84_v40 = vrot.slane %v82_v27, 4  ;;  %v87_v41 = vld [vmem:[%s494_s0 + $0x14] sm:$0x3]  ;;  %v182_v44 = vunpack.c.l.bf16 %v181_v35 }
   0x8   :  { %v18_v23 = vadd.f32 %v17_v7, %v15_v17  ;;  %v90_v42 = vld [vmem:[%s494_s0 + $0x14] sm:$0xc]  ;;  %v252_v43 = vld [vmem:[%s494_s0 + $0x38] sm:$0xc]  ;;  %v186_v45 = vrot.slane %v184_v32, 4  ;;  %v119_v46 = vadd.f32 %v117_v34, %v113_v33  ;;  %v121_v47 = vunpack.c.l.bf16 %v120_v37 }
   0x9   :  { %v52_v31 = vadd.f32 %v51_v20, %v49_v24  ;;  %v124_v48 = vunpack.c.l.bf16 %v123_v38  ;;  %v189_v49 = vld [vmem:[%s494_s0 + $0x2c] sm:$0x3]  ;;  %v192_v50 = vld [vmem:[%s494_s0 + $0x2c] sm:$0xc]  ;;  %v150_v51 = vld [vmem:[%s494_s0 + $0x20] sm:$0xc]  ;;  %v86_v52 = vadd.f32 %v84_v40, %v80_v39  ;;  %v88_v53 = vunpack.c.l.bf16 %v87_v41 }
   0xa   :  { %v345_v30 = vadd.f32 %v22_v18, %v18_v23  ;;  %v91_v54 = vunpack.c.l.bf16 %v90_v42  ;;  %v253_v55 = vunpack.c.l.bf16 %v252_v43  ;;  %v250_v56 = vld [vmem:[%s494_s0 + $0x38] sm:$0x3]  ;;  %v188_v57 = vadd.f32 %v186_v45, %v182_v44  ;;  %v148_v63 = vld [vmem:[%s494_s0 + $0x20] sm:$0x3]  ;;  %v258_v4 = vld [vmem:[%s494_s0 + $0x3c] sm:$0x3] }
   0xb   :  { %v354_v36 = vadd.f32 %v56_v25, %v52_v31  ;;  %v190_v58 = vunpack.c.l.bf16 %v189_v49  ;;  %v193_v59 = vunpack.c.l.bf16 %v192_v50  ;;  %v151_v60 = vunpack.c.l.bf16 %v150_v51  ;;  %v261_v5 = vld [vmem:[%s494_s0 + $0x3c] sm:$0xc]  ;;  %v219_v6 = vld [vmem:[%s494_s0 + $0x30] sm:$0xc]  ;;  %v156_v13 = vld [vmem:[%s494_s0 + $0x24] sm:$0x3] }
   0xc   :  { %34 = vrot.lane.b32.xlu1 %v345_v30, %s293_s5  ;;  %26 = vrot.lane.b32.xlu0 %v345_v30, %s294_s6  ;;  %v122_v61 = vadd.f32 %v121_v47, %v119_v46  ;;  %v126_v62 = vrot.slane %v124_v48, 4  ;;  %v89_v0 = vadd.f32 %v88_v53, %v86_v52  ;;  %v93_v1 = vrot.slane %v91_v54, 4  ;;  %v159_v14 = vld [vmem:[%s494_s0 + $0x24] sm:$0xc]  ;;  %v217_v19 = vld [vmem:[%s494_s0 + $0x30] sm:$0x3] }
   0xd   :  { %64 = vrot.lane.b32.xlu2 %v354_v36, %s295_s17  ;;  %v251_v2 = vunpack.c.l.bf16 %v250_v56  ;;  %v255_v3 = vrot.slane %v253_v55, 4  ;;  %v191_v7 = vadd.f32 %v190_v58, %v188_v57  ;;  %v195_v8 = vrot.slane %v193_v59, 4  ;;  %v225_v28 = vld [vmem:[%s494_s0 + $0x34] sm:$0x3]  ;;  %v228_v29 = vld [vmem:[%s494_s0 + $0x34] sm:$0xc] }
   0xe   :  { %v149_v9 = vunpack.c.l.bf16 %v148_v63  ;;  %v153_v10 = vrot.slane %v151_v60, 4  ;;  %v403_v11 = vadd.f32 %v126_v62, %v122_v61  ;;  %v259_v12 = vunpack.c.l.bf16 %v258_v4 }
   0xf   :  { %v411_v15 = vadd.f32 %v93_v1, %v89_v0  ;;  %v257_v16 = vadd.f32 %v255_v3, %v251_v2  ;;  %v262_v17 = vunpack.c.l.bf16 %v261_v5  ;;  %v220_v18 = vunpack.c.l.bf16 %v219_v6 }
  0x10   :  { %v416_v20 = vadd.f32 %v195_v8, %v191_v7  ;;  %v155_v21 = vadd.f32 %v153_v10, %v149_v9  ;;  %v157_v22 = vunpack.c.l.bf16 %v156_v13  ;;  %v160_v23 = vunpack.c.l.bf16 %v159_v14 }
  0x11   :  { %v260_v24 = vadd.f32 %v259_v12, %v257_v16  ;;  %v264_v25 = vrot.slane %v262_v17, 4  ;;  %v218_v26 = vunpack.c.l.bf16 %v217_v19  ;;  %v222_v27 = vrot.slane %v220_v18, 4 }
  0x12   :  { %v158_v31 = vadd.f32 %v157_v22, %v155_v21  ;;  %v162_v32 = vrot.slane %v160_v23, 4  ;;  %v226_v35 = vunpack.c.l.bf16 %v225_v28  ;;  %v229_v37 = vunpack.c.l.bf16 %v228_v29 }
  0x13   :  { %v266_v33 = vadd.f32 %v264_v25, %v260_v24  ;;  %v224_v34 = vadd.f32 %v222_v27, %v218_v26 }
  0x14   :  { %60 = vrot.lane.b32.xlu1 %v354_v36, %s294_s6  ;;  %30 = vrot.lane.b32.xlu0 %v345_v30, %s295_s17  ;;  %v430_v38 = vadd.f32 %v162_v32, %v158_v31  ;;  %v231_v40 = vrot.slane %v229_v37, 4 }
  0x15   :  { %68 = vrot.lane.b32.xlu2 %v354_v36, %s293_s5  ;;  %v227_v39 = vadd.f32 %v226_v35, %v224_v34 }
  0x17   :  { %v233_v41 = vadd.f32 %v231_v40, %v227_v39 }
  0x1c   :  { %130 = vrot.lane.b32.xlu1 %v403_v11, %s294_s6  ;;  %97 = vrot.lane.b32.xlu0 %v411_v15, %s294_s6 }
  0x1d   :  { %199 = vrot.lane.b32.xlu2 %v416_v20, %s294_s6 }
  0x24   :  { %134 = vrot.lane.b32.xlu1 %v403_v11, %s295_s17  ;;  %268 = vrot.lane.b32.xlu0 %v266_v33, %s294_s6 }
  0x25   :  { %166 = vrot.lane.b32.xlu2 %v430_v38, %s294_s6 }
  0x2c   :  { %235 = vrot.lane.b32.xlu1 %v233_v41, %s294_s6  ;;  %203 = vrot.lane.b32.xlu0 %v416_v20, %s295_s17 }
  0x2d   :  { %272 = vrot.lane.b32.xlu2 %v266_v33, %s295_s17 }
  0x34   :  { %138 = vrot.lane.b32.xlu1 %v403_v11, %s293_s5  ;;  %101 = vrot.lane.b32.xlu0 %v411_v15, %s295_s17 }
  0x35   :  { %170 = vrot.lane.b32.xlu2 %v430_v38, %s295_s17 }
  0x3c   :  { %239 = vrot.lane.b32.xlu1 %v233_v41, %s295_s17  ;;  %207 = vrot.lane.b32.xlu0 %v416_v20, %s293_s5 }
  0x3d   :  { %276 = vrot.lane.b32.xlu2 %v266_v33, %s293_s5 }
  0x44   :  { %174 = vrot.lane.b32.xlu1 %v430_v38, %s293_s5  ;;  %105 = vrot.lane.b32.xlu0 %v411_v15, %s293_s5 }
  0x45   :  { %243 = vrot.lane.b32.xlu2 %v233_v41, %s293_s5 }
  0x67   :  { %v65_v42 = vpop.permute.xlu2 %64 }
  0x6f   :  { %v69_v43 = vpop.permute.xlu2 %68 }
  0x77   :  { %v200_v44 = vpop.permute.xlu2 %199 }
  0x78   :  { %v202_v18 = vadd.f32 %v200_v44, %v416_v20 }
  0x7e   :  { %v35_v45 = vpop.permute.xlu1 %34  ;;  %v27_v46 = vpop.permute.xlu0 %26 }
  0x7f   :  { %v167_v47 = vpop.permute.xlu2 %166  ;;  %v29_v48 = vadd.f32 %v27_v46, %v345_v30 }
  0x80   :  { %v169_v28 = vadd.f32 %v167_v47, %v430_v38 }
  0x86   :  { %v61_v49 = vpop.permute.xlu1 %60  ;;  %v31_v50 = vpop.permute.xlu0 %30 }
  0x87   :  { %v63_v51 = vadd.f32 %v61_v49, %v354_v36  ;;  %v33_v52 = vadd.f32 %v31_v50, %v29_v48  ;;  %v273_v53 = vpop.permute.xlu2 %272 }
  0x89   :  { %v67_v54 = vadd.f32 %v65_v42, %v63_v51  ;;  %v37_v55 = vadd.f32 %v35_v45, %v33_v52 }
  0x8b   :  { %v71_v56 = vadd.f32 %v69_v43, %v67_v54  ;;  %v38_v57 = vmul.f32 0.0625, %v37_v55 }
  0x8d   :  { %v72_v58 = vmul.f32 0.0625, %v71_v56  ;;  %v39_v59 = vpack.c.bf16 %v38_v57, %v38_v57 }
  0x8e   :  { %v131_v60 = vpop.permute.xlu1 %130  ;;  %v98_v61 = vpop.permute.xlu0 %97 }
  0x8f   :  { %v73_v62 = vpack.c.bf16 %v72_v58, %v72_v58  ;;  %41 = vst.msk [vmem:[%s495_s1] sm:$0x3] %vm40_vm0, %v39_v59  ;;  %v171_v30 = vpop.permute.xlu2 %170  ;;  %v133_v10 = vadd.f32 %v131_v60, %v403_v11  ;;  %v100_v20 = vadd.f32 %v98_v61, %v411_v15 }
  0x90   :  { %v173_v34 = vadd.f32 %v171_v30, %v169_v28 }
  0x91   :  { %v75_v36 = vrot.slane %v73_v62, 6 }
  0x93   :  { %78 = vst.msk [vmem:[%s495_s1] sm:$0xc] %vm77_vm1, %v75_v36 }
  0x96   :  { %v135_v63 = vpop.permute.xlu1 %134  ;;  %v269_v0 = vpop.permute.xlu0 %268 }
  0x97   :  { %v271_v1 = vadd.f32 %v269_v0, %v266_v33  ;;  %v277_v2 = vpop.permute.xlu2 %276  ;;  %v137_v12 = vadd.f32 %v135_v63, %v133_v10 }
  0x99   :  { %v275_v3 = vadd.f32 %v273_v53, %v271_v1 }
  0x9b   :  { %v279_v4 = vadd.f32 %v277_v2, %v275_v3 }
  0x9d   :  { %v280_v5 = vmul.f32 0.0625, %v279_v4 }
  0x9e   :  { %v236_v6 = vpop.permute.xlu1 %235  ;;  %v204_v7 = vpop.permute.xlu0 %203 }
  0x9f   :  { %v281_v8 = vpack.c.bf16 %v280_v5, %v280_v5  ;;  %v238_v21 = vadd.f32 %v236_v6, %v233_v41  ;;  %v206_v22 = vadd.f32 %v204_v7, %v202_v18  ;;  %v244_v24 = vpop.permute.xlu2 %243 }
  0xa1   :  { %v283_v9 = vrot.slane %v281_v8, 6 }
  0xa3   :  { %285 = vst.msk [vmem:[%s495_s1 + $0xc] sm:$0xc] %vm77_vm1, %v283_v9 }
  0xa6   :  { %v139_v13 = vpop.permute.xlu1 %138  ;;  %v102_v14 = vpop.permute.xlu0 %101 }
  0xa7   :  { %v141_v16 = vadd.f32 %v139_v13, %v137_v12  ;;  %v104_v35 = vadd.f32 %v102_v14, %v100_v20 }
  0xa9   :  { %v142_v17 = vmul.f32 0.0625, %v141_v16 }
  0xab   :  { %v143_v19 = vpack.c.bf16 %v142_v17, %v142_v17 }
  0xad   :  { %v145_v23 = vrot.slane %v143_v19, 6 }
  0xae   :  { %v240_v25 = vpop.permute.xlu1 %239  ;;  %v208_v26 = vpop.permute.xlu0 %207 }
  0xaf   :  { %147 = vst.msk [vmem:[%s495_s1 + $0x4] sm:$0xc] %vm77_vm1, %v145_v23  ;;  %v242_v11 = vadd.f32 %v240_v25, %v238_v21  ;;  %v210_v27 = vadd.f32 %v208_v26, %v206_v22 }
  0xb1   :  { %v211_v29 = vmul.f32 0.0625, %v210_v27  ;;  %v246_v31 = vadd.f32 %v244_v24, %v242_v11 }
  0xb3   :  { %v212_v32 = vpack.c.bf16 %v211_v29, %v211_v29  ;;  %v247_v33 = vmul.f32 0.0625, %v246_v31 }
  0xb5   :  { %v214_v37 = vrot.slane %v212_v32, 6  ;;  %v248_v39 = vpack.c.bf16 %v247_v33, %v247_v33 }
  0xb6   :  { %v175_v40 = vpop.permute.xlu1 %174  ;;  %v106_v41 = vpop.permute.xlu0 %105 }
  0xb7   :  { %216 = vst.msk [vmem:[%s495_s1 + $0x8] sm:$0xc] %vm77_vm1, %v214_v37  ;;  %v177_v42 = vadd.f32 %v175_v40, %v173_v34  ;;  %v108_v43 = vadd.f32 %v106_v41, %v104_v35 }
  0xb8   :  { %249 = vst.msk [vmem:[%s495_s1 + $0xc] sm:$0x3] %vm40_vm0, %v248_v39 }
  0xb9   :  { %v178_v15 = vmul.f32 0.0625, %v177_v42  ;;  %v109_v38 = vmul.f32 0.0625, %v108_v43 }
  0xbb   :  { %v179_v44 = vpack.c.bf16 %v178_v15, %v178_v15  ;;  %v110_v45 = vpack.c.bf16 %v109_v38, %v109_v38 }
  0xbd   :  { %180 = vst.msk [vmem:[%s495_s1 + $0x8] sm:$0x3] %vm40_vm0, %v179_v44 }
  0xbe   :  { %111 = vst.msk [vmem:[%s495_s1 + $0x4] sm:$0x3] %vm40_vm0, %v110_v45 }

// kernel: bottleneck_enhancer_forward.17
= control target key start
LH: loop header
LB: loop body
LE: loop exit
PB: predicated region body
PF: predicated region fallthrough
CT: control target
= control target key end

     0   :  { %s1142_s12 = smov 0   ;;  %s1144_s13 = smov 0   ;;  %s1230_s0 = inlined_call_operand.vmem [shape: bf16[16,16,128], index: 0, kind: input, shape index: {}, may-alias: {0,1,2}]   ;;  %s1231_s1 = inlined_call_operand.vmem [shape: bf16[16,16,128], index: 1, kind: input, shape index: {}, may-alias: {0,1,2}]   ;;  %s1232_s2 = inlined_call_operand.vmem [shape: bf16[16,16,128], index: 2, kind: input, shape index: {}, may-alias: {0,1,2}]   ;;  %s1233_s3 = inlined_call_operand.vmem [shape: bf16[32,16,128], index: 3, kind: output, shape index: {}]  }
   0x1   :  { %s1146_s14 = smov 0  }
   0x2 LB: > { %s32_s15 = sadd.s32 1, %s1116_s13  ;;  %p774_p0 = scmp.ge.s32.totalorder %s1120_s14, 1  ;;  %s1120_s14 = sphi %s1146_s14, %s13_s14   ;;  %s1116_s13 = sphi %s1144_s13, %s1236_s13   ;;  %s1112_s12 = sphi %s1142_s12, %s1235_s12  }
   0x3   : > { %p34_p1 = scmp.ge.s32.totalorder %s32_s15, 2  ;;  %p249_p2 = scmp.lt.s32.totalorder %s1120_s14, 3 }
   0x5   : > { %s1238_s15 = smov (%p34_p1, %s32_s15), 0  ;;  %p250_p3 = pnand %p774_p0, %p249_p2 }
   0x6   : > { %s1160_s16 = sshll.u32 (!%p250_p3), %s1112_s12, 3  ;;  %s784_s17 = sshll.u32 (!%p250_p3), %s1112_s12, 4 }
   0x7   : > { %253 = sbr.rel (%p250_p3) target bundleno = 48 (0x30), region = 32  ;;  %p317_p4 = scmp.lt.s32.totalorder (!%p250_p3), %s1160_s16, 15 }
   0x8   : > { %p365_p5 = scmp.lt.s32.totalorder (!%p250_p3), %s784_s17, 31  ;;  %s348_s26 = sadd.s32 (!%p250_p3), 7, %s1160_s16 }
   0x9   : > { %p1181_p6 = scmp.lt.s32.totalorder (!%p250_p3), %s348_s26, 15 }
   0xc   : > { %s318_s18 = scalar_select %p317_p4, %s1160_s16, 15 }
   0xd   : > { %s1240_s17 = smov (!%p365_p5, %s784_s17), 31  ;;  %s1242_s26 = smov (!%p1181_p6, %s348_s26), 15 }
   0xe   : > { %s859_s19 = sshll.u32 %s318_s18, 3  ;;  %s862_s27 = sshll.u32 %s1240_s17, 3 }
   0xf   : > { %s324_s22 = scalar_lea.vmem %s1230_s0, %s859_s19  ;;  %s1172_s25 = scalar_lea.vmem %s1231_s1, %s859_s19 }
  0x10   : > { %v864_v0 = vld [vmem:[%s324_s22] sm:$0xff]   ;;  %v1039_v2 = vld [vmem:[%s1172_s25 + $0x8] sm:$0xff]   ;;  %v1042_v7 = vld [vmem:[%s1172_s25 + $0x10] sm:$0xff]   ;;  %s1188_s4 = scalar_lea.vmem %s1233_s3, %s862_s27  ;;  %s861_s5 = sshll.u32 %s1242_s26, 3 }
  0x11   : > { %v872_v1 = vld [vmem:[%s1172_s25] sm:$0xff]   ;;  %v865_v3 = vunpack.c.l.bf16 %v864_v0  ;;  %v866_v4 = vunpack.c.h.bf16 %v864_v0  ;;  %v877_v8 = vunpack.c.l.bf16 %v1039_v2  ;;  %v878_v9 = vunpack.c.h.bf16 %v1039_v2  ;;  %v1047_v28 = vld [vmem:[%s1172_s25 + $0x18] sm:$0xff]   ;;  %v1057_v54 = vld [vmem:[%s1172_s25 + $0x28] sm:$0xff]   ;;  %s356_s8 = scalar_lea.vmem %s1232_s2, %s861_s5 }
  0x12   : > { %v873_v5 = vunpack.c.l.bf16 %v872_v1  ;;  %v874_v6 = vunpack.c.h.bf16 %v872_v1  ;;  %v899_v10 = vunpack.c.l.bf16 %v1042_v7  ;;  %v900_v11 = vunpack.c.h.bf16 %v1042_v7  ;;  %v1052_v33 = vld [vmem:[%s1172_s25 + $0x20] sm:$0xff]   ;;  %v1062_v59 = vld [vmem:[%s1172_s25 + $0x30] sm:$0xff]  }
  0x13   : > { %v392_v12 = vmul.f32 0.25, %v865_v3  ;;  %v393_v13 = vmul.f32 0.25, %v866_v4  ;;  %v402_v16 = vmul.f32 0.25, %v877_v8  ;;  %v403_v17 = vmul.f32 0.25, %v878_v9 }
  0x14   : > { %v394_v14 = vmul.f32 0.75, %v873_v5  ;;  %v395_v15 = vmul.f32 0.75, %v874_v6  ;;  %v424_v18 = vmul.f32 0.25, %v873_v5  ;;  %v425_v19 = vmul.f32 0.25, %v874_v6 }
  0x15   : > { %v426_v22 = vmul.f32 0.75, %v877_v8  ;;  %v427_v23 = vmul.f32 0.75, %v878_v9  ;;  %v435_v26 = vmul.f32 0.25, %v899_v10  ;;  %v436_v27 = vmul.f32 0.25, %v900_v11 }
  0x16   : > { %v396_v20 = vadd.f32 %v394_v14, %v392_v12  ;;  %v397_v21 = vadd.f32 %v395_v15, %v393_v13  ;;  %v404_v24 = vadd.f32 %v402_v16, %v394_v14  ;;  %v405_v25 = vadd.f32 %v403_v17, %v395_v15 }
  0x17   : > { %v428_v30 = vadd.f32 %v426_v22, %v424_v18  ;;  %v429_v31 = vadd.f32 %v427_v23, %v425_v19  ;;  %v459_v32 = vmul.f32 0.75, %v899_v10  ;;  %v437_v35 = vadd.f32 %v435_v26, %v426_v22 }
  0x18   : > { %v882_v29 = vpack.c.bf16 %v397_v21, %v396_v20  ;;  %v887_v34 = vpack.c.bf16 %v405_v25, %v404_v24  ;;  %v438_v36 = vadd.f32 %v436_v27, %v427_v23  ;;  %v460_v37 = vmul.f32 0.75, %v900_v11  ;;  %v868_v21 = vld [vmem:[%s356_s8] sm:$0xff]  }
  0x19   : > { %v904_v38 = vpack.c.bf16 %v429_v31, %v428_v30  ;;  %v461_v39 = vadd.f32 %v459_v32, %v402_v16  ;;  %v921_v40 = vunpack.c.l.bf16 %v1047_v28  ;;  %v922_v41 = vunpack.c.h.bf16 %v1047_v28  ;;  %v1067_v16 = vld [vmem:[%s1172_s25 + $0x38] sm:$0xff]  }
  0x1a   : > { %883 = vst [vmem:[%s1188_s4] sm:$0xff] %v882_v29   ;;  %v909_v42 = vpack.c.bf16 %v438_v36, %v437_v35  ;;  %v462_v43 = vadd.f32 %v460_v37, %v403_v17  ;;  %v943_v44 = vunpack.c.l.bf16 %v1052_v33  ;;  %v944_v45 = vunpack.c.h.bf16 %v1052_v33 }
  0x1b   : > { %1040 = vst [vmem:[%s1188_s4 + $0x8] sm:$0xff] %v887_v34   ;;  %v468_v46 = vmul.f32 0.25, %v921_v40  ;;  %v469_v47 = vmul.f32 0.25, %v922_v41  ;;  %v492_v48 = vmul.f32 0.75, %v921_v40  ;;  %v493_v49 = vmul.f32 0.75, %v922_v41 }
  0x1c   : > { %1043 = vst [vmem:[%s1188_s4 + $0x10] sm:$0xff] %v904_v38   ;;  %v926_v50 = vpack.c.bf16 %v462_v43, %v461_v39  ;;  %v501_v51 = vmul.f32 0.25, %v943_v44  ;;  %v502_v52 = vmul.f32 0.25, %v944_v45  ;;  %v525_v53 = vmul.f32 0.75, %v943_v44 }
  0x1d   : > { %1044 = vst [vmem:[%s1188_s4 + $0x18] sm:$0xff] %v909_v42   ;;  %v470_v55 = vadd.f32 %v468_v46, %v459_v32  ;;  %v471_v56 = vadd.f32 %v469_v47, %v460_v37  ;;  %v494_v57 = vadd.f32 %v492_v48, %v435_v26  ;;  %v495_v58 = vadd.f32 %v493_v49, %v436_v27 }
  0x1e   : > { %1048 = vst [vmem:[%s1188_s4 + $0x20] sm:$0xff] %v926_v50   ;;  %v503_v60 = vadd.f32 %v501_v51, %v492_v48  ;;  %v504_v61 = vadd.f32 %v502_v52, %v493_v49  ;;  %v526_v62 = vmul.f32 0.75, %v944_v45  ;;  %v527_v63 = vadd.f32 %v525_v53, %v468_v46 }
  0x1f   : > { %v931_v0 = vpack.c.bf16 %v471_v56, %v470_v55  ;;  %v948_v1 = vpack.c.bf16 %v495_v58, %v494_v57  ;;  %v965_v2 = vunpack.c.l.bf16 %v1057_v54  ;;  %v966_v3 = vunpack.c.h.bf16 %v1057_v54 }
  0x20   : > { %v953_v4 = vpack.c.bf16 %v504_v61, %v503_v60  ;;  %v528_v5 = vadd.f32 %v526_v62, %v469_v47  ;;  %v987_v6 = vunpack.c.l.bf16 %v1062_v59  ;;  %v988_v7 = vunpack.c.h.bf16 %v1062_v59 }
  0x21   : > { %1049 = vst [vmem:[%s1188_s4 + $0x28] sm:$0xff] %v931_v0   ;;  %v534_v8 = vmul.f32 0.25, %v965_v2  ;;  %v535_v9 = vmul.f32 0.25, %v966_v3  ;;  %v558_v10 = vmul.f32 0.75, %v965_v2  ;;  %v559_v11 = vmul.f32 0.75, %v966_v3 }
  0x22   : > { %1053 = vst [vmem:[%s1188_s4 + $0x30] sm:$0xff] %v948_v1   ;;  %v970_v12 = vpack.c.bf16 %v528_v5, %v527_v63  ;;  %v567_v13 = vmul.f32 0.25, %v987_v6  ;;  %v568_v14 = vmul.f32 0.25, %v988_v7  ;;  %v591_v15 = vmul.f32 0.75, %v987_v6 }
  0x23   : > { %1054 = vst [vmem:[%s1188_s4 + $0x38] sm:$0xff] %v953_v4   ;;  %v536_v17 = vadd.f32 %v534_v8, %v525_v53  ;;  %v537_v18 = vadd.f32 %v535_v9, %v526_v62  ;;  %v560_v19 = vadd.f32 %v558_v10, %v501_v51  ;;  %v561_v20 = vadd.f32 %v559_v11, %v502_v52 }
  0x24   : > { %1058 = vst [vmem:[%s1188_s4 + $0x40] sm:$0xff] %v970_v12   ;;  %v569_v22 = vadd.f32 %v567_v13, %v558_v10  ;;  %v570_v23 = vadd.f32 %v568_v14, %v559_v11  ;;  %v592_v24 = vmul.f32 0.75, %v988_v7  ;;  %v593_v25 = vadd.f32 %v591_v15, %v534_v8 }
  0x25   : > { %v975_v26 = vpack.c.bf16 %v537_v18, %v536_v17  ;;  %v992_v27 = vpack.c.bf16 %v561_v20, %v560_v19  ;;  %v1009_v28 = vunpack.c.l.bf16 %v1067_v16  ;;  %v1010_v29 = vunpack.c.h.bf16 %v1067_v16 }
  0x26   : > { %v997_v30 = vpack.c.bf16 %v570_v23, %v569_v22  ;;  %v594_v31 = vadd.f32 %v592_v24, %v535_v9  ;;  %v869_v32 = vunpack.c.l.bf16 %v868_v21  ;;  %v870_v33 = vunpack.c.h.bf16 %v868_v21 }
  0x27   : > { %1059 = vst [vmem:[%s1188_s4 + $0x48] sm:$0xff] %v975_v26   ;;  %v600_v34 = vmul.f32 0.25, %v1009_v28  ;;  %v601_v35 = vmul.f32 0.25, %v1010_v29  ;;  %v619_v36 = vmul.f32 0.75, %v1009_v28  ;;  %v620_v37 = vmul.f32 0.75, %v1010_v29 }
  0x28   : > { %1063 = vst [vmem:[%s1188_s4 + $0x50] sm:$0xff] %v992_v27   ;;  %v1014_v38 = vpack.c.bf16 %v594_v31, %v593_v25  ;;  %v628_v39 = vmul.f32 0.25, %v869_v32  ;;  %v629_v40 = vmul.f32 0.25, %v870_v33 }
  0x29   : > { %1064 = vst [vmem:[%s1188_s4 + $0x58] sm:$0xff] %v997_v30   ;;  %v602_v41 = vadd.f32 %v600_v34, %v591_v15  ;;  %v603_v42 = vadd.f32 %v601_v35, %v592_v24  ;;  %v621_v43 = vadd.f32 %v619_v36, %v567_v13  ;;  %v622_v44 = vadd.f32 %v620_v37, %v568_v14 }
  0x2a   : > { %1068 = vst [vmem:[%s1188_s4 + $0x60] sm:$0xff] %v1014_v38   ;;  %v630_v45 = vadd.f32 %v628_v39, %v619_v36  ;;  %v631_v46 = vadd.f32 %v629_v40, %v620_v37 }
  0x2b   : > { %v1019_v47 = vpack.c.bf16 %v603_v42, %v602_v41  ;;  %v1032_v48 = vpack.c.bf16 %v622_v44, %v621_v43 }
  0x2c   : > { %v1037_v49 = vpack.c.bf16 %v631_v46, %v630_v45 }
  0x2d   : > { %1069 = vst [vmem:[%s1188_s4 + $0x68] sm:$0xff] %v1019_v47  }
  0x2e   : > { %1072 = vst [vmem:[%s1188_s4 + $0x70] sm:$0xff] %v1032_v48  }
  0x2f   : > { %1073 = vst [vmem:[%s1188_s4 + $0x78] sm:$0xff] %v1037_v49  }
  0x30 PF: > { %s13_s14 = sadd.s32 1, %s1120_s14   ;;  %s1235_s12 = smov %s1116_s13 }
  0x31   : > { %p10_p7 = scmp.ge.s32.totalorder %s13_s14, 4   ;;  %s1236_s13 = smov %s1238_s15 }
  0x33   :  { %12 = sbr.rel (!%p10_p7) target bundleno = 2 (0x2), region = 90 }

// kernel: bottleneck_enhancer_forward.14
= control target key start
LH: loop header
LB: loop body
LE: loop exit
PB: predicated region body
PF: predicated region fallthrough
CT: control target
= control target key end

     0   :  { %s1083_s15 = smov 0   ;;  %s1085_s16 = smov 0   ;;  %s1225_s0 = inlined_call_operand.vmem [shape: bf16[2,36,4], index: 0, kind: input, shape index: {}]   ;;  %s1226_s1 = inlined_call_operand.vmem [shape: bf16[36,128], index: 1, kind: input, shape index: {}]   ;;  %s1227_s2 = inlined_call_operand.vmem [shape: f32[1,128], index: 2, kind: input, shape index: {}]   ;;  %s1228_s3 = inlined_call_operand.vmem [shape: bf16[16,4], index: 3, kind: input, shape index: {}]   ;;  %s1229_s4 = inlined_call_operand.vmem [shape: bf16[8,16,128], index: 4, kind: output, shape index: {}]  }
   0x1   :  { %s1087_s17 = smov 0  }
   0x2 LB: > { %s33_s18 = sadd.s32 1, %s1052_s16  ;;  %p932_p0 = scmp.ge.s32.totalorder %s1056_s17, 1  ;;  %s1056_s17 = sphi %s1087_s17, %s14_s17   ;;  %s1052_s16 = sphi %s1085_s16, %s1231_s16   ;;  %s1048_s15 = sphi %s1083_s15, %s1230_s15  }
   0x3   : > { %p35_p1 = scmp.ge.s32.totalorder %s33_s18, 2  ;;  %p206_p2 = scmp.lt.s32.totalorder %s1056_s17, 3 }
   0x5   : > { %s1233_s18 = smov (%p35_p1, %s33_s18), 0  ;;  %p207_p3 = pnand %p932_p0, %p206_p2 }
   0x6   : > { %p246_p4 = scmp.lt.s32.totalorder (!%p207_p3), %s1048_s15, 1  ;;  %s934_s24 = sshll.u32 (!%p207_p3), %s1048_s15, 2 }
   0x7   : > { %210 = sbr.rel (%p207_p3) target bundleno = 389 (0x185), region = 36  ;;  %p261_p5 = scmp.lt.s32.totalorder (!%p207_p3), %s934_s24, 7 }
   0xc   : > { %vm313_vm0 = vcmask 1041408   ;;  %v365_v0 = vld [vmem:[%s1226_s1 + $0x4] sm:$0x3]  ;;  %v277_v1 = vld [vmem:[%s1226_s1] sm:$0xc]  ;;  %s247_s27 = scalar_select %p246_p4, %s1048_s15, 1 }
   0xd   : > { %v380_v2 = vsel %vm313_vm0, %v365_v0, 0  ;;  %v303_v3 = vunpack.c.l.b16 %v277_v1  ;;  %v275_v4 = vld [vmem:[%s1226_s1] sm:$0x3]  ;;  %v407_v5 = vld [vmem:[%s1226_s1 + $0x4] sm:$0xc]  ;;  %vm306_vm1 = vcmask 31744  }
   0xe   : > { %389 = vmatpush.bf16.msra.mxu2 %v380_v2  ;;  %v344_v6 = vsel %vm313_vm0, %v275_v4, 0  ;;  %v423_v7 = vunpack.c.l.b16 %v407_v5  ;;  %v550_v9 = vld [vmem:[%s1226_s1 + $0xc] sm:$0x3]  ;;  %v457_v10 = vld [vmem:[%s1226_s1 + $0x8] sm:$0x3]  ;;  %s1008_s6 = smul.u32 20, %s247_s27 }
   0xf   : > { %v304_v8 = vpack.c.b16 %v303_v3, %v303_v3  ;;  %353 = vmatpush.bf16.msra.mxu1 %v344_v6  ;;  %v572_v12 = vsel %vm313_vm0, %v550_v9, 0  ;;  %v596_v13 = vld [vmem:[%s1226_s1 + $0xc] sm:$0xc]  ;;  %v486_v17 = vsel %vm313_vm0, %v457_v10, 0  ;;  %vm369_vm2 = vcmask 1046528   ;;  %s1235_s24 = smov (!%p261_p5, %s934_s24), 7 }
  0x10   : > { %v424_v11 = vpack.c.b16 %v423_v7, %v423_v7  ;;  %v619_v15 = vunpack.c.l.b16 %v596_v13  ;;  %s1132_s11 = scalar_lea.vmem %s1225_s0, %s1008_s6  ;;  %vm286_vm3 = vsmask.f32 7424  ;;  %v509_v44 = vld [vmem:[%s1226_s1 + $0x8] sm:$0xc]  ;;  %vm418_vm4 = vcmask 1044480   ;;  %s971_s25 = sshll.u32 %s1235_s24, 3 }
  0x11   : > { %v305_v14 = vrot.slane %v304_v8, 2  ;;  %v1001_v19 = vld [vmem:[%s1132_s11] sm:$0xf0]  ;;  %v1002_v21 = vld [vmem:[%s1132_s11] sm:$0xe]  ;;  %v513_v52 = vunpack.c.l.b16 %v509_v44  ;;  %v1004_v60 = vld [vmem:[%s1132_s11 + $0x8] sm:$0xff]   ;;  %s268_s28 = scalar_lea.vmem %s1229_s4, %s971_s25 }
  0x12   : > { %581 = vmatpush.bf16.msrb.mxu2 %v572_v12  ;;  %v425_v16 = vrot.slane %v424_v11, 2  ;;  %v1138_v20 = vld [vmem:[%s1132_s11 + $0x4] sm:$0xff]   ;;  %v620_v22 = vpack.c.b16 %v619_v15, %v619_v15  ;;  %v1003_v25 = vor.u32 %v1002_v21, %v1001_v19  ;;  %v403_v27 = vld [vmem:[%s1132_s11] sm:$0x8]  ;;  %v406_v32 = vld [vmem:[%s1132_s11 + $0xc] sm:$0x3]  ;;  %v979_v0 = vunpack.c.l.b16 %v1004_v60 }
  0x13   : > { %v315_v18 = vsel %vm313_vm0, %v305_v14, 0  ;;  %v283_v24 = vunpack.c.h.b16 %v1138_v20  ;;  %v974_v26 = vld [vmem:[%s1132_s11] sm:$0xff]   ;;  %v405_v28 = vld [vmem:[%s1132_s11 + $0x8] sm:$0xf]  ;;  %v413_v29 = vunpack.c.l.b16 %v1138_v20  ;;  %v412_v33 = vunpack.c.l.b16 %v403_v27  ;;  %v456_v61 = vld [vmem:[%s1132_s11 + $0xc] sm:$0x7] }
  0x14   : > { %324 = vmatpush.bf16.msra.mxu0 %v315_v18  ;;  %v433_v23 = vsel %vm313_vm0, %v425_v16, 0  ;;  %v288_v30 = vshrl.u32 %v974_v26, 16  ;;  %v290_v31 = vshll.u32 %v974_v26, 16  ;;  %939 = vmatmul.msk.bf16.vlgmr.msra.gmra.mxu1 %vm306_vm1, %v974_v26  ;;  %v1149_v34 = vunpack.c.l.b16 %v405_v28  ;;  %v274_v51 = vld [vmem:[%s1132_s11 + $0x8] sm:$0x7] }
  0x15   : > { %442 = vmatpush.bf16.msra.mxu3 %v433_v23  ;;  %v285_v35 = vpack.c.b16 %v283_v24, %v283_v24  ;;  %v370_v36 = vrot.slane %v1003_v25, 1  ;;  %v415_v37 = vunpack.c.l.b16 %v406_v32  ;;  %v1153_v39 = vpack.c.b16 %v413_v29, %v412_v33  ;;  %v546_v59 = vld [vmem:[%s1132_s11 + $0x4] sm:$0xc]  ;;  %v595_v63 = vld [vmem:[%s1132_s11 + $0x10] sm:$0x3] }
  0x16   : > { %v292_v38 = vrot.slane %v290_v31, 1  ;;  %v621_v40 = vrot.slane %v620_v22, 2  ;;  %v336_v55 = vunpack.c.l.b16 %v274_v51  ;;  %v514_v56 = vpack.c.b16 %v513_v52, %v513_v52  ;;  %v549_v6 = vld [vmem:[%s1132_s11 + $0x10] sm:$0x1]  ;;  %v652_v19 = vld [vmem:[%s1132_s11 + $0x4] sm:$0x8] }
  0x17   : > { %v371_v41 = vrot.slane %v285_v35, 1  ;;  %v295_v42 = vshll.u32 %v285_v35, 16  ;;  %v417_v43 = vpack.c.b16 %v415_v37, %v1149_v34  ;;  %v419_v46 = vrot.slane %v1153_v39, 3  ;;  %v653_v18 = vld [vmem:[%s1226_s1 + $0x10] sm:$0x3] }
  0x18   : > { %495 = vmatpush.bf16.msrb.mxu0 %v486_v17  ;;  %v293_v45 = vor.u32 %v292_v38, %v288_v30  ;;  %v629_v47 = vsel %vm313_vm0, %v621_v40, 0  ;;  %v515_v57 = vrot.slane %v514_v56, 2  ;;  %v337_v58 = vpack.c.b16 %v336_v55, %v336_v55 }
  0x19   : > { %v372_v48 = vsel %vm369_vm2, %v370_v36, %v371_v41  ;;  %v297_v49 = vrot.slane %v295_v42, 1  ;;  %v420_v50 = vrot.slane %v417_v43, 3  ;;  %638 = vmatpush.bf16.msrb.mxu3 %v629_v47  ;;  %v555_v1 = vunpack.c.l.b16 %v546_v59 }
  0x1a   : > { %941 = vmatmul.msk.bf16.vlgmr.msra.gmra.mxu2 %vm306_vm1, %v372_v48  ;;  %v523_v62 = vsel %vm313_vm0, %v515_v57, 0  ;;  %v459_v2 = vunpack.c.l.b16 %v456_v61  ;;  %v299_v3 = vshrl.u32 %v285_v35, 16  ;;  %v980_v4 = vunpack.c.h.b16 %v1004_v60 }
  0x1b   : > { %v298_v53 = vsel %vm286_vm3, %v293_v45, %v297_v49  ;;  %v421_v54 = vsel %vm418_vm4, %v419_v46, %v420_v50  ;;  %532 = vmatpush.bf16.msrb.mxu1 %v523_v62  ;;  %v598_v5 = vunpack.c.l.b16 %v595_v63  ;;  %v559_v7 = vpack.c.b16 %v979_v0, %v555_v1 }
  0x1c   : > { %937 = vmatmul.msk.bf16.vlgmr.msra.gmra.mxu0 %vm306_vm1, %v298_v53  ;;  %943 = vmatmul.msk.bf16.vlgmr.msra.gmra.mxu3 %vm306_vm1, %v421_v54  ;;  %v460_v8 = vpack.c.b16 %v459_v2, %v1149_v34  ;;  %v301_v9 = vor.u32 %v299_v3, %v297_v49  ;;  %v558_v11 = vunpack.c.l.b16 %v549_v6  ;;  %v463_v12 = vshrl.u32 %v1153_v39, 16 }
  0x1d   : > { %v599_v10 = vpack.c.b16 %v598_v5, %v980_v4  ;;  %v466_v13 = vshll.u32 %v1153_v39, 16  ;;  %v602_v15 = vshrl.u32 %v559_v7, 16  ;;  %v605_v17 = vshll.u32 %v559_v7, 16 }
  0x1e   : > { %v471_v14 = vshrl.u32 %v460_v8, 16  ;;  %v474_v16 = vshll.u32 %v460_v8, 16  ;;  %v667_v23 = vsel %vm313_vm0, %v653_v18, 0  ;;  %v655_v24 = vunpack.c.l.b16 %v652_v19 }
  0x1f   : > { %v610_v21 = vshrl.u32 %v599_v10, 16  ;;  %v613_v22 = vshll.u32 %v599_v10, 16  ;;  %v560_v25 = vpack.c.b16 %v558_v11, %v980_v4  ;;  %676 = vmatpush.bf16.msra.mxu0 %v667_v23  ;;  %v465_v26 = vrot.slane %v463_v12, 3 }
  0x20   : > { %v468_v27 = vrot.slane %v466_v13, 4  ;;  %v656_v28 = vpack.c.b16 %v979_v0, %v655_v24  ;;  %v658_v30 = vrot.slane %v599_v10, 3  ;;  %v473_v31 = vrot.slane %v471_v14, 3 }
  0x21   : > { %v476_v32 = vrot.slane %v474_v16, 4  ;;  %v604_v33 = vrot.slane %v602_v15, 2  ;;  %v510_v35 = vpack.c.b16 %v1149_v34, %v413_v29  ;;  %v607_v36 = vrot.slane %v605_v17, 3 }
  0x22   : > { %v612_v37 = vrot.slane %v610_v21, 2  ;;  %v615_v38 = vrot.slane %v613_v22, 3  ;;  %v657_v39 = vrot.slane %v656_v28, 3  ;;  %v562_v40 = vrot.slane %v559_v7, 2 }
  0x23   : > { %vm561_vm5 = vcmask 1045504   ;;  %v469_v43 = vor.u32 %v468_v27, %v465_v26  ;;  %v477_v44 = vor.u32 %v476_v32, %v473_v31  ;;  %v608_v45 = vor.u32 %v607_v36, %v604_v33  ;;  %v1033_v32 = vld [vmem:[%s1227_s2] ss:$0 sm:$0xff] }
  0x24   : > { %940 = vmatmul.msk.bf16.gmra.mxu1 %vm306_vm1, %v337_v58  ;;  %v659_v42 = vsel %vm418_vm4, %v657_v39, %v658_v30  ;;  %v616_v46 = vor.u32 %v615_v38, %v612_v37  ;;  %vm461_vm6 = vsmask.f32 4352  ;;  %vm600_vm7 = vsmask.f32 5376 }
  0x25   : > { %v478_v47 = vsel %vm461_vm6, %v469_v43, %v477_v44  ;;  %v511_v34 = vpack.c.b16 %v459_v2, %v459_v2 }
  0x26   : > { %v617_v29 = vsel %vm600_vm7, %v608_v45, %v616_v46 }
  0x2a   : > { %942 = vmatmul.msk.bf16.gmra.mxu2 %vm306_vm1, %v371_v41  ;;  %v563_v41 = vrot.slane %v560_v25, 2 }
  0x2c   : > { %938 = vmatmul.msk.bf16.gmra.mxu0 %vm306_vm1, %v301_v9  ;;  %944 = vmatmul.msk.bf16.gmra.mxu3 %vm306_vm1, %v420_v50  ;;  %v564_v20 = vsel %vm561_vm5, %v562_v40, %v563_v41 }
  0x34   : > { %947 = vmatmul.msk.bf16.vlgmr.msrb.gmra.mxu1 %vm306_vm1, %v510_v35 }
  0x3a   : > { %949 = vmatmul.msk.bf16.vlgmr.msrb.gmra.mxu2 %vm306_vm1, %v564_v20  ;;  %v972_v20 = vld [vmem:[%s1228_s3] sm:$0xff] }
  0x3c   : > { %945 = vmatmul.msk.bf16.vlgmr.msrb.gmra.mxu0 %vm306_vm1, %v478_v47  ;;  %951 = vmatmul.msk.bf16.vlgmr.msrb.gmra.mxu3 %vm306_vm1, %v617_v29 }
  0x44   : > { %948 = vmatmul.msk.bf16.gmra.mxu1 %vm306_vm1, %v511_v34 }
  0x4a   : > { %950 = vmatmul.msk.bf16.gmra.mxu2 %vm306_vm1, %v563_v41 }
  0x4c   : > { %946 = vmatmul.msk.bf16.gmra.mxu0 %vm306_vm1, %v477_v44  ;;  %952 = vmatmul.msk.bf16.gmra.mxu3 %vm306_vm1, %v616_v46 }
  0x5c   : > { %953 = vmatmul.msk.bf16.vlgmr.msra.gmra.mxu0 %vm306_vm1, %v659_v42 }
  0x6c   : > { %954 = vmatmul.msk.bf16.gmra.mxu0 %vm306_vm1, %v658_v30 }
  0x91   : > { %v355_v48 = vpop.f32.mrf.mxu1 }
  0x99   : > { %v326_v49 = vpop.f32.mrf.mxu0  ;;  %v357_v50 = vpop.f32.mrf.mxu1 }
  0x9a   : > { %v356_v7 = vadd.f32 %v355_v48, %v326_v49 }
  0x9d   : > { %v391_v51 = vpop.f32.mrf.mxu2 }
  0x9e   : > { %v400_v9 = vadd.f32 %v391_v51, %v356_v7 }
  0x9f   : > { %v444_v52 = vpop.f32.mrf.mxu3 }
  0xa0   : > { %v453_v13 = vadd.f32 %v444_v52, %v400_v9 }
  0xa1   : > { %v328_v53 = vpop.f32.mrf.mxu0  ;;  %v360_v54 = vpop.f32.mrf.mxu1 }
  0xa2   : > { %v358_v14 = vadd.f32 %v357_v50, %v328_v53 }
  0xa5   : > { %v393_v55 = vpop.f32.mrf.mxu2 }
  0xa6   : > { %v401_v17 = vadd.f32 %v393_v55, %v358_v14 }
  0xa7   : > { %v446_v56 = vpop.f32.mrf.mxu3 }
  0xa8   : > { %v454_v22 = vadd.f32 %v446_v56, %v401_v17 }
  0xa9   : > { %v331_v57 = vpop.f32.mrf.mxu0  ;;  %v362_v58 = vpop.f32.mrf.mxu1 }
  0xaa   : > { %v361_v23 = vadd.f32 %v360_v54, %v331_v57 }
  0xad   : > { %v396_v59 = vpop.f32.mrf.mxu2 }
  0xae   : > { %v402_v27 = vadd.f32 %v396_v59, %v361_v23 }
  0xaf   : > { %v449_v60 = vpop.f32.mrf.mxu3 }
  0xb0   : > { %v455_v35 = vadd.f32 %v449_v60, %v402_v27 }
  0xb1   : > { %v333_v61 = vpop.f32.mrf.mxu0  ;;  %v534_v62 = vpop.f32.mrf.mxu1 }
  0xb5   : > { %v398_v63 = vpop.f32.mrf.mxu2 }
  0xb7   : > { %v451_v0 = vpop.f32.mrf.mxu3 }
  0xb9   : > { %v497_v1 = vpop.f32.mrf.mxu0  ;;  %v536_v2 = vpop.f32.mrf.mxu1 }
  0xba   : > { %v506_v15 = vadd.f32 %v497_v1, %v453_v13 }
  0xbc   : > { %v543_v19 = vadd.f32 %v534_v62, %v506_v15 }
  0xbd   : > { %v583_v3 = vpop.f32.mrf.mxu2 }
  0xbe   : > { %v592_v24 = vadd.f32 %v583_v3, %v543_v19 }
  0xbf   : > { %v640_v4 = vpop.f32.mrf.mxu3 }
  0xc0   : > { %v649_v30 = vadd.f32 %v640_v4, %v592_v24 }
  0xc1   : > { %v499_v5 = vpop.f32.mrf.mxu0  ;;  %v539_v6 = vpop.f32.mrf.mxu1 }
  0xc2   : > { %v507_v25 = vadd.f32 %v499_v5, %v454_v22 }
  0xc4   : > { %v544_v31 = vadd.f32 %v536_v2, %v507_v25 }
  0xc5   : > { %v585_v8 = vpop.f32.mrf.mxu2 }
  0xc6   : > { %v593_v37 = vadd.f32 %v585_v8, %v544_v31 }
  0xc7   : > { %v642_v10 = vpop.f32.mrf.mxu3 }
  0xc8   : > { %v650_v41 = vadd.f32 %v642_v10, %v593_v37 }
  0xc9   : > { %v502_v11 = vpop.f32.mrf.mxu0  ;;  %v541_v12 = vpop.f32.mrf.mxu1 }
  0xca   : > { %v508_v38 = vadd.f32 %v502_v11, %v455_v35 }
  0xcc   : > { %v545_v42 = vadd.f32 %v539_v6, %v508_v38 }
  0xcd   : > { %v588_v16 = vpop.f32.mrf.mxu2 }
  0xce   : > { %v594_v47 = vadd.f32 %v588_v16, %v545_v42 }
  0xcf   : > { %v645_v18 = vpop.f32.mrf.mxu3 }
  0xd0   : > { %v651_v48 = vadd.f32 %v645_v18, %v594_v47 }
  0xd1   : > { %v504_v21 = vpop.f32.mrf.mxu0 }
  0xd5   : > { %v590_v26 = vpop.f32.mrf.mxu2 }
  0xd7   : > { %v647_v28 = vpop.f32.mrf.mxu3 }
  0xd9   : > { %v678_v33 = vpop.f32.mrf.mxu0 }
  0xda   : > { %v687_v36 = vadd.f32 %v678_v33, %v649_v30 }
  0xdc   : > { %v694_v39 = vadd.f32 %v1033_v32, %v687_v36 }
  0xde   : > { %v697_v40 = vmax.f32 %v694_v39, 0.0 }
  0xe0   : > { %v700_v43 = vpack.c.bf16 %v697_v40, %v697_v40 }
  0xe1   : > { %v680_v44 = vpop.f32.mrf.mxu0 }
  0xe2   : > { %v688_v45 = vadd.f32 %v680_v44, %v650_v41  ;;  %v714_v46 = vsel %vm313_vm0, %v700_v43, 0  ;;  %v736_v51 = vunpack.c.l.b16 %v700_v43 }
  0xe3   : > { %723 = vmatpush.bf16.msra.mxu1 %v714_v46 }
  0xe4   : > { %v695_v29 = vadd.f32 %v1033_v32, %v688_v45 }
  0xe6   : > { %v698_v34 = vmax.f32 %v695_v29, 0.0  ;;  %959 = vmatmul.msk.bf16.vlgmr.msra.gmra.mxu1 %vm306_vm1, %v972_v20 }
  0xe8   : > { %v701_v49 = vpack.c.bf16 %v698_v34, %v698_v34 }
  0xe9   : > { %v683_v50 = vpop.f32.mrf.mxu0 }
  0xea   : > { %v737_v52 = vunpack.c.l.b16 %v701_v49  ;;  %v689_v53 = vadd.f32 %v683_v50, %v651_v48 }
  0xec   : > { %v696_v54 = vadd.f32 %v1033_v32, %v689_v53  ;;  %v738_v55 = vpack.c.b16 %v737_v52, %v736_v51  ;;  %v762_v56 = vpack.c.b16 %v737_v52, %v737_v52 }
  0xee   : > { %v699_v57 = vmax.f32 %v696_v54, 0.0  ;;  %v739_v58 = vrot.slane %v738_v55, 3  ;;  %v763_v59 = vrot.slane %v762_v56, 2 }
  0xf0   : > { %v702_v60 = vpack.c.bf16 %v699_v57, %v699_v57  ;;  %v741_v61 = vsel %vm313_vm0, %v739_v58, 0  ;;  %v765_v62 = vsel %vm313_vm0, %v763_v59, 0 }
  0xf1   : > { %750 = vmatpush.bf16.msra.mxu2 %v741_v61  ;;  %774 = vmatpush.bf16.msra.mxu3 %v765_v62  ;;  %v685_v63 = vpop.f32.mrf.mxu0 }
  0xf2   : > { %v787_v0 = vunpack.c.l.b16 %v702_v60 }
  0xf4   : > { %v788_v1 = vpack.c.b16 %v787_v0, %v787_v0  ;;  %960 = vmatmul.msk.bf16.vlgmr.msra.gmra.mxu2 %vm306_vm1, %v972_v20  ;;  %963 = vmatmul.msk.bf16.vlgmr.msra.gmra.mxu3 %vm306_vm1, %v972_v20 }
  0xf6   : > { %v789_v2 = vrot.slane %v788_v1, 1 }
  0xf8   : > { %v791_v3 = vsel %vm313_vm0, %v789_v2, 0 }
  0xf9   : > { %800 = vmatpush.bf16.msrb.mxu1 %v791_v3 }
  0xfc   : > { %966 = vmatmul.msk.bf16.vlgmr.msrb.gmra.mxu1 %vm306_vm1, %v972_v20 }
 0x163   : > { %v725_v4 = vpop.f32.mrf.mxu1 }
 0x16b   : > { %v727_v5 = vpop.f32.mrf.mxu1 }
 0x16c   : > { %v984_v6 = vpack.c.bf16 %v727_v5, %v725_v4 }
 0x16e   : > { %985 = vst [vmem:[%s268_s28] sm:$0xff] %v984_v6  }
 0x177   : > { %v752_v7 = vpop.f32.mrf.mxu2  ;;  %v776_v8 = vpop.f32.mrf.mxu3 }
 0x179   : > { %v802_v9 = vpop.f32.mrf.mxu1 }
 0x17f   : > { %v754_v10 = vpop.f32.mrf.mxu2  ;;  %v778_v11 = vpop.f32.mrf.mxu3 }
 0x180   : > { %v989_v12 = vpack.c.bf16 %v754_v10, %v752_v7  ;;  %v994_v13 = vpack.c.bf16 %v778_v11, %v776_v8 }
 0x181   : > { %v804_v14 = vpop.f32.mrf.mxu1 }
 0x182   : > { %1005 = vst [vmem:[%s268_s28 + $0x8] sm:$0xff] %v989_v12   ;;  %v999_v15 = vpack.c.bf16 %v804_v14, %v802_v9 }
 0x183   : > { %1006 = vst [vmem:[%s268_s28 + $0x10] sm:$0xff] %v994_v13  }
 0x184   : > { %1007 = vst [vmem:[%s268_s28 + $0x18] sm:$0xff] %v999_v15  }
 0x185 PF: > { %s14_s17 = sadd.s32 1, %s1056_s17   ;;  %s1230_s15 = smov %s1052_s16 }
 0x186   : > { %p11_p6 = scmp.ge.s32.totalorder %s14_s17, 4   ;;  %s1231_s16 = smov %s1233_s18 }
 0x188   :  { %13 = sbr.rel (!%p11_p6) target bundleno = 2 (0x2), region = 75 }

// kernel: bottleneck_enhancer_forward.16
= control target key start
LH: loop header
LB: loop body
LE: loop exit
PB: predicated region body
PF: predicated region fallthrough
CT: control target
= control target key end

     0   :  { %s1868_s15 = smov 0   ;;  %s1870_s16 = smov 0   ;;  %s2201_s0 = inlined_call_operand.vmem [shape: bf16[2,100,4], index: 0, kind: input, shape index: {}]   ;;  %s2202_s1 = inlined_call_operand.vmem [shape: bf16[36,128], index: 1, kind: input, shape index: {}]   ;;  %s2203_s2 = inlined_call_operand.vmem [shape: f32[1,128], index: 2, kind: input, shape index: {}]   ;;  %s2204_s3 = inlined_call_operand.vmem [shape: bf16[16,8], index: 3, kind: input, shape index: {}]   ;;  %s2205_s4 = inlined_call_operand.vmem [shape: bf16[16,16,128], index: 4, kind: output, shape index: {}]  }
   0x1   :  { %s1872_s17 = smov 0  }
   0x2 LB: > { %s33_s18 = sadd.s32 1, %s1837_s16  ;;  %p1568_p0 = scmp.ge.s32.totalorder %s1841_s17, 1  ;;  %s1841_s17 = sphi %s1872_s17, %s14_s17   ;;  %s1837_s16 = sphi %s1870_s16, %s2207_s16   ;;  %s1833_s15 = sphi %s1868_s15, %s2206_s15  }
   0x3   : > { %p35_p1 = scmp.ge.s32.totalorder %s33_s18, 2  ;;  %p206_p2 = scmp.lt.s32.totalorder %s1841_s17, 3 }
   0x5   : > { %s2209_s18 = smov (%p35_p1, %s33_s18), 0  ;;  %p207_p3 = pnand %p1568_p0, %p206_p2 }
   0x6   : > { %p246_p4 = scmp.lt.s32.totalorder (!%p207_p3), %s1833_s15, 1  ;;  %s1570_s24 = sshll.u32 (!%p207_p3), %s1833_s15, 3 }
   0x7   : > { %210 = sbr.rel (%p207_p3) target bundleno = 529 (0x211), region = 36  ;;  %p261_p5 = scmp.lt.s32.totalorder (!%p207_p3), %s1570_s24, 15 }
   0xc   : > { %v282_v0 = vld [vmem:[%s2202_s1] sm:$0x3]  ;;  %vm370_vm0 = vcmask 1041408   ;;  %v460_v2 = vld [vmem:[%s2202_s1 + $0x4] sm:$0x3]  ;;  %s247_s25 = scalar_select %p246_p4, %s1833_s15, 1 }
   0xd   : > { %v423_v1 = vsel %vm370_vm0, %v282_v0, 0  ;;  %v284_v3 = vld [vmem:[%s2202_s1] sm:$0xc]  ;;  %v490_v4 = vsel %vm370_vm0, %v460_v2, 0  ;;  %v546_v6 = vld [vmem:[%s2202_s1 + $0x4] sm:$0xc] }
   0xe   : > { %432 = vmatpush.bf16.msra.mxu1 %v423_v1  ;;  %v351_v5 = vunpack.c.l.b16 %v284_v3  ;;  %499 = vmatpush.bf16.msra.mxu2 %v490_v4  ;;  %v582_v7 = vunpack.c.l.b16 %v546_v6  ;;  %s1793_s28 = smul.u32 52, %s247_s25  ;;  %vm354_vm1 = vcmask 31744   ;;  %vm464_vm2 = vcmask 1046528   ;;  %v658_v49 = vld [vmem:[%s2202_s1 + $0x8] sm:$0x3]  ;;  %s2211_s24 = smov (!%p261_p5, %s1570_s24), 15 }
   0xf   : > { %vm310_vm3 = vsmask.f32 7424  ;;  %v753_v51 = vsel %vm370_vm0, %v658_v49, 0  ;;  %v800_v62 = vld [vmem:[%s2202_s1 + $0x8] sm:$0xc]  ;;  %vm804_vm5 = vcmask 1045504  }
  0x10   : > { %v352_v8 = vpack.c.b16 %v351_v5, %v351_v5  ;;  %v583_v9 = vpack.c.b16 %v582_v7, %v582_v7  ;;  %s1907_s5 = scalar_lea.vmem %s2201_s0, %s1793_s28  ;;  %v817_v63 = vunpack.c.l.b16 %v800_v62  ;;  %vm687_vm4 = vsmask.f32 6400  ;;  %s1710_s25 = sshll.u32 %s2211_s24, 3 }
  0x11   : > { %v1729_v11 = vld [vmem:[%s1907_s5] sm:$0xff]   ;;  %v1711_v13 = vld [vmem:[%s1907_s5 + $0x8] sm:$0xff]  ;;  %v1712_v34 = vld [vmem:[%s1907_s5 + $0x10] sm:$0xff]  ;;  %vm1000_vm6 = vsmask.f32 5376  ;;  %vm1125_vm7 = vcmask 1044480   ;;  %s2182_s28 = scalar_lea.vmem %s2205_s4, %s1710_s25 }
  0x12   : > { %v353_v10 = vrot.slane %v352_v8, 2  ;;  %v1781_v12 = vld [vmem:[%s1907_s5] sm:$0xf0]  ;;  %v584_v14 = vrot.slane %v583_v9, 2  ;;  %v312_v15 = vshrl.u32 %v1729_v11, 16  ;;  %v314_v16 = vshll.u32 %v1729_v11, 16  ;;  %1590 = vmatmul.msk.bf16.vlgmr.msra.gmra.mxu1 %vm354_vm1, %v1729_v11 }
  0x13   : > { %v1782_v18 = vld [vmem:[%s1907_s5] sm:$0xe]  ;;  %v466_v21 = vrot.slane %v1711_v13, 1  ;;  %v319_v25 = vshll.u32 %v1711_v13, 16  ;;  %v1602_v35 = vld [vmem:[%s1907_s5 + $0x4] sm:$0xe]  ;;  %v818_v0 = vpack.c.b16 %v817_v63, %v817_v63 }
  0x14   : > { %v372_v17 = vsel %vm370_vm0, %v353_v10, 0  ;;  %v1916_v19 = vld [vmem:[%s1907_s5 + $0x20] sm:$0xff]   ;;  %v1783_v20 = vor.u32 %v1782_v18, %v1781_v12  ;;  %v316_v24 = vrot.slane %v314_v16, 1  ;;  %v601_v26 = vsel %vm370_vm0, %v584_v14, 0  ;;  %v1714_v36 = vld [vmem:[%s1907_s5 + $0x4] sm:$0xf0] }
  0x15   : > { %1792 = vmatpush.bf16.msra.mxu3 %v372_v17  ;;  %381 = vmatpush.bf16.msra.mxu0 %v372_v17  ;;  %v343_v22 = vshll.u32 %v1916_v19, 16  ;;  %v347_v23 = vshrl.u32 %v1916_v19, 16  ;;  %v321_v30 = vrot.slane %v319_v25, 1  ;;  %v1715_v37 = vld [vmem:[%s1907_s5 + $0xc] sm:$0xff]  ;;  %v1603_v38 = vor.u32 %v1714_v36, %v1602_v35  ;;  %v1713_v50 = vld [vmem:[%s1907_s5 + $0x18] sm:$0xff] }
  0x16   : > { %v465_v27 = vrot.slane %v1783_v20, 1  ;;  %v317_v29 = vor.u32 %v316_v24, %v312_v15  ;;  %v323_v39 = vshrl.u32 %v1711_v13, 16  ;;  %v327_v40 = vshll.u32 %v1712_v34, 16  ;;  %v1716_v52 = vld [vmem:[%s1907_s5 + $0x14] sm:$0xff]  ;;  %v1717_v2 = vld [vmem:[%s1907_s5 + $0x1c] sm:$0xff]  ;;  %v1959_v5 = vld [vmem:[%s1907_s5 + $0x8] sm:$0xff]  }
  0x17   : > { %v1921_v28 = vrot.slane %v343_v22, 1  ;;  %v468_v41 = vrot.slane %v1712_v34, 1  ;;  %v572_v42 = vrot.slane %v1603_v38, 1  ;;  %v573_v43 = vrot.slane %v1715_v37, 1  ;;  %v647_v4 = vld [vmem:[%s1907_s5 + $0x4] sm:$0xe] }
  0x18   : > { %v467_v31 = vsel %vm464_vm2, %v465_v27, %v466_v21  ;;  %v322_v33 = vsel %vm310_vm3, %v317_v29, %v321_v30  ;;  %v325_v44 = vor.u32 %v323_v39, %v321_v30  ;;  %v329_v45 = vrot.slane %v327_v40, 1  ;;  %v893_v12 = vld [vmem:[%s2202_s1 + $0xc] sm:$0x3]  ;;  %v1791_v20 = vld [vmem:[%s1907_s5 + $0x20] sm:$0x70]  ;;  %v2014_v62 = vld [vmem:[%s1907_s5 + $0x1c] sm:$0xff] }
  0x19   : > { %610 = vmatpush.bf16.msrb.mxu3 %v601_v26  ;;  %v349_v32 = vor.u32 %v347_v23, %v1921_v28  ;;  %1595 = vmatmul.msk.bf16.vlgmr.msra.gmra.mxu2 %vm354_vm1, %v467_v31  ;;  %v469_v46 = vsel %vm464_vm2, %v466_v21, %v468_v41  ;;  %v574_v47 = vsel %vm464_vm2, %v572_v42, %v573_v43  ;;  %v331_v53 = vshrl.u32 %v1712_v34, 16  ;;  %v1974_v17 = vld [vmem:[%s1907_s5 + $0xc] sm:$0xff]  ;;  %v1718_v26 = vld [vmem:[%s1907_s5 + $0x24] sm:$0xff] }
  0x1a   : > { %1585 = vmatmul.msk.bf16.vlgmr.msra.gmra.mxu0 %vm354_vm1, %v322_v33  ;;  %v330_v48 = vsel %vm310_vm3, %v325_v44, %v329_v45  ;;  %v335_v54 = vshll.u32 %v1713_v50, 16  ;;  %v470_v55 = vrot.slane %v1713_v50, 1  ;;  %v575_v56 = vrot.slane %v1716_v52, 1  ;;  %v996_v31 = vld [vmem:[%s2202_s1 + $0xc] sm:$0xc]  ;;  %v1994_v44 = vld [vmem:[%s1907_s5 + $0x14] sm:$0xff] }
  0x1b   : > { %1589 = vmatmul.msk.bf16.vlgmr.msra.gmra.mxu3 %vm354_vm1, %v349_v32  ;;  %762 = vmatpush.bf16.msrb.mxu0 %v753_v51  ;;  %v333_v57 = vor.u32 %v331_v53, %v329_v45  ;;  %v819_v1 = vrot.slane %v818_v0, 2  ;;  %v339_v3 = vshrl.u32 %v1713_v50, 16  ;;  %v472_v7 = vrot.slane %v1916_v19, 1  ;;  %v1779_v19 = vld [vmem:[%s1907_s5 + $0x20] sm:$0xf]   ;;  %v2004_v52 = vld [vmem:[%s1907_s5 + $0x10] sm:$0xff] }
  0x1c   : > { %v337_v58 = vrot.slane %v335_v54, 1  ;;  %v471_v59 = vsel %vm464_vm2, %v468_v41, %v470_v55  ;;  %v576_v60 = vsel %vm464_vm2, %v573_v43, %v575_v56  ;;  %v577_v8 = vrot.slane %v1717_v2, 1  ;;  %v799_v33 = vld [vmem:[%s1907_s5 + $0x4] sm:$0xc]  ;;  %v882_v43 = vld [vmem:[%s1907_s5 + $0x8] sm:$0xc] }
  0x1d   : > { %v836_v6 = vsel %vm370_vm0, %v819_v1, 0  ;;  %v670_v10 = vunpack.c.l.b16 %v647_v4  ;;  %v671_v11 = vunpack.c.l.b16 %v1959_v5  ;;  %v473_v14 = vsel %vm464_vm2, %v470_v55, %v472_v7  ;;  %v1121_v2 = vld [vmem:[%s2202_s1 + $0x10] sm:$0x3] }
  0x1e   : > { %v338_v61 = vsel %vm310_vm3, %v333_v57, %v337_v58  ;;  %845 = vmatpush.bf16.msrb.mxu1 %v836_v6  ;;  %v341_v9 = vor.u32 %v339_v3, %v337_v58  ;;  %v578_v15 = vsel %vm464_vm2, %v575_v56, %v577_v8  ;;  %v697_v23 = vshrl.u32 %v1974_v17, 16 }
  0x1f   : > { %v681_v18 = vpack.c.b16 %v671_v11, %v670_v10  ;;  %v700_v24 = vshll.u32 %v1974_v17, 16  ;;  %v1780_v25 = vor.u32 %v1791_v20, %v1779_v19  ;;  %v1055_v32 = vunpack.c.l.b16 %v996_v31 }
  0x20   : > { %v346_v16 = vsel %vm310_vm3, %v341_v9, %v1921_v28  ;;  %v699_v29 = vrot.slane %v697_v23, 1  ;;  %v579_v35 = vrot.slane %v1718_v26, 1  ;;  %v802_v38 = vunpack.c.l.b16 %v799_v33  ;;  %v2029_v9 = vld [vmem:[%s1907_s5 + $0x18] sm:$0xff] }
  0x21   : > { %v689_v21 = vshrl.u32 %v681_v18, 16  ;;  %v692_v22 = vshll.u32 %v681_v18, 16  ;;  %v702_v30 = vrot.slane %v700_v24, 2  ;;  %v709_v49 = vshll.u32 %v1994_v44, 16  ;;  %v2038_v24 = vld [vmem:[%s1907_s5 + $0x24] sm:$0xff] }
  0x22   : > { %1591 = vmatmul.msk.bf16.gmra.mxu1 %vm354_vm1, %v1711_v13  ;;  %v949_v13 = vsel %vm370_vm0, %v893_v12, 0  ;;  %v580_v41 = vsel %vm464_vm2, %v577_v8, %v579_v35  ;;  %v803_v45 = vpack.c.b16 %v671_v11, %v802_v38  ;;  %v806_v51 = vrot.slane %v1974_v17, 2 }
  0x23   : > { %958 = vmatpush.bf16.msrb.mxu2 %v949_v13  ;;  %v691_v27 = vrot.slane %v689_v21, 1  ;;  %v694_v28 = vrot.slane %v692_v22, 2  ;;  %v703_v37 = vor.u32 %v702_v30, %v699_v29  ;;  %v711_v55 = vrot.slane %v709_v49, 2  ;;  %v2049_v30 = vld [vmem:[%s1907_s5 + $0x20] sm:$0xff]  ;;  %v2065_v49 = vld [vmem:[%s1907_s5 + $0x28] sm:$0xff] }
  0x24   : > { %v923_v58 = vrot.slane %v2004_v52, 2  ;;  %v1010_v1 = vshrl.u32 %v2004_v52, 16  ;;  %v1013_v3 = vshll.u32 %v2004_v52, 16  ;;  %v715_v4 = vshrl.u32 %v2014_v62, 16 }
  0x25   : > { %v695_v36 = vor.u32 %v694_v28, %v691_v27  ;;  %v718_v6 = vshll.u32 %v2014_v62, 16  ;;  %v808_v8 = vrot.slane %v1994_v44, 2  ;;  %v925_v17 = vrot.slane %v2029_v9, 2 }
  0x26   : > { %v1012_v12 = vrot.slane %v1010_v1, 2  ;;  %v1015_v13 = vrot.slane %v1013_v3, 3  ;;  %v1022_v26 = vshll.u32 %v2029_v9, 16  ;;  %v724_v27 = vshrl.u32 %v2038_v24, 16 }
  0x27   : > { %v704_v42 = vsel %vm687_vm4, %v695_v36, %v703_v37  ;;  %v926_v21 = vsel %vm804_vm5, %v923_v58, %v925_v17  ;;  %v727_v28 = vshll.u32 %v2038_v24, 16  ;;  %v810_v29 = vrot.slane %v2014_v62, 2 }
  0x28   : > { %v1016_v19 = vor.u32 %v1015_v13, %v1012_v12  ;;  %v726_v33 = vrot.slane %v724_v27, 1  ;;  %v927_v36 = vrot.slane %v2049_v30, 2  ;;  %vm1244_vm8 = vcmask 1043456  }
  0x29   : > { %1596 = vmatmul.msk.bf16.gmra.mxu2 %vm354_vm1, %v469_v46  ;;  %v905_v46 = vunpack.c.l.b16 %v882_v43  ;;  %vm1240_vm9 = vcmask 64512  }
  0x2a   : > { %1586 = vmatmul.msk.bf16.gmra.mxu0 %vm354_vm1, %v330_v48  ;;  %v706_v48 = vshrl.u32 %v1994_v44, 16  ;;  %v1028_v44 = vshrl.u32 %v2049_v30, 16 }
  0x2b   : > { %1620 = vmatmul.msk.bf16.vlgmr.msrb.gmra.mxu3 %vm354_vm1, %v574_v47  ;;  %v906_v47 = vunpack.c.h.b16 %v1959_v5 }
  0x2c   : > { %v708_v54 = vrot.slane %v706_v48, 1  ;;  %v812_v48 = vrot.slane %v2038_v24, 2  ;;  %v1127_v24 = vrot.slane %v2004_v52, 3 }
  0x2d   : > { %v916_v53 = vpack.c.b16 %v906_v47, %v905_v46 }
  0x2f   : > { %v922_v57 = vrot.slane %v916_v53, 2  ;;  %v1002_v63 = vshrl.u32 %v916_v53, 16  ;;  %v1005_v0 = vshll.u32 %v916_v53, 16 }
  0x31   : > { %v1004_v10 = vrot.slane %v1002_v63, 2  ;;  %v1007_v11 = vrot.slane %v1005_v0, 3  ;;  %v892_v63 = vld [vmem:[%s1907_s5 + $0x30] sm:$0x1] }
  0x32   : > { %1592 = vmatmul.msk.bf16.gmra.mxu1 %vm354_vm1, %v1712_v34  ;;  %v1056_v34 = vpack.c.b16 %v1055_v32, %v1055_v32  ;;  %v1024_v32 = vrot.slane %v1022_v26, 3  ;;  %v915_v3 = vunpack.c.l.b16 %v892_v63 }
  0x33   : > { %v1008_v18 = vor.u32 %v1007_v11, %v1004_v10 }
  0x34   : > { %v1057_v39 = vrot.slane %v1056_v34, 2  ;;  %v729_v34 = vrot.slane %v727_v28, 2  ;;  %v921_v13 = vpack.c.b16 %v915_v3, %v915_v3 }
  0x35   : > { %v1017_v22 = vsel %vm1000_vm6, %v1008_v18, %v1016_v19 }
  0x36   : > { %v1074_v40 = vsel %vm370_vm0, %v1057_v39, 0  ;;  %v730_v38 = vor.u32 %v729_v34, %v726_v33  ;;  %v657_v39 = vld [vmem:[%s1907_s5 + $0x2c] sm:$0x1] }
  0x37   : > { %1083 = vmatpush.bf16.msra.mxu3 %v1074_v40  ;;  %v928_v40 = vsel %vm804_vm5, %v925_v17, %v927_v36  ;;  %v680_v43 = vunpack.c.l.b16 %v657_v39 }
  0x39   : > { %1597 = vmatmul.msk.bf16.gmra.mxu2 %vm354_vm1, %v471_v59  ;;  %v712_v59 = vor.u32 %v711_v55, %v708_v54  ;;  %v686_v46 = vpack.c.b16 %v680_v43, %v680_v43  ;;  %v813_v55 = vsel %vm804_vm5, %v810_v29, %v812_v48 }
  0x3a   : > { %1587 = vmatmul.msk.bf16.gmra.mxu0 %vm354_vm1, %v338_v61 }
  0x3b   : > { %1621 = vmatmul.msk.bf16.gmra.mxu3 %vm354_vm1, %v576_v60  ;;  %v924_v60 = vsel %vm804_vm5, %v922_v57, %v923_v58  ;;  %v713_v61 = vsel %vm687_vm4, %v703_v37, %v712_v59  ;;  %v733_v53 = vshll.u32 %v686_v46, 16  ;;  %v814_v10 = vrot.slane %v686_v46, 2 }
  0x3c   : > { %v1129_v46 = vrot.slane %v2029_v9, 3 }
  0x3d   : > { %v735_v58 = vrot.slane %v733_v53, 2 }
  0x3f   : > { %v736_v62 = vsel %vm687_vm4, %v730_v38, %v735_v58 }
  0x42   : > { %1593 = vmatmul.msk.bf16.gmra.mxu1 %vm354_vm1, %v1713_v50  ;;  %v805_v50 = vrot.slane %v803_v45, 2  ;;  %v1031_v45 = vshll.u32 %v2049_v30, 16 }
  0x44   : > { %v807_v56 = vsel %vm804_vm5, %v805_v50, %v806_v51  ;;  %v1030_v50 = vrot.slane %v1028_v44, 2 }
  0x49   : > { %1598 = vmatmul.msk.bf16.gmra.mxu2 %vm354_vm1, %v473_v14  ;;  %v717_v14 = vrot.slane %v715_v4, 1  ;;  %v1037_v4 = vshrl.u32 %v2065_v49, 16 }
  0x4a   : > { %1588 = vmatmul.msk.bf16.gmra.mxu0 %vm354_vm1, %v346_v16  ;;  %v809_v16 = vsel %vm804_vm5, %v806_v51, %v808_v8  ;;  %v1033_v51 = vrot.slane %v1031_v45, 3 }
  0x4b   : > { %1622 = vmatmul.msk.bf16.gmra.mxu3 %vm354_vm1, %v578_v15  ;;  %v720_v15 = vrot.slane %v718_v6, 2  ;;  %v1040_v6 = vshll.u32 %v2065_v49, 16 }
  0x4c   : > { %v1034_v57 = vor.u32 %v1033_v51, %v1030_v50 }
  0x4d   : > { %v721_v20 = vor.u32 %v720_v15, %v717_v14  ;;  %v1039_v15 = vrot.slane %v1037_v4, 2 }
  0x4f   : > { %v722_v23 = vsel %vm687_vm4, %v712_v59, %v721_v20 }
  0x52   : > { %1594 = vmatmul.msk.bf16.gmra.mxu1 %vm354_vm1, %v1780_v25  ;;  %v1019_v25 = vshrl.u32 %v2029_v9, 16 }
  0x54   : > { %v1021_v31 = vrot.slane %v1019_v25, 2 }
  0x56   : > { %v1025_v37 = vor.u32 %v1024_v32, %v1021_v31 }
  0x59   : > { %1599 = vmatmul.msk.bf16.gmra.mxu2 %vm354_vm1, %v472_v7  ;;  %v1153_v7 = vsel %vm370_vm0, %v1121_v2, 0  ;;  %v1120_v2 = vld [vmem:[%s1907_s5 + $0x8] sm:$0x8] }
  0x5a   : > { %1641 = vmatmul.msk.bf16.vlgmr.msrb.gmra.mxu0 %vm354_vm1, %v704_v42  ;;  %v731_v42 = vsel %vm687_vm4, %v721_v20, %v730_v38  ;;  %v995_v20 = vld [vmem:[%s1907_s5 + $0x30] sm:$0x3] }
  0x5b   : > { %1623 = vmatmul.msk.bf16.gmra.mxu3 %vm354_vm1, %v580_v41  ;;  %1162 = vmatpush.bf16.msra.mxu0 %v1153_v7  ;;  %v1026_v41 = vsel %vm1000_vm6, %v1016_v19, %v1025_v37  ;;  %v1123_v7 = vunpack.c.l.b16 %v1120_v2  ;;  %v815_v19 = vsel %vm804_vm5, %v812_v48, %v814_v10  ;;  %v998_v25 = vunpack.c.l.b16 %v995_v20 }
  0x5c   : > { %v1131_v2 = vrot.slane %v2049_v30, 3 }
  0x5d   : > { %v1124_v17 = vpack.c.b16 %v906_v47, %v1123_v7  ;;  %v2093_v31 = vpack.c.b16 %v998_v25, %v998_v25 }
  0x5e   : > { %v1132_v10 = vsel %vm1125_vm7, %v1129_v46, %v1131_v2 }
  0x5f   : > { %v1046_v52 = vshrl.u32 %v2093_v31, 16  ;;  %v1049_v34 = vshll.u32 %v2093_v31, 16 }
  0x62   : > { %1646 = vmatmul.msk.bf16.vlgmr.msrb.gmra.mxu1 %vm354_vm1, %v807_v56  ;;  %v929_v56 = vrot.slane %v2065_v49, 2 }
  0x64   : > { %v930_v59 = vsel %vm804_vm5, %v927_v36, %v929_v56 }
  0x69   : > { %1667 = vmatmul.msk.bf16.vlgmr.msrb.gmra.mxu2 %vm354_vm1, %v924_v60 }
  0x6a   : > { %1642 = vmatmul.msk.bf16.gmra.mxu0 %vm354_vm1, %v713_v61  ;;  %v1035_v61 = vsel %vm1000_vm6, %v1025_v37, %v1034_v57 }
  0x6b   : > { %1624 = vmatmul.msk.bf16.gmra.mxu3 %vm354_vm1, %v579_v35  ;;  %v811_v35 = vsel %vm804_vm5, %v808_v8, %v810_v29 }
  0x72   : > { %1647 = vmatmul.msk.bf16.gmra.mxu1 %vm354_vm1, %v809_v16  ;;  %v1042_v16 = vrot.slane %v1040_v6, 3 }
  0x79   : > { %1668 = vmatmul.msk.bf16.gmra.mxu2 %vm354_vm1, %v926_v21  ;;  %v931_v21 = vrot.slane %v921_v13, 2 }
  0x7a   : > { %1643 = vmatmul.msk.bf16.gmra.mxu0 %vm354_vm1, %v722_v23  ;;  %v1126_v23 = vrot.slane %v1124_v17, 3 }
  0x7b   : > { %1672 = vmatmul.msk.bf16.vlgmr.msra.gmra.mxu3 %vm354_vm1, %v1017_v22  ;;  %v1043_v22 = vor.u32 %v1042_v16, %v1039_v15  ;;  %v932_v28 = vsel %vm804_vm5, %v929_v56, %v931_v21  ;;  %v1133_v21 = vrot.slane %v2065_v49, 3  ;;  %v1135_v49 = vrot.slane %v2093_v31, 3 }
  0x7c   : > { %v1128_v29 = vsel %vm1125_vm7, %v1126_v23, %v1127_v24 }
  0x7d   : > { %v1044_v47 = vsel %vm1000_vm6, %v1034_v57, %v1043_v22  ;;  %v1130_v57 = vsel %vm1125_vm7, %v1127_v24, %v1129_v46 }
  0x82   : > { %1648 = vmatmul.msk.bf16.gmra.mxu1 %vm354_vm1, %v811_v35 }
  0x89   : > { %1669 = vmatmul.msk.bf16.gmra.mxu2 %vm354_vm1, %v928_v40  ;;  %v1048_v40 = vrot.slane %v1046_v52, 2 }
  0x8a   : > { %1644 = vmatmul.msk.bf16.gmra.mxu0 %vm354_vm1, %v731_v42 }
  0x8b   : > { %1673 = vmatmul.msk.bf16.gmra.mxu3 %vm354_vm1, %v1026_v41  ;;  %v1051_v41 = vrot.slane %v1049_v34, 3 }
  0x8d   : > { %v1052_v45 = vor.u32 %v1051_v41, %v1048_v40 }
  0x8f   : > { %v434_v54 = vpop.f32.mrf.mxu1  ;;  %v1053_v56 = vsel %vm1000_vm6, %v1043_v22, %v1052_v45 }
  0x92   : > { %1649 = vmatmul.msk.bf16.gmra.mxu1 %vm354_vm1, %v813_v55 }
  0x97   : > { %v383_v60 = vpop.f32.mrf.mxu0  ;;  %v436_v1 = vpop.f32.mrf.mxu1 }
  0x98   : > { %v435_v0 = vadd.f32 %v434_v54, %v383_v60 }
  0x99   : > { %1670 = vmatmul.msk.bf16.gmra.mxu2 %vm354_vm1, %v930_v59 }
  0x9a   : > { %1645 = vmatmul.msk.bf16.gmra.mxu0 %vm354_vm1, %v736_v62 }
  0x9b   : > { %1674 = vmatmul.msk.bf16.gmra.mxu3 %vm354_vm1, %v1035_v61 }
  0x9c   : > { %v501_v8 = vpop.f32.mrf.mxu2 }
  0x9d   : > { %v526_v11 = vadd.f32 %v501_v8, %v435_v0 }
  0x9e   : > { %v2080_v12 = vpop.f32.mrf.mxu3 }
  0x9f   : > { %v385_v14 = vpop.f32.mrf.mxu0  ;;  %v439_v18 = vpop.f32.mrf.mxu1 }
  0xa0   : > { %v437_v44 = vadd.f32 %v436_v1, %v385_v14 }
  0xa2   : > { %1650 = vmatmul.msk.bf16.gmra.mxu1 %vm354_vm1, %v815_v19 }
  0xa4   : > { %v503_v26 = vpop.f32.mrf.mxu2 }
  0xa5   : > { %v527_v48 = vadd.f32 %v503_v26, %v437_v44 }
  0xa6   : > { %v2088_v27 = vpop.f32.mrf.mxu3 }
  0xa7   : > { %v388_v5 = vpop.f32.mrf.mxu0  ;;  %v441_v33 = vpop.f32.mrf.mxu1 }
  0xa8   : > { %v440_v32 = vadd.f32 %v439_v18, %v388_v5 }
  0xa9   : > { %1671 = vmatmul.msk.bf16.gmra.mxu2 %vm354_vm1, %v932_v28  ;;  %v1134_v28 = vsel %vm1125_vm7, %v1131_v2, %v1133_v21 }
  0xaa   : > { %1677 = vmatmul.msk.bf16.vlgmr.msra.gmra.mxu0 %vm354_vm1, %v1128_v29 }
  0xab   : > { %1675 = vmatmul.msk.bf16.gmra.mxu3 %vm354_vm1, %v1044_v47 }
  0xac   : > { %v506_v35 = vpop.f32.mrf.mxu2 }
  0xad   : > { %v528_v36 = vadd.f32 %v506_v35, %v440_v32 }
  0xae   : > { %v612_v37 = vpop.f32.mrf.mxu3 }
  0xaf   : > { %v637_v38 = vadd.f32 %v612_v37, %v526_v11  ;;  %v390_v39 = vpop.f32.mrf.mxu0  ;;  %v444_v43 = vpop.f32.mrf.mxu1 }
  0xb0   : > { %v442_v42 = vadd.f32 %v441_v33, %v390_v39 }
  0xb4   : > { %v508_v50 = vpop.f32.mrf.mxu2 }
  0xb5   : > { %v529_v51 = vadd.f32 %v508_v50, %v442_v42 }
  0xb6   : > { %v614_v53 = vpop.f32.mrf.mxu3 }
  0xb7   : > { %v638_v54 = vadd.f32 %v614_v53, %v527_v48  ;;  %v393_v55 = vpop.f32.mrf.mxu0  ;;  %v446_v59 = vpop.f32.mrf.mxu1 }
  0xb8   : > { %v445_v58 = vadd.f32 %v444_v43, %v393_v55 }
  0xba   : > { %1678 = vmatmul.msk.bf16.gmra.mxu0 %vm354_vm1, %v1130_v57 }
  0xbb   : > { %1676 = vmatmul.msk.bf16.gmra.mxu3 %vm354_vm1, %v1053_v56 }
  0xbc   : > { %v511_v60 = vpop.f32.mrf.mxu2 }
  0xbd   : > { %v530_v61 = vadd.f32 %v511_v60, %v445_v58 }
  0xbe   : > { %v617_v62 = vpop.f32.mrf.mxu3 }
  0xbf   : > { %v639_v9 = vadd.f32 %v617_v62, %v528_v36  ;;  %v395_v63 = vpop.f32.mrf.mxu0  ;;  %v449_v1 = vpop.f32.mrf.mxu1 }
  0xc0   : > { %v447_v0 = vadd.f32 %v446_v59, %v395_v63 }
  0xc4   : > { %v513_v3 = vpop.f32.mrf.mxu2 }
  0xc5   : > { %v531_v4 = vadd.f32 %v513_v3, %v447_v0 }
  0xc6   : > { %v619_v6 = vpop.f32.mrf.mxu3 }
  0xc7   : > { %v640_v7 = vadd.f32 %v619_v6, %v529_v51  ;;  %v398_v8 = vpop.f32.mrf.mxu0  ;;  %v451_v13 = vpop.f32.mrf.mxu1 }
  0xc8   : > { %v450_v11 = vadd.f32 %v449_v1, %v398_v8 }
  0xca   : > { %1679 = vmatmul.msk.bf16.gmra.mxu0 %vm354_vm1, %v1132_v10 }
  0xcc   : > { %v516_v14 = vpop.f32.mrf.mxu2 }
  0xcd   : > { %v532_v15 = vadd.f32 %v516_v14, %v450_v11  ;;  %v2131_v11 = vld [vmem:[%s2203_s2] ss:$0 sm:$0xff] }
  0xce   : > { %v622_v16 = vpop.f32.mrf.mxu3 }
  0xcf   : > { %v641_v17 = vadd.f32 %v622_v16, %v530_v61  ;;  %v400_v18 = vpop.f32.mrf.mxu0  ;;  %v454_v20 = vpop.f32.mrf.mxu1 }
  0xd0   : > { %v452_v19 = vadd.f32 %v451_v13, %v400_v18  ;;  %v455_v30 = vadd.f32 %v454_v20, %v2080_v12 }
  0xd4   : > { %v518_v22 = vpop.f32.mrf.mxu2 }
  0xd5   : > { %v533_v23 = vadd.f32 %v518_v22, %v452_v19 }
  0xd6   : > { %v624_v24 = vpop.f32.mrf.mxu3 }
  0xd7   : > { %v642_v25 = vadd.f32 %v624_v24, %v531_v4  ;;  %v764_v26 = vpop.f32.mrf.mxu0  ;;  %v456_v34 = vpop.f32.mrf.mxu1 }
  0xd8   : > { %v789_v5 = vadd.f32 %v764_v26, %v637_v38  ;;  %v457_v12 = vadd.f32 %v456_v34, %v2088_v27  ;;  %v1136_v38 = vsel %vm1125_vm7, %v1133_v21, %v1135_v49 }
  0xda   : > { %1680 = vmatmul.msk.bf16.gmra.mxu0 %vm354_vm1, %v1134_v28 }
  0xdc   : > { %v521_v47 = vpop.f32.mrf.mxu2 }
  0xdd   : > { %v534_v29 = vadd.f32 %v521_v47, %v455_v30 }
  0xde   : > { %v627_v32 = vpop.f32.mrf.mxu3 }
  0xdf   : > { %v643_v33 = vadd.f32 %v627_v32, %v532_v15  ;;  %v766_v52 = vpop.f32.mrf.mxu0  ;;  %v847_v56 = vpop.f32.mrf.mxu1 }
  0xe0   : > { %v790_v35 = vadd.f32 %v766_v52, %v638_v54  ;;  %v872_v4 = vadd.f32 %v847_v56, %v789_v5 }
  0xe4   : > { %v523_v36 = vpop.f32.mrf.mxu2 }
  0xe5   : > { %v535_v37 = vadd.f32 %v523_v36, %v457_v12  ;;  %v2139_v12 = vld [vmem:[%s2204_s3] sm:$0xff] }
  0xe6   : > { %v629_v39 = vpop.f32.mrf.mxu3 }
  0xe7   : > { %v644_v40 = vadd.f32 %v629_v39, %v533_v23  ;;  %v769_v41 = vpop.f32.mrf.mxu0  ;;  %v849_v61 = vpop.f32.mrf.mxu1 }
  0xe8   : > { %v791_v42 = vadd.f32 %v769_v41, %v639_v9  ;;  %v873_v15 = vadd.f32 %v849_v61, %v790_v35 }
  0xea   : > { %1681 = vmatmul.msk.bf16.gmra.mxu0 %vm354_vm1, %v1136_v38 }
  0xec   : > { %v960_v57 = vpop.f32.mrf.mxu2 }
  0xee   : > { %v632_v43 = vpop.f32.mrf.mxu3 }
  0xef   : > { %v645_v44 = vadd.f32 %v632_v43, %v534_v29  ;;  %v771_v45 = vpop.f32.mrf.mxu0  ;;  %v852_v3 = vpop.f32.mrf.mxu1 }
  0xf0   : > { %v792_v46 = vadd.f32 %v771_v45, %v640_v7  ;;  %v985_v7 = vadd.f32 %v960_v57, %v872_v4  ;;  %v874_v26 = vadd.f32 %v852_v3, %v791_v42 }
  0xf4   : > { %v962_v63 = vpop.f32.mrf.mxu2 }
  0xf5   : > { %v986_v18 = vadd.f32 %v962_v63, %v873_v15 }
  0xf6   : > { %v634_v48 = vpop.f32.mrf.mxu3 }
  0xf7   : > { %v646_v50 = vadd.f32 %v634_v48, %v535_v37  ;;  %v774_v51 = vpop.f32.mrf.mxu0 }
  0xf8   : > { %v2116_v27 = vadd.f32 %v774_v51, %v641_v17  ;;  %v854_v17 = vpop.f32.mrf.mxu1 }
  0xf9   : > { %v875_v49 = vadd.f32 %v854_v17, %v792_v46 }
  0xfc   : > { %v965_v6 = vpop.f32.mrf.mxu2 }
  0xfd   : > { %v987_v28 = vadd.f32 %v965_v6, %v874_v26 }
  0xfe   : > { %v1085_v60 = vpop.f32.mrf.mxu3 }
  0xff   : > { %v776_v31 = vpop.f32.mrf.mxu0  ;;  %v1110_v10 = vadd.f32 %v1085_v60, %v985_v7 }
 0x100   : > { %v2118_v53 = vadd.f32 %v776_v31, %v642_v25  ;;  %v857_v47 = vpop.f32.mrf.mxu1 }
 0x101   : > { %v876_v51 = vadd.f32 %v857_v47, %v2116_v27 }
 0x104   : > { %v967_v20 = vpop.f32.mrf.mxu2 }
 0x105   : > { %v988_v37 = vadd.f32 %v967_v20, %v875_v49 }
 0x106   : > { %v1087_v0 = vpop.f32.mrf.mxu3 }
 0x107   : > { %v779_v54 = vpop.f32.mrf.mxu0  ;;  %v1111_v30 = vadd.f32 %v1087_v0, %v986_v18 }
 0x108   : > { %v2120_v55 = vadd.f32 %v779_v54, %v643_v33  ;;  %v859_v42 = vpop.f32.mrf.mxu1 }
 0x109   : > { %v877_v4 = vadd.f32 %v859_v42, %v2118_v53 }
 0x10c   : > { %v970_v32 = vpop.f32.mrf.mxu2 }
 0x10d   : > { %v989_v56 = vadd.f32 %v970_v32, %v876_v51 }
 0x10e   : > { %v1090_v8 = vpop.f32.mrf.mxu3 }
 0x10f   : > { %v781_v58 = vpop.f32.mrf.mxu0  ;;  %v1112_v29 = vadd.f32 %v1090_v8, %v987_v28 }
 0x110   : > { %v2122_v59 = vadd.f32 %v781_v58, %v644_v40  ;;  %v862_v3 = vpop.f32.mrf.mxu1 }
 0x111   : > { %v878_v53 = vadd.f32 %v862_v3, %v2120_v55 }
 0x116   : > { %v1092_v22 = vpop.f32.mrf.mxu3 }
 0x117   : > { %v784_v62 = vpop.f32.mrf.mxu0  ;;  %v1113_v41 = vadd.f32 %v1092_v22, %v988_v37 }
 0x118   : > { %v2124_v9 = vadd.f32 %v784_v62, %v645_v44  ;;  %v864_v22 = vpop.f32.mrf.mxu1 }
 0x11e   : > { %v1095_v35 = vpop.f32.mrf.mxu3 }
 0x11f   : > { %v786_v1 = vpop.f32.mrf.mxu0  ;;  %v1114_v60 = vadd.f32 %v1095_v35, %v989_v56 }
 0x120   : > { %v2126_v2 = vadd.f32 %v786_v1, %v646_v50  ;;  %v972_v50 = vpop.f32.mrf.mxu2  ;;  %v867_v49 = vpop.f32.mrf.mxu1 }
 0x121   : > { %v990_v8 = vadd.f32 %v972_v50, %v877_v4  ;;  %v880_v42 = vadd.f32 %v867_v49, %v2124_v9 }
 0x126   : > { %v1097_v54 = vpop.f32.mrf.mxu3 }
 0x127   : > { %v1164_v13 = vpop.f32.mrf.mxu0  ;;  %v1115_v15 = vadd.f32 %v1097_v54, %v990_v8 }
 0x128   : > { %v1189_v14 = vadd.f32 %v1164_v13, %v1110_v10  ;;  %v975_v7 = vpop.f32.mrf.mxu2  ;;  %v869_v51 = vpop.f32.mrf.mxu1 }
 0x12a   : > { %v1203_v16 = vadd.f32 %v2131_v11, %v1189_v14 }
 0x12c   : > { %v1213_v19 = vmax.f32 %v1203_v16, 0.0 }
 0x12e   : > { %v1223_v21 = vpack.c.bf16 %v1213_v19, %v1213_v19  ;;  %v1100_v14 = vpop.f32.mrf.mxu3 }
 0x12f   : > { %v1166_v23 = vpop.f32.mrf.mxu0 }
 0x130   : > { %v1190_v24 = vadd.f32 %v1166_v23, %v1111_v30  ;;  %v1246_v25 = vsel %vm1244_vm8, %v1223_v21, 0  ;;  %v991_v23 = vadd.f32 %v975_v7, %v878_v53  ;;  %v977_v26 = vpop.f32.mrf.mxu2 }
 0x131   : > { %1255 = vmatpush.bf16.msra.mxu1 %v1246_v25 }
 0x132   : > { %v1204_v5 = vadd.f32 %v2131_v11, %v1190_v24  ;;  %v1116_v28 = vadd.f32 %v1100_v14, %v991_v23 }
 0x134   : > { %v1214_v52 = vmax.f32 %v1204_v5, 0.0  ;;  %1686 = vmatmul.msk.bf16.vlgmr.msra.gmra.mxu1 %vm1240_vm9, %v2139_v12 }
 0x136   : > { %v1224_v39 = vpack.c.bf16 %v1214_v52, %v1214_v52  ;;  %v879_v52 = vadd.f32 %v864_v22, %v2122_v59 }
 0x137   : > { %v1169_v33 = vpop.f32.mrf.mxu0 }
 0x138   : > { %v1191_v34 = vadd.f32 %v1169_v33, %v1112_v29  ;;  %v1268_v44 = vunpack.c.l.b16 %v1224_v39  ;;  %v1102_v29 = vpop.f32.mrf.mxu3  ;;  %v980_v37 = vpop.f32.mrf.mxu2 }
 0x13a   : > { %v1205_v36 = vadd.f32 %v2131_v11, %v1191_v34  ;;  %v992_v34 = vadd.f32 %v977_v26, %v879_v52 }
 0x13c   : > { %v1215_v40 = vmax.f32 %v1205_v36, 0.0  ;;  %v1117_v36 = vadd.f32 %v1102_v29, %v992_v34 }
 0x13e   : > { %v1225_v38 = vpack.c.bf16 %v1215_v40, %v1215_v40 }
 0x13f   : > { %v1171_v43 = vpop.f32.mrf.mxu0 }
 0x140   : > { %v1269_v45 = vunpack.c.l.b16 %v1225_v38  ;;  %v1192_v48 = vadd.f32 %v1171_v43, %v1113_v41  ;;  %v1105_v38 = vpop.f32.mrf.mxu3  ;;  %v993_v43 = vadd.f32 %v980_v37, %v880_v42 }
 0x142   : > { %v1206_v46 = vadd.f32 %v2131_v11, %v1192_v48  ;;  %v1270_v31 = vpack.c.b16 %v1269_v45, %v1268_v44  ;;  %v1118_v48 = vadd.f32 %v1105_v38, %v993_v43 }
 0x144   : > { %v1216_v57 = vmax.f32 %v1206_v46, 0.0  ;;  %v1271_v58 = vrot.slane %v1270_v31, 1 }
 0x146   : > { %v1226_v61 = vpack.c.bf16 %v1216_v57, %v1216_v57  ;;  %v1273_v62 = vsel %vm1244_vm8, %v1271_v58, 0  ;;  %v982_v57 = vpop.f32.mrf.mxu2  ;;  %v881_v58 = vadd.f32 %v869_v51, %v2126_v2 }
 0x147   : > { %v1174_v63 = vpop.f32.mrf.mxu0  ;;  %1282 = vmatpush.bf16.msra.mxu2 %v1273_v62 }
 0x148   : > { %v1295_v0 = vunpack.c.l.b16 %v1226_v61  ;;  %v1193_v1 = vadd.f32 %v1174_v63, %v1114_v60  ;;  %v1107_v62 = vpop.f32.mrf.mxu3  ;;  %v994_v9 = vadd.f32 %v982_v57, %v881_v58 }
 0x14a   : > { %v1207_v27 = vadd.f32 %v2131_v11, %v1193_v1  ;;  %v1296_v6 = vpack.c.b16 %v1295_v0, %v1269_v45  ;;  %1687 = vmatmul.msk.bf16.vlgmr.msra.gmra.mxu2 %vm1240_vm9, %v2139_v12  ;;  %v1119_v1 = vadd.f32 %v1107_v62, %v994_v9 }
 0x14c   : > { %v1217_v10 = vmax.f32 %v1207_v27, 0.0  ;;  %v1297_v13 = vrot.slane %v1296_v6, 2 }
 0x14e   : > { %v1227_v16 = vpack.c.bf16 %v1217_v10, %v1217_v10  ;;  %v1299_v17 = vsel %vm1244_vm8, %v1297_v13, 0 }
 0x14f   : > { %v1176_v18 = vpop.f32.mrf.mxu0  ;;  %1308 = vmatpush.bf16.msrb.mxu3 %v1299_v17 }
 0x150   : > { %v1321_v19 = vunpack.c.l.b16 %v1227_v16  ;;  %v1194_v20 = vadd.f32 %v1176_v18, %v1115_v15 }
 0x152   : > { %v1208_v30 = vadd.f32 %v2131_v11, %v1194_v20  ;;  %v1322_v21 = vpack.c.b16 %v1321_v19, %v1295_v0  ;;  %1690 = vmatmul.msk.bf16.vlgmr.msrb.gmra.mxu3 %vm1240_vm9, %v2139_v12 }
 0x154   : > { %v1218_v24 = vmax.f32 %v1208_v30, 0.0  ;;  %v1323_v25 = vrot.slane %v1322_v21, 3 }
 0x156   : > { %v1228_v5 = vpack.c.bf16 %v1218_v24, %v1218_v24  ;;  %v1325_v47 = vsel %vm1244_vm8, %v1323_v25, 0 }
 0x157   : > { %v1179_v32 = vpop.f32.mrf.mxu0  ;;  %1334 = vmatpush.bf16.msrb.mxu1 %v1325_v47 }
 0x158   : > { %v1195_v33 = vadd.f32 %v1179_v32, %v1116_v28  ;;  %v1347_v55 = vsel %vm1244_vm8, %v1228_v5, 0 }
 0x159   : > { %1356 = vmatpush.bf16.msrb.mxu2 %v1347_v55 }
 0x15a   : > { %1693 = vmatmul.msk.bf16.vlgmr.msrb.gmra.mxu1 %vm1240_vm9, %v2139_v12  ;;  %v1209_v35 = vadd.f32 %v2131_v11, %v1195_v33 }
 0x15c   : > { %1696 = vmatmul.msk.bf16.vlgmr.msrb.gmra.mxu2 %vm1240_vm9, %v2139_v12  ;;  %v1219_v40 = vmax.f32 %v1209_v35, 0.0 }
 0x15e   : > { %v1229_v44 = vpack.c.bf16 %v1219_v40, %v1219_v40 }
 0x15f   : > { %v1181_v39 = vpop.f32.mrf.mxu0 }
 0x160   : > { %v1196_v41 = vadd.f32 %v1181_v39, %v1117_v36  ;;  %v1370_v31 = vunpack.c.l.b16 %v1229_v44 }
 0x162   : > { %v1210_v59 = vadd.f32 %v2131_v11, %v1196_v41 }
 0x164   : > { %v1220_v45 = vmax.f32 %v1210_v59, 0.0 }
 0x166   : > { %v1230_v50 = vpack.c.bf16 %v1220_v45, %v1220_v45 }
 0x167   : > { %v1184_v46 = vpop.f32.mrf.mxu0 }
 0x168   : > { %v1371_v54 = vunpack.c.l.b16 %v1230_v50  ;;  %v1197_v56 = vadd.f32 %v1184_v46, %v1118_v48 }
 0x16a   : > { %v1211_v60 = vadd.f32 %v2131_v11, %v1197_v56  ;;  %v1372_v61 = vpack.c.b16 %v1371_v54, %v1370_v31 }
 0x16c   : > { %v1221_v63 = vmax.f32 %v1211_v60, 0.0  ;;  %v1373_v0 = vrot.slane %v1372_v61, 1 }
 0x16e   : > { %v1231_v3 = vpack.c.bf16 %v1221_v63, %v1221_v63  ;;  %v1375_v4 = vsel %vm1244_vm8, %v1373_v0, 0 }
 0x16f   : > { %v1186_v27 = vpop.f32.mrf.mxu0  ;;  %1384 = vmatpush.bf16.msra.mxu3 %v1375_v4 }
 0x170   : > { %v1397_v6 = vunpack.c.l.b16 %v1231_v3  ;;  %v1198_v7 = vadd.f32 %v1186_v27, %v1119_v1 }
 0x172   : > { %v1212_v8 = vadd.f32 %v2131_v11, %v1198_v7  ;;  %v1398_v10 = vpack.c.b16 %v1397_v6, %v1371_v54  ;;  %1699 = vmatmul.msk.bf16.vlgmr.msra.gmra.mxu3 %vm1240_vm9, %v2139_v12 }
 0x174   : > { %v1222_v2 = vmax.f32 %v1212_v8, 0.0  ;;  %v1399_v13 = vrot.slane %v1398_v10, 2 }
 0x176   : > { %v1232_v14 = vpack.c.bf16 %v1222_v2, %v1222_v2  ;;  %v1401_v15 = vsel %vm1244_vm8, %v1399_v13, 0 }
 0x177   : > { %1410 = vmatpush.bf16.msra.mxu1 %v1401_v15 }
 0x178   : > { %v1423_v16 = vunpack.c.l.b16 %v1232_v14 }
 0x17a   : > { %v1424_v17 = vpack.c.b16 %v1423_v16, %v1397_v6  ;;  %1702 = vmatmul.msk.bf16.vlgmr.msra.gmra.mxu1 %vm1240_vm9, %v2139_v12 }
 0x17c   : > { %v1425_v18 = vrot.slane %v1424_v17, 3 }
 0x17e   : > { %v1427_v19 = vsel %vm1244_vm8, %v1425_v18, 0 }
 0x17f   : > { %1436 = vmatpush.bf16.msra.mxu2 %v1427_v19 }
 0x182   : > { %1705 = vmatmul.msk.bf16.vlgmr.msra.gmra.mxu2 %vm1240_vm9, %v2139_v12 }
 0x1b1   : > { %v1257_v11 = vpop.f32.mrf.mxu1 }
 0x1b9   : > { %v1259_v20 = vpop.f32.mrf.mxu1 }
 0x1ba   : > { %v1739_v53 = vpack.c.bf16 %v1259_v20, %v1257_v11 }
 0x1bc   : > { %1740 = vst [vmem:[%s2182_s28] sm:$0xff] %v1739_v53  }
 0x1cd   : > { %v1284_v30 = vpop.f32.mrf.mxu2 }
 0x1d5   : > { %v1286_v12 = vpop.f32.mrf.mxu2  ;;  %v1310_v21 = vpop.f32.mrf.mxu3 }
 0x1d6   : > { %v1744_v22 = vpack.c.bf16 %v1286_v12, %v1284_v30 }
 0x1d7   : > { %v1336_v23 = vpop.f32.mrf.mxu1 }
 0x1d8   : > { %1784 = vst [vmem:[%s2182_s28 + $0x8] sm:$0xff] %v1744_v22  }
 0x1dd   : > { %v1312_v24 = vpop.f32.mrf.mxu3 }
 0x1de   : > { %v1749_v25 = vpack.c.bf16 %v1312_v24, %v1310_v21 }
 0x1df   : > { %v1358_v26 = vpop.f32.mrf.mxu2  ;;  %v1338_v28 = vpop.f32.mrf.mxu1 }
 0x1e0   : > { %1785 = vst [vmem:[%s2182_s28 + $0x10] sm:$0xff] %v1749_v25   ;;  %v1754_v5 = vpack.c.bf16 %v1338_v28, %v1336_v23 }
 0x1e2   : > { %1786 = vst [vmem:[%s2182_s28 + $0x18] sm:$0xff] %v1754_v5  }
 0x1e7   : > { %v1360_v47 = vpop.f32.mrf.mxu2 }
 0x1e8   : > { %v1759_v29 = vpack.c.bf16 %v1360_v47, %v1358_v26 }
 0x1ea   : > { %1787 = vst [vmem:[%s2182_s28 + $0x20] sm:$0xff] %v1759_v29  }
 0x1f5   : > { %v1386_v32 = vpop.f32.mrf.mxu3 }
 0x1f7   : > { %v1412_v33 = vpop.f32.mrf.mxu1 }
 0x1fd   : > { %v1388_v55 = vpop.f32.mrf.mxu3 }
 0x1fe   : > { %v1764_v52 = vpack.c.bf16 %v1388_v55, %v1386_v32 }
 0x1ff   : > { %v1414_v34 = vpop.f32.mrf.mxu1 }
 0x200   : > { %1788 = vst [vmem:[%s2182_s28 + $0x28] sm:$0xff] %v1764_v52   ;;  %v1769_v35 = vpack.c.bf16 %v1414_v34, %v1412_v33 }
 0x202   : > { %1789 = vst [vmem:[%s2182_s28 + $0x30] sm:$0xff] %v1769_v35  }
 0x205   : > { %v1438_v49 = vpop.f32.mrf.mxu2 }
 0x20d   : > { %v1440_v36 = vpop.f32.mrf.mxu2 }
 0x20e   : > { %v1774_v37 = vpack.c.bf16 %v1440_v36, %v1438_v49 }
 0x210   : > { %1790 = vst [vmem:[%s2182_s28 + $0x38] sm:$0xff] %v1774_v37  }
 0x211 PF: > { %s14_s17 = sadd.s32 1, %s1841_s17   ;;  %s2206_s15 = smov %s1837_s16 }
 0x212   : > { %p11_p6 = scmp.ge.s32.totalorder %s14_s17, 4   ;;  %s2207_s16 = smov %s2209_s18 }
 0x214   :  { %13 = sbr.rel (!%p11_p6) target bundleno = 2 (0x2), region = 79 }

// kernel: bottleneck_enhancer_forward.15
= control target key start
LH: loop header
LB: loop body
LE: loop exit
PB: predicated region body
PF: predicated region fallthrough
CT: control target
= control target key end

     0   :  { %s1006_s12 = smov 0   ;;  %s1008_s13 = smov 0   ;;  %s1098_s0 = inlined_call_operand.vmem [shape: bf16[8,16,128], index: 0, kind: input, shape index: {}, may-alias: {0,1,2}]   ;;  %s1099_s1 = inlined_call_operand.vmem [shape: bf16[8,16,128], index: 1, kind: input, shape index: {}, may-alias: {0,1,2}]   ;;  %s1100_s2 = inlined_call_operand.vmem [shape: bf16[8,16,128], index: 2, kind: input, shape index: {}, may-alias: {0,1,2}]   ;;  %s1101_s3 = inlined_call_operand.vmem [shape: bf16[32,16,128], index: 3, kind: output, shape index: {}]  }
   0x1   :  { %s1010_s14 = smov 0  }
   0x2 LB: > { %s32_s15 = sadd.s32 1, %s980_s13  ;;  %p722_p0 = scmp.ge.s32.totalorder %s984_s14, 1  ;;  %s984_s14 = sphi %s1010_s14, %s13_s14   ;;  %s980_s13 = sphi %s1008_s13, %s1104_s13   ;;  %s976_s12 = sphi %s1006_s12, %s1103_s12  }
   0x3   : > { %p34_p1 = scmp.ge.s32.totalorder %s32_s15, 2  ;;  %p249_p2 = scmp.lt.s32.totalorder %s984_s14, 3 }
   0x5   : > { %s1106_s15 = smov (%p34_p1, %s32_s15), 0  ;;  %p250_p3 = pnand %p722_p0, %p249_p2 }
   0x6   : > { %s1024_s16 = sshll.u32 (!%p250_p3), %s976_s12, 2  ;;  %s732_s17 = sshll.u32 (!%p250_p3), %s976_s12, 4 }
   0x7   : > { %253 = sbr.rel (%p250_p3) target bundleno = 46 (0x2e), region = 32  ;;  %p317_p4 = scmp.lt.s32.totalorder (!%p250_p3), %s1024_s16, 7 }
   0x8   : > { %p365_p5 = scmp.lt.s32.totalorder (!%p250_p3), %s732_s17, 31  ;;  %s348_s18 = sadd.s32 (!%p250_p3), 3, %s1024_s16 }
   0x9   : > { %p1041_p6 = scmp.lt.s32.totalorder (!%p250_p3), %s348_s18, 7 }
   0xc   : > { %s1108_s16 = smov (!%p317_p4, %s1024_s16), 7  ;;  %s1110_s17 = smov (!%p365_p5, %s732_s17), 31 }
   0xd   : > { %s783_s19 = sshll.u32 %s1108_s16, 3  ;;  %s786_s27 = sshll.u32 %s1110_s17, 3 }
   0xe   : > { %s324_s22 = scalar_lea.vmem %s1098_s0, %s783_s19  ;;  %s1037_s25 = scalar_lea.vmem %s1099_s1, %s783_s19 }
   0xf   : > { %v788_v0 = vld [vmem:[%s324_s22] sm:$0xff]   ;;  %v915_v2 = vld [vmem:[%s1037_s25 + $0x8] sm:$0xff]   ;;  %v920_v7 = vld [vmem:[%s1037_s25 + $0x10] sm:$0xff]   ;;  %s1112_s18 = smov (!%p1041_p6, %s348_s18), 7  ;;  %s1058_s30 = scalar_lea.vmem %s1101_s3, %s786_s27 }
  0x10   : > { %v796_v1 = vld [vmem:[%s1037_s25] sm:$0xff]   ;;  %v789_v3 = vunpack.c.l.bf16 %v788_v0  ;;  %v790_v4 = vunpack.c.h.bf16 %v788_v0  ;;  %v801_v8 = vunpack.c.l.bf16 %v915_v2  ;;  %v802_v9 = vunpack.c.h.bf16 %v915_v2  ;;  %s785_s4 = sshll.u32 %s1112_s18, 3  ;;  %v927_v56 = vld [vmem:[%s1037_s25 + $0x18] sm:$0xff]  }
  0x11   : > { %v797_v5 = vunpack.c.l.bf16 %v796_v1  ;;  %v798_v6 = vunpack.c.h.bf16 %v796_v1  ;;  %v1046_v10 = vunpack.c.l.bf16 %v920_v7  ;;  %v1048_v11 = vunpack.c.h.bf16 %v920_v7  ;;  %s356_s7 = scalar_lea.vmem %s1100_s2, %s785_s4 }
  0x12   : > { %v392_v12 = vmul.f32 0.375, %v789_v3  ;;  %v393_v13 = vmul.f32 0.375, %v790_v4  ;;  %v402_v16 = vmul.f32 0.125, %v789_v3  ;;  %v403_v17 = vmul.f32 0.125, %v790_v4  ;;  %v792_v61 = vld [vmem:[%s356_s7] sm:$0xff]  }
  0x13   : > { %v394_v14 = vmul.f32 0.625, %v797_v5  ;;  %v395_v15 = vmul.f32 0.625, %v798_v6  ;;  %v404_v18 = vmul.f32 0.875, %v797_v5  ;;  %v405_v19 = vmul.f32 0.875, %v798_v6 }
  0x14   : > { %v413_v22 = vmul.f32 0.125, %v801_v8  ;;  %v414_v23 = vmul.f32 0.125, %v802_v9  ;;  %v422_v26 = vmul.f32 0.375, %v801_v8  ;;  %v423_v27 = vmul.f32 0.375, %v802_v9 }
  0x15   : > { %v396_v20 = vadd.f32 %v394_v14, %v392_v12  ;;  %v397_v21 = vadd.f32 %v395_v15, %v393_v13  ;;  %v406_v24 = vadd.f32 %v404_v18, %v402_v16  ;;  %v407_v25 = vadd.f32 %v405_v19, %v403_v17 }
  0x16   : > { %v415_v29 = vadd.f32 %v413_v22, %v404_v18  ;;  %v416_v30 = vadd.f32 %v414_v23, %v405_v19  ;;  %v444_v31 = vmul.f32 0.375, %v797_v5  ;;  %v424_v33 = vadd.f32 %v422_v26, %v394_v14 }
  0x17   : > { %v806_v28 = vpack.c.bf16 %v397_v21, %v396_v20  ;;  %v811_v32 = vpack.c.bf16 %v407_v25, %v406_v24  ;;  %v425_v34 = vadd.f32 %v423_v27, %v395_v15  ;;  %v445_v35 = vmul.f32 0.375, %v798_v6 }
  0x18   : > { %v816_v36 = vpack.c.bf16 %v416_v30, %v415_v29  ;;  %v446_v37 = vmul.f32 0.625, %v801_v8  ;;  %v447_v38 = vmul.f32 0.625, %v802_v9  ;;  %v455_v39 = vmul.f32 0.125, %v797_v5 }
  0x19   : > { %807 = vst [vmem:[%s1058_s30] sm:$0xff] %v806_v28   ;;  %v821_v40 = vpack.c.bf16 %v425_v34, %v424_v33  ;;  %v456_v41 = vmul.f32 0.125, %v798_v6  ;;  %v457_v42 = vmul.f32 0.875, %v801_v8  ;;  %v458_v43 = vmul.f32 0.875, %v802_v9 }
  0x1a   : > { %916 = vst [vmem:[%s1058_s30 + $0x8] sm:$0xff] %v811_v32   ;;  %v448_v44 = vadd.f32 %v446_v37, %v444_v31  ;;  %v449_v45 = vadd.f32 %v447_v38, %v445_v35  ;;  %v466_v46 = vmul.f32 0.125, %v1046_v10  ;;  %v467_v47 = vmul.f32 0.125, %v1048_v11 }
  0x1b   : > { %917 = vst [vmem:[%s1058_s30 + $0x10] sm:$0xff] %v816_v36   ;;  %v459_v48 = vadd.f32 %v457_v42, %v455_v39  ;;  %v460_v49 = vadd.f32 %v458_v43, %v456_v41  ;;  %v475_v50 = vmul.f32 0.375, %v1046_v10  ;;  %v476_v51 = vmul.f32 0.375, %v1048_v11 }
  0x1c   : > { %918 = vst [vmem:[%s1058_s30 + $0x18] sm:$0xff] %v821_v40   ;;  %v838_v52 = vpack.c.bf16 %v449_v45, %v448_v44  ;;  %v468_v53 = vadd.f32 %v466_v46, %v457_v42  ;;  %v469_v54 = vadd.f32 %v467_v47, %v458_v43  ;;  %v499_v55 = vmul.f32 0.625, %v1046_v10 }
  0x1d   : > { %v843_v57 = vpack.c.bf16 %v460_v49, %v459_v48  ;;  %v477_v58 = vadd.f32 %v475_v50, %v446_v37  ;;  %v478_v59 = vadd.f32 %v476_v51, %v447_v38  ;;  %v500_v60 = vmul.f32 0.625, %v1048_v11 }
  0x1e   : > { %921 = vst [vmem:[%s1058_s30 + $0x20] sm:$0xff] %v838_v52   ;;  %v848_v62 = vpack.c.bf16 %v469_v54, %v468_v53  ;;  %v501_v63 = vadd.f32 %v499_v55, %v422_v26  ;;  %v510_v0 = vmul.f32 0.875, %v1046_v10  ;;  %v511_v1 = vmul.f32 0.875, %v1048_v11 }
  0x1f   : > { %922 = vst [vmem:[%s1058_s30 + $0x28] sm:$0xff] %v843_v57   ;;  %v853_v2 = vpack.c.bf16 %v478_v59, %v477_v58  ;;  %v502_v3 = vadd.f32 %v500_v60, %v423_v27  ;;  %v865_v4 = vunpack.c.l.bf16 %v927_v56  ;;  %v866_v5 = vunpack.c.h.bf16 %v927_v56 }
  0x20   : > { %923 = vst [vmem:[%s1058_s30 + $0x30] sm:$0xff] %v848_v62   ;;  %v512_v6 = vadd.f32 %v510_v0, %v413_v22  ;;  %v513_v7 = vadd.f32 %v511_v1, %v414_v23  ;;  %v793_v8 = vunpack.c.l.bf16 %v792_v61  ;;  %v794_v9 = vunpack.c.h.bf16 %v792_v61 }
  0x21   : > { %924 = vst [vmem:[%s1058_s30 + $0x38] sm:$0xff] %v853_v2   ;;  %v870_v12 = vpack.c.bf16 %v502_v3, %v501_v63  ;;  %v519_v13 = vmul.f32 0.125, %v865_v4  ;;  %v520_v14 = vmul.f32 0.125, %v866_v5  ;;  %v528_v15 = vmul.f32 0.375, %v865_v4 }
  0x22   : > { %v875_v10 = vpack.c.bf16 %v513_v7, %v512_v6  ;;  %v529_v16 = vmul.f32 0.375, %v866_v5  ;;  %v547_v11 = vmul.f32 0.625, %v865_v4  ;;  %v548_v17 = vmul.f32 0.625, %v866_v5 }
  0x23   : > { %928 = vst [vmem:[%s1058_s30 + $0x40] sm:$0xff] %v870_v12   ;;  %v521_v18 = vadd.f32 %v519_v13, %v510_v0  ;;  %v522_v19 = vadd.f32 %v520_v14, %v511_v1  ;;  %v530_v20 = vadd.f32 %v528_v15, %v499_v55  ;;  %v558_v21 = vmul.f32 0.875, %v865_v4 }
  0x24   : > { %929 = vst [vmem:[%s1058_s30 + $0x48] sm:$0xff] %v875_v10   ;;  %v531_v22 = vadd.f32 %v529_v16, %v500_v60  ;;  %v549_v23 = vadd.f32 %v547_v11, %v475_v50  ;;  %v550_v24 = vadd.f32 %v548_v17, %v476_v51  ;;  %v559_v25 = vmul.f32 0.875, %v866_v5 }
  0x25   : > { %v880_v26 = vpack.c.bf16 %v522_v19, %v521_v18  ;;  %v560_v27 = vadd.f32 %v558_v21, %v466_v46  ;;  %v567_v28 = vmul.f32 0.125, %v793_v8  ;;  %v568_v29 = vmul.f32 0.125, %v794_v9 }
  0x26   : > { %v885_v30 = vpack.c.bf16 %v531_v22, %v530_v20  ;;  %v898_v31 = vpack.c.bf16 %v550_v24, %v549_v23  ;;  %v561_v32 = vadd.f32 %v559_v25, %v467_v47  ;;  %v576_v33 = vmul.f32 0.375, %v793_v8 }
  0x27   : > { %930 = vst [vmem:[%s1058_s30 + $0x50] sm:$0xff] %v880_v26   ;;  %v569_v34 = vadd.f32 %v567_v28, %v558_v21  ;;  %v570_v35 = vadd.f32 %v568_v29, %v559_v25  ;;  %v577_v36 = vmul.f32 0.375, %v794_v9 }
  0x28   : > { %931 = vst [vmem:[%s1058_s30 + $0x58] sm:$0xff] %v885_v30   ;;  %v903_v37 = vpack.c.bf16 %v561_v32, %v560_v27  ;;  %v578_v38 = vadd.f32 %v576_v33, %v547_v11 }
  0x29   : > { %934 = vst [vmem:[%s1058_s30 + $0x60] sm:$0xff] %v898_v31   ;;  %v908_v39 = vpack.c.bf16 %v570_v35, %v569_v34  ;;  %v579_v40 = vadd.f32 %v577_v36, %v548_v17 }
  0x2a   : > { %935 = vst [vmem:[%s1058_s30 + $0x68] sm:$0xff] %v903_v37  }
  0x2b   : > { %936 = vst [vmem:[%s1058_s30 + $0x70] sm:$0xff] %v908_v39   ;;  %v913_v41 = vpack.c.bf16 %v579_v40, %v578_v38 }
  0x2d   : > { %937 = vst [vmem:[%s1058_s30 + $0x78] sm:$0xff] %v913_v41  }
  0x2e PF: > { %s13_s14 = sadd.s32 1, %s984_s14   ;;  %s1103_s12 = smov %s980_s13 }
  0x2f   : > { %p10_p7 = scmp.ge.s32.totalorder %s13_s14, 4   ;;  %s1104_s13 = smov %s1106_s15 }
  0x31   :  { %12 = sbr.rel (!%p10_p7) target bundleno = 2 (0x2), region = 86 }

// kernel: bottleneck_enhancer_forward.13
= control target key start
LH: loop header
LB: loop body
LE: loop exit
PB: predicated region body
PF: predicated region fallthrough
CT: control target
= control target key end

     0   :  { %s938_s12 = smov 0   ;;  %s940_s13 = smov 0   ;;  %s1056_s0 = inlined_call_operand.vmem [shape: bf16[4,16,128], index: 0, kind: input, shape index: {}, may-alias: {0,1,2}]   ;;  %s1057_s1 = inlined_call_operand.vmem [shape: bf16[4,16,128], index: 1, kind: input, shape index: {}, may-alias: {0,1,2}]   ;;  %s1058_s2 = inlined_call_operand.vmem [shape: bf16[4,16,128], index: 2, kind: input, shape index: {}, may-alias: {0,1,2}]   ;;  %s1059_s3 = inlined_call_operand.vmem [shape: bf16[32,16,128], index: 3, kind: output, shape index: {}]  }
   0x1   :  { %s942_s14 = smov 0  }
   0x2 LB: > { %s32_s15 = sadd.s32 1, %s912_s13  ;;  %p696_p0 = scmp.ge.s32.totalorder %s916_s14, 1  ;;  %s916_s14 = sphi %s942_s14, %s13_s14   ;;  %s912_s13 = sphi %s940_s13, %s1062_s13   ;;  %s908_s12 = sphi %s938_s12, %s1061_s12  }
   0x3   : > { %p34_p1 = scmp.ge.s32.totalorder %s32_s15, 2  ;;  %p249_p2 = scmp.lt.s32.totalorder %s916_s14, 3 }
   0x5   : > { %s1064_s15 = smov (%p34_p1, %s32_s15), 0  ;;  %p250_p3 = pnand %p696_p0, %p249_p2 }
   0x6   : > { %s956_s16 = sshll.u32 (!%p250_p3), %s908_s12, 1  ;;  %s706_s17 = sshll.u32 (!%p250_p3), %s908_s12, 4 }
   0x7   : > { %253 = sbr.rel (%p250_p3) target bundleno = 49 (0x31), region = 32  ;;  %p317_p4 = scmp.lt.s32.totalorder (!%p250_p3), %s956_s16, 3 }
   0x8   : > { %p365_p5 = scmp.lt.s32.totalorder (!%p250_p3), %s706_s17, 31  ;;  %s348_s26 = sadd.s32 (!%p250_p3), 1, %s956_s16 }
   0x9   : > { %p984_p6 = scmp.lt.s32.totalorder (!%p250_p3), %s348_s26, 3 }
   0xc   : > { %s318_s18 = scalar_select %p317_p4, %s956_s16, 3 }
   0xd   : > { %s1066_s17 = smov (!%p365_p5, %s706_s17), 31  ;;  %s1068_s26 = smov (!%p984_p6, %s348_s26), 3 }
   0xe   : > { %s745_s19 = sshll.u32 %s318_s18, 3  ;;  %s748_s27 = sshll.u32 %s1066_s17, 3 }
   0xf   : > { %s324_s22 = scalar_lea.vmem %s1056_s0, %s745_s19  ;;  %s340_s25 = scalar_lea.vmem %s1057_s1, %s745_s19 }
  0x10   : > { %v750_v0 = vld [vmem:[%s324_s22] sm:$0xff]   ;;  %v853_v2 = vld [vmem:[%s340_s25 + $0x8] sm:$0xff]   ;;  %s991_s4 = scalar_lea.vmem %s1059_s3, %s748_s27  ;;  %s747_s5 = sshll.u32 %s1068_s26, 3 }
  0x11   : > { %v758_v1 = vld [vmem:[%s340_s25] sm:$0xff]   ;;  %v751_v3 = vunpack.c.l.bf16 %v750_v0  ;;  %v752_v4 = vunpack.c.h.bf16 %v750_v0  ;;  %v973_v7 = vunpack.c.l.bf16 %v853_v2  ;;  %v975_v8 = vunpack.c.h.bf16 %v853_v2  ;;  %s356_s8 = scalar_lea.vmem %s1058_s2, %s747_s5 }
  0x12   : > { %v968_v5 = vunpack.c.l.bf16 %v758_v1  ;;  %v970_v6 = vunpack.c.h.bf16 %v758_v1 }
  0x13   : > { %v392_v9 = vmul.f32 0.4375, %v751_v3  ;;  %v393_v10 = vmul.f32 0.4375, %v752_v4  ;;  %v402_v13 = vmul.f32 0.3125, %v751_v3  ;;  %v403_v14 = vmul.f32 0.3125, %v752_v4 }
  0x14   : > { %v394_v11 = vmul.f32 0.5625, %v968_v5  ;;  %v395_v12 = vmul.f32 0.5625, %v970_v6  ;;  %v404_v15 = vmul.f32 0.6875, %v968_v5  ;;  %v405_v16 = vmul.f32 0.6875, %v970_v6 }
  0x15   : > { %v413_v19 = vmul.f32 0.1875, %v751_v3  ;;  %v414_v20 = vmul.f32 0.1875, %v752_v4  ;;  %v415_v23 = vmul.f32 0.8125, %v968_v5  ;;  %v416_v24 = vmul.f32 0.8125, %v970_v6 }
  0x16   : > { %v396_v17 = vadd.f32 %v394_v11, %v392_v9  ;;  %v397_v18 = vadd.f32 %v395_v12, %v393_v10  ;;  %v406_v21 = vadd.f32 %v404_v15, %v402_v13  ;;  %v407_v22 = vadd.f32 %v405_v16, %v403_v14  ;;  %v754_v13 = vld [vmem:[%s356_s8] sm:$0xff]  }
  0x17   : > { %v424_v26 = vmul.f32 0.0625, %v751_v3  ;;  %v425_v27 = vmul.f32 0.0625, %v752_v4  ;;  %v426_v28 = vmul.f32 0.9375, %v968_v5  ;;  %v417_v30 = vadd.f32 %v415_v23, %v413_v19 }
  0x18   : > { %v768_v25 = vpack.c.bf16 %v397_v18, %v396_v17  ;;  %v773_v29 = vpack.c.bf16 %v407_v22, %v406_v21  ;;  %v418_v31 = vadd.f32 %v416_v24, %v414_v20  ;;  %v427_v32 = vmul.f32 0.9375, %v970_v6 }
  0x19   : > { %v428_v33 = vadd.f32 %v426_v28, %v424_v26  ;;  %v435_v34 = vmul.f32 0.0625, %v973_v7  ;;  %v436_v35 = vmul.f32 0.0625, %v975_v8  ;;  %v444_v36 = vmul.f32 0.1875, %v973_v7 }
  0x1a   : > { %769 = vst [vmem:[%s991_s4] sm:$0xff] %v768_v25   ;;  %v778_v37 = vpack.c.bf16 %v418_v31, %v417_v30  ;;  %v429_v38 = vadd.f32 %v427_v32, %v425_v27  ;;  %v445_v39 = vmul.f32 0.1875, %v975_v8  ;;  %v453_v40 = vmul.f32 0.3125, %v973_v7 }
  0x1b   : > { %854 = vst [vmem:[%s991_s4 + $0x8] sm:$0xff] %v773_v29   ;;  %v437_v41 = vadd.f32 %v435_v34, %v426_v28  ;;  %v438_v42 = vadd.f32 %v436_v35, %v427_v32  ;;  %v446_v43 = vadd.f32 %v444_v36, %v415_v23  ;;  %v454_v44 = vmul.f32 0.3125, %v975_v8 }
  0x1c   : > { %855 = vst [vmem:[%s991_s4 + $0x10] sm:$0xff] %v778_v37   ;;  %v783_v45 = vpack.c.bf16 %v429_v38, %v428_v33  ;;  %v447_v46 = vadd.f32 %v445_v39, %v416_v24  ;;  %v455_v47 = vadd.f32 %v453_v40, %v404_v15  ;;  %v462_v48 = vmul.f32 0.4375, %v973_v7 }
  0x1d   : > { %v788_v49 = vpack.c.bf16 %v438_v42, %v437_v41  ;;  %v456_v50 = vadd.f32 %v454_v44, %v405_v16  ;;  %v463_v51 = vmul.f32 0.4375, %v975_v8  ;;  %v479_v52 = vmul.f32 0.4375, %v968_v5 }
  0x1e   : > { %856 = vst [vmem:[%s991_s4 + $0x18] sm:$0xff] %v783_v45   ;;  %v793_v53 = vpack.c.bf16 %v447_v46, %v446_v43  ;;  %v464_v54 = vadd.f32 %v462_v48, %v394_v11  ;;  %v480_v55 = vmul.f32 0.4375, %v970_v6  ;;  %v481_v56 = vmul.f32 0.5625, %v973_v7 }
  0x1f   : > { %857 = vst [vmem:[%s991_s4 + $0x20] sm:$0xff] %v788_v49   ;;  %v798_v57 = vpack.c.bf16 %v456_v50, %v455_v47  ;;  %v465_v58 = vadd.f32 %v463_v51, %v395_v12  ;;  %v482_v59 = vmul.f32 0.5625, %v975_v8  ;;  %v490_v60 = vmul.f32 0.3125, %v968_v5 }
  0x20   : > { %858 = vst [vmem:[%s991_s4 + $0x28] sm:$0xff] %v793_v53   ;;  %v483_v61 = vadd.f32 %v481_v56, %v479_v52  ;;  %v491_v62 = vmul.f32 0.3125, %v970_v6  ;;  %v492_v63 = vmul.f32 0.6875, %v973_v7  ;;  %v493_v0 = vmul.f32 0.6875, %v975_v8 }
  0x21   : > { %859 = vst [vmem:[%s991_s4 + $0x30] sm:$0xff] %v798_v57   ;;  %v803_v1 = vpack.c.bf16 %v465_v58, %v464_v54  ;;  %v484_v2 = vadd.f32 %v482_v59, %v480_v55  ;;  %v501_v3 = vmul.f32 0.1875, %v968_v5  ;;  %v502_v4 = vmul.f32 0.1875, %v970_v6 }
  0x22   : > { %v494_v9 = vadd.f32 %v492_v63, %v490_v60  ;;  %v495_v10 = vadd.f32 %v493_v0, %v491_v62  ;;  %v503_v11 = vmul.f32 0.8125, %v973_v7  ;;  %v504_v12 = vmul.f32 0.8125, %v975_v8 }
  0x23   : > { %860 = vst [vmem:[%s991_s4 + $0x38] sm:$0xff] %v803_v1   ;;  %v816_v14 = vpack.c.bf16 %v484_v2, %v483_v61  ;;  %v512_v15 = vmul.f32 0.0625, %v968_v5  ;;  %v513_v16 = vmul.f32 0.0625, %v970_v6  ;;  %v514_v17 = vmul.f32 0.9375, %v973_v7 }
  0x24   : > { %v821_v18 = vpack.c.bf16 %v495_v10, %v494_v9  ;;  %v505_v19 = vadd.f32 %v503_v11, %v501_v3  ;;  %v506_v20 = vadd.f32 %v504_v12, %v502_v4  ;;  %v515_v21 = vmul.f32 0.9375, %v975_v8 }
  0x25   : > { %862 = vst [vmem:[%s991_s4 + $0x40] sm:$0xff] %v816_v14   ;;  %v516_v22 = vadd.f32 %v514_v17, %v512_v15  ;;  %v755_v23 = vunpack.c.l.bf16 %v754_v13  ;;  %v756_v24 = vunpack.c.h.bf16 %v754_v13 }
  0x26   : > { %863 = vst [vmem:[%s991_s4 + $0x48] sm:$0xff] %v821_v18   ;;  %v826_v25 = vpack.c.bf16 %v506_v20, %v505_v19  ;;  %v517_v26 = vadd.f32 %v515_v21, %v513_v16 }
  0x27   : > { %v523_v27 = vmul.f32 0.0625, %v755_v23  ;;  %v524_v5 = vmul.f32 0.0625, %v756_v24  ;;  %v532_v28 = vmul.f32 0.1875, %v755_v23  ;;  %v533_v6 = vmul.f32 0.1875, %v756_v24 }
  0x28   : > { %864 = vst [vmem:[%s991_s4 + $0x50] sm:$0xff] %v826_v25   ;;  %v831_v7 = vpack.c.bf16 %v517_v26, %v516_v22  ;;  %v541_v29 = vmul.f32 0.3125, %v755_v23  ;;  %v542_v30 = vmul.f32 0.3125, %v756_v24  ;;  %v550_v31 = vmul.f32 0.4375, %v755_v23 }
  0x29   : > { %v525_v8 = vadd.f32 %v523_v27, %v514_v17  ;;  %v526_v32 = vadd.f32 %v524_v5, %v515_v21  ;;  %v534_v33 = vadd.f32 %v532_v28, %v503_v11  ;;  %v535_v34 = vadd.f32 %v533_v6, %v504_v12 }
  0x2a   : > { %865 = vst [vmem:[%s991_s4 + $0x58] sm:$0xff] %v831_v7   ;;  %v543_v35 = vadd.f32 %v541_v29, %v492_v63  ;;  %v544_v36 = vadd.f32 %v542_v30, %v493_v0  ;;  %v551_v37 = vmul.f32 0.4375, %v756_v24  ;;  %v552_v38 = vadd.f32 %v550_v31, %v481_v56 }
  0x2b   : > { %v836_v39 = vpack.c.bf16 %v526_v32, %v525_v8  ;;  %v841_v40 = vpack.c.bf16 %v535_v34, %v534_v33 }
  0x2c   : > { %v846_v41 = vpack.c.bf16 %v544_v36, %v543_v35  ;;  %v553_v42 = vadd.f32 %v551_v37, %v482_v59 }
  0x2d   : > { %866 = vst [vmem:[%s991_s4 + $0x60] sm:$0xff] %v836_v39  }
  0x2e   : > { %867 = vst [vmem:[%s991_s4 + $0x68] sm:$0xff] %v841_v40   ;;  %v851_v43 = vpack.c.bf16 %v553_v42, %v552_v38 }
  0x2f   : > { %868 = vst [vmem:[%s991_s4 + $0x70] sm:$0xff] %v846_v41  }
  0x30   : > { %869 = vst [vmem:[%s991_s4 + $0x78] sm:$0xff] %v851_v43  }
  0x31 PF: > { %s13_s14 = sadd.s32 1, %s916_s14   ;;  %s1061_s12 = smov %s912_s13 }
  0x32   : > { %p10_p7 = scmp.ge.s32.totalorder %s13_s14, 4   ;;  %s1062_s13 = smov %s1064_s15 }
  0x34   :  { %12 = sbr.rel (!%p10_p7) target bundleno = 2 (0x2), region = 84 }

</bundles_post_ra>
